<compile_context>
chip_gen: v5e
topology: v5e:2x2
jax: 0.10.0
libtpu: 0.0.40
codegen_flags: <defaults>
</compile_context>

<pallas_src>
import numpy as np
import jax
import jax.numpy as jnp
from jax.experimental import pallas as pl
from jax.experimental.pallas import tpu as pltpu


_VMEM_LIMIT = 32 * 1024 * 1024   # safe on v5e/v6e/v7x; all blocks are << this


# ---------------------------------------------------------------------------
# Pallas kernels
# ---------------------------------------------------------------------------

def conv_prelu_pool_kernel(p_ref, w_ref, b_ref, a_ref, o_ref):
    """Fused conv-as-matmul + bias + PReLU + 2x2/stride-2 max-pool.

    p_ref : (4, TM, K) bf16 -- im2col patches, one slab per pooling-window tap
    w_ref : (K, N)     bf16 -- conv weights as a matrix, rows ordered (dh,dw,c)
    b_ref : (1, N)     f32
    a_ref : (1,)       f32 in SMEM -- shared PReLU slope
    o_ref : (TM, N)    bf16 -- pooled output rows (b, ph, pw)
    """
    alpha = a_ref[0]
    w = w_ref[...]
    b = b_ref[...]

    def tap(t):
        y = jnp.dot(p_ref[t], w, preferred_element_type=jnp.float32) + b
        return jnp.where(y >= 0.0, y, alpha * y)           # PReLU before pool

    pooled = jnp.maximum(jnp.maximum(tap(0), tap(1)),
                         jnp.maximum(tap(2), tap(3)))
    o_ref[...] = pooled.astype(o_ref.dtype)


def fc_head_kernel(x_ref, w1_ref, b1_ref, w2_ref, b2_ref, w3_ref, b3_ref,
                   a_ref, o_ref):
    """fc1+PReLU -> fc2+PReLU -> fc3 -> L2-normalize, all fused in one kernel."""
    a3 = a_ref[0]
    a4 = a_ref[1]
    h = jnp.dot(x_ref[...], w1_ref[...], preferred_element_type=jnp.float32)
    h = h + b1_ref[...]
    h = jnp.where(h >= 0.0, h, a3 * h).astype(jnp.bfloat16)
    h = jnp.dot(h, w2_ref[...], preferred_element_type=jnp.float32)
    h = h + b2_ref[...]
    h = jnp.where(h >= 0.0, h, a4 * h).astype(jnp.bfloat16)
    y = jnp.dot(h, w3_ref[...], preferred_element_type=jnp.float32)
    y = y + b3_ref[...]
    # F.normalize(p=2, dim=1, eps=1e-12): x / max(||x||, eps)
    ssq = jnp.sum(y * y, axis=1, keepdims=True)
    o_ref[...] = y * jax.lax.rsqrt(jnp.maximum(ssq, 1e-24))


# ---------------------------------------------------------------------------
# pallas_call wrappers
# ---------------------------------------------------------------------------

def _pick_row_tile(m, cap):
    """Largest row tile t with t | m, t <= cap, t % 16 == 0 (or t == m)."""
    if m <= cap:
        return m
    t = (cap // 16) * 16
    while t >= 16:
        if m % t == 0:
            return t
        t -= 16
    return m   # fallback: single full block (still a valid BlockSpec)


def conv_prelu_pool(p_taps, w, b, alpha, row_cap):
    """p_taps: (4, M, K) bf16; w: (K, N) bf16; b: (1, N) f32; alpha: (1,) f32."""
    _, M, K = p_taps.shape
    N = w.shape[1]
    tm = _pick_row_tile(M, row_cap)
    return pl.pallas_call(
        conv_prelu_pool_kernel,
        out_shape=jax.ShapeDtypeStruct((M, N), jnp.bfloat16),
        grid=(M // tm,),
        in_specs=[
            pl.BlockSpec((4, tm, K), lambda i: (0, i, 0)),
            pl.BlockSpec((K, N), lambda i: (0, 0)),
            pl.BlockSpec((1, N), lambda i: (0, 0)),
            pl.BlockSpec(memory_space=pltpu.MemorySpace.SMEM),
        ],
        out_specs=pl.BlockSpec((tm, N), lambda i: (i, 0)),
        compiler_params=pltpu.CompilerParams(
            dimension_semantics=("parallel",),
            vmem_limit_bytes=_VMEM_LIMIT),
    )(p_taps, w, b, alpha)


def fc_head(x, params, row_cap=512):
    """x: (M, 1024) bf16 -> (M, 64) f32 L2-normalized embedding."""
    M, K = x.shape
    w1, w2, w3 = params["fc1_wm"], params["fc2_wm"], params["fc3_wm"]
    b1, b2, b3 = params["fc1_b"], params["fc2_b"], params["fc3_b"]
    tm = _pick_row_tile(M, row_cap)

    def full(arr):
        return pl.BlockSpec(arr.shape, lambda i, _nd=arr.ndim: (0,) * _nd)

    return pl.pallas_call(
        fc_head_kernel,
        out_shape=jax.ShapeDtypeStruct((M, w3.shape[1]), jnp.float32),
        grid=(M // tm,),
        in_specs=[
            pl.BlockSpec((tm, K), lambda i: (i, 0)),
            full(w1), full(b1),
            full(w2), full(b2),
            full(w3), full(b3),
            pl.BlockSpec(memory_space=pltpu.MemorySpace.SMEM),
        ],
        out_specs=pl.BlockSpec((tm, w3.shape[1]), lambda i: (i, 0)),
        compiler_params=pltpu.CompilerParams(
            dimension_semantics=("parallel",),
            vmem_limit_bytes=_VMEM_LIMIT),
    )(x, w1, b1, w2, b2, w3, b3, params["a_fc"])


# ---------------------------------------------------------------------------
# Glue: pool-tap im2col (pure data rearrangement, stays in XLA)
# ---------------------------------------------------------------------------

def im2col_pool_taps(x, kh, kw):
    """x: (B, H, W, C) -> (4, B*PH*PW, kh*kw*C) plus (PH, PW).

    Tap t of pooled position (b, ph, pw) holds the im2col patch of conv output
    position (2*ph + th, 2*pw + tw); column order is (dh, dw, c), matching the
    OIHW -> (KH, KW, C, O) weight reshape.
    """
    B, H, W, C = x.shape
    OH, OW = H - kh + 1, W - kw + 1
    cols = []
    for dh in range(kh):
        for dw in range(kw):
            cols.append(x[:, dh:dh + OH, dw:dw + OW, :])
    p = jnp.concatenate(cols, axis=-1)                 # (B, OH, OW, kh*kw*C)
    PH, PW = OH // 2, OW // 2
    taps = [p[:, th::2, tw::2, :].reshape(B * PH * PW, kh * kw * C)
            for th in range(2) for tw in range(2)]
    return jnp.stack(taps, axis=0), (PH, PW)


def conv_weight_to_matrix(w_oihw):
    """PyTorch Conv2d weight (O, C, KH, KW) -> (KH*KW*C, O), matching im2col."""
    O, C, KH, KW = w_oihw.shape
    return jnp.transpose(w_oihw, (2, 3, 1, 0)).reshape(KH * KW * C, O)


# ---------------------------------------------------------------------------
# Parameter init (one-time; all layout work done here, off the hot path)
# ---------------------------------------------------------------------------

def init_params(key):
    ks = jax.random.split(key, 10)

    def u(k, shape, fan_in):
        bound = float(1.0 / np.sqrt(fan_in))
        return jax.random.uniform(k, shape, jnp.float32, -bound, bound)

    conv1_w = u(ks[0], (32, 1, 5, 5), 25)      # OIHW
    conv1_b = u(ks[1], (32,), 25)
    conv2_w = u(ks[2], (64, 32, 5, 5), 800)
    conv2_b = u(ks[3], (64,), 800)
    fc1_w = u(ks[4], (256, 1024), 1024)        # (out, in), like nn.Linear
    fc1_b = u(ks[5], (256,), 1024)
    fc2_w = u(ks[6], (128, 256), 256)
    fc2_b = u(ks[7], (128,), 256)
    fc3_w = u(ks[8], (64, 128), 128)
    fc3_b = u(ks[9], (64,), 128)

    # Fold the NHWC(h,w,c) -> NCHW(c,h,w) flatten order into fc1's weight rows
    # so the forward pass can flatten the pooled conv2 output without transpose.
    j = np.arange(64 * 4 * 4)
    h, w, c = j // (4 * 64), (j // 64) % 4, j % 64
    perm = c * 16 + h * 4 + w                  # NHWC position j -> NCHW index
    fc1_wm = fc1_w.T[perm, :]                  # (1024, 256), rows in NHWC order

    return {
        # conv stage 1
        "w1m": conv_weight_to_matrix(conv1_w).astype(jnp.bfloat16),   # (25, 32)
        "b1": conv1_b.reshape(1, 32),
        "a1": jnp.full((1,), 0.25, jnp.float32),
        # conv stage 2
        "w2m": conv_weight_to_matrix(conv2_w).astype(jnp.bfloat16),   # (800, 64)
        "b2": conv2_b.reshape(1, 64),
        "a2": jnp.full((1,), 0.25, jnp.float32),
        # fused FC head
        "fc1_wm": fc1_wm.astype(jnp.bfloat16),                        # (1024, 256)
        "fc1_b": fc1_b.reshape(1, 256),
        "fc2_wm": fc2_w.T.astype(jnp.bfloat16),                       # (256, 128)
        "fc2_b": fc2_b.reshape(1, 128),
        "fc3_wm": fc3_w.T.astype(jnp.bfloat16),                       # (128, 64)
        "fc3_b": fc3_b.reshape(1, 64),
        "a_fc": jnp.array([0.25, 0.25], jnp.float32),
    }


# ---------------------------------------------------------------------------
# Forward pass
# ---------------------------------------------------------------------------

def embedding_forward(x_nchw, params):
    """x_nchw: (B, 1, 28, 28) -> (B, 64) L2-normalized embedding."""
    x = jnp.transpose(x_nchw, (0, 2, 3, 1)).astype(jnp.bfloat16)  # NHWC (B,28,28,1)
    B = x.shape[0]

    # conv1 (1->32, k=5) + PReLU + maxpool(2,2), fused into one kernel.
    t1, (ph1, pw1) = im2col_pool_taps(x, 5, 5)                    # (4, B*144, 25)
    h1 = conv_prelu_pool(t1, params["w1m"], params["b1"], params["a1"],
                         row_cap=2048)                            # (B*144, 32) bf16
    h1 = h1.reshape(B, ph1, pw1, 32)                              # (B,12,12,32)

    # conv2 (32->64, k=5) + PReLU + maxpool(2,2), fused into one kernel.
    # TODO(synk): build conv2's im2col from shifted VMEM views inside the kernel
    # (25 accumulated matmuls) to avoid this ~25x-expanded HBM intermediate at
    # large batch; kept in XLA here for lowering robustness.
    t2, (ph2, pw2) = im2col_pool_taps(h1, 5, 5)                   # (4, B*16, 800)
    h2 = conv_prelu_pool(t2, params["w2m"], params["b2"], params["a2"],
                         row_cap=512)                             # (B*16, 64) bf16
    flat = h2.reshape(B, ph2 * pw2 * 64)                          # (B, 1024) NHWC order

    # fc1+PReLU -> fc2+PReLU -> fc3 -> L2 normalize, single fused kernel.
    return fc_head(flat, params)                                  # (B, 64) f32


def triplet_forward(i1, i2, i3, params):
    """TripletNet: run the shared embedding net on i1, i2, i3."""
    B = i1.shape[0]
    x = jnp.concatenate([i1, i2, i3], axis=0)   # one embedding pass for all three
    e = embedding_forward(x, params)
    return e[:B], e[B:2 * B], e[2 * B:]


# ---------------------------------------------------------------------------
# Main
# ---------------------------------------------------------------------------

if __name__ == "__main__":
    key = jax.random.PRNGKey(0)
    k1, k2, k3, kp = jax.random.split(key, 4)

    B = 2   # spatial size must be 28x28 so the conv/pool stages give 64*4*4 feats
    i1 = jax.random.normal(k1, (B, 1, 28, 28), jnp.float32)
    i2 = jax.random.normal(k2, (B, 1, 28, 28), jnp.float32)
    i3 = jax.random.normal(k3, (B, 1, 28, 28), jnp.float32)
    params = init_params(kp)

    fwd = jax.jit(triplet_forward)
    e1, e2, e3 = jax.block_until_ready(fwd(i1, i2, i3, params))

    assert e1.shape == (B, 64) and e2.shape == (B, 64) and e3.shape == (B, 64), \
        (e1.shape, e2.shape, e3.shape)
    for e in (e1, e2, e3):
        norms = jnp.linalg.norm(e.astype(jnp.float32), axis=1)
        assert bool(jnp.all(jnp.abs(norms - 1.0) < 1e-3)), norms

    print("KERNEL_OK")
</pallas_src>

<mosaic_0001>
module attributes {stable_mosaic.version = 11 : i64} {
  func.func @conv_prelu_pool_kernel(%arg0: i32, %arg1: memref<4x864x25xbf16, #tpu.memory_space<vmem>>, %arg2: memref<25x32xbf16, #tpu.memory_space<vmem>>, %arg3: memref<1x32xf32, #tpu.memory_space<vmem>>, %arg4: memref<1xf32, #tpu.memory_space<smem>>, %arg5: memref<864x32xbf16, #tpu.memory_space<vmem>>) attributes {dimension_semantics = [#tpu.dimension_semantics<parallel>], iteration_bounds = array<i64: 1>, scalar_prefetch = 0 : i64, scratch_operands = 0 : i64, tpu.core_type = #tpu.core_type<tc>, window_params = [{transform_indices = @transform_0, window_bounds = array<i64: 4, 864, 25>}, {pipeline_mode = #tpu.pipeline_mode<synchronous>, transform_indices = @transform_1, window_bounds = array<i64: 25, 32>}, {pipeline_mode = #tpu.pipeline_mode<synchronous>, transform_indices = @transform_2, window_bounds = array<i64: 1, 32>}, {transform_indices = @transform_3, window_bounds = array<i64: 1>}, {transform_indices = @transform_4, window_bounds = array<i64: 864, 32>}]} {
    %c0 = arith.constant 0 : index
    %0 = memref.load %arg4[%c0] : memref<1xf32, #tpu.memory_space<smem>>
    %c0_0 = arith.constant 0 : index
    %c0_1 = arith.constant 0 : index
    %1 = vector.load %arg2[%c0_0, %c0_1] : memref<25x32xbf16, #tpu.memory_space<vmem>>, vector<25x32xbf16>
    %c0_2 = arith.constant 0 : index
    %c0_3 = arith.constant 0 : index
    %2 = vector.load %arg3[%c0_2, %c0_3] : memref<1x32xf32, #tpu.memory_space<vmem>>, vector<1x32xf32>
    %c0_4 = arith.constant 0 : index
    %c0_5 = arith.constant 0 : index
    %c0_6 = arith.constant 0 : index
    %3 = vector.load %arg1[%c0_4, %c0_5, %c0_6] : memref<4x864x25xbf16, #tpu.memory_space<vmem>>, vector<1x864x25xbf16>
    %4 = vector.shape_cast %3 : vector<1x864x25xbf16> to vector<864x25xbf16>
    %cst = arith.constant dense<0.000000e+00> : vector<864x32xf32>
    %5 = tpu.matmul %4, %1, %cst {dimension_numbers = #tpu.dot_dimension_numbers<[1], [0], [0], [1], [0, 0, 1, 1], [], []>} : vector<864x25xbf16>, vector<25x32xbf16>, vector<864x32xf32> -> vector<864x32xf32>
    %6 = vector.broadcast %2 : vector<1x32xf32> to vector<864x32xf32>
    %7 = arith.addf %5, %6 : vector<864x32xf32>
    %cst_7 = arith.constant 0.000000e+00 : f32
    %8 = vector.broadcast %cst_7 : f32 to vector<864x32xf32>
    %9 = arith.cmpf oge, %7, %8 : vector<864x32xf32>
    %10 = vector.broadcast %0 : f32 to vector<864x32xf32>
    %11 = arith.mulf %10, %7 : vector<864x32xf32>
    %12 = arith.select %9, %7, %11 : vector<864x32xi1>, vector<864x32xf32>
    %c1 = arith.constant 1 : index
    %c0_8 = arith.constant 0 : index
    %c0_9 = arith.constant 0 : index
    %13 = vector.load %arg1[%c1, %c0_8, %c0_9] : memref<4x864x25xbf16, #tpu.memory_space<vmem>>, vector<1x864x25xbf16>
    %14 = vector.shape_cast %13 : vector<1x864x25xbf16> to vector<864x25xbf16>
    %cst_10 = arith.constant dense<0.000000e+00> : vector<864x32xf32>
    %15 = tpu.matmul %14, %1, %cst_10 {dimension_numbers = #tpu.dot_dimension_numbers<[1], [0], [0], [1], [0, 0, 1, 1], [], []>} : vector<864x25xbf16>, vector<25x32xbf16>, vector<864x32xf32> -> vector<864x32xf32>
    %16 = vector.broadcast %2 : vector<1x32xf32> to vector<864x32xf32>
    %17 = arith.addf %15, %16 : vector<864x32xf32>
    %cst_11 = arith.constant 0.000000e+00 : f32
    %18 = vector.broadcast %cst_11 : f32 to vector<864x32xf32>
    %19 = arith.cmpf oge, %17, %18 : vector<864x32xf32>
    %20 = vector.broadcast %0 : f32 to vector<864x32xf32>
    %21 = arith.mulf %20, %17 : vector<864x32xf32>
    %22 = arith.select %19, %17, %21 : vector<864x32xi1>, vector<864x32xf32>
    %23 = arith.maximumf %12, %22 : vector<864x32xf32>
    %c2 = arith.constant 2 : index
    %c0_12 = arith.constant 0 : index
    %c0_13 = arith.constant 0 : index
    %24 = vector.load %arg1[%c2, %c0_12, %c0_13] : memref<4x864x25xbf16, #tpu.memory_space<vmem>>, vector<1x864x25xbf16>
    %25 = vector.shape_cast %24 : vector<1x864x25xbf16> to vector<864x25xbf16>
    %cst_14 = arith.constant dense<0.000000e+00> : vector<864x32xf32>
    %26 = tpu.matmul %25, %1, %cst_14 {dimension_numbers = #tpu.dot_dimension_numbers<[1], [0], [0], [1], [0, 0, 1, 1], [], []>} : vector<864x25xbf16>, vector<25x32xbf16>, vector<864x32xf32> -> vector<864x32xf32>
    %27 = vector.broadcast %2 : vector<1x32xf32> to vector<864x32xf32>
    %28 = arith.addf %26, %27 : vector<864x32xf32>
    %cst_15 = arith.constant 0.000000e+00 : f32
    %29 = vector.broadcast %cst_15 : f32 to vector<864x32xf32>
    %30 = arith.cmpf oge, %28, %29 : vector<864x32xf32>
    %31 = vector.broadcast %0 : f32 to vector<864x32xf32>
    %32 = arith.mulf %31, %28 : vector<864x32xf32>
    %33 = arith.select %30, %28, %32 : vector<864x32xi1>, vector<864x32xf32>
    %c3 = arith.constant 3 : index
    %c0_16 = arith.constant 0 : index
    %c0_17 = arith.constant 0 : index
    %34 = vector.load %arg1[%c3, %c0_16, %c0_17] : memref<4x864x25xbf16, #tpu.memory_space<vmem>>, vector<1x864x25xbf16>
    %35 = vector.shape_cast %34 : vector<1x864x25xbf16> to vector<864x25xbf16>
    %cst_18 = arith.constant dense<0.000000e+00> : vector<864x32xf32>
    %36 = tpu.matmul %35, %1, %cst_18 {dimension_numbers = #tpu.dot_dimension_numbers<[1], [0], [0], [1], [0, 0, 1, 1], [], []>} : vector<864x25xbf16>, vector<25x32xbf16>, vector<864x32xf32> -> vector<864x32xf32>
    %37 = vector.broadcast %2 : vector<1x32xf32> to vector<864x32xf32>
    %38 = arith.addf %36, %37 : vector<864x32xf32>
    %cst_19 = arith.constant 0.000000e+00 : f32
    %39 = vector.broadcast %cst_19 : f32 to vector<864x32xf32>
    %40 = arith.cmpf oge, %38, %39 : vector<864x32xf32>
    %41 = vector.broadcast %0 : f32 to vector<864x32xf32>
    %42 = arith.mulf %41, %38 : vector<864x32xf32>
    %43 = arith.select %40, %38, %42 : vector<864x32xi1>, vector<864x32xf32>
    %44 = arith.maximumf %33, %43 : vector<864x32xf32>
    %45 = arith.maximumf %23, %44 : vector<864x32xf32>
    %46 = arith.truncf %45 : vector<864x32xf32> to vector<864x32xbf16>
    %c0_20 = arith.constant 0 : index
    %c0_21 = arith.constant 0 : index
    %47 = vector.load %arg5[%c0_20, %c0_21] : memref<864x32xbf16, #tpu.memory_space<vmem>>, vector<864x32xbf16>
    tpu.vector_store %arg5[%c0_20, %c0_21], %46 {strides = array<i32>} : memref<864x32xbf16, #tpu.memory_space<vmem>>, vector<864x32xbf16>,
    return
  }
  func.func @transform_0(%arg0: i32) -> (i32, i32, i32) {
    %c0_i32 = arith.constant 0 : i32
    %c0_i32_0 = arith.constant 0 : i32
    %c0_i32_1 = arith.constant 0 : i32
    return %c0_i32, %arg0, %c0_i32_0 : i32, i32, i32
  }
  func.func @transform_1(%arg0: i32) -> (i32, i32) {
    %c0_i32 = arith.constant 0 : i32
    %c0_i32_0 = arith.constant 0 : i32
    %c0_i32_1 = arith.constant 0 : i32
    return %c0_i32, %c0_i32_0 : i32, i32
  }
  func.func @transform_2(%arg0: i32) -> (i32, i32) {
    %c0_i32 = arith.constant 0 : i32
    %c0_i32_0 = arith.constant 0 : i32
    %c0_i32_1 = arith.constant 0 : i32
    return %c0_i32, %c0_i32_0 : i32, i32
  }
  func.func @transform_3(%arg0: i32) -> i32 {
    %c0_i32 = arith.constant 0 : i32
    %c0_i32_0 = arith.constant 0 : i32
    return %c0_i32 : i32
  }
  func.func @transform_4(%arg0: i32) -> (i32, i32) {
    %c0_i32 = arith.constant 0 : i32
    %c0_i32_0 = arith.constant 0 : i32
    return %arg0, %c0_i32 : i32, i32
  }
}

module attributes {stable_mosaic.version = 11 : i64} {
  func.func @conv_prelu_pool_kernel(%arg0: i32, %arg1: memref<4x96x800xbf16, #tpu.memory_space<vmem>>, %arg2: memref<800x64xbf16, #tpu.memory_space<vmem>>, %arg3: memref<1x64xf32, #tpu.memory_space<vmem>>, %arg4: memref<1xf32, #tpu.memory_space<smem>>, %arg5: memref<96x64xbf16, #tpu.memory_space<vmem>>) attributes {dimension_semantics = [#tpu.dimension_semantics<parallel>], iteration_bounds = array<i64: 1>, scalar_prefetch = 0 : i64, scratch_operands = 0 : i64, tpu.core_type = #tpu.core_type<tc>, window_params = [{transform_indices = @transform_0, window_bounds = array<i64: 4, 96, 800>}, {pipeline_mode = #tpu.pipeline_mode<synchronous>, transform_indices = @transform_1, window_bounds = array<i64: 800, 64>}, {pipeline_mode = #tpu.pipeline_mode<synchronous>, transform_indices = @transform_2, window_bounds = array<i64: 1, 64>}, {transform_indices = @transform_3, window_bounds = array<i64: 1>}, {transform_indices = @transform_4, window_bounds = array<i64: 96, 64>}]} {
    %c0 = arith.constant 0 : index
    %0 = memref.load %arg4[%c0] : memref<1xf32, #tpu.memory_space<smem>>
    %c0_0 = arith.constant 0 : index
    %c0_1 = arith.constant 0 : index
    %1 = vector.load %arg2[%c0_0, %c0_1] : memref<800x64xbf16, #tpu.memory_space<vmem>>, vector<800x64xbf16>
    %c0_2 = arith.constant 0 : index
    %c0_3 = arith.constant 0 : index
    %2 = vector.load %arg3[%c0_2, %c0_3] : memref<1x64xf32, #tpu.memory_space<vmem>>, vector<1x64xf32>
    %c0_4 = arith.constant 0 : index
    %c0_5 = arith.constant 0 : index
    %c0_6 = arith.constant 0 : index
    %3 = vector.load %arg1[%c0_4, %c0_5, %c0_6] : memref<4x96x800xbf16, #tpu.memory_space<vmem>>, vector<1x96x800xbf16>
    %4 = vector.shape_cast %3 : vector<1x96x800xbf16> to vector<96x800xbf16>
    %cst = arith.constant dense<0.000000e+00> : vector<96x64xf32>
    %5 = tpu.matmul %4, %1, %cst {dimension_numbers = #tpu.dot_dimension_numbers<[1], [0], [0], [1], [0, 0, 1, 1], [], []>} : vector<96x800xbf16>, vector<800x64xbf16>, vector<96x64xf32> -> vector<96x64xf32>
    %6 = vector.broadcast %2 : vector<1x64xf32> to vector<96x64xf32>
    %7 = arith.addf %5, %6 : vector<96x64xf32>
    %cst_7 = arith.constant 0.000000e+00 : f32
    %8 = vector.broadcast %cst_7 : f32 to vector<96x64xf32>
    %9 = arith.cmpf oge, %7, %8 : vector<96x64xf32>
    %10 = vector.broadcast %0 : f32 to vector<96x64xf32>
    %11 = arith.mulf %10, %7 : vector<96x64xf32>
    %12 = arith.select %9, %7, %11 : vector<96x64xi1>, vector<96x64xf32>
    %c1 = arith.constant 1 : index
    %c0_8 = arith.constant 0 : index
    %c0_9 = arith.constant 0 : index
    %13 = vector.load %arg1[%c1, %c0_8, %c0_9] : memref<4x96x800xbf16, #tpu.memory_space<vmem>>, vector<1x96x800xbf16>
    %14 = vector.shape_cast %13 : vector<1x96x800xbf16> to vector<96x800xbf16>
    %cst_10 = arith.constant dense<0.000000e+00> : vector<96x64xf32>
    %15 = tpu.matmul %14, %1, %cst_10 {dimension_numbers = #tpu.dot_dimension_numbers<[1], [0], [0], [1], [0, 0, 1, 1], [], []>} : vector<96x800xbf16>, vector<800x64xbf16>, vector<96x64xf32> -> vector<96x64xf32>
    %16 = vector.broadcast %2 : vector<1x64xf32> to vector<96x64xf32>
    %17 = arith.addf %15, %16 : vector<96x64xf32>
    %cst_11 = arith.constant 0.000000e+00 : f32
    %18 = vector.broadcast %cst_11 : f32 to vector<96x64xf32>
    %19 = arith.cmpf oge, %17, %18 : vector<96x64xf32>
    %20 = vector.broadcast %0 : f32 to vector<96x64xf32>
    %21 = arith.mulf %20, %17 : vector<96x64xf32>
    %22 = arith.select %19, %17, %21 : vector<96x64xi1>, vector<96x64xf32>
    %23 = arith.maximumf %12, %22 : vector<96x64xf32>
    %c2 = arith.constant 2 : index
    %c0_12 = arith.constant 0 : index
    %c0_13 = arith.constant 0 : index
    %24 = vector.load %arg1[%c2, %c0_12, %c0_13] : memref<4x96x800xbf16, #tpu.memory_space<vmem>>, vector<1x96x800xbf16>
    %25 = vector.shape_cast %24 : vector<1x96x800xbf16> to vector<96x800xbf16>
    %cst_14 = arith.constant dense<0.000000e+00> : vector<96x64xf32>
    %26 = tpu.matmul %25, %1, %cst_14 {dimension_numbers = #tpu.dot_dimension_numbers<[1], [0], [0], [1], [0, 0, 1, 1], [], []>} : vector<96x800xbf16>, vector<800x64xbf16>, vector<96x64xf32> -> vector<96x64xf32>
    %27 = vector.broadcast %2 : vector<1x64xf32> to vector<96x64xf32>
    %28 = arith.addf %26, %27 : vector<96x64xf32>
    %cst_15 = arith.constant 0.000000e+00 : f32
    %29 = vector.broadcast %cst_15 : f32 to vector<96x64xf32>
    %30 = arith.cmpf oge, %28, %29 : vector<96x64xf32>
    %31 = vector.broadcast %0 : f32 to vector<96x64xf32>
    %32 = arith.mulf %31, %28 : vector<96x64xf32>
    %33 = arith.select %30, %28, %32 : vector<96x64xi1>, vector<96x64xf32>
    %c3 = arith.constant 3 : index
    %c0_16 = arith.constant 0 : index
    %c0_17 = arith.constant 0 : index
    %34 = vector.load %arg1[%c3, %c0_16, %c0_17] : memref<4x96x800xbf16, #tpu.memory_space<vmem>>, vector<1x96x800xbf16>
    %35 = vector.shape_cast %34 : vector<1x96x800xbf16> to vector<96x800xbf16>
    %cst_18 = arith.constant dense<0.000000e+00> : vector<96x64xf32>
    %36 = tpu.matmul %35, %1, %cst_18 {dimension_numbers = #tpu.dot_dimension_numbers<[1], [0], [0], [1], [0, 0, 1, 1], [], []>} : vector<96x800xbf16>, vector<800x64xbf16>, vector<96x64xf32> -> vector<96x64xf32>
    %37 = vector.broadcast %2 : vector<1x64xf32> to vector<96x64xf32>
    %38 = arith.addf %36, %37 : vector<96x64xf32>
    %cst_19 = arith.constant 0.000000e+00 : f32
    %39 = vector.broadcast %cst_19 : f32 to vector<96x64xf32>
    %40 = arith.cmpf oge, %38, %39 : vector<96x64xf32>
    %41 = vector.broadcast %0 : f32 to vector<96x64xf32>
    %42 = arith.mulf %41, %38 : vector<96x64xf32>
    %43 = arith.select %40, %38, %42 : vector<96x64xi1>, vector<96x64xf32>
    %44 = arith.maximumf %33, %43 : vector<96x64xf32>
    %45 = arith.maximumf %23, %44 : vector<96x64xf32>
    %46 = arith.truncf %45 : vector<96x64xf32> to vector<96x64xbf16>
    %c0_20 = arith.constant 0 : index
    %c0_21 = arith.constant 0 : index
    %47 = vector.load %arg5[%c0_20, %c0_21] : memref<96x64xbf16, #tpu.memory_space<vmem>>, vector<96x64xbf16>
    tpu.vector_store %arg5[%c0_20, %c0_21], %46 {strides = array<i32>} : memref<96x64xbf16, #tpu.memory_space<vmem>>, vector<96x64xbf16>,
    return
  }
  func.func @transform_0(%arg0: i32) -> (i32, i32, i32) {
    %c0_i32 = arith.constant 0 : i32
    %c0_i32_0 = arith.constant 0 : i32
    %c0_i32_1 = arith.constant 0 : i32
    return %c0_i32, %arg0, %c0_i32_0 : i32, i32, i32
  }
  func.func @transform_1(%arg0: i32) -> (i32, i32) {
    %c0_i32 = arith.constant 0 : i32
    %c0_i32_0 = arith.constant 0 : i32
    %c0_i32_1 = arith.constant 0 : i32
    return %c0_i32, %c0_i32_0 : i32, i32
  }
  func.func @transform_2(%arg0: i32) -> (i32, i32) {
    %c0_i32 = arith.constant 0 : i32
    %c0_i32_0 = arith.constant 0 : i32
    %c0_i32_1 = arith.constant 0 : i32
    return %c0_i32, %c0_i32_0 : i32, i32
  }
  func.func @transform_3(%arg0: i32) -> i32 {
    %c0_i32 = arith.constant 0 : i32
    %c0_i32_0 = arith.constant 0 : i32
    return %c0_i32 : i32
  }
  func.func @transform_4(%arg0: i32) -> (i32, i32) {
    %c0_i32 = arith.constant 0 : i32
    %c0_i32_0 = arith.constant 0 : i32
    return %arg0, %c0_i32 : i32, i32
  }
}

module attributes {stable_mosaic.version = 11 : i64} {
  func.func @fc_head_kernel(%arg0: i32, %arg1: memref<6x1024xbf16, #tpu.memory_space<vmem>>, %arg2: memref<1024x256xbf16, #tpu.memory_space<vmem>>, %arg3: memref<1x256xf32, #tpu.memory_space<vmem>>, %arg4: memref<256x128xbf16, #tpu.memory_space<vmem>>, %arg5: memref<1x128xf32, #tpu.memory_space<vmem>>, %arg6: memref<128x64xbf16, #tpu.memory_space<vmem>>, %arg7: memref<1x64xf32, #tpu.memory_space<vmem>>, %arg8: memref<2xf32, #tpu.memory_space<smem>>, %arg9: memref<6x64xf32, #tpu.memory_space<vmem>>) attributes {dimension_semantics = [#tpu.dimension_semantics<parallel>], iteration_bounds = array<i64: 1>, scalar_prefetch = 0 : i64, scratch_operands = 0 : i64, tpu.core_type = #tpu.core_type<tc>, window_params = [{transform_indices = @transform_0, window_bounds = array<i64: 6, 1024>}, {pipeline_mode = #tpu.pipeline_mode<synchronous>, transform_indices = @transform_1, window_bounds = array<i64: 1024, 256>}, {pipeline_mode = #tpu.pipeline_mode<synchronous>, transform_indices = @transform_2, window_bounds = array<i64: 1, 256>}, {pipeline_mode = #tpu.pipeline_mode<synchronous>, transform_indices = @transform_3, window_bounds = array<i64: 256, 128>}, {pipeline_mode = #tpu.pipeline_mode<synchronous>, transform_indices = @transform_4, window_bounds = array<i64: 1, 128>}, {pipeline_mode = #tpu.pipeline_mode<synchronous>, transform_indices = @transform_5, window_bounds = array<i64: 128, 64>}, {pipeline_mode = #tpu.pipeline_mode<synchronous>, transform_indices = @transform_6, window_bounds = array<i64: 1, 64>}, {transform_indices = @transform_7, window_bounds = array<i64: 2>}, {transform_indices = @transform_8, window_bounds = array<i64: 6, 64>}]} {
    %c0 = arith.constant 0 : index
    %0 = memref.load %arg8[%c0] : memref<2xf32, #tpu.memory_space<smem>>
    %c1 = arith.constant 1 : index
    %1 = memref.load %arg8[%c1] : memref<2xf32, #tpu.memory_space<smem>>
    %c0_0 = arith.constant 0 : index
    %c0_1 = arith.constant 0 : index
    %2 = vector.load %arg1[%c0_0, %c0_1] : memref<6x1024xbf16, #tpu.memory_space<vmem>>, vector<6x1024xbf16>
    %c0_2 = arith.constant 0 : index
    %c0_3 = arith.constant 0 : index
    %3 = vector.load %arg2[%c0_2, %c0_3] : memref<1024x256xbf16, #tpu.memory_space<vmem>>, vector<1024x256xbf16>
    %cst = arith.constant dense<0.000000e+00> : vector<6x256xf32>
    %4 = tpu.matmul %2, %3, %cst {dimension_numbers = #tpu.dot_dimension_numbers<[1], [0], [0], [1], [0, 0, 1, 1], [], []>} : vector<6x1024xbf16>, vector<1024x256xbf16>, vector<6x256xf32> -> vector<6x256xf32>
    %c0_4 = arith.constant 0 : index
    %c0_5 = arith.constant 0 : index
    %5 = vector.load %arg3[%c0_4, %c0_5] : memref<1x256xf32, #tpu.memory_space<vmem>>, vector<1x256xf32>
    %6 = vector.broadcast %5 : vector<1x256xf32> to vector<6x256xf32>
    %7 = arith.addf %4, %6 : vector<6x256xf32>
    %cst_6 = arith.constant 0.000000e+00 : f32
    %8 = vector.broadcast %cst_6 : f32 to vector<6x256xf32>
    %9 = arith.cmpf oge, %7, %8 : vector<6x256xf32>
    %10 = vector.broadcast %0 : f32 to vector<6x256xf32>
    %11 = arith.mulf %10, %7 : vector<6x256xf32>
    %12 = arith.select %9, %7, %11 : vector<6x256xi1>, vector<6x256xf32>
    %13 = arith.truncf %12 : vector<6x256xf32> to vector<6x256xbf16>
    %c0_7 = arith.constant 0 : index
    %c0_8 = arith.constant 0 : index
    %14 = vector.load %arg4[%c0_7, %c0_8] : memref<256x128xbf16, #tpu.memory_space<vmem>>, vector<256x128xbf16>
    %cst_9 = arith.constant dense<0.000000e+00> : vector<6x128xf32>
    %15 = tpu.matmul %13, %14, %cst_9 {dimension_numbers = #tpu.dot_dimension_numbers<[1], [0], [0], [1], [0, 0, 1, 1], [], []>} : vector<6x256xbf16>, vector<256x128xbf16>, vector<6x128xf32> -> vector<6x128xf32>
    %c0_10 = arith.constant 0 : index
    %c0_11 = arith.constant 0 : index
    %16 = vector.load %arg5[%c0_10, %c0_11] : memref<1x128xf32, #tpu.memory_space<vmem>>, vector<1x128xf32>
    %17 = vector.broadcast %16 : vector<1x128xf32> to vector<6x128xf32>
    %18 = arith.addf %15, %17 : vector<6x128xf32>
    %cst_12 = arith.constant 0.000000e+00 : f32
    %19 = vector.broadcast %cst_12 : f32 to vector<6x128xf32>
    %20 = arith.cmpf oge, %18, %19 : vector<6x128xf32>
    %21 = vector.broadcast %1 : f32 to vector<6x128xf32>
    %22 = arith.mulf %21, %18 : vector<6x128xf32>
    %23 = arith.select %20, %18, %22 : vector<6x128xi1>, vector<6x128xf32>
    %24 = arith.truncf %23 : vector<6x128xf32> to vector<6x128xbf16>
    %c0_13 = arith.constant 0 : index
    %c0_14 = arith.constant 0 : index
    %25 = vector.load %arg6[%c0_13, %c0_14] : memref<128x64xbf16, #tpu.memory_space<vmem>>, vector<128x64xbf16>
    %cst_15 = arith.constant dense<0.000000e+00> : vector<6x64xf32>
    %26 = tpu.matmul %24, %25, %cst_15 {dimension_numbers = #tpu.dot_dimension_numbers<[1], [0], [0], [1], [0, 0, 1, 1], [], []>} : vector<6x128xbf16>, vector<128x64xbf16>, vector<6x64xf32> -> vector<6x64xf32>
    %c0_16 = arith.constant 0 : index
    %c0_17 = arith.constant 0 : index
    %27 = vector.load %arg7[%c0_16, %c0_17] : memref<1x64xf32, #tpu.memory_space<vmem>>, vector<1x64xf32>
    %28 = vector.broadcast %27 : vector<1x64xf32> to vector<6x64xf32>
    %29 = arith.addf %26, %28 : vector<6x64xf32>
    %30 = arith.mulf %29, %29 : vector<6x64xf32>
    %cst_18 = arith.constant dense<0.000000e+00> : vector<6xf32>
    %31 = vector.multi_reduction <add>, %30, %cst_18 [1] : vector<6x64xf32> to vector<6xf32>
    %32 = vector.shape_cast %31 : vector<6xf32> to vector<6x1xf32>
    %cst_19 = arith.constant 1.000000e-24 : f32
    %33 = vector.broadcast %cst_19 : f32 to vector<6x1xf32>
    %34 = arith.maximumf %32, %33 : vector<6x1xf32>
    %35 = math.rsqrt %34 : vector<6x1xf32>
    %36 = vector.broadcast %35 : vector<6x1xf32> to vector<6x64xf32>
    %37 = arith.mulf %29, %36 : vector<6x64xf32>
    %c0_20 = arith.constant 0 : index
    %c0_21 = arith.constant 0 : index
    %38 = vector.load %arg9[%c0_20, %c0_21] : memref<6x64xf32, #tpu.memory_space<vmem>>, vector<6x64xf32>
    tpu.vector_store %arg9[%c0_20, %c0_21], %37 {strides = array<i32>} : memref<6x64xf32, #tpu.memory_space<vmem>>, vector<6x64xf32>,
    return
  }
  func.func @transform_0(%arg0: i32) -> (i32, i32) {
    %c0_i32 = arith.constant 0 : i32
    %c0_i32_0 = arith.constant 0 : i32
    return %arg0, %c0_i32 : i32, i32
  }
  func.func @transform_1(%arg0: i32) -> (i32, i32) {
    %c0_i32 = arith.constant 0 : i32
    %c0_i32_0 = arith.constant 0 : i32
    %c0_i32_1 = arith.constant 0 : i32
    return %c0_i32, %c0_i32_0 : i32, i32
  }
  func.func @transform_2(%arg0: i32) -> (i32, i32) {
    %c0_i32 = arith.constant 0 : i32
    %c0_i32_0 = arith.constant 0 : i32
    %c0_i32_1 = arith.constant 0 : i32
    return %c0_i32, %c0_i32_0 : i32, i32
  }
  func.func @transform_3(%arg0: i32) -> (i32, i32) {
    %c0_i32 = arith.constant 0 : i32
    %c0_i32_0 = arith.constant 0 : i32
    %c0_i32_1 = arith.constant 0 : i32
    return %c0_i32, %c0_i32_0 : i32, i32
  }
  func.func @transform_4(%arg0: i32) -> (i32, i32) {
    %c0_i32 = arith.constant 0 : i32
    %c0_i32_0 = arith.constant 0 : i32
    %c0_i32_1 = arith.constant 0 : i32
    return %c0_i32, %c0_i32_0 : i32, i32
  }
  func.func @transform_5(%arg0: i32) -> (i32, i32) {
    %c0_i32 = arith.constant 0 : i32
    %c0_i32_0 = arith.constant 0 : i32
    %c0_i32_1 = arith.constant 0 : i32
    return %c0_i32, %c0_i32_0 : i32, i32
  }
  func.func @transform_6(%arg0: i32) -> (i32, i32) {
    %c0_i32 = arith.constant 0 : i32
    %c0_i32_0 = arith.constant 0 : i32
    %c0_i32_1 = arith.constant 0 : i32
    return %c0_i32, %c0_i32_0 : i32, i32
  }
  func.func @transform_7(%arg0: i32) -> i32 {
    %c0_i32 = arith.constant 0 : i32
    %c0_i32_0 = arith.constant 0 : i32
    return %c0_i32 : i32
  }
  func.func @transform_8(%arg0: i32) -> (i32, i32) {
    %c0_i32 = arith.constant 0 : i32
    %c0_i32_0 = arith.constant 0 : i32
    return %arg0, %c0_i32 : i32, i32
  }
}

</mosaic_0001>

<bundles_post_ra>
// kernel: triplet_forward.3
= control target key start
LH: loop header
LB: loop body
LE: loop exit
PB: predicated region body
PF: predicated region fallthrough
CT: control target
= control target key end

     0   :  { %vm580_vm0 = vcmask 1043456   ;;  %vm581_vm1 = vcmask 1044480   ;;  %v6805_v2 = vmov 65535   ;;  %vm417_vm2 = vcmask 203776   ;;  %s9036_s1 = inlined_call_operand.vmem [shape: bf16[25,32], index: 1, kind: input, shape index: {}]   ;;  %s9037_s2 = inlined_call_operand.vmem [shape: f32[1,32], index: 2, kind: input, shape index: {}]   ;;  %s9038_s0 = inlined_call_operand.vmem [shape: bf16[4,864,25], index: 0, kind: input, shape index: {}]   ;;  %s9039_s3 = inlined_call_operand.<no memory space> [shape: f32[1], index: 3, kind: input, shape index: {}]   ;;  %s9040_s4 = inlined_call_operand.vmem [shape: bf16[864,32], index: 4, kind: output, shape index: {}]  }
   0x1   :  { %v5390_v0 = vld [vmem:[%s9036_s1 + $0x8] sm:$0xf]  ;;  %v6581_v1 = vld [vmem:[%s9036_s1 + $0x8] sm:$0x10]  ;;  %v582_v3 = vsel %vm580_vm0, 4294967295, %v6805_v2  ;;  %v6580_v7 = vld [vmem:[%s9036_s1] sm:$0xff]  ;;  %v6990_v49 = vstv %s9039_s3 }
   0x2   :  { %v5391_v4 = vor.u32 %v6581_v1, %v5390_v0  ;;  %v583_v5 = vsel %vm581_vm1, %v582_v3, 0  ;;  %v6582_v8 = vld [vmem:[%s9038_s0] sm:$0xff]  ;;  %v6636_v9 = vld [vmem:[%s9038_s0 + $0x1b0] sm:$0xff]  ;;  %v6583_v12 = vld [vmem:[%s9038_s0 + $0x8] sm:$0xff]  ;;  %vm5055_vm9 = vcmask 257024  }
   0x3   :  { %v6690_v10 = vld [vmem:[%s9038_s0 + $0x360] sm:$0xff]  ;;  %v6744_v11 = vld [vmem:[%s9038_s0 + $0x510] sm:$0xff]  ;;  %v6637_v13 = vld [vmem:[%s9038_s0 + $0x1b8] sm:$0xff] }
   0x4   :  { %v585_v6 = vand.u32 %v5391_v4, %v583_v5  ;;  %v6691_v14 = vld [vmem:[%s9038_s0 + $0x368] sm:$0xff]  ;;  %v6745_v15 = vld [vmem:[%s9038_s0 + $0x518] sm:$0xff]  ;;  %v6584_v16 = vld [vmem:[%s9038_s0 + $0x10] sm:$0xff] }
   0x5   :  { %v6638_v17 = vld [vmem:[%s9038_s0 + $0x1c0] sm:$0xff]  ;;  %v6692_v18 = vld [vmem:[%s9038_s0 + $0x370] sm:$0xff]  ;;  %v6585_v20 = vld [vmem:[%s9038_s0 + $0x18] sm:$0xff] }
   0x6   :  { %593 = vmatpush.bf16.msra.mxu0 %v585_v6  ;;  %1738 = vmatpush.bf16.msra.mxu1 %v585_v6  ;;  %v6746_v19 = vld [vmem:[%s9038_s0 + $0x520] sm:$0xff]  ;;  %v6639_v21 = vld [vmem:[%s9038_s0 + $0x1c8] sm:$0xff]  ;;  %v6693_v22 = vld [vmem:[%s9038_s0 + $0x378] sm:$0xff] }
   0x7   :  { %2990 = vmatpush.bf16.msra.mxu2 %v585_v6  ;;  %4134 = vmatpush.bf16.msra.mxu3 %v585_v6  ;;  %v6747_v23 = vld [vmem:[%s9038_s0 + $0x528] sm:$0xff]  ;;  %v6586_v24 = vld [vmem:[%s9038_s0 + $0x20] sm:$0xff]  ;;  %v6640_v25 = vld [vmem:[%s9038_s0 + $0x1d0] sm:$0xff] }
   0x8   :  { %v6694_v26 = vld [vmem:[%s9038_s0 + $0x380] sm:$0xff]  ;;  %v6748_v27 = vld [vmem:[%s9038_s0 + $0x530] sm:$0xff]  ;;  %v6587_v28 = vld [vmem:[%s9038_s0 + $0x28] sm:$0xff] }
   0x9   :  { %v6641_v29 = vld [vmem:[%s9038_s0 + $0x1d8] sm:$0xff]  ;;  %v6695_v30 = vld [vmem:[%s9038_s0 + $0x388] sm:$0xff]  ;;  %v6588_v32 = vld [vmem:[%s9038_s0 + $0x30] sm:$0xff] }
   0xa   :  { %594 = vmatpush.bf16.msra.mxu0 %v6580_v7  ;;  %1739 = vmatpush.bf16.msra.mxu1 %v6580_v7  ;;  %v6749_v31 = vld [vmem:[%s9038_s0 + $0x538] sm:$0xff]  ;;  %v6642_v33 = vld [vmem:[%s9038_s0 + $0x1e0] sm:$0xff]  ;;  %v6696_v34 = vld [vmem:[%s9038_s0 + $0x390] sm:$0xff] }
   0xb   :  { %2991 = vmatpush.bf16.msra.mxu2 %v6580_v7  ;;  %4135 = vmatpush.bf16.msra.mxu3 %v6580_v7  ;;  %v6750_v35 = vld [vmem:[%s9038_s0 + $0x540] sm:$0xff]  ;;  %v6589_v36 = vld [vmem:[%s9038_s0 + $0x38] sm:$0xff]  ;;  %v6643_v37 = vld [vmem:[%s9038_s0 + $0x1e8] sm:$0xff] }
   0xc   :  { %v6697_v38 = vld [vmem:[%s9038_s0 + $0x398] sm:$0xff]  ;;  %v6751_v39 = vld [vmem:[%s9038_s0 + $0x548] sm:$0xff]  ;;  %v6971_v40 = vld [vmem:[%s9037_s2] ss:$0 sm:$0xff] }
   0xd   :  { %5392 = vmatmul.msk.bf16.vlgmr.msra.gmra.mxu0 %vm417_vm2, %v6582_v8  ;;  %5770 = vmatmul.msk.bf16.vlgmr.msra.gmra.mxu1 %vm417_vm2, %v6636_v9  ;;  %v6590_v41 = vld [vmem:[%s9038_s0 + $0x40] sm:$0xff]  ;;  %v6644_v42 = vld [vmem:[%s9038_s0 + $0x1f0] sm:$0xff]  ;;  %v6591_v9 = vld [vmem:[%s9038_s0 + $0x48] sm:$0xff] }
   0xe   :  { %6148 = vmatmul.msk.bf16.vlgmr.msra.gmra.mxu2 %vm417_vm2, %v6690_v10  ;;  %6526 = vmatmul.msk.bf16.vlgmr.msra.gmra.mxu3 %vm417_vm2, %v6744_v11  ;;  %v6698_v45 = vld [vmem:[%s9038_s0 + $0x3a0] sm:$0xff]  ;;  %v6752_v46 = vld [vmem:[%s9038_s0 + $0x550] sm:$0xff]  ;;  %v6645_v10 = vld [vmem:[%s9038_s0 + $0x1f8] sm:$0xff] }
  0x1d   :  { %5393 = vmatmul.msk.bf16.gmra.mxu0 %vm417_vm2, %v6583_v12  ;;  %5771 = vmatmul.msk.bf16.gmra.mxu1 %vm417_vm2, %v6637_v13 }
  0x1e   :  { %6149 = vmatmul.msk.bf16.gmra.mxu2 %vm417_vm2, %v6691_v14  ;;  %6527 = vmatmul.msk.bf16.gmra.mxu3 %vm417_vm2, %v6745_v15 }
  0x2d   :  { %5394 = vmatmul.msk.bf16.gmra.mxu0 %vm417_vm2, %v6584_v16  ;;  %5772 = vmatmul.msk.bf16.gmra.mxu1 %vm417_vm2, %v6638_v17  ;;  %v6699_v16 = vld [vmem:[%s9038_s0 + $0x3a8] sm:$0xff]  ;;  %v6753_v17 = vld [vmem:[%s9038_s0 + $0x558] sm:$0xff] }
  0x2e   :  { %6150 = vmatmul.msk.bf16.gmra.mxu2 %vm417_vm2, %v6692_v18  ;;  %6528 = vmatmul.msk.bf16.gmra.mxu3 %vm417_vm2, %v6746_v19 }
  0x3d   :  { %5395 = vmatmul.msk.bf16.gmra.mxu0 %vm417_vm2, %v6585_v20  ;;  %5773 = vmatmul.msk.bf16.gmra.mxu1 %vm417_vm2, %v6639_v21 }
  0x3e   :  { %6151 = vmatmul.msk.bf16.gmra.mxu2 %vm417_vm2, %v6693_v22  ;;  %6529 = vmatmul.msk.bf16.gmra.mxu3 %vm417_vm2, %v6747_v23 }
  0x4d   :  { %5396 = vmatmul.msk.bf16.gmra.mxu0 %vm417_vm2, %v6586_v24  ;;  %5774 = vmatmul.msk.bf16.gmra.mxu1 %vm417_vm2, %v6640_v25 }
  0x4e   :  { %6152 = vmatmul.msk.bf16.gmra.mxu2 %vm417_vm2, %v6694_v26  ;;  %6530 = vmatmul.msk.bf16.gmra.mxu3 %vm417_vm2, %v6748_v27 }
  0x5d   :  { %5397 = vmatmul.msk.bf16.gmra.mxu0 %vm417_vm2, %v6587_v28  ;;  %5775 = vmatmul.msk.bf16.gmra.mxu1 %vm417_vm2, %v6641_v29 }
  0x5e   :  { %6153 = vmatmul.msk.bf16.gmra.mxu2 %vm417_vm2, %v6695_v30  ;;  %6531 = vmatmul.msk.bf16.gmra.mxu3 %vm417_vm2, %v6749_v31 }
  0x6d   :  { %5398 = vmatmul.msk.bf16.gmra.mxu0 %vm417_vm2, %v6588_v32  ;;  %5776 = vmatmul.msk.bf16.gmra.mxu1 %vm417_vm2, %v6642_v33 }
  0x6e   :  { %6154 = vmatmul.msk.bf16.gmra.mxu2 %vm417_vm2, %v6696_v34  ;;  %6532 = vmatmul.msk.bf16.gmra.mxu3 %vm417_vm2, %v6750_v35 }
  0x7d   :  { %5399 = vmatmul.msk.bf16.gmra.mxu0 %vm417_vm2, %v6589_v36  ;;  %5777 = vmatmul.msk.bf16.gmra.mxu1 %vm417_vm2, %v6643_v37 }
  0x7e   :  { %6155 = vmatmul.msk.bf16.gmra.mxu2 %vm417_vm2, %v6697_v38  ;;  %6533 = vmatmul.msk.bf16.gmra.mxu3 %vm417_vm2, %v6751_v39 }
  0x8a   :  { %v596_v43 = vpop.f32.mrf.mxu0  ;;  %v1741_v44 = vpop.f32.mrf.mxu1 }
  0x8b   :  { %v597_v47 = vadd.f32 %v6971_v40, %v596_v43  ;;  %v1742_v48 = vadd.f32 %v6971_v40, %v1741_v44 }
  0x8d   :  { %5400 = vmatmul.msk.bf16.gmra.mxu0 %vm417_vm2, %v6590_v41  ;;  %5778 = vmatmul.msk.bf16.gmra.mxu1 %vm417_vm2, %v6644_v42  ;;  %v975_v50 = vmul.f32 %v6990_v49, %v597_v47  ;;  %v2119_v51 = vmul.f32 %v1742_v48, %v6990_v49  ;;  %vm866_vm3 = vcmp.ge.f32.partialorder %v597_v47, 0.0  ;;  %vm2011_vm4 = vcmp.ge.f32.partialorder %v1742_v48, 0.0 }
  0x8e   :  { %6156 = vmatmul.msk.bf16.gmra.mxu2 %vm417_vm2, %v6698_v45  ;;  %6534 = vmatmul.msk.bf16.gmra.mxu3 %vm417_vm2, %v6752_v46 }
  0x8f   :  { %v1083_v58 = vsel %vm866_vm3, %v597_v47, %v975_v50  ;;  %v2227_v59 = vsel %vm2011_vm4, %v1742_v48, %v2119_v51 }
  0x90   :  { %v2335_v3 = vmax.f32 %v1083_v58, %v2227_v59 }
  0x91   :  { %v2993_v52 = vpop.f32.mrf.mxu2  ;;  %v4137_v53 = vpop.f32.mrf.mxu3 }
  0x92   :  { %v2994_v54 = vadd.f32 %v6971_v40, %v2993_v52  ;;  %v4138_v55 = vadd.f32 %v6971_v40, %v4137_v53  ;;  %v598_v56 = vpop.f32.mrf.mxu0  ;;  %v1743_v57 = vpop.f32.mrf.mxu1 }
  0x93   :  { %v599_v60 = vadd.f32 %v6971_v40, %v598_v56  ;;  %v1744_v61 = vadd.f32 %v6971_v40, %v1743_v57  ;;  %v6646_v56 = vld [vmem:[%s9038_s0 + $0x200] sm:$0xff] }
  0x94   :  { %vm3263_vm5 = vcmp.ge.f32.partialorder %v2994_v54, 0.0  ;;  %v3371_v62 = vmul.f32 %v2994_v54, %v6990_v49  ;;  %vm4407_vm6 = vcmp.ge.f32.partialorder %v4138_v55, 0.0  ;;  %v4515_v63 = vmul.f32 %v4138_v55, %v6990_v49 }
  0x95   :  { %v976_v2 = vmul.f32 %v6990_v49, %v599_v60  ;;  %vm867_vm7 = vcmp.ge.f32.partialorder %v599_v60, 0.0  ;;  %v2120_v5 = vmul.f32 %v1744_v61, %v6990_v49  ;;  %vm2012_vm8 = vcmp.ge.f32.partialorder %v1744_v61, 0.0 }
  0x96   :  { %v3479_v0 = vsel %vm3263_vm5, %v2994_v54, %v3371_v62  ;;  %v4623_v1 = vsel %vm4407_vm6, %v4138_v55, %v4515_v63  ;;  %v6592_v55 = vld [vmem:[%s9038_s0 + $0x50] sm:$0xff]  ;;  %v6754_v63 = vld [vmem:[%s9038_s0 + $0x560] sm:$0xff] }
  0x97   :  { %v4731_v4 = vmax.f32 %v3479_v0, %v4623_v1  ;;  %v1084_v11 = vsel %vm867_vm7, %v599_v60, %v976_v2  ;;  %v2228_v19 = vsel %vm2012_vm8, %v1744_v61, %v2120_v5  ;;  %v6700_v62 = vld [vmem:[%s9038_s0 + $0x3b0] sm:$0xff] }
  0x98   :  { %v2336_v27 = vmax.f32 %v1084_v11, %v2228_v19 }
  0x99   :  { %v4839_v6 = vmax.f32 %v2335_v3, %v4731_v4  ;;  %v2995_v7 = vpop.f32.mrf.mxu2  ;;  %v4139_v8 = vpop.f32.mrf.mxu3 }
  0x9a   :  { %v2996_v12 = vadd.f32 %v6971_v40, %v2995_v7  ;;  %v4140_v13 = vadd.f32 %v6971_v40, %v4139_v8  ;;  %v601_v14 = vpop.f32.mrf.mxu0  ;;  %v1746_v15 = vpop.f32.mrf.mxu1 }
  0x9b   :  { %v4947_v18 = vpack.c.bf16 %v4839_v6, %v4839_v6  ;;  %v602_v20 = vadd.f32 %v6971_v40, %v601_v14  ;;  %v1747_v21 = vadd.f32 %v6971_v40, %v1746_v15 }
  0x9c   :  { %vm3264_vm10 = vcmp.ge.f32.partialorder %v2996_v12, 0.0  ;;  %v3372_v22 = vmul.f32 %v2996_v12, %v6990_v49  ;;  %vm4408_vm11 = vcmp.ge.f32.partialorder %v4140_v13, 0.0  ;;  %v4516_v23 = vmul.f32 %v4140_v13, %v6990_v49 }
  0x9d   :  { %5056 = vst.msk [vmem:[%s9040_s4] sm:$0xf] %vm5055_vm9, %v4947_v18  ;;  %5401 = vmatmul.msk.bf16.gmra.mxu0 %vm417_vm2, %v6591_v9  ;;  %5779 = vmatmul.msk.bf16.gmra.mxu1 %vm417_vm2, %v6645_v10  ;;  %v977_v26 = vmul.f32 %v6990_v49, %v602_v20  ;;  %vm868_vm12 = vcmp.ge.f32.partialorder %v602_v20, 0.0  ;;  %v2121_v29 = vmul.f32 %v1747_v21, %v6990_v49  ;;  %vm2013_vm13 = vcmp.ge.f32.partialorder %v1747_v21, 0.0 }
  0x9e   :  { %v3480_v24 = vsel %vm3264_vm10, %v2996_v12, %v3372_v22  ;;  %v4624_v25 = vsel %vm4408_vm11, %v4140_v13, %v4516_v23  ;;  %6157 = vmatmul.msk.bf16.gmra.mxu2 %vm417_vm2, %v6699_v16  ;;  %6535 = vmatmul.msk.bf16.gmra.mxu3 %vm417_vm2, %v6753_v17 }
  0x9f   :  { %v4732_v28 = vmax.f32 %v3480_v24, %v4624_v25  ;;  %v1085_v33 = vsel %vm868_vm12, %v602_v20, %v977_v26  ;;  %v2229_v39 = vsel %vm2013_vm13, %v1747_v21, %v2121_v29 }
  0xa0   :  { %v2337_v48 = vmax.f32 %v1085_v33, %v2229_v39 }
  0xa1   :  { %v4840_v30 = vmax.f32 %v2336_v27, %v4732_v28  ;;  %v2998_v31 = vpop.f32.mrf.mxu2  ;;  %v4142_v32 = vpop.f32.mrf.mxu3 }
  0xa2   :  { %v2999_v34 = vadd.f32 %v6971_v40, %v2998_v31  ;;  %v4143_v35 = vadd.f32 %v6971_v40, %v4142_v32  ;;  %v603_v36 = vpop.f32.mrf.mxu0  ;;  %v1748_v37 = vpop.f32.mrf.mxu1 }
  0xa3   :  { %v4948_v38 = vpack.c.bf16 %v4840_v30, %v4840_v30  ;;  %v604_v41 = vadd.f32 %v6971_v40, %v603_v36  ;;  %v1749_v42 = vadd.f32 %v6971_v40, %v1748_v37  ;;  %v6647_v36 = vld [vmem:[%s9038_s0 + $0x208] sm:$0xff] }
  0xa4   :  { %vm3265_vm14 = vcmp.ge.f32.partialorder %v2999_v34, 0.0  ;;  %v3373_v43 = vmul.f32 %v2999_v34, %v6990_v49  ;;  %vm4409_vm15 = vcmp.ge.f32.partialorder %v4143_v35, 0.0  ;;  %v4517_v44 = vmul.f32 %v4143_v35, %v6990_v49 }
  0xa5   :  { %5057 = vst.msk [vmem:[%s9040_s4 + $0x4] sm:$0xf] %vm5055_vm9, %v4948_v38  ;;  %v978_v47 = vmul.f32 %v6990_v49, %v604_v41  ;;  %vm869_vm0 = vcmp.ge.f32.partialorder %v604_v41, 0.0  ;;  %v2122_v51 = vmul.f32 %v1749_v42, %v6990_v49  ;;  %vm2014_vm1 = vcmp.ge.f32.partialorder %v1749_v42, 0.0 }
  0xa6   :  { %v3481_v45 = vsel %vm3265_vm14, %v2999_v34, %v3373_v43  ;;  %v4625_v46 = vsel %vm4409_vm15, %v4143_v35, %v4517_v44  ;;  %v6593_v35 = vld [vmem:[%s9038_s0 + $0x58] sm:$0xff]  ;;  %v6755_v44 = vld [vmem:[%s9038_s0 + $0x568] sm:$0xff] }
  0xa7   :  { %v4733_v50 = vmax.f32 %v3481_v45, %v4625_v46  ;;  %v1086_v57 = vsel %vm869_vm0, %v604_v41, %v978_v47  ;;  %v2230_v1 = vsel %vm2014_vm1, %v1749_v42, %v2122_v51  ;;  %v6701_v43 = vld [vmem:[%s9038_s0 + $0x3b8] sm:$0xff] }
  0xa8   :  { %v2338_v9 = vmax.f32 %v1086_v57, %v2230_v1 }
  0xa9   :  { %v4841_v52 = vmax.f32 %v2337_v48, %v4733_v50  ;;  %v3000_v53 = vpop.f32.mrf.mxu2  ;;  %v4144_v54 = vpop.f32.mrf.mxu3 }
  0xaa   :  { %v3001_v58 = vadd.f32 %v6971_v40, %v3000_v53  ;;  %v4145_v59 = vadd.f32 %v6971_v40, %v4144_v54  ;;  %v606_v60 = vpop.f32.mrf.mxu0  ;;  %v1751_v61 = vpop.f32.mrf.mxu1 }
  0xab   :  { %v4949_v0 = vpack.c.bf16 %v4841_v52, %v4841_v52  ;;  %v607_v2 = vadd.f32 %v6971_v40, %v606_v60  ;;  %v1752_v3 = vadd.f32 %v6971_v40, %v1751_v61 }
  0xac   :  { %vm3266_vm3 = vcmp.ge.f32.partialorder %v3001_v58, 0.0  ;;  %v3374_v4 = vmul.f32 %v3001_v58, %v6990_v49  ;;  %vm4410_vm4 = vcmp.ge.f32.partialorder %v4145_v59, 0.0  ;;  %v4518_v5 = vmul.f32 %v4145_v59, %v6990_v49 }
  0xad   :  { %5058 = vst.msk [vmem:[%s9040_s4 + $0x8] sm:$0xf] %vm5055_vm9, %v4949_v0  ;;  %5402 = vmatmul.msk.bf16.gmra.mxu0 %vm417_vm2, %v6592_v55  ;;  %5780 = vmatmul.msk.bf16.gmra.mxu1 %vm417_vm2, %v6646_v56  ;;  %v979_v8 = vmul.f32 %v6990_v49, %v607_v2  ;;  %vm870_vm5 = vcmp.ge.f32.partialorder %v607_v2, 0.0  ;;  %v2123_v11 = vmul.f32 %v1752_v3, %v6990_v49  ;;  %vm2015_vm6 = vcmp.ge.f32.partialorder %v1752_v3, 0.0 }
  0xae   :  { %v3482_v6 = vsel %vm3266_vm3, %v3001_v58, %v3374_v4  ;;  %v4626_v7 = vsel %vm4410_vm4, %v4145_v59, %v4518_v5  ;;  %6158 = vmatmul.msk.bf16.gmra.mxu2 %vm417_vm2, %v6700_v62  ;;  %6536 = vmatmul.msk.bf16.gmra.mxu3 %vm417_vm2, %v6754_v63 }
  0xaf   :  { %v4734_v10 = vmax.f32 %v3482_v6, %v4626_v7  ;;  %v1087_v15 = vsel %vm870_vm5, %v607_v2, %v979_v8  ;;  %v2231_v21 = vsel %vm2015_vm6, %v1752_v3, %v2123_v11 }
  0xb0   :  { %v2339_v29 = vmax.f32 %v1087_v15, %v2231_v21 }
  0xb1   :  { %v4842_v12 = vmax.f32 %v2338_v9, %v4734_v10  ;;  %v3003_v13 = vpop.f32.mrf.mxu2  ;;  %v4147_v14 = vpop.f32.mrf.mxu3 }
  0xb2   :  { %v3004_v16 = vadd.f32 %v6971_v40, %v3003_v13  ;;  %v4148_v17 = vadd.f32 %v6971_v40, %v4147_v14  ;;  %v608_v18 = vpop.f32.mrf.mxu0  ;;  %v1753_v19 = vpop.f32.mrf.mxu1 }
  0xb3   :  { %v4950_v20 = vpack.c.bf16 %v4842_v12, %v4842_v12  ;;  %v609_v22 = vadd.f32 %v6971_v40, %v608_v18  ;;  %v1754_v23 = vadd.f32 %v6971_v40, %v1753_v19  ;;  %v6648_v18 = vld [vmem:[%s9038_s0 + $0x210] sm:$0xff] }
  0xb4   :  { %vm3267_vm7 = vcmp.ge.f32.partialorder %v3004_v16, 0.0  ;;  %v3375_v24 = vmul.f32 %v3004_v16, %v6990_v49  ;;  %vm4411_vm8 = vcmp.ge.f32.partialorder %v4148_v17, 0.0  ;;  %v4519_v25 = vmul.f32 %v4148_v17, %v6990_v49 }
  0xb5   :  { %5059 = vst.msk [vmem:[%s9040_s4 + $0xc] sm:$0xf] %vm5055_vm9, %v4950_v20  ;;  %v980_v28 = vmul.f32 %v6990_v49, %v609_v22  ;;  %vm871_vm10 = vcmp.ge.f32.partialorder %v609_v22, 0.0  ;;  %v2124_v31 = vmul.f32 %v1754_v23, %v6990_v49  ;;  %vm2016_vm11 = vcmp.ge.f32.partialorder %v1754_v23, 0.0 }
  0xb6   :  { %v3483_v26 = vsel %vm3267_vm7, %v3004_v16, %v3375_v24  ;;  %v4627_v27 = vsel %vm4411_vm8, %v4148_v17, %v4519_v25  ;;  %v6594_v17 = vld [vmem:[%s9038_s0 + $0x60] sm:$0xff]  ;;  %v6756_v25 = vld [vmem:[%s9038_s0 + $0x570] sm:$0xff] }
  0xb7   :  { %v4735_v30 = vmax.f32 %v3483_v26, %v4627_v27  ;;  %v1088_v37 = vsel %vm871_vm10, %v609_v22, %v980_v28  ;;  %v2232_v46 = vsel %vm2016_vm11, %v1754_v23, %v2124_v31  ;;  %v6702_v24 = vld [vmem:[%s9038_s0 + $0x3c0] sm:$0xff] }
  0xb8   :  { %v2340_v55 = vmax.f32 %v1088_v37, %v2232_v46 }
  0xb9   :  { %v4843_v32 = vmax.f32 %v2339_v29, %v4735_v30  ;;  %v3005_v33 = vpop.f32.mrf.mxu2  ;;  %v4149_v34 = vpop.f32.mrf.mxu3 }
  0xba   :  { %v3006_v38 = vadd.f32 %v6971_v40, %v3005_v33  ;;  %v4150_v39 = vadd.f32 %v6971_v40, %v4149_v34  ;;  %v611_v41 = vpop.f32.mrf.mxu0  ;;  %v1756_v42 = vpop.f32.mrf.mxu1 }
  0xbb   :  { %v4951_v45 = vpack.c.bf16 %v4843_v32, %v4843_v32  ;;  %v612_v47 = vadd.f32 %v6971_v40, %v611_v41  ;;  %v1757_v48 = vadd.f32 %v6971_v40, %v1756_v42 }
  0xbc   :  { %vm3268_vm12 = vcmp.ge.f32.partialorder %v3006_v38, 0.0  ;;  %v3376_v50 = vmul.f32 %v3006_v38, %v6990_v49  ;;  %vm4412_vm13 = vcmp.ge.f32.partialorder %v4150_v39, 0.0  ;;  %v4520_v51 = vmul.f32 %v4150_v39, %v6990_v49 }
  0xbd   :  { %5060 = vst.msk [vmem:[%s9040_s4 + $0x10] sm:$0xf] %vm5055_vm9, %v4951_v45  ;;  %5403 = vmatmul.msk.bf16.gmra.mxu0 %vm417_vm2, %v6593_v35  ;;  %5781 = vmatmul.msk.bf16.gmra.mxu1 %vm417_vm2, %v6647_v36  ;;  %v981_v54 = vmul.f32 %v6990_v49, %v612_v47  ;;  %vm872_vm14 = vcmp.ge.f32.partialorder %v612_v47, 0.0  ;;  %v2125_v57 = vmul.f32 %v1757_v48, %v6990_v49  ;;  %vm2017_vm15 = vcmp.ge.f32.partialorder %v1757_v48, 0.0 }
  0xbe   :  { %v3484_v52 = vsel %vm3268_vm12, %v3006_v38, %v3376_v50  ;;  %v4628_v53 = vsel %vm4412_vm13, %v4150_v39, %v4520_v51  ;;  %6159 = vmatmul.msk.bf16.gmra.mxu2 %vm417_vm2, %v6701_v43  ;;  %6537 = vmatmul.msk.bf16.gmra.mxu3 %vm417_vm2, %v6755_v44 }
  0xbf   :  { %v4736_v56 = vmax.f32 %v3484_v52, %v4628_v53  ;;  %v1089_v61 = vsel %vm872_vm14, %v612_v47, %v981_v54  ;;  %v2233_v3 = vsel %vm2017_vm15, %v1757_v48, %v2125_v57 }
  0xc0   :  { %v2341_v11 = vmax.f32 %v1089_v61, %v2233_v3 }
  0xc1   :  { %v4844_v58 = vmax.f32 %v2340_v55, %v4736_v56  ;;  %v3008_v59 = vpop.f32.mrf.mxu2  ;;  %v4152_v60 = vpop.f32.mrf.mxu3 }
  0xc2   :  { %v3009_v62 = vadd.f32 %v6971_v40, %v3008_v59  ;;  %v4153_v63 = vadd.f32 %v6971_v40, %v4152_v60  ;;  %v613_v0 = vpop.f32.mrf.mxu0  ;;  %v1758_v1 = vpop.f32.mrf.mxu1 }
  0xc3   :  { %v4952_v2 = vpack.c.bf16 %v4844_v58, %v4844_v58  ;;  %v614_v4 = vadd.f32 %v6971_v40, %v613_v0  ;;  %v1759_v5 = vadd.f32 %v6971_v40, %v1758_v1  ;;  %v6649_v0 = vld [vmem:[%s9038_s0 + $0x218] sm:$0xff] }
  0xc4   :  { %vm3269_vm0 = vcmp.ge.f32.partialorder %v3009_v62, 0.0  ;;  %v3377_v6 = vmul.f32 %v3009_v62, %v6990_v49  ;;  %vm4413_vm1 = vcmp.ge.f32.partialorder %v4153_v63, 0.0  ;;  %v4521_v7 = vmul.f32 %v4153_v63, %v6990_v49 }
  0xc5   :  { %5061 = vst.msk [vmem:[%s9040_s4 + $0x14] sm:$0xf] %vm5055_vm9, %v4952_v2  ;;  %v982_v10 = vmul.f32 %v6990_v49, %v614_v4  ;;  %vm873_vm3 = vcmp.ge.f32.partialorder %v614_v4, 0.0  ;;  %v2126_v13 = vmul.f32 %v1759_v5, %v6990_v49  ;;  %vm2018_vm4 = vcmp.ge.f32.partialorder %v1759_v5, 0.0 }
  0xc6   :  { %v3485_v8 = vsel %vm3269_vm0, %v3009_v62, %v3377_v6  ;;  %v4629_v9 = vsel %vm4413_vm1, %v4153_v63, %v4521_v7  ;;  %v6595_v63 = vld [vmem:[%s9038_s0 + $0x68] sm:$0xff]  ;;  %v6757_v7 = vld [vmem:[%s9038_s0 + $0x578] sm:$0xff] }
  0xc7   :  { %v4737_v12 = vmax.f32 %v3485_v8, %v4629_v9  ;;  %v1090_v19 = vsel %vm873_vm3, %v614_v4, %v982_v10  ;;  %v2234_v27 = vsel %vm2018_vm4, %v1759_v5, %v2126_v13  ;;  %v6703_v6 = vld [vmem:[%s9038_s0 + $0x3c8] sm:$0xff] }
  0xc8   :  { %v2342_v35 = vmax.f32 %v1090_v19, %v2234_v27 }
  0xc9   :  { %v4845_v14 = vmax.f32 %v2341_v11, %v4737_v12  ;;  %v3010_v15 = vpop.f32.mrf.mxu2  ;;  %v4154_v16 = vpop.f32.mrf.mxu3 }
  0xca   :  { %v3011_v20 = vadd.f32 %v6971_v40, %v3010_v15  ;;  %v4155_v21 = vadd.f32 %v6971_v40, %v4154_v16  ;;  %v616_v22 = vpop.f32.mrf.mxu0  ;;  %v1761_v23 = vpop.f32.mrf.mxu1 }
  0xcb   :  { %v4953_v26 = vpack.c.bf16 %v4845_v14, %v4845_v14  ;;  %v617_v28 = vadd.f32 %v6971_v40, %v616_v22  ;;  %v1762_v29 = vadd.f32 %v6971_v40, %v1761_v23 }
  0xcc   :  { %vm3270_vm5 = vcmp.ge.f32.partialorder %v3011_v20, 0.0  ;;  %v3378_v30 = vmul.f32 %v3011_v20, %v6990_v49  ;;  %vm4414_vm6 = vcmp.ge.f32.partialorder %v4155_v21, 0.0  ;;  %v4522_v31 = vmul.f32 %v4155_v21, %v6990_v49 }
  0xcd   :  { %5062 = vst.msk [vmem:[%s9040_s4 + $0x18] sm:$0xf] %vm5055_vm9, %v4953_v26  ;;  %5404 = vmatmul.msk.bf16.gmra.mxu0 %vm417_vm2, %v6594_v17  ;;  %5782 = vmatmul.msk.bf16.gmra.mxu1 %vm417_vm2, %v6648_v18  ;;  %v983_v34 = vmul.f32 %v6990_v49, %v617_v28  ;;  %vm874_vm7 = vcmp.ge.f32.partialorder %v617_v28, 0.0  ;;  %v2127_v37 = vmul.f32 %v1762_v29, %v6990_v49  ;;  %vm2019_vm8 = vcmp.ge.f32.partialorder %v1762_v29, 0.0 }
  0xce   :  { %v3486_v32 = vsel %vm3270_vm5, %v3011_v20, %v3378_v30  ;;  %v4630_v33 = vsel %vm4414_vm6, %v4155_v21, %v4522_v31  ;;  %6160 = vmatmul.msk.bf16.gmra.mxu2 %vm417_vm2, %v6702_v24  ;;  %6538 = vmatmul.msk.bf16.gmra.mxu3 %vm417_vm2, %v6756_v25 }
  0xcf   :  { %v4738_v36 = vmax.f32 %v3486_v32, %v4630_v33  ;;  %v1091_v42 = vsel %vm874_vm7, %v617_v28, %v983_v34  ;;  %v2235_v48 = vsel %vm2019_vm8, %v1762_v29, %v2127_v37 }
  0xd0   :  { %v2343_v57 = vmax.f32 %v1091_v42, %v2235_v48 }
  0xd1   :  { %v4846_v38 = vmax.f32 %v2342_v35, %v4738_v36  ;;  %v3013_v39 = vpop.f32.mrf.mxu2  ;;  %v4157_v41 = vpop.f32.mrf.mxu3 }
  0xd2   :  { %v3014_v43 = vadd.f32 %v6971_v40, %v3013_v39  ;;  %v4158_v44 = vadd.f32 %v6971_v40, %v4157_v41  ;;  %v618_v45 = vpop.f32.mrf.mxu0  ;;  %v1763_v46 = vpop.f32.mrf.mxu1 }
  0xd3   :  { %v4954_v47 = vpack.c.bf16 %v4846_v38, %v4846_v38  ;;  %v619_v50 = vadd.f32 %v6971_v40, %v618_v45  ;;  %v1764_v51 = vadd.f32 %v6971_v40, %v1763_v46  ;;  %v6650_v45 = vld [vmem:[%s9038_s0 + $0x220] sm:$0xff] }
  0xd4   :  { %vm3271_vm10 = vcmp.ge.f32.partialorder %v3014_v43, 0.0  ;;  %v3379_v52 = vmul.f32 %v3014_v43, %v6990_v49  ;;  %vm4415_vm11 = vcmp.ge.f32.partialorder %v4158_v44, 0.0  ;;  %v4523_v53 = vmul.f32 %v4158_v44, %v6990_v49 }
  0xd5   :  { %5063 = vst.msk [vmem:[%s9040_s4 + $0x1c] sm:$0xf] %vm5055_vm9, %v4954_v47  ;;  %v984_v56 = vmul.f32 %v6990_v49, %v619_v50  ;;  %vm875_vm12 = vcmp.ge.f32.partialorder %v619_v50, 0.0  ;;  %v2128_v59 = vmul.f32 %v1764_v51, %v6990_v49  ;;  %vm2020_vm13 = vcmp.ge.f32.partialorder %v1764_v51, 0.0 }
  0xd6   :  { %v3487_v54 = vsel %vm3271_vm10, %v3014_v43, %v3379_v52  ;;  %v4631_v55 = vsel %vm4415_vm11, %v4158_v44, %v4523_v53  ;;  %v6596_v44 = vld [vmem:[%s9038_s0 + $0x70] sm:$0xff]  ;;  %v6758_v53 = vld [vmem:[%s9038_s0 + $0x580] sm:$0xff] }
  0xd7   :  { %v4739_v58 = vmax.f32 %v3487_v54, %v4631_v55  ;;  %v1092_v1 = vsel %vm875_vm12, %v619_v50, %v984_v56  ;;  %v2236_v9 = vsel %vm2020_vm13, %v1764_v51, %v2128_v59  ;;  %v6704_v52 = vld [vmem:[%s9038_s0 + $0x3d0] sm:$0xff] }
  0xd8   :  { %v2344_v17 = vmax.f32 %v1092_v1, %v2236_v9 }
  0xd9   :  { %v4847_v60 = vmax.f32 %v2343_v57, %v4739_v58  ;;  %v3015_v61 = vpop.f32.mrf.mxu2  ;;  %v4159_v62 = vpop.f32.mrf.mxu3 }
  0xda   :  { %v3016_v2 = vadd.f32 %v6971_v40, %v3015_v61  ;;  %v4160_v3 = vadd.f32 %v6971_v40, %v4159_v62  ;;  %v621_v4 = vpop.f32.mrf.mxu0  ;;  %v1766_v5 = vpop.f32.mrf.mxu1 }
  0xdb   :  { %v4955_v8 = vpack.c.bf16 %v4847_v60, %v4847_v60  ;;  %v622_v10 = vadd.f32 %v6971_v40, %v621_v4  ;;  %v1767_v11 = vadd.f32 %v6971_v40, %v1766_v5 }
  0xdc   :  { %vm3272_vm14 = vcmp.ge.f32.partialorder %v3016_v2, 0.0  ;;  %v3380_v12 = vmul.f32 %v3016_v2, %v6990_v49  ;;  %vm4416_vm15 = vcmp.ge.f32.partialorder %v4160_v3, 0.0  ;;  %v4524_v13 = vmul.f32 %v4160_v3, %v6990_v49 }
  0xdd   :  { %5064 = vst.msk [vmem:[%s9040_s4 + $0x20] sm:$0xf] %vm5055_vm9, %v4955_v8  ;;  %5405 = vmatmul.msk.bf16.gmra.mxu0 %vm417_vm2, %v6595_v63  ;;  %5783 = vmatmul.msk.bf16.gmra.mxu1 %vm417_vm2, %v6649_v0  ;;  %v985_v16 = vmul.f32 %v6990_v49, %v622_v10  ;;  %vm876_vm0 = vcmp.ge.f32.partialorder %v622_v10, 0.0  ;;  %v2129_v19 = vmul.f32 %v1767_v11, %v6990_v49  ;;  %vm2021_vm1 = vcmp.ge.f32.partialorder %v1767_v11, 0.0 }
  0xde   :  { %v3488_v14 = vsel %vm3272_vm14, %v3016_v2, %v3380_v12  ;;  %v4632_v15 = vsel %vm4416_vm15, %v4160_v3, %v4524_v13  ;;  %6161 = vmatmul.msk.bf16.gmra.mxu2 %vm417_vm2, %v6703_v6  ;;  %6539 = vmatmul.msk.bf16.gmra.mxu3 %vm417_vm2, %v6757_v7 }
  0xdf   :  { %v4740_v18 = vmax.f32 %v3488_v14, %v4632_v15  ;;  %v1093_v23 = vsel %vm876_vm0, %v622_v10, %v985_v16  ;;  %v2237_v29 = vsel %vm2021_vm1, %v1767_v11, %v2129_v19 }
  0xe0   :  { %v2345_v37 = vmax.f32 %v1093_v23, %v2237_v29 }
  0xe1   :  { %v4848_v20 = vmax.f32 %v2344_v17, %v4740_v18  ;;  %v3018_v21 = vpop.f32.mrf.mxu2  ;;  %v4162_v22 = vpop.f32.mrf.mxu3 }
  0xe2   :  { %v3019_v24 = vadd.f32 %v6971_v40, %v3018_v21  ;;  %v4163_v25 = vadd.f32 %v6971_v40, %v4162_v22  ;;  %v623_v26 = vpop.f32.mrf.mxu0  ;;  %v1768_v27 = vpop.f32.mrf.mxu1 }
  0xe3   :  { %v4956_v28 = vpack.c.bf16 %v4848_v20, %v4848_v20  ;;  %v624_v30 = vadd.f32 %v6971_v40, %v623_v26  ;;  %v1769_v31 = vadd.f32 %v6971_v40, %v1768_v27  ;;  %v6651_v26 = vld [vmem:[%s9038_s0 + $0x228] sm:$0xff] }
  0xe4   :  { %vm3273_vm3 = vcmp.ge.f32.partialorder %v3019_v24, 0.0  ;;  %v3381_v32 = vmul.f32 %v3019_v24, %v6990_v49  ;;  %vm4417_vm4 = vcmp.ge.f32.partialorder %v4163_v25, 0.0  ;;  %v4525_v33 = vmul.f32 %v4163_v25, %v6990_v49 }
  0xe5   :  { %5065 = vst.msk [vmem:[%s9040_s4 + $0x24] sm:$0xf] %vm5055_vm9, %v4956_v28  ;;  %v986_v36 = vmul.f32 %v6990_v49, %v624_v30  ;;  %vm877_vm5 = vcmp.ge.f32.partialorder %v624_v30, 0.0  ;;  %v2130_v39 = vmul.f32 %v1769_v31, %v6990_v49  ;;  %vm2022_vm6 = vcmp.ge.f32.partialorder %v1769_v31, 0.0 }
  0xe6   :  { %v3489_v34 = vsel %vm3273_vm3, %v3019_v24, %v3381_v32  ;;  %v4633_v35 = vsel %vm4417_vm4, %v4163_v25, %v4525_v33  ;;  %v6597_v25 = vld [vmem:[%s9038_s0 + $0x78] sm:$0xff]  ;;  %v6759_v33 = vld [vmem:[%s9038_s0 + $0x588] sm:$0xff] }
  0xe7   :  { %v4741_v38 = vmax.f32 %v3489_v34, %v4633_v35  ;;  %v1094_v46 = vsel %vm877_vm5, %v624_v30, %v986_v36  ;;  %v2238_v55 = vsel %vm2022_vm6, %v1769_v31, %v2130_v39  ;;  %v6705_v32 = vld [vmem:[%s9038_s0 + $0x3d8] sm:$0xff] }
  0xe8   :  { %v2346_v63 = vmax.f32 %v1094_v46, %v2238_v55 }
  0xe9   :  { %v4849_v41 = vmax.f32 %v2345_v37, %v4741_v38  ;;  %v3020_v42 = vpop.f32.mrf.mxu2  ;;  %v4164_v43 = vpop.f32.mrf.mxu3 }
  0xea   :  { %v3021_v47 = vadd.f32 %v6971_v40, %v3020_v42  ;;  %v4165_v48 = vadd.f32 %v6971_v40, %v4164_v43  ;;  %v626_v50 = vpop.f32.mrf.mxu0  ;;  %v1771_v51 = vpop.f32.mrf.mxu1 }
  0xeb   :  { %v4957_v54 = vpack.c.bf16 %v4849_v41, %v4849_v41  ;;  %v627_v56 = vadd.f32 %v6971_v40, %v626_v50  ;;  %v1772_v57 = vadd.f32 %v6971_v40, %v1771_v51 }
  0xec   :  { %vm3274_vm7 = vcmp.ge.f32.partialorder %v3021_v47, 0.0  ;;  %v3382_v58 = vmul.f32 %v3021_v47, %v6990_v49  ;;  %vm4418_vm8 = vcmp.ge.f32.partialorder %v4165_v48, 0.0  ;;  %v4526_v59 = vmul.f32 %v4165_v48, %v6990_v49 }
  0xed   :  { %5066 = vst.msk [vmem:[%s9040_s4 + $0x28] sm:$0xf] %vm5055_vm9, %v4957_v54  ;;  %5406 = vmatmul.msk.bf16.gmra.mxu0 %vm417_vm2, %v6596_v44  ;;  %5784 = vmatmul.msk.bf16.gmra.mxu1 %vm417_vm2, %v6650_v45  ;;  %v987_v62 = vmul.f32 %v6990_v49, %v627_v56  ;;  %vm878_vm10 = vcmp.ge.f32.partialorder %v627_v56, 0.0  ;;  %v2131_v1 = vmul.f32 %v1772_v57, %v6990_v49  ;;  %vm2023_vm11 = vcmp.ge.f32.partialorder %v1772_v57, 0.0 }
  0xee   :  { %v3490_v60 = vsel %vm3274_vm7, %v3021_v47, %v3382_v58  ;;  %v4634_v61 = vsel %vm4418_vm8, %v4165_v48, %v4526_v59  ;;  %6162 = vmatmul.msk.bf16.gmra.mxu2 %vm417_vm2, %v6704_v52  ;;  %6540 = vmatmul.msk.bf16.gmra.mxu3 %vm417_vm2, %v6758_v53 }
  0xef   :  { %v4742_v0 = vmax.f32 %v3490_v60, %v4634_v61  ;;  %v1095_v5 = vsel %vm878_vm10, %v627_v56, %v987_v62  ;;  %v2239_v11 = vsel %vm2023_vm11, %v1772_v57, %v2131_v1 }
  0xf0   :  { %v2347_v19 = vmax.f32 %v1095_v5, %v2239_v11 }
  0xf1   :  { %v4850_v2 = vmax.f32 %v2346_v63, %v4742_v0  ;;  %v3023_v3 = vpop.f32.mrf.mxu2  ;;  %v4167_v4 = vpop.f32.mrf.mxu3 }
  0xf2   :  { %v3024_v6 = vadd.f32 %v6971_v40, %v3023_v3  ;;  %v4168_v7 = vadd.f32 %v6971_v40, %v4167_v4  ;;  %v628_v8 = vpop.f32.mrf.mxu0  ;;  %v1773_v9 = vpop.f32.mrf.mxu1 }
  0xf3   :  { %v4958_v10 = vpack.c.bf16 %v4850_v2, %v4850_v2  ;;  %v629_v12 = vadd.f32 %v6971_v40, %v628_v8  ;;  %v1774_v13 = vadd.f32 %v6971_v40, %v1773_v9  ;;  %v6652_v8 = vld [vmem:[%s9038_s0 + $0x230] sm:$0xff] }
  0xf4   :  { %vm3275_vm12 = vcmp.ge.f32.partialorder %v3024_v6, 0.0  ;;  %v3383_v14 = vmul.f32 %v3024_v6, %v6990_v49  ;;  %vm4419_vm13 = vcmp.ge.f32.partialorder %v4168_v7, 0.0  ;;  %v4527_v15 = vmul.f32 %v4168_v7, %v6990_v49 }
  0xf5   :  { %5067 = vst.msk [vmem:[%s9040_s4 + $0x2c] sm:$0xf] %vm5055_vm9, %v4958_v10  ;;  %v988_v18 = vmul.f32 %v6990_v49, %v629_v12  ;;  %vm879_vm14 = vcmp.ge.f32.partialorder %v629_v12, 0.0  ;;  %v2132_v21 = vmul.f32 %v1774_v13, %v6990_v49  ;;  %vm2024_vm15 = vcmp.ge.f32.partialorder %v1774_v13, 0.0 }
  0xf6   :  { %v3491_v16 = vsel %vm3275_vm12, %v3024_v6, %v3383_v14  ;;  %v4635_v17 = vsel %vm4419_vm13, %v4168_v7, %v4527_v15  ;;  %v6598_v7 = vld [vmem:[%s9038_s0 + $0x80] sm:$0xff]  ;;  %v6760_v15 = vld [vmem:[%s9038_s0 + $0x590] sm:$0xff] }
  0xf7   :  { %v4743_v20 = vmax.f32 %v3491_v16, %v4635_v17  ;;  %v1096_v27 = vsel %vm879_vm14, %v629_v12, %v988_v18  ;;  %v2240_v35 = vsel %vm2024_vm15, %v1774_v13, %v2132_v21  ;;  %v6706_v14 = vld [vmem:[%s9038_s0 + $0x3e0] sm:$0xff] }
  0xf8   :  { %v2348_v44 = vmax.f32 %v1096_v27, %v2240_v35 }
  0xf9   :  { %v4851_v22 = vmax.f32 %v2347_v19, %v4743_v20  ;;  %v3025_v23 = vpop.f32.mrf.mxu2  ;;  %v4169_v24 = vpop.f32.mrf.mxu3 }
  0xfa   :  { %v3026_v28 = vadd.f32 %v6971_v40, %v3025_v23  ;;  %v4170_v29 = vadd.f32 %v6971_v40, %v4169_v24  ;;  %v631_v30 = vpop.f32.mrf.mxu0  ;;  %v1776_v31 = vpop.f32.mrf.mxu1 }
  0xfb   :  { %v4959_v34 = vpack.c.bf16 %v4851_v22, %v4851_v22  ;;  %v632_v36 = vadd.f32 %v6971_v40, %v631_v30  ;;  %v1777_v37 = vadd.f32 %v6971_v40, %v1776_v31 }
  0xfc   :  { %vm3276_vm0 = vcmp.ge.f32.partialorder %v3026_v28, 0.0  ;;  %v3384_v38 = vmul.f32 %v3026_v28, %v6990_v49  ;;  %vm4420_vm1 = vcmp.ge.f32.partialorder %v4170_v29, 0.0  ;;  %v4528_v39 = vmul.f32 %v4170_v29, %v6990_v49 }
  0xfd   :  { %5068 = vst.msk [vmem:[%s9040_s4 + $0x30] sm:$0xf] %vm5055_vm9, %v4959_v34  ;;  %5407 = vmatmul.msk.bf16.gmra.mxu0 %vm417_vm2, %v6597_v25  ;;  %5785 = vmatmul.msk.bf16.gmra.mxu1 %vm417_vm2, %v6651_v26  ;;  %v989_v43 = vmul.f32 %v6990_v49, %v632_v36  ;;  %vm880_vm3 = vcmp.ge.f32.partialorder %v632_v36, 0.0  ;;  %v2133_v46 = vmul.f32 %v1777_v37, %v6990_v49  ;;  %vm2025_vm4 = vcmp.ge.f32.partialorder %v1777_v37, 0.0 }
  0xfe   :  { %v3492_v41 = vsel %vm3276_vm0, %v3026_v28, %v3384_v38  ;;  %v4636_v42 = vsel %vm4420_vm1, %v4170_v29, %v4528_v39  ;;  %6163 = vmatmul.msk.bf16.gmra.mxu2 %vm417_vm2, %v6705_v32  ;;  %6541 = vmatmul.msk.bf16.gmra.mxu3 %vm417_vm2, %v6759_v33 }
  0xff   :  { %v4744_v45 = vmax.f32 %v3492_v41, %v4636_v42  ;;  %v1097_v51 = vsel %vm880_vm3, %v632_v36, %v989_v43  ;;  %v2241_v57 = vsel %vm2025_vm4, %v1777_v37, %v2133_v46 }
 0x100   :  { %v2349_v1 = vmax.f32 %v1097_v51, %v2241_v57 }
 0x101   :  { %v4852_v47 = vmax.f32 %v2348_v44, %v4744_v45  ;;  %v3028_v48 = vpop.f32.mrf.mxu2  ;;  %v4172_v50 = vpop.f32.mrf.mxu3 }
 0x102   :  { %v3029_v52 = vadd.f32 %v6971_v40, %v3028_v48  ;;  %v4173_v53 = vadd.f32 %v6971_v40, %v4172_v50  ;;  %v633_v54 = vpop.f32.mrf.mxu0  ;;  %v1778_v55 = vpop.f32.mrf.mxu1 }
 0x103   :  { %v4960_v56 = vpack.c.bf16 %v4852_v47, %v4852_v47  ;;  %v634_v58 = vadd.f32 %v6971_v40, %v633_v54  ;;  %v1779_v59 = vadd.f32 %v6971_v40, %v1778_v55  ;;  %v7336_v55 = vld [vmem:[%s9037_s2] ss:$0 sm:$0xff] }
 0x104   :  { %vm3277_vm5 = vcmp.ge.f32.partialorder %v3029_v52, 0.0  ;;  %v3385_v60 = vmul.f32 %v3029_v52, %v6990_v49  ;;  %vm4421_vm6 = vcmp.ge.f32.partialorder %v4173_v53, 0.0  ;;  %v4529_v61 = vmul.f32 %v4173_v53, %v6990_v49 }
 0x105   :  { %5069 = vst.msk [vmem:[%s9040_s4 + $0x34] sm:$0xf] %vm5055_vm9, %v4960_v56  ;;  %v990_v0 = vmul.f32 %v6990_v49, %v634_v58  ;;  %vm881_vm7 = vcmp.ge.f32.partialorder %v634_v58, 0.0  ;;  %v2134_v3 = vmul.f32 %v1779_v59, %v6990_v49  ;;  %vm2026_vm8 = vcmp.ge.f32.partialorder %v1779_v59, 0.0 }
 0x106   :  { %v3493_v62 = vsel %vm3277_vm5, %v3029_v52, %v3385_v60  ;;  %v4637_v63 = vsel %vm4421_vm6, %v4173_v53, %v4529_v61  ;;  %v6599_v52 = vld [vmem:[%s9038_s0 + $0x88] sm:$0xff]  ;;  %v6653_v53 = vld [vmem:[%s9038_s0 + $0x238] sm:$0xff] }
 0x107   :  { %v4745_v2 = vmax.f32 %v3493_v62, %v4637_v63  ;;  %v1098_v9 = vsel %vm881_vm7, %v634_v58, %v990_v0  ;;  %v2242_v17 = vsel %vm2026_vm8, %v1779_v59, %v2134_v3  ;;  %v6707_v60 = vld [vmem:[%s9038_s0 + $0x3e8] sm:$0xff]  ;;  %v6761_v61 = vld [vmem:[%s9038_s0 + $0x598] sm:$0xff] }
 0x108   :  { %v2350_v25 = vmax.f32 %v1098_v9, %v2242_v17 }
 0x109   :  { %v4853_v4 = vmax.f32 %v2349_v1, %v4745_v2  ;;  %v3030_v5 = vpop.f32.mrf.mxu2  ;;  %v4174_v6 = vpop.f32.mrf.mxu3 }
 0x10a   :  { %v3031_v10 = vadd.f32 %v6971_v40, %v3030_v5  ;;  %v4175_v11 = vadd.f32 %v6971_v40, %v4174_v6  ;;  %v636_v12 = vpop.f32.mrf.mxu0  ;;  %v1781_v13 = vpop.f32.mrf.mxu1 }
 0x10b   :  { %v4961_v16 = vpack.c.bf16 %v4853_v4, %v4853_v4  ;;  %v637_v18 = vadd.f32 %v6971_v40, %v636_v12  ;;  %v1782_v19 = vadd.f32 %v6971_v40, %v1781_v13 }
 0x10c   :  { %vm3278_vm10 = vcmp.ge.f32.partialorder %v3031_v10, 0.0  ;;  %v3386_v20 = vmul.f32 %v3031_v10, %v6990_v49  ;;  %vm4422_vm11 = vcmp.ge.f32.partialorder %v4175_v11, 0.0  ;;  %v4530_v21 = vmul.f32 %v4175_v11, %v6990_v49 }
 0x10d   :  { %5070 = vst.msk [vmem:[%s9040_s4 + $0x38] sm:$0xf] %vm5055_vm9, %v4961_v16  ;;  %5408 = vmatmul.msk.bf16.gmra.mxu0 %vm417_vm2, %v6598_v7  ;;  %5786 = vmatmul.msk.bf16.gmra.mxu1 %vm417_vm2, %v6652_v8  ;;  %v991_v24 = vmul.f32 %v6990_v49, %v637_v18  ;;  %vm882_vm12 = vcmp.ge.f32.partialorder %v637_v18, 0.0  ;;  %v2135_v27 = vmul.f32 %v1782_v19, %v6990_v49  ;;  %vm2027_vm13 = vcmp.ge.f32.partialorder %v1782_v19, 0.0 }
 0x10e   :  { %v3494_v22 = vsel %vm3278_vm10, %v3031_v10, %v3386_v20  ;;  %v4638_v23 = vsel %vm4422_vm11, %v4175_v11, %v4530_v21  ;;  %6164 = vmatmul.msk.bf16.gmra.mxu2 %vm417_vm2, %v6706_v14  ;;  %6542 = vmatmul.msk.bf16.gmra.mxu3 %vm417_vm2, %v6760_v15 }
 0x10f   :  { %v4746_v26 = vmax.f32 %v3494_v22, %v4638_v23  ;;  %v1099_v31 = vsel %vm882_vm12, %v637_v18, %v991_v24  ;;  %v2243_v37 = vsel %vm2027_vm13, %v1782_v19, %v2135_v27 }
 0x110   :  { %v2351_v46 = vmax.f32 %v1099_v31, %v2243_v37 }
 0x111   :  { %v4854_v28 = vmax.f32 %v2350_v25, %v4746_v26  ;;  %v3033_v29 = vpop.f32.mrf.mxu2  ;;  %v4177_v30 = vpop.f32.mrf.mxu3 }
 0x112   :  { %v3034_v32 = vadd.f32 %v6971_v40, %v3033_v29  ;;  %v4178_v33 = vadd.f32 %v6971_v40, %v4177_v30  ;;  %v638_v34 = vpop.f32.mrf.mxu0  ;;  %v1783_v35 = vpop.f32.mrf.mxu1 }
 0x113   :  { %v4962_v36 = vpack.c.bf16 %v4854_v28, %v4854_v28  ;;  %v639_v38 = vadd.f32 %v6971_v40, %v638_v34  ;;  %v1784_v39 = vadd.f32 %v6971_v40, %v1783_v35  ;;  %v6654_v34 = vld [vmem:[%s9038_s0 + $0x240] sm:$0xff] }
 0x114   :  { %vm3279_vm14 = vcmp.ge.f32.partialorder %v3034_v32, 0.0  ;;  %v3387_v41 = vmul.f32 %v3034_v32, %v6990_v49  ;;  %vm4423_vm15 = vcmp.ge.f32.partialorder %v4178_v33, 0.0  ;;  %v4531_v42 = vmul.f32 %v4178_v33, %v6990_v49 }
 0x115   :  { %5071 = vst.msk [vmem:[%s9040_s4 + $0x3c] sm:$0xf] %vm5055_vm9, %v4962_v36  ;;  %v992_v45 = vmul.f32 %v6990_v49, %v639_v38  ;;  %vm883_vm0 = vcmp.ge.f32.partialorder %v639_v38, 0.0  ;;  %v2136_v40 = vmul.f32 %v1784_v39, %v6990_v49  ;;  %vm2028_vm1 = vcmp.ge.f32.partialorder %v1784_v39, 0.0 }
 0x116   :  { %v3495_v43 = vsel %vm3279_vm14, %v3034_v32, %v3387_v41  ;;  %v4639_v44 = vsel %vm4423_vm15, %v4178_v33, %v4531_v42  ;;  %v6600_v33 = vld [vmem:[%s9038_s0 + $0x90] sm:$0xff]  ;;  %v6762_v42 = vld [vmem:[%s9038_s0 + $0x5a0] sm:$0xff] }
 0x117   :  { %v4747_v47 = vmax.f32 %v3495_v43, %v4639_v44  ;;  %v1100_v54 = vsel %vm883_vm0, %v639_v38, %v992_v45  ;;  %v2244_v63 = vsel %vm2028_vm1, %v1784_v39, %v2136_v40  ;;  %v6708_v41 = vld [vmem:[%s9038_s0 + $0x3f0] sm:$0xff] }
 0x118   :  { %v2352_v7 = vmax.f32 %v1100_v54, %v2244_v63 }
 0x119   :  { %v4855_v48 = vmax.f32 %v2351_v46, %v4747_v47  ;;  %v3035_v50 = vpop.f32.mrf.mxu2  ;;  %v4179_v51 = vpop.f32.mrf.mxu3 }
 0x11a   :  { %v3036_v56 = vadd.f32 %v7336_v55, %v3035_v50  ;;  %v4180_v57 = vadd.f32 %v7336_v55, %v4179_v51  ;;  %v641_v58 = vpop.f32.mrf.mxu0  ;;  %v1786_v59 = vpop.f32.mrf.mxu1 }
 0x11b   :  { %v4963_v62 = vpack.c.bf16 %v4855_v48, %v4855_v48  ;;  %v642_v0 = vadd.f32 %v7336_v55, %v641_v58  ;;  %v1787_v1 = vadd.f32 %v7336_v55, %v1786_v59 }
 0x11c   :  { %vm3280_vm3 = vcmp.ge.f32.partialorder %v3036_v56, 0.0  ;;  %v3388_v2 = vmul.f32 %v3036_v56, %v6990_v49  ;;  %vm4424_vm4 = vcmp.ge.f32.partialorder %v4180_v57, 0.0  ;;  %v4532_v3 = vmul.f32 %v4180_v57, %v6990_v49 }
 0x11d   :  { %5072 = vst.msk [vmem:[%s9040_s4 + $0x40] sm:$0xf] %vm5055_vm9, %v4963_v62  ;;  %5409 = vmatmul.msk.bf16.gmra.mxu0 %vm417_vm2, %v6599_v52  ;;  %5787 = vmatmul.msk.bf16.gmra.mxu1 %vm417_vm2, %v6653_v53  ;;  %v993_v6 = vmul.f32 %v6990_v49, %v642_v0  ;;  %vm884_vm5 = vcmp.ge.f32.partialorder %v642_v0, 0.0  ;;  %v2137_v9 = vmul.f32 %v1787_v1, %v6990_v49  ;;  %vm2029_vm6 = vcmp.ge.f32.partialorder %v1787_v1, 0.0 }
 0x11e   :  { %v3496_v4 = vsel %vm3280_vm3, %v3036_v56, %v3388_v2  ;;  %v4640_v5 = vsel %vm4424_vm4, %v4180_v57, %v4532_v3  ;;  %6165 = vmatmul.msk.bf16.gmra.mxu2 %vm417_vm2, %v6707_v60  ;;  %6543 = vmatmul.msk.bf16.gmra.mxu3 %vm417_vm2, %v6761_v61 }
 0x11f   :  { %v4748_v8 = vmax.f32 %v3496_v4, %v4640_v5  ;;  %v1101_v13 = vsel %vm884_vm5, %v642_v0, %v993_v6  ;;  %v2245_v19 = vsel %vm2029_vm6, %v1787_v1, %v2137_v9 }
 0x120   :  { %v2353_v27 = vmax.f32 %v1101_v13, %v2245_v19 }
 0x121   :  { %v4856_v10 = vmax.f32 %v2352_v7, %v4748_v8  ;;  %v3038_v11 = vpop.f32.mrf.mxu2  ;;  %v4182_v12 = vpop.f32.mrf.mxu3 }
 0x122   :  { %v3039_v14 = vadd.f32 %v7336_v55, %v3038_v11  ;;  %v4183_v15 = vadd.f32 %v7336_v55, %v4182_v12  ;;  %v643_v16 = vpop.f32.mrf.mxu0  ;;  %v1788_v17 = vpop.f32.mrf.mxu1 }
 0x123   :  { %v4964_v18 = vpack.c.bf16 %v4856_v10, %v4856_v10  ;;  %v644_v20 = vadd.f32 %v7336_v55, %v643_v16  ;;  %v1789_v21 = vadd.f32 %v7336_v55, %v1788_v17  ;;  %v6655_v16 = vld [vmem:[%s9038_s0 + $0x248] sm:$0xff] }
 0x124   :  { %vm3281_vm7 = vcmp.ge.f32.partialorder %v3039_v14, 0.0  ;;  %v3389_v22 = vmul.f32 %v3039_v14, %v6990_v49  ;;  %vm4425_vm8 = vcmp.ge.f32.partialorder %v4183_v15, 0.0  ;;  %v4533_v23 = vmul.f32 %v4183_v15, %v6990_v49 }
 0x125   :  { %5073 = vst.msk [vmem:[%s9040_s4 + $0x44] sm:$0xf] %vm5055_vm9, %v4964_v18  ;;  %v994_v26 = vmul.f32 %v6990_v49, %v644_v20  ;;  %vm885_vm10 = vcmp.ge.f32.partialorder %v644_v20, 0.0  ;;  %v2138_v29 = vmul.f32 %v1789_v21, %v6990_v49  ;;  %vm2030_vm11 = vcmp.ge.f32.partialorder %v1789_v21, 0.0 }
 0x126   :  { %v3497_v24 = vsel %vm3281_vm7, %v3039_v14, %v3389_v22  ;;  %v4641_v25 = vsel %vm4425_vm8, %v4183_v15, %v4533_v23  ;;  %v6601_v15 = vld [vmem:[%s9038_s0 + $0x98] sm:$0xff]  ;;  %v6763_v23 = vld [vmem:[%s9038_s0 + $0x5a8] sm:$0xff] }
 0x127   :  { %v4749_v28 = vmax.f32 %v3497_v24, %v4641_v25  ;;  %v1102_v35 = vsel %vm885_vm10, %v644_v20, %v994_v26  ;;  %v2246_v44 = vsel %vm2030_vm11, %v1789_v21, %v2138_v29  ;;  %v6709_v22 = vld [vmem:[%s9038_s0 + $0x3f8] sm:$0xff] }
 0x128   :  { %v2354_v52 = vmax.f32 %v1102_v35, %v2246_v44 }
 0x129   :  { %v4857_v30 = vmax.f32 %v2353_v27, %v4749_v28  ;;  %v3040_v31 = vpop.f32.mrf.mxu2  ;;  %v4184_v32 = vpop.f32.mrf.mxu3 }
 0x12a   :  { %v3041_v36 = vadd.f32 %v7336_v55, %v3040_v31  ;;  %v4185_v37 = vadd.f32 %v7336_v55, %v4184_v32  ;;  %v646_v38 = vpop.f32.mrf.mxu0  ;;  %v1791_v39 = vpop.f32.mrf.mxu1 }
 0x12b   :  { %v4965_v43 = vpack.c.bf16 %v4857_v30, %v4857_v30  ;;  %v647_v45 = vadd.f32 %v7336_v55, %v646_v38  ;;  %v1792_v46 = vadd.f32 %v7336_v55, %v1791_v39 }
 0x12c   :  { %vm3282_vm12 = vcmp.ge.f32.partialorder %v3041_v36, 0.0  ;;  %v3390_v47 = vmul.f32 %v3041_v36, %v6990_v49  ;;  %vm4426_vm13 = vcmp.ge.f32.partialorder %v4185_v37, 0.0  ;;  %v4534_v40 = vmul.f32 %v4185_v37, %v6990_v49 }
 0x12d   :  { %5074 = vst.msk [vmem:[%s9040_s4 + $0x48] sm:$0xf] %vm5055_vm9, %v4965_v43  ;;  %5410 = vmatmul.msk.bf16.gmra.mxu0 %vm417_vm2, %v6600_v33  ;;  %5788 = vmatmul.msk.bf16.gmra.mxu1 %vm417_vm2, %v6654_v34  ;;  %v995_v51 = vmul.f32 %v6990_v49, %v647_v45  ;;  %vm886_vm14 = vcmp.ge.f32.partialorder %v647_v45, 0.0  ;;  %v2139_v54 = vmul.f32 %v1792_v46, %v6990_v49  ;;  %vm2031_vm15 = vcmp.ge.f32.partialorder %v1792_v46, 0.0 }
 0x12e   :  { %v3498_v48 = vsel %vm3282_vm12, %v3041_v36, %v3390_v47  ;;  %v4642_v50 = vsel %vm4426_vm13, %v4185_v37, %v4534_v40  ;;  %6166 = vmatmul.msk.bf16.gmra.mxu2 %vm417_vm2, %v6708_v41  ;;  %6544 = vmatmul.msk.bf16.gmra.mxu3 %vm417_vm2, %v6762_v42 }
 0x12f   :  { %v4750_v53 = vmax.f32 %v3498_v48, %v4642_v50  ;;  %v1103_v59 = vsel %vm886_vm14, %v647_v45, %v995_v51  ;;  %v2247_v1 = vsel %vm2031_vm15, %v1792_v46, %v2139_v54 }
 0x130   :  { %v2355_v9 = vmax.f32 %v1103_v59, %v2247_v1 }
 0x131   :  { %v4858_v56 = vmax.f32 %v2354_v52, %v4750_v53  ;;  %v3043_v57 = vpop.f32.mrf.mxu2  ;;  %v4187_v58 = vpop.f32.mrf.mxu3 }
 0x132   :  { %v3044_v60 = vadd.f32 %v7336_v55, %v3043_v57  ;;  %v4188_v61 = vadd.f32 %v7336_v55, %v4187_v58  ;;  %v648_v62 = vpop.f32.mrf.mxu0  ;;  %v1793_v63 = vpop.f32.mrf.mxu1 }
 0x133   :  { %v4966_v0 = vpack.c.bf16 %v4858_v56, %v4858_v56  ;;  %v649_v2 = vadd.f32 %v7336_v55, %v648_v62  ;;  %v1794_v3 = vadd.f32 %v7336_v55, %v1793_v63  ;;  %v6656_v62 = vld [vmem:[%s9038_s0 + $0x250] sm:$0xff] }
 0x134   :  { %vm3283_vm0 = vcmp.ge.f32.partialorder %v3044_v60, 0.0  ;;  %v3391_v4 = vmul.f32 %v3044_v60, %v6990_v49  ;;  %vm4427_vm1 = vcmp.ge.f32.partialorder %v4188_v61, 0.0  ;;  %v4535_v5 = vmul.f32 %v4188_v61, %v6990_v49 }
 0x135   :  { %5075 = vst.msk [vmem:[%s9040_s4 + $0x4c] sm:$0xf] %vm5055_vm9, %v4966_v0  ;;  %v996_v8 = vmul.f32 %v6990_v49, %v649_v2  ;;  %vm887_vm3 = vcmp.ge.f32.partialorder %v649_v2, 0.0  ;;  %v2140_v11 = vmul.f32 %v1794_v3, %v6990_v49  ;;  %vm2032_vm4 = vcmp.ge.f32.partialorder %v1794_v3, 0.0 }
 0x136   :  { %v3499_v6 = vsel %vm3283_vm0, %v3044_v60, %v3391_v4  ;;  %v4643_v7 = vsel %vm4427_vm1, %v4188_v61, %v4535_v5  ;;  %v6602_v61 = vld [vmem:[%s9038_s0 + $0xa0] sm:$0xff]  ;;  %v6764_v5 = vld [vmem:[%s9038_s0 + $0x5b0] sm:$0xff] }
 0x137   :  { %v4751_v10 = vmax.f32 %v3499_v6, %v4643_v7  ;;  %v1104_v17 = vsel %vm887_vm3, %v649_v2, %v996_v8  ;;  %v2248_v25 = vsel %vm2032_vm4, %v1794_v3, %v2140_v11  ;;  %v6710_v4 = vld [vmem:[%s9038_s0 + $0x400] sm:$0xff] }
 0x138   :  { %v2356_v33 = vmax.f32 %v1104_v17, %v2248_v25 }
 0x139   :  { %v4859_v12 = vmax.f32 %v2355_v9, %v4751_v10  ;;  %v3045_v13 = vpop.f32.mrf.mxu2  ;;  %v4189_v14 = vpop.f32.mrf.mxu3 }
 0x13a   :  { %v3046_v18 = vadd.f32 %v7336_v55, %v3045_v13  ;;  %v4190_v19 = vadd.f32 %v7336_v55, %v4189_v14  ;;  %v651_v20 = vpop.f32.mrf.mxu0  ;;  %v1796_v21 = vpop.f32.mrf.mxu1 }
 0x13b   :  { %v4967_v24 = vpack.c.bf16 %v4859_v12, %v4859_v12  ;;  %v652_v26 = vadd.f32 %v7336_v55, %v651_v20  ;;  %v1797_v27 = vadd.f32 %v7336_v55, %v1796_v21 }
 0x13c   :  { %vm3284_vm5 = vcmp.ge.f32.partialorder %v3046_v18, 0.0  ;;  %v3392_v28 = vmul.f32 %v3046_v18, %v6990_v49  ;;  %vm4428_vm6 = vcmp.ge.f32.partialorder %v4190_v19, 0.0  ;;  %v4536_v29 = vmul.f32 %v4190_v19, %v6990_v49 }
 0x13d   :  { %5076 = vst.msk [vmem:[%s9040_s4 + $0x50] sm:$0xf] %vm5055_vm9, %v4967_v24  ;;  %5411 = vmatmul.msk.bf16.gmra.mxu0 %vm417_vm2, %v6601_v15  ;;  %5789 = vmatmul.msk.bf16.gmra.mxu1 %vm417_vm2, %v6655_v16  ;;  %v997_v32 = vmul.f32 %v6990_v49, %v652_v26  ;;  %vm888_vm7 = vcmp.ge.f32.partialorder %v652_v26, 0.0  ;;  %v2141_v35 = vmul.f32 %v1797_v27, %v6990_v49  ;;  %vm2033_vm8 = vcmp.ge.f32.partialorder %v1797_v27, 0.0 }
 0x13e   :  { %v3500_v30 = vsel %vm3284_vm5, %v3046_v18, %v3392_v28  ;;  %v4644_v31 = vsel %vm4428_vm6, %v4190_v19, %v4536_v29  ;;  %6167 = vmatmul.msk.bf16.gmra.mxu2 %vm417_vm2, %v6709_v22  ;;  %6545 = vmatmul.msk.bf16.gmra.mxu3 %vm417_vm2, %v6763_v23 }
 0x13f   :  { %v4752_v34 = vmax.f32 %v3500_v30, %v4644_v31  ;;  %v1105_v39 = vsel %vm888_vm7, %v652_v26, %v997_v32  ;;  %v2249_v46 = vsel %vm2033_vm8, %v1797_v27, %v2141_v35 }
 0x140   :  { %v2357_v54 = vmax.f32 %v1105_v39, %v2249_v46 }
 0x141   :  { %v4860_v36 = vmax.f32 %v2356_v33, %v4752_v34  ;;  %v3048_v37 = vpop.f32.mrf.mxu2  ;;  %v4192_v38 = vpop.f32.mrf.mxu3 }
 0x142   :  { %v3049_v41 = vadd.f32 %v7336_v55, %v3048_v37  ;;  %v4193_v42 = vadd.f32 %v7336_v55, %v4192_v38  ;;  %v653_v43 = vpop.f32.mrf.mxu0  ;;  %v1798_v44 = vpop.f32.mrf.mxu1 }
 0x143   :  { %v4968_v45 = vpack.c.bf16 %v4860_v36, %v4860_v36  ;;  %v654_v47 = vadd.f32 %v7336_v55, %v653_v43  ;;  %v1799_v40 = vadd.f32 %v7336_v55, %v1798_v44  ;;  %v6657_v43 = vld [vmem:[%s9038_s0 + $0x258] sm:$0xff] }
 0x144   :  { %vm3285_vm10 = vcmp.ge.f32.partialorder %v3049_v41, 0.0  ;;  %v3393_v48 = vmul.f32 %v3049_v41, %v6990_v49  ;;  %vm4429_vm11 = vcmp.ge.f32.partialorder %v4193_v42, 0.0  ;;  %v4537_v50 = vmul.f32 %v4193_v42, %v6990_v49 }
 0x145   :  { %5077 = vst.msk [vmem:[%s9040_s4 + $0x54] sm:$0xf] %vm5055_vm9, %v4968_v45  ;;  %v998_v53 = vmul.f32 %v6990_v49, %v654_v47  ;;  %vm889_vm12 = vcmp.ge.f32.partialorder %v654_v47, 0.0  ;;  %v2142_v57 = vmul.f32 %v1799_v40, %v6990_v49  ;;  %vm2034_vm13 = vcmp.ge.f32.partialorder %v1799_v40, 0.0 }
 0x146   :  { %v3501_v51 = vsel %vm3285_vm10, %v3049_v41, %v3393_v48  ;;  %v4645_v52 = vsel %vm4429_vm11, %v4193_v42, %v4537_v50  ;;  %v6603_v42 = vld [vmem:[%s9038_s0 + $0xa8] sm:$0xff]  ;;  %v6765_v50 = vld [vmem:[%s9038_s0 + $0x5b8] sm:$0xff] }
 0x147   :  { %v4753_v56 = vmax.f32 %v3501_v51, %v4645_v52  ;;  %v1106_v63 = vsel %vm889_vm12, %v654_v47, %v998_v53  ;;  %v2250_v7 = vsel %vm2034_vm13, %v1799_v40, %v2142_v57  ;;  %v6711_v48 = vld [vmem:[%s9038_s0 + $0x408] sm:$0xff] }
 0x148   :  { %v2358_v15 = vmax.f32 %v1106_v63, %v2250_v7 }
 0x149   :  { %v4861_v58 = vmax.f32 %v2357_v54, %v4753_v56  ;;  %v3050_v59 = vpop.f32.mrf.mxu2  ;;  %v4194_v60 = vpop.f32.mrf.mxu3 }
 0x14a   :  { %v3051_v0 = vadd.f32 %v7336_v55, %v3050_v59  ;;  %v4195_v1 = vadd.f32 %v7336_v55, %v4194_v60  ;;  %v656_v2 = vpop.f32.mrf.mxu0  ;;  %v1801_v3 = vpop.f32.mrf.mxu1 }
 0x14b   :  { %v4969_v6 = vpack.c.bf16 %v4861_v58, %v4861_v58  ;;  %v657_v8 = vadd.f32 %v7336_v55, %v656_v2  ;;  %v1802_v9 = vadd.f32 %v7336_v55, %v1801_v3 }
 0x14c   :  { %vm3286_vm14 = vcmp.ge.f32.partialorder %v3051_v0, 0.0  ;;  %v3394_v10 = vmul.f32 %v3051_v0, %v6990_v49  ;;  %vm4430_vm15 = vcmp.ge.f32.partialorder %v4195_v1, 0.0  ;;  %v4538_v11 = vmul.f32 %v4195_v1, %v6990_v49 }
 0x14d   :  { %5078 = vst.msk [vmem:[%s9040_s4 + $0x58] sm:$0xf] %vm5055_vm9, %v4969_v6  ;;  %5412 = vmatmul.msk.bf16.gmra.mxu0 %vm417_vm2, %v6602_v61  ;;  %5790 = vmatmul.msk.bf16.gmra.mxu1 %vm417_vm2, %v6656_v62  ;;  %v999_v14 = vmul.f32 %v6990_v49, %v657_v8  ;;  %vm890_vm0 = vcmp.ge.f32.partialorder %v657_v8, 0.0  ;;  %v2143_v17 = vmul.f32 %v1802_v9, %v6990_v49  ;;  %vm2035_vm1 = vcmp.ge.f32.partialorder %v1802_v9, 0.0 }
 0x14e   :  { %v3502_v12 = vsel %vm3286_vm14, %v3051_v0, %v3394_v10  ;;  %v4646_v13 = vsel %vm4430_vm15, %v4195_v1, %v4538_v11  ;;  %6168 = vmatmul.msk.bf16.gmra.mxu2 %vm417_vm2, %v6710_v4  ;;  %6546 = vmatmul.msk.bf16.gmra.mxu3 %vm417_vm2, %v6764_v5 }
 0x14f   :  { %v4754_v16 = vmax.f32 %v3502_v12, %v4646_v13  ;;  %v1107_v21 = vsel %vm890_vm0, %v657_v8, %v999_v14  ;;  %v2251_v27 = vsel %vm2035_vm1, %v1802_v9, %v2143_v17 }
 0x150   :  { %v2359_v35 = vmax.f32 %v1107_v21, %v2251_v27 }
 0x151   :  { %v4862_v18 = vmax.f32 %v2358_v15, %v4754_v16  ;;  %v3053_v19 = vpop.f32.mrf.mxu2  ;;  %v4197_v20 = vpop.f32.mrf.mxu3 }
 0x152   :  { %v3054_v22 = vadd.f32 %v7336_v55, %v3053_v19  ;;  %v4198_v23 = vadd.f32 %v7336_v55, %v4197_v20  ;;  %v658_v24 = vpop.f32.mrf.mxu0  ;;  %v1803_v25 = vpop.f32.mrf.mxu1 }
 0x153   :  { %v4970_v26 = vpack.c.bf16 %v4862_v18, %v4862_v18  ;;  %v659_v28 = vadd.f32 %v7336_v55, %v658_v24  ;;  %v1804_v29 = vadd.f32 %v7336_v55, %v1803_v25  ;;  %v6658_v24 = vld [vmem:[%s9038_s0 + $0x260] sm:$0xff] }
 0x154   :  { %vm3287_vm3 = vcmp.ge.f32.partialorder %v3054_v22, 0.0  ;;  %v3395_v30 = vmul.f32 %v3054_v22, %v6990_v49  ;;  %vm4431_vm4 = vcmp.ge.f32.partialorder %v4198_v23, 0.0  ;;  %v4539_v31 = vmul.f32 %v4198_v23, %v6990_v49 }
 0x155   :  { %5079 = vst.msk [vmem:[%s9040_s4 + $0x5c] sm:$0xf] %vm5055_vm9, %v4970_v26  ;;  %v1000_v34 = vmul.f32 %v6990_v49, %v659_v28  ;;  %vm891_vm5 = vcmp.ge.f32.partialorder %v659_v28, 0.0  ;;  %v2144_v37 = vmul.f32 %v1804_v29, %v6990_v49  ;;  %vm2036_vm6 = vcmp.ge.f32.partialorder %v1804_v29, 0.0 }
 0x156   :  { %v3503_v32 = vsel %vm3287_vm3, %v3054_v22, %v3395_v30  ;;  %v4647_v33 = vsel %vm4431_vm4, %v4198_v23, %v4539_v31  ;;  %v6604_v23 = vld [vmem:[%s9038_s0 + $0xb0] sm:$0xff]  ;;  %v6766_v31 = vld [vmem:[%s9038_s0 + $0x5c0] sm:$0xff] }
 0x157   :  { %v4755_v36 = vmax.f32 %v3503_v32, %v4647_v33  ;;  %v1108_v44 = vsel %vm891_vm5, %v659_v28, %v1000_v34  ;;  %v2252_v52 = vsel %vm2036_vm6, %v1804_v29, %v2144_v37  ;;  %v6712_v30 = vld [vmem:[%s9038_s0 + $0x410] sm:$0xff] }
 0x158   :  { %v2360_v61 = vmax.f32 %v1108_v44, %v2252_v52 }
 0x159   :  { %v4863_v38 = vmax.f32 %v2359_v35, %v4755_v36  ;;  %v3055_v39 = vpop.f32.mrf.mxu2  ;;  %v4199_v41 = vpop.f32.mrf.mxu3 }
 0x15a   :  { %v3056_v45 = vadd.f32 %v7336_v55, %v3055_v39  ;;  %v4200_v46 = vadd.f32 %v7336_v55, %v4199_v41  ;;  %v661_v47 = vpop.f32.mrf.mxu0  ;;  %v1806_v40 = vpop.f32.mrf.mxu1 }
 0x15b   :  { %v4971_v51 = vpack.c.bf16 %v4863_v38, %v4863_v38  ;;  %v662_v53 = vadd.f32 %v7336_v55, %v661_v47  ;;  %v1807_v54 = vadd.f32 %v7336_v55, %v1806_v40 }
 0x15c   :  { %vm3288_vm7 = vcmp.ge.f32.partialorder %v3056_v45, 0.0  ;;  %v3396_v56 = vmul.f32 %v3056_v45, %v6990_v49  ;;  %vm4432_vm8 = vcmp.ge.f32.partialorder %v4200_v46, 0.0  ;;  %v4540_v57 = vmul.f32 %v4200_v46, %v6990_v49 }
 0x15d   :  { %5080 = vst.msk [vmem:[%s9040_s4 + $0x60] sm:$0xf] %vm5055_vm9, %v4971_v51  ;;  %5413 = vmatmul.msk.bf16.gmra.mxu0 %vm417_vm2, %v6603_v42  ;;  %5791 = vmatmul.msk.bf16.gmra.mxu1 %vm417_vm2, %v6657_v43  ;;  %v1001_v60 = vmul.f32 %v6990_v49, %v662_v53  ;;  %vm892_vm10 = vcmp.ge.f32.partialorder %v662_v53, 0.0  ;;  %v2145_v63 = vmul.f32 %v1807_v54, %v6990_v49  ;;  %vm2037_vm11 = vcmp.ge.f32.partialorder %v1807_v54, 0.0 }
 0x15e   :  { %v3504_v58 = vsel %vm3288_vm7, %v3056_v45, %v3396_v56  ;;  %v4648_v59 = vsel %vm4432_vm8, %v4200_v46, %v4540_v57  ;;  %6169 = vmatmul.msk.bf16.gmra.mxu2 %vm417_vm2, %v6711_v48  ;;  %6547 = vmatmul.msk.bf16.gmra.mxu3 %vm417_vm2, %v6765_v50 }
 0x15f   :  { %v4756_v62 = vmax.f32 %v3504_v58, %v4648_v59  ;;  %v1109_v3 = vsel %vm892_vm10, %v662_v53, %v1001_v60  ;;  %v2253_v9 = vsel %vm2037_vm11, %v1807_v54, %v2145_v63 }
 0x160   :  { %v2361_v17 = vmax.f32 %v1109_v3, %v2253_v9 }
 0x161   :  { %v4864_v0 = vmax.f32 %v2360_v61, %v4756_v62  ;;  %v3058_v1 = vpop.f32.mrf.mxu2  ;;  %v4202_v2 = vpop.f32.mrf.mxu3 }
 0x162   :  { %v3059_v4 = vadd.f32 %v7336_v55, %v3058_v1  ;;  %v4203_v5 = vadd.f32 %v7336_v55, %v4202_v2  ;;  %v663_v6 = vpop.f32.mrf.mxu0  ;;  %v1808_v7 = vpop.f32.mrf.mxu1 }
 0x163   :  { %v4972_v8 = vpack.c.bf16 %v4864_v0, %v4864_v0  ;;  %v664_v10 = vadd.f32 %v7336_v55, %v663_v6  ;;  %v1809_v11 = vadd.f32 %v7336_v55, %v1808_v7  ;;  %v6659_v6 = vld [vmem:[%s9038_s0 + $0x268] sm:$0xff] }
 0x164   :  { %vm3289_vm12 = vcmp.ge.f32.partialorder %v3059_v4, 0.0  ;;  %v3397_v12 = vmul.f32 %v3059_v4, %v6990_v49  ;;  %vm4433_vm13 = vcmp.ge.f32.partialorder %v4203_v5, 0.0  ;;  %v4541_v13 = vmul.f32 %v4203_v5, %v6990_v49 }
 0x165   :  { %5081 = vst.msk [vmem:[%s9040_s4 + $0x64] sm:$0xf] %vm5055_vm9, %v4972_v8  ;;  %v1002_v16 = vmul.f32 %v6990_v49, %v664_v10  ;;  %vm893_vm14 = vcmp.ge.f32.partialorder %v664_v10, 0.0  ;;  %v2146_v19 = vmul.f32 %v1809_v11, %v6990_v49  ;;  %vm2038_vm15 = vcmp.ge.f32.partialorder %v1809_v11, 0.0 }
 0x166   :  { %v3505_v14 = vsel %vm3289_vm12, %v3059_v4, %v3397_v12  ;;  %v4649_v15 = vsel %vm4433_vm13, %v4203_v5, %v4541_v13  ;;  %v6605_v5 = vld [vmem:[%s9038_s0 + $0xb8] sm:$0xff]  ;;  %v6767_v13 = vld [vmem:[%s9038_s0 + $0x5c8] sm:$0xff] }
 0x167   :  { %v4757_v18 = vmax.f32 %v3505_v14, %v4649_v15  ;;  %v1110_v25 = vsel %vm893_vm14, %v664_v10, %v1002_v16  ;;  %v2254_v33 = vsel %vm2038_vm15, %v1809_v11, %v2146_v19  ;;  %v6713_v12 = vld [vmem:[%s9038_s0 + $0x418] sm:$0xff] }
 0x168   :  { %v2362_v42 = vmax.f32 %v1110_v25, %v2254_v33 }
 0x169   :  { %v4865_v20 = vmax.f32 %v2361_v17, %v4757_v18  ;;  %v3060_v21 = vpop.f32.mrf.mxu2  ;;  %v4204_v22 = vpop.f32.mrf.mxu3 }
 0x16a   :  { %v3061_v26 = vadd.f32 %v7336_v55, %v3060_v21  ;;  %v4205_v27 = vadd.f32 %v7336_v55, %v4204_v22  ;;  %v666_v28 = vpop.f32.mrf.mxu0  ;;  %v1811_v29 = vpop.f32.mrf.mxu1 }
 0x16b   :  { %v4973_v32 = vpack.c.bf16 %v4865_v20, %v4865_v20  ;;  %v667_v34 = vadd.f32 %v7336_v55, %v666_v28  ;;  %v1812_v35 = vadd.f32 %v7336_v55, %v1811_v29 }
 0x16c   :  { %vm3290_vm0 = vcmp.ge.f32.partialorder %v3061_v26, 0.0  ;;  %v3398_v36 = vmul.f32 %v3061_v26, %v6990_v49  ;;  %vm4434_vm1 = vcmp.ge.f32.partialorder %v4205_v27, 0.0  ;;  %v4542_v37 = vmul.f32 %v4205_v27, %v6990_v49 }
 0x16d   :  { %5082 = vst.msk [vmem:[%s9040_s4 + $0x68] sm:$0xf] %vm5055_vm9, %v4973_v32  ;;  %5414 = vmatmul.msk.bf16.gmra.mxu0 %vm417_vm2, %v6604_v23  ;;  %5792 = vmatmul.msk.bf16.gmra.mxu1 %vm417_vm2, %v6658_v24  ;;  %v1003_v41 = vmul.f32 %v6990_v49, %v667_v34  ;;  %vm894_vm3 = vcmp.ge.f32.partialorder %v667_v34, 0.0  ;;  %v2147_v44 = vmul.f32 %v1812_v35, %v6990_v49  ;;  %vm2039_vm4 = vcmp.ge.f32.partialorder %v1812_v35, 0.0 }
 0x16e   :  { %v3506_v38 = vsel %vm3290_vm0, %v3061_v26, %v3398_v36  ;;  %v4650_v39 = vsel %vm4434_vm1, %v4205_v27, %v4542_v37  ;;  %6170 = vmatmul.msk.bf16.gmra.mxu2 %vm417_vm2, %v6712_v30  ;;  %6548 = vmatmul.msk.bf16.gmra.mxu3 %vm417_vm2, %v6766_v31 }
 0x16f   :  { %v4758_v43 = vmax.f32 %v3506_v38, %v4650_v39  ;;  %v1111_v40 = vsel %vm894_vm3, %v667_v34, %v1003_v41  ;;  %v2255_v54 = vsel %vm2039_vm4, %v1812_v35, %v2147_v44 }
 0x170   :  { %v2363_v63 = vmax.f32 %v1111_v40, %v2255_v54 }
 0x171   :  { %v4866_v45 = vmax.f32 %v2362_v42, %v4758_v43  ;;  %v3063_v46 = vpop.f32.mrf.mxu2  ;;  %v4207_v47 = vpop.f32.mrf.mxu3 }
 0x172   :  { %v3064_v48 = vadd.f32 %v7336_v55, %v3063_v46  ;;  %v4208_v50 = vadd.f32 %v7336_v55, %v4207_v47  ;;  %v668_v51 = vpop.f32.mrf.mxu0  ;;  %v1813_v52 = vpop.f32.mrf.mxu1 }
 0x173   :  { %v4974_v53 = vpack.c.bf16 %v4866_v45, %v4866_v45  ;;  %v669_v56 = vadd.f32 %v7336_v55, %v668_v51  ;;  %v1814_v57 = vadd.f32 %v7336_v55, %v1813_v52  ;;  %v6660_v51 = vld [vmem:[%s9038_s0 + $0x270] sm:$0xff] }
 0x174   :  { %vm3291_vm5 = vcmp.ge.f32.partialorder %v3064_v48, 0.0  ;;  %v3399_v58 = vmul.f32 %v3064_v48, %v6990_v49  ;;  %vm4435_vm6 = vcmp.ge.f32.partialorder %v4208_v50, 0.0  ;;  %v4543_v59 = vmul.f32 %v4208_v50, %v6990_v49 }
 0x175   :  { %5083 = vst.msk [vmem:[%s9040_s4 + $0x6c] sm:$0xf] %vm5055_vm9, %v4974_v53  ;;  %v1004_v62 = vmul.f32 %v6990_v49, %v669_v56  ;;  %vm895_vm7 = vcmp.ge.f32.partialorder %v669_v56, 0.0  ;;  %v2148_v1 = vmul.f32 %v1814_v57, %v6990_v49  ;;  %vm2040_vm8 = vcmp.ge.f32.partialorder %v1814_v57, 0.0 }
 0x176   :  { %v3507_v60 = vsel %vm3291_vm5, %v3064_v48, %v3399_v58  ;;  %v4651_v61 = vsel %vm4435_vm6, %v4208_v50, %v4543_v59  ;;  %v6606_v50 = vld [vmem:[%s9038_s0 + $0xc0] sm:$0xff]  ;;  %v6768_v59 = vld [vmem:[%s9038_s0 + $0x5d0] sm:$0xff] }
 0x177   :  { %v4759_v0 = vmax.f32 %v3507_v60, %v4651_v61  ;;  %v1112_v7 = vsel %vm895_vm7, %v669_v56, %v1004_v62  ;;  %v2256_v15 = vsel %vm2040_vm8, %v1814_v57, %v2148_v1  ;;  %v6714_v58 = vld [vmem:[%s9038_s0 + $0x420] sm:$0xff] }
 0x178   :  { %v2364_v23 = vmax.f32 %v1112_v7, %v2256_v15 }
 0x179   :  { %v4867_v2 = vmax.f32 %v2363_v63, %v4759_v0  ;;  %v3065_v3 = vpop.f32.mrf.mxu2  ;;  %v4209_v4 = vpop.f32.mrf.mxu3 }
 0x17a   :  { %v3066_v8 = vadd.f32 %v7336_v55, %v3065_v3  ;;  %v4210_v9 = vadd.f32 %v7336_v55, %v4209_v4  ;;  %v671_v10 = vpop.f32.mrf.mxu0  ;;  %v1816_v11 = vpop.f32.mrf.mxu1 }
 0x17b   :  { %v4975_v14 = vpack.c.bf16 %v4867_v2, %v4867_v2  ;;  %v672_v16 = vadd.f32 %v7336_v55, %v671_v10  ;;  %v1817_v17 = vadd.f32 %v7336_v55, %v1816_v11 }
 0x17c   :  { %vm3292_vm10 = vcmp.ge.f32.partialorder %v3066_v8, 0.0  ;;  %v3400_v18 = vmul.f32 %v3066_v8, %v6990_v49  ;;  %vm4436_vm11 = vcmp.ge.f32.partialorder %v4210_v9, 0.0  ;;  %v4544_v19 = vmul.f32 %v4210_v9, %v6990_v49 }
 0x17d   :  { %5084 = vst.msk [vmem:[%s9040_s4 + $0x70] sm:$0xf] %vm5055_vm9, %v4975_v14  ;;  %5415 = vmatmul.msk.bf16.gmra.mxu0 %vm417_vm2, %v6605_v5  ;;  %5793 = vmatmul.msk.bf16.gmra.mxu1 %vm417_vm2, %v6659_v6  ;;  %v1005_v22 = vmul.f32 %v6990_v49, %v672_v16  ;;  %vm896_vm12 = vcmp.ge.f32.partialorder %v672_v16, 0.0  ;;  %v2149_v25 = vmul.f32 %v1817_v17, %v6990_v49  ;;  %vm2041_vm13 = vcmp.ge.f32.partialorder %v1817_v17, 0.0 }
 0x17e   :  { %v3508_v20 = vsel %vm3292_vm10, %v3066_v8, %v3400_v18  ;;  %v4652_v21 = vsel %vm4436_vm11, %v4210_v9, %v4544_v19  ;;  %6171 = vmatmul.msk.bf16.gmra.mxu2 %vm417_vm2, %v6713_v12  ;;  %6549 = vmatmul.msk.bf16.gmra.mxu3 %vm417_vm2, %v6767_v13 }
 0x17f   :  { %v4760_v24 = vmax.f32 %v3508_v20, %v4652_v21  ;;  %v1113_v29 = vsel %vm896_vm12, %v672_v16, %v1005_v22  ;;  %v2257_v35 = vsel %vm2041_vm13, %v1817_v17, %v2149_v25 }
 0x180   :  { %v2365_v44 = vmax.f32 %v1113_v29, %v2257_v35 }
 0x181   :  { %v4868_v26 = vmax.f32 %v2364_v23, %v4760_v24  ;;  %v3068_v27 = vpop.f32.mrf.mxu2  ;;  %v4212_v28 = vpop.f32.mrf.mxu3 }
 0x182   :  { %v3069_v30 = vadd.f32 %v7336_v55, %v3068_v27  ;;  %v4213_v31 = vadd.f32 %v7336_v55, %v4212_v28  ;;  %v673_v32 = vpop.f32.mrf.mxu0  ;;  %v1818_v33 = vpop.f32.mrf.mxu1 }
 0x183   :  { %v4976_v34 = vpack.c.bf16 %v4868_v26, %v4868_v26  ;;  %v674_v36 = vadd.f32 %v7336_v55, %v673_v32  ;;  %v1819_v37 = vadd.f32 %v7336_v55, %v1818_v33  ;;  %v6661_v32 = vld [vmem:[%s9038_s0 + $0x278] sm:$0xff] }
 0x184   :  { %vm3293_vm14 = vcmp.ge.f32.partialorder %v3069_v30, 0.0  ;;  %v3401_v38 = vmul.f32 %v3069_v30, %v6990_v49  ;;  %vm4437_vm15 = vcmp.ge.f32.partialorder %v4213_v31, 0.0  ;;  %v4545_v39 = vmul.f32 %v4213_v31, %v6990_v49 }
 0x185   :  { %5085 = vst.msk [vmem:[%s9040_s4 + $0x74] sm:$0xf] %vm5055_vm9, %v4976_v34  ;;  %v1006_v43 = vmul.f32 %v6990_v49, %v674_v36  ;;  %vm897_vm0 = vcmp.ge.f32.partialorder %v674_v36, 0.0  ;;  %v2150_v46 = vmul.f32 %v1819_v37, %v6990_v49  ;;  %vm2042_vm1 = vcmp.ge.f32.partialorder %v1819_v37, 0.0 }
 0x186   :  { %v3509_v41 = vsel %vm3293_vm14, %v3069_v30, %v3401_v38  ;;  %v4653_v42 = vsel %vm4437_vm15, %v4213_v31, %v4545_v39  ;;  %v6607_v31 = vld [vmem:[%s9038_s0 + $0xc8] sm:$0xff]  ;;  %v6769_v39 = vld [vmem:[%s9038_s0 + $0x5d8] sm:$0xff] }
 0x187   :  { %v4761_v45 = vmax.f32 %v3509_v41, %v4653_v42  ;;  %v1114_v52 = vsel %vm897_vm0, %v674_v36, %v1006_v43  ;;  %v2258_v61 = vsel %vm2042_vm1, %v1819_v37, %v2150_v46  ;;  %v6715_v38 = vld [vmem:[%s9038_s0 + $0x428] sm:$0xff] }
 0x188   :  { %v2366_v5 = vmax.f32 %v1114_v52, %v2258_v61 }
 0x189   :  { %v4869_v47 = vmax.f32 %v2365_v44, %v4761_v45  ;;  %v3070_v40 = vpop.f32.mrf.mxu2  ;;  %v4214_v48 = vpop.f32.mrf.mxu3 }
 0x18a   :  { %v3071_v53 = vadd.f32 %v7336_v55, %v3070_v40  ;;  %v4215_v54 = vadd.f32 %v7336_v55, %v4214_v48  ;;  %v676_v56 = vpop.f32.mrf.mxu0  ;;  %v1821_v57 = vpop.f32.mrf.mxu1 }
 0x18b   :  { %v4977_v60 = vpack.c.bf16 %v4869_v47, %v4869_v47  ;;  %v677_v62 = vadd.f32 %v7336_v55, %v676_v56  ;;  %v1822_v63 = vadd.f32 %v7336_v55, %v1821_v57 }
 0x18c   :  { %vm3294_vm3 = vcmp.ge.f32.partialorder %v3071_v53, 0.0  ;;  %v3402_v0 = vmul.f32 %v3071_v53, %v6990_v49  ;;  %vm4438_vm4 = vcmp.ge.f32.partialorder %v4215_v54, 0.0  ;;  %v4546_v1 = vmul.f32 %v4215_v54, %v6990_v49 }
 0x18d   :  { %5086 = vst.msk [vmem:[%s9040_s4 + $0x78] sm:$0xf] %vm5055_vm9, %v4977_v60  ;;  %5416 = vmatmul.msk.bf16.gmra.mxu0 %vm417_vm2, %v6606_v50  ;;  %5794 = vmatmul.msk.bf16.gmra.mxu1 %vm417_vm2, %v6660_v51  ;;  %v1007_v4 = vmul.f32 %v6990_v49, %v677_v62  ;;  %vm898_vm5 = vcmp.ge.f32.partialorder %v677_v62, 0.0  ;;  %v2151_v7 = vmul.f32 %v1822_v63, %v6990_v49  ;;  %vm2043_vm6 = vcmp.ge.f32.partialorder %v1822_v63, 0.0 }
 0x18e   :  { %v3510_v2 = vsel %vm3294_vm3, %v3071_v53, %v3402_v0  ;;  %v4654_v3 = vsel %vm4438_vm4, %v4215_v54, %v4546_v1  ;;  %6172 = vmatmul.msk.bf16.gmra.mxu2 %vm417_vm2, %v6714_v58  ;;  %6550 = vmatmul.msk.bf16.gmra.mxu3 %vm417_vm2, %v6768_v59 }
 0x18f   :  { %v4762_v6 = vmax.f32 %v3510_v2, %v4654_v3  ;;  %v1115_v11 = vsel %vm898_vm5, %v677_v62, %v1007_v4  ;;  %v2259_v17 = vsel %vm2043_vm6, %v1822_v63, %v2151_v7 }
 0x190   :  { %v2367_v25 = vmax.f32 %v1115_v11, %v2259_v17 }
 0x191   :  { %v4870_v8 = vmax.f32 %v2366_v5, %v4762_v6  ;;  %v3073_v9 = vpop.f32.mrf.mxu2  ;;  %v4217_v10 = vpop.f32.mrf.mxu3 }
 0x192   :  { %v3074_v12 = vadd.f32 %v7336_v55, %v3073_v9  ;;  %v4218_v13 = vadd.f32 %v7336_v55, %v4217_v10  ;;  %v678_v14 = vpop.f32.mrf.mxu0  ;;  %v1823_v15 = vpop.f32.mrf.mxu1 }
 0x193   :  { %v4978_v16 = vpack.c.bf16 %v4870_v8, %v4870_v8  ;;  %v679_v18 = vadd.f32 %v7336_v55, %v678_v14  ;;  %v1824_v19 = vadd.f32 %v7336_v55, %v1823_v15  ;;  %v7701_v15 = vld [vmem:[%s9037_s2] ss:$0 sm:$0xff] }
 0x194   :  { %vm3295_vm7 = vcmp.ge.f32.partialorder %v3074_v12, 0.0  ;;  %v3403_v20 = vmul.f32 %v3074_v12, %v6990_v49  ;;  %vm4439_vm8 = vcmp.ge.f32.partialorder %v4218_v13, 0.0  ;;  %v4547_v21 = vmul.f32 %v4218_v13, %v6990_v49 }
 0x195   :  { %5087 = vst.msk [vmem:[%s9040_s4 + $0x7c] sm:$0xf] %vm5055_vm9, %v4978_v16  ;;  %v1008_v24 = vmul.f32 %v6990_v49, %v679_v18  ;;  %vm899_vm10 = vcmp.ge.f32.partialorder %v679_v18, 0.0  ;;  %v2152_v27 = vmul.f32 %v1824_v19, %v6990_v49  ;;  %vm2044_vm11 = vcmp.ge.f32.partialorder %v1824_v19, 0.0 }
 0x196   :  { %v3511_v22 = vsel %vm3295_vm7, %v3074_v12, %v3403_v20  ;;  %v4655_v23 = vsel %vm4439_vm8, %v4218_v13, %v4547_v21  ;;  %v6608_v12 = vld [vmem:[%s9038_s0 + $0xd0] sm:$0xff]  ;;  %v6662_v13 = vld [vmem:[%s9038_s0 + $0x280] sm:$0xff] }
 0x197   :  { %v4763_v26 = vmax.f32 %v3511_v22, %v4655_v23  ;;  %v1116_v33 = vsel %vm899_vm10, %v679_v18, %v1008_v24  ;;  %v2260_v42 = vsel %vm2044_vm11, %v1824_v19, %v2152_v27  ;;  %v6716_v20 = vld [vmem:[%s9038_s0 + $0x430] sm:$0xff]  ;;  %v6770_v21 = vld [vmem:[%s9038_s0 + $0x5e0] sm:$0xff] }
 0x198   :  { %v2368_v50 = vmax.f32 %v1116_v33, %v2260_v42 }
 0x199   :  { %v4871_v28 = vmax.f32 %v2367_v25, %v4763_v26  ;;  %v3075_v29 = vpop.f32.mrf.mxu2  ;;  %v4219_v30 = vpop.f32.mrf.mxu3 }
 0x19a   :  { %v3076_v34 = vadd.f32 %v7336_v55, %v3075_v29  ;;  %v4220_v35 = vadd.f32 %v7336_v55, %v4219_v30  ;;  %v681_v36 = vpop.f32.mrf.mxu0  ;;  %v1826_v37 = vpop.f32.mrf.mxu1 }
 0x19b   :  { %v4979_v41 = vpack.c.bf16 %v4871_v28, %v4871_v28  ;;  %v682_v43 = vadd.f32 %v7336_v55, %v681_v36  ;;  %v1827_v44 = vadd.f32 %v7336_v55, %v1826_v37 }
 0x19c   :  { %vm3296_vm12 = vcmp.ge.f32.partialorder %v3076_v34, 0.0  ;;  %v3404_v45 = vmul.f32 %v3076_v34, %v6990_v49  ;;  %vm4440_vm13 = vcmp.ge.f32.partialorder %v4220_v35, 0.0  ;;  %v4548_v46 = vmul.f32 %v4220_v35, %v6990_v49 }
 0x19d   :  { %5088 = vst.msk [vmem:[%s9040_s4 + $0x80] sm:$0xf] %vm5055_vm9, %v4979_v41  ;;  %5417 = vmatmul.msk.bf16.gmra.mxu0 %vm417_vm2, %v6607_v31  ;;  %5795 = vmatmul.msk.bf16.gmra.mxu1 %vm417_vm2, %v6661_v32  ;;  %v1009_v48 = vmul.f32 %v6990_v49, %v682_v43  ;;  %vm900_vm14 = vcmp.ge.f32.partialorder %v682_v43, 0.0  ;;  %v2153_v52 = vmul.f32 %v1827_v44, %v6990_v49  ;;  %vm2045_vm15 = vcmp.ge.f32.partialorder %v1827_v44, 0.0 }
 0x19e   :  { %v3512_v47 = vsel %vm3296_vm12, %v3076_v34, %v3404_v45  ;;  %v4656_v40 = vsel %vm4440_vm13, %v4220_v35, %v4548_v46  ;;  %6173 = vmatmul.msk.bf16.gmra.mxu2 %vm417_vm2, %v6715_v38  ;;  %6551 = vmatmul.msk.bf16.gmra.mxu3 %vm417_vm2, %v6769_v39 }
 0x19f   :  { %v4764_v51 = vmax.f32 %v3512_v47, %v4656_v40  ;;  %v1117_v57 = vsel %vm900_vm14, %v682_v43, %v1009_v48  ;;  %v2261_v63 = vsel %vm2045_vm15, %v1827_v44, %v2153_v52 }
 0x1a0   :  { %v2369_v7 = vmax.f32 %v1117_v57, %v2261_v63 }
 0x1a1   :  { %v4872_v53 = vmax.f32 %v2368_v50, %v4764_v51  ;;  %v3078_v54 = vpop.f32.mrf.mxu2  ;;  %v4222_v56 = vpop.f32.mrf.mxu3 }
 0x1a2   :  { %v3079_v58 = vadd.f32 %v7336_v55, %v3078_v54  ;;  %v4223_v59 = vadd.f32 %v7336_v55, %v4222_v56  ;;  %v683_v60 = vpop.f32.mrf.mxu0  ;;  %v1828_v61 = vpop.f32.mrf.mxu1 }
 0x1a3   :  { %v4980_v62 = vpack.c.bf16 %v4872_v53, %v4872_v53  ;;  %v684_v0 = vadd.f32 %v7336_v55, %v683_v60  ;;  %v1829_v1 = vadd.f32 %v7336_v55, %v1828_v61  ;;  %v6663_v60 = vld [vmem:[%s9038_s0 + $0x288] sm:$0xff] }
 0x1a4   :  { %vm3297_vm0 = vcmp.ge.f32.partialorder %v3079_v58, 0.0  ;;  %v3405_v2 = vmul.f32 %v3079_v58, %v6990_v49  ;;  %vm4441_vm1 = vcmp.ge.f32.partialorder %v4223_v59, 0.0  ;;  %v4549_v3 = vmul.f32 %v4223_v59, %v6990_v49 }
 0x1a5   :  { %5089 = vst.msk [vmem:[%s9040_s4 + $0x84] sm:$0xf] %vm5055_vm9, %v4980_v62  ;;  %v1010_v6 = vmul.f32 %v6990_v49, %v684_v0  ;;  %vm901_vm3 = vcmp.ge.f32.partialorder %v684_v0, 0.0  ;;  %v2154_v55 = vmul.f32 %v1829_v1, %v6990_v49  ;;  %vm2046_vm4 = vcmp.ge.f32.partialorder %v1829_v1, 0.0 }
 0x1a6   :  { %v3513_v4 = vsel %vm3297_vm0, %v3079_v58, %v3405_v2  ;;  %v4657_v5 = vsel %vm4441_vm1, %v4223_v59, %v4549_v3  ;;  %v6609_v59 = vld [vmem:[%s9038_s0 + $0xd8] sm:$0xff]  ;;  %v6771_v3 = vld [vmem:[%s9038_s0 + $0x5e8] sm:$0xff] }
 0x1a7   :  { %v4765_v8 = vmax.f32 %v3513_v4, %v4657_v5  ;;  %v1118_v14 = vsel %vm901_vm3, %v684_v0, %v1010_v6  ;;  %v2262_v23 = vsel %vm2046_vm4, %v1829_v1, %v2154_v55  ;;  %v6717_v2 = vld [vmem:[%s9038_s0 + $0x438] sm:$0xff] }
 0x1a8   :  { %v2370_v31 = vmax.f32 %v1118_v14, %v2262_v23 }
 0x1a9   :  { %v4873_v9 = vmax.f32 %v2369_v7, %v4765_v8  ;;  %v3080_v10 = vpop.f32.mrf.mxu2  ;;  %v4224_v11 = vpop.f32.mrf.mxu3 }
 0x1aa   :  { %v3081_v16 = vadd.f32 %v7701_v15, %v3080_v10  ;;  %v4225_v17 = vadd.f32 %v7701_v15, %v4224_v11  ;;  %v686_v18 = vpop.f32.mrf.mxu0  ;;  %v1831_v19 = vpop.f32.mrf.mxu1 }
 0x1ab   :  { %v4981_v22 = vpack.c.bf16 %v4873_v9, %v4873_v9  ;;  %v687_v24 = vadd.f32 %v7701_v15, %v686_v18  ;;  %v1832_v25 = vadd.f32 %v7701_v15, %v1831_v19 }
 0x1ac   :  { %vm3298_vm5 = vcmp.ge.f32.partialorder %v3081_v16, 0.0  ;;  %v3406_v26 = vmul.f32 %v3081_v16, %v6990_v49  ;;  %vm4442_vm6 = vcmp.ge.f32.partialorder %v4225_v17, 0.0  ;;  %v4550_v27 = vmul.f32 %v4225_v17, %v6990_v49 }
 0x1ad   :  { %5090 = vst.msk [vmem:[%s9040_s4 + $0x88] sm:$0xf] %vm5055_vm9, %v4981_v22  ;;  %5418 = vmatmul.msk.bf16.gmra.mxu0 %vm417_vm2, %v6608_v12  ;;  %5796 = vmatmul.msk.bf16.gmra.mxu1 %vm417_vm2, %v6662_v13  ;;  %v1011_v30 = vmul.f32 %v6990_v49, %v687_v24  ;;  %vm902_vm7 = vcmp.ge.f32.partialorder %v687_v24, 0.0  ;;  %v2155_v33 = vmul.f32 %v1832_v25, %v6990_v49  ;;  %vm2047_vm8 = vcmp.ge.f32.partialorder %v1832_v25, 0.0 }
 0x1ae   :  { %v3514_v28 = vsel %vm3298_vm5, %v3081_v16, %v3406_v26  ;;  %v4658_v29 = vsel %vm4442_vm6, %v4225_v17, %v4550_v27  ;;  %6174 = vmatmul.msk.bf16.gmra.mxu2 %vm417_vm2, %v6716_v20  ;;  %6552 = vmatmul.msk.bf16.gmra.mxu3 %vm417_vm2, %v6770_v21 }
 0x1af   :  { %v4766_v32 = vmax.f32 %v3514_v28, %v4658_v29  ;;  %v1119_v37 = vsel %vm902_vm7, %v687_v24, %v1011_v30  ;;  %v2263_v44 = vsel %vm2047_vm8, %v1832_v25, %v2155_v33 }
 0x1b0   :  { %v2371_v52 = vmax.f32 %v1119_v37, %v2263_v44 }
 0x1b1   :  { %v4874_v34 = vmax.f32 %v2370_v31, %v4766_v32  ;;  %v3083_v35 = vpop.f32.mrf.mxu2  ;;  %v4227_v36 = vpop.f32.mrf.mxu3 }
 0x1b2   :  { %v3084_v38 = vadd.f32 %v7701_v15, %v3083_v35  ;;  %v4228_v39 = vadd.f32 %v7701_v15, %v4227_v36  ;;  %v688_v41 = vpop.f32.mrf.mxu0  ;;  %v1833_v42 = vpop.f32.mrf.mxu1 }
 0x1b3   :  { %v4982_v43 = vpack.c.bf16 %v4874_v34, %v4874_v34  ;;  %v689_v45 = vadd.f32 %v7701_v15, %v688_v41  ;;  %v1834_v46 = vadd.f32 %v7701_v15, %v1833_v42  ;;  %v6664_v41 = vld [vmem:[%s9038_s0 + $0x290] sm:$0xff] }
 0x1b4   :  { %vm3299_vm10 = vcmp.ge.f32.partialorder %v3084_v38, 0.0  ;;  %v3407_v47 = vmul.f32 %v3084_v38, %v6990_v49  ;;  %vm4443_vm11 = vcmp.ge.f32.partialorder %v4228_v39, 0.0  ;;  %v4551_v40 = vmul.f32 %v4228_v39, %v6990_v49 }
 0x1b5   :  { %5091 = vst.msk [vmem:[%s9040_s4 + $0x8c] sm:$0xf] %vm5055_vm9, %v4982_v43  ;;  %v1012_v51 = vmul.f32 %v6990_v49, %v689_v45  ;;  %vm903_vm12 = vcmp.ge.f32.partialorder %v689_v45, 0.0  ;;  %v2156_v54 = vmul.f32 %v1834_v46, %v6990_v49  ;;  %vm2048_vm13 = vcmp.ge.f32.partialorder %v1834_v46, 0.0 }
 0x1b6   :  { %v3515_v48 = vsel %vm3299_vm10, %v3084_v38, %v3407_v47  ;;  %v4659_v50 = vsel %vm4443_vm11, %v4228_v39, %v4551_v40  ;;  %v6610_v39 = vld [vmem:[%s9038_s0 + $0xe0] sm:$0xff]  ;;  %v6772_v40 = vld [vmem:[%s9038_s0 + $0x5f0] sm:$0xff] }
 0x1b7   :  { %v4767_v53 = vmax.f32 %v3515_v48, %v4659_v50  ;;  %v1120_v61 = vsel %vm903_vm12, %v689_v45, %v1012_v51  ;;  %v2264_v5 = vsel %vm2048_vm13, %v1834_v46, %v2156_v54  ;;  %v6718_v47 = vld [vmem:[%s9038_s0 + $0x440] sm:$0xff] }
 0x1b8   :  { %v2372_v12 = vmax.f32 %v1120_v61, %v2264_v5 }
 0x1b9   :  { %v4875_v56 = vmax.f32 %v2371_v52, %v4767_v53  ;;  %v3085_v57 = vpop.f32.mrf.mxu2  ;;  %v4229_v58 = vpop.f32.mrf.mxu3 }
 0x1ba   :  { %v3086_v62 = vadd.f32 %v7701_v15, %v3085_v57  ;;  %v4230_v63 = vadd.f32 %v7701_v15, %v4229_v58  ;;  %v691_v0 = vpop.f32.mrf.mxu0  ;;  %v1836_v1 = vpop.f32.mrf.mxu1 }
 0x1bb   :  { %v4983_v4 = vpack.c.bf16 %v4875_v56, %v4875_v56  ;;  %v692_v6 = vadd.f32 %v7701_v15, %v691_v0  ;;  %v1837_v7 = vadd.f32 %v7701_v15, %v1836_v1 }
 0x1bc   :  { %vm3300_vm14 = vcmp.ge.f32.partialorder %v3086_v62, 0.0  ;;  %v3408_v8 = vmul.f32 %v3086_v62, %v6990_v49  ;;  %vm4444_vm15 = vcmp.ge.f32.partialorder %v4230_v63, 0.0  ;;  %v4552_v55 = vmul.f32 %v4230_v63, %v6990_v49 }
 0x1bd   :  { %5092 = vst.msk [vmem:[%s9040_s4 + $0x90] sm:$0xf] %vm5055_vm9, %v4983_v4  ;;  %5419 = vmatmul.msk.bf16.gmra.mxu0 %vm417_vm2, %v6609_v59  ;;  %5797 = vmatmul.msk.bf16.gmra.mxu1 %vm417_vm2, %v6663_v60  ;;  %v1013_v11 = vmul.f32 %v6990_v49, %v692_v6  ;;  %vm904_vm0 = vcmp.ge.f32.partialorder %v692_v6, 0.0  ;;  %v2157_v14 = vmul.f32 %v1837_v7, %v6990_v49  ;;  %vm2049_vm1 = vcmp.ge.f32.partialorder %v1837_v7, 0.0 }
 0x1be   :  { %v3516_v9 = vsel %vm3300_vm14, %v3086_v62, %v3408_v8  ;;  %v4660_v10 = vsel %vm4444_vm15, %v4230_v63, %v4552_v55  ;;  %6175 = vmatmul.msk.bf16.gmra.mxu2 %vm417_vm2, %v6717_v2  ;;  %6553 = vmatmul.msk.bf16.gmra.mxu3 %vm417_vm2, %v6771_v3 }
 0x1bf   :  { %v4768_v13 = vmax.f32 %v3516_v9, %v4660_v10  ;;  %v1121_v19 = vsel %vm904_vm0, %v692_v6, %v1013_v11  ;;  %v2265_v25 = vsel %vm2049_vm1, %v1837_v7, %v2157_v14 }
 0x1c0   :  { %v2373_v33 = vmax.f32 %v1121_v19, %v2265_v25 }
 0x1c1   :  { %v4876_v16 = vmax.f32 %v2372_v12, %v4768_v13  ;;  %v3088_v17 = vpop.f32.mrf.mxu2  ;;  %v4232_v18 = vpop.f32.mrf.mxu3 }
 0x1c2   :  { %v3089_v20 = vadd.f32 %v7701_v15, %v3088_v17  ;;  %v4233_v21 = vadd.f32 %v7701_v15, %v4232_v18  ;;  %v693_v22 = vpop.f32.mrf.mxu0  ;;  %v1838_v23 = vpop.f32.mrf.mxu1 }
 0x1c3   :  { %v4984_v24 = vpack.c.bf16 %v4876_v16, %v4876_v16  ;;  %v694_v26 = vadd.f32 %v7701_v15, %v693_v22  ;;  %v1839_v27 = vadd.f32 %v7701_v15, %v1838_v23  ;;  %v6665_v22 = vld [vmem:[%s9038_s0 + $0x298] sm:$0xff] }
 0x1c4   :  { %vm3301_vm3 = vcmp.ge.f32.partialorder %v3089_v20, 0.0  ;;  %v3409_v28 = vmul.f32 %v3089_v20, %v6990_v49  ;;  %vm4445_vm4 = vcmp.ge.f32.partialorder %v4233_v21, 0.0  ;;  %v4553_v29 = vmul.f32 %v4233_v21, %v6990_v49 }
 0x1c5   :  { %5093 = vst.msk [vmem:[%s9040_s4 + $0x94] sm:$0xf] %vm5055_vm9, %v4984_v24  ;;  %v1014_v32 = vmul.f32 %v6990_v49, %v694_v26  ;;  %vm905_vm5 = vcmp.ge.f32.partialorder %v694_v26, 0.0  ;;  %v2158_v35 = vmul.f32 %v1839_v27, %v6990_v49  ;;  %vm2050_vm6 = vcmp.ge.f32.partialorder %v1839_v27, 0.0 }
 0x1c6   :  { %v3517_v30 = vsel %vm3301_vm3, %v3089_v20, %v3409_v28  ;;  %v4661_v31 = vsel %vm4445_vm4, %v4233_v21, %v4553_v29  ;;  %v6611_v21 = vld [vmem:[%s9038_s0 + $0xe8] sm:$0xff]  ;;  %v6773_v29 = vld [vmem:[%s9038_s0 + $0x5f8] sm:$0xff] }
 0x1c7   :  { %v4769_v34 = vmax.f32 %v3517_v30, %v4661_v31  ;;  %v1122_v42 = vsel %vm905_vm5, %v694_v26, %v1014_v32  ;;  %v2266_v50 = vsel %vm2050_vm6, %v1839_v27, %v2158_v35  ;;  %v6719_v28 = vld [vmem:[%s9038_s0 + $0x448] sm:$0xff] }
 0x1c8   :  { %v2374_v59 = vmax.f32 %v1122_v42, %v2266_v50 }
 0x1c9   :  { %v4877_v36 = vmax.f32 %v2373_v33, %v4769_v34  ;;  %v3090_v37 = vpop.f32.mrf.mxu2  ;;  %v4234_v38 = vpop.f32.mrf.mxu3 }
 0x1ca   :  { %v3091_v43 = vadd.f32 %v7701_v15, %v3090_v37  ;;  %v4235_v44 = vadd.f32 %v7701_v15, %v4234_v38  ;;  %v696_v45 = vpop.f32.mrf.mxu0  ;;  %v1841_v46 = vpop.f32.mrf.mxu1 }
 0x1cb   :  { %v4985_v48 = vpack.c.bf16 %v4877_v36, %v4877_v36  ;;  %v697_v51 = vadd.f32 %v7701_v15, %v696_v45  ;;  %v1842_v52 = vadd.f32 %v7701_v15, %v1841_v46 }
 0x1cc   :  { %vm3302_vm7 = vcmp.ge.f32.partialorder %v3091_v43, 0.0  ;;  %v3410_v53 = vmul.f32 %v3091_v43, %v6990_v49  ;;  %vm4446_vm8 = vcmp.ge.f32.partialorder %v4235_v44, 0.0  ;;  %v4554_v54 = vmul.f32 %v4235_v44, %v6990_v49 }
 0x1cd   :  { %5094 = vst.msk [vmem:[%s9040_s4 + $0x98] sm:$0xf] %vm5055_vm9, %v4985_v48  ;;  %5420 = vmatmul.msk.bf16.gmra.mxu0 %vm417_vm2, %v6610_v39  ;;  %5798 = vmatmul.msk.bf16.gmra.mxu1 %vm417_vm2, %v6664_v41  ;;  %v1015_v58 = vmul.f32 %v6990_v49, %v697_v51  ;;  %vm906_vm10 = vcmp.ge.f32.partialorder %v697_v51, 0.0  ;;  %v2159_v61 = vmul.f32 %v1842_v52, %v6990_v49  ;;  %vm2051_vm11 = vcmp.ge.f32.partialorder %v1842_v52, 0.0 }
 0x1ce   :  { %v3518_v56 = vsel %vm3302_vm7, %v3091_v43, %v3410_v53  ;;  %v4662_v57 = vsel %vm4446_vm8, %v4235_v44, %v4554_v54  ;;  %6176 = vmatmul.msk.bf16.gmra.mxu2 %vm417_vm2, %v6718_v47  ;;  %6554 = vmatmul.msk.bf16.gmra.mxu3 %vm417_vm2, %v6772_v40 }
 0x1cf   :  { %v4770_v60 = vmax.f32 %v3518_v56, %v4662_v57  ;;  %v1123_v1 = vsel %vm906_vm10, %v697_v51, %v1015_v58  ;;  %v2267_v7 = vsel %vm2051_vm11, %v1842_v52, %v2159_v61 }
 0x1d0   :  { %v2375_v14 = vmax.f32 %v1123_v1, %v2267_v7 }
 0x1d1   :  { %v4878_v62 = vmax.f32 %v2374_v59, %v4770_v60  ;;  %v3093_v63 = vpop.f32.mrf.mxu2  ;;  %v4237_v0 = vpop.f32.mrf.mxu3 }
 0x1d2   :  { %v3094_v2 = vadd.f32 %v7701_v15, %v3093_v63  ;;  %v4238_v3 = vadd.f32 %v7701_v15, %v4237_v0  ;;  %v698_v4 = vpop.f32.mrf.mxu0  ;;  %v1843_v5 = vpop.f32.mrf.mxu1 }
 0x1d3   :  { %v4986_v6 = vpack.c.bf16 %v4878_v62, %v4878_v62  ;;  %v699_v8 = vadd.f32 %v7701_v15, %v698_v4  ;;  %v1844_v55 = vadd.f32 %v7701_v15, %v1843_v5  ;;  %v6666_v4 = vld [vmem:[%s9038_s0 + $0x2a0] sm:$0xff] }
 0x1d4   :  { %vm3303_vm12 = vcmp.ge.f32.partialorder %v3094_v2, 0.0  ;;  %v3411_v9 = vmul.f32 %v3094_v2, %v6990_v49  ;;  %vm4447_vm13 = vcmp.ge.f32.partialorder %v4238_v3, 0.0  ;;  %v4555_v10 = vmul.f32 %v4238_v3, %v6990_v49 }
 0x1d5   :  { %5095 = vst.msk [vmem:[%s9040_s4 + $0x9c] sm:$0xf] %vm5055_vm9, %v4986_v6  ;;  %v1016_v13 = vmul.f32 %v6990_v49, %v699_v8  ;;  %vm907_vm14 = vcmp.ge.f32.partialorder %v699_v8, 0.0  ;;  %v2160_v17 = vmul.f32 %v1844_v55, %v6990_v49  ;;  %vm2052_vm15 = vcmp.ge.f32.partialorder %v1844_v55, 0.0 }
 0x1d6   :  { %v3519_v11 = vsel %vm3303_vm12, %v3094_v2, %v3411_v9  ;;  %v4663_v12 = vsel %vm4447_vm13, %v4238_v3, %v4555_v10  ;;  %v6612_v3 = vld [vmem:[%s9038_s0 + $0xf0] sm:$0xff]  ;;  %v6774_v10 = vld [vmem:[%s9038_s0 + $0x600] sm:$0xff] }
 0x1d7   :  { %v4771_v16 = vmax.f32 %v3519_v11, %v4663_v12  ;;  %v1124_v23 = vsel %vm907_vm14, %v699_v8, %v1016_v13  ;;  %v2268_v31 = vsel %vm2052_vm15, %v1844_v55, %v2160_v17  ;;  %v6720_v9 = vld [vmem:[%s9038_s0 + $0x450] sm:$0xff] }
 0x1d8   :  { %v2376_v39 = vmax.f32 %v1124_v23, %v2268_v31 }
 0x1d9   :  { %v4879_v18 = vmax.f32 %v2375_v14, %v4771_v16  ;;  %v3095_v19 = vpop.f32.mrf.mxu2  ;;  %v4239_v20 = vpop.f32.mrf.mxu3 }
 0x1da   :  { %v3096_v24 = vadd.f32 %v7701_v15, %v3095_v19  ;;  %v4240_v25 = vadd.f32 %v7701_v15, %v4239_v20  ;;  %v701_v26 = vpop.f32.mrf.mxu0  ;;  %v1846_v27 = vpop.f32.mrf.mxu1 }
 0x1db   :  { %v4987_v30 = vpack.c.bf16 %v4879_v18, %v4879_v18  ;;  %v702_v32 = vadd.f32 %v7701_v15, %v701_v26  ;;  %v1847_v33 = vadd.f32 %v7701_v15, %v1846_v27 }
 0x1dc   :  { %vm3304_vm0 = vcmp.ge.f32.partialorder %v3096_v24, 0.0  ;;  %v3412_v34 = vmul.f32 %v3096_v24, %v6990_v49  ;;  %vm4448_vm1 = vcmp.ge.f32.partialorder %v4240_v25, 0.0  ;;  %v4556_v35 = vmul.f32 %v4240_v25, %v6990_v49 }
 0x1dd   :  { %5096 = vst.msk [vmem:[%s9040_s4 + $0xa0] sm:$0xf] %vm5055_vm9, %v4987_v30  ;;  %5421 = vmatmul.msk.bf16.gmra.mxu0 %vm417_vm2, %v6611_v21  ;;  %5799 = vmatmul.msk.bf16.gmra.mxu1 %vm417_vm2, %v6665_v22  ;;  %v1017_v38 = vmul.f32 %v6990_v49, %v702_v32  ;;  %vm908_vm3 = vcmp.ge.f32.partialorder %v702_v32, 0.0  ;;  %v2161_v42 = vmul.f32 %v1847_v33, %v6990_v49  ;;  %vm2053_vm4 = vcmp.ge.f32.partialorder %v1847_v33, 0.0 }
 0x1de   :  { %v3520_v36 = vsel %vm3304_vm0, %v3096_v24, %v3412_v34  ;;  %v4664_v37 = vsel %vm4448_vm1, %v4240_v25, %v4556_v35  ;;  %6177 = vmatmul.msk.bf16.gmra.mxu2 %vm417_vm2, %v6719_v28  ;;  %6555 = vmatmul.msk.bf16.gmra.mxu3 %vm417_vm2, %v6773_v29 }
 0x1df   :  { %v4772_v41 = vmax.f32 %v3520_v36, %v4664_v37  ;;  %v1125_v46 = vsel %vm908_vm3, %v702_v32, %v1017_v38  ;;  %v2269_v52 = vsel %vm2053_vm4, %v1847_v33, %v2161_v42 }
 0x1e0   :  { %v2377_v61 = vmax.f32 %v1125_v46, %v2269_v52 }
 0x1e1   :  { %v4880_v43 = vmax.f32 %v2376_v39, %v4772_v41  ;;  %v3098_v44 = vpop.f32.mrf.mxu2  ;;  %v4242_v45 = vpop.f32.mrf.mxu3 }
 0x1e2   :  { %v3099_v47 = vadd.f32 %v7701_v15, %v3098_v44  ;;  %v4243_v40 = vadd.f32 %v7701_v15, %v4242_v45  ;;  %v703_v48 = vpop.f32.mrf.mxu0  ;;  %v1848_v50 = vpop.f32.mrf.mxu1 }
 0x1e3   :  { %v4988_v51 = vpack.c.bf16 %v4880_v43, %v4880_v43  ;;  %v704_v53 = vadd.f32 %v7701_v15, %v703_v48  ;;  %v1849_v54 = vadd.f32 %v7701_v15, %v1848_v50  ;;  %v6667_v48 = vld [vmem:[%s9038_s0 + $0x2a8] sm:$0xff] }
 0x1e4   :  { %vm3305_vm5 = vcmp.ge.f32.partialorder %v3099_v47, 0.0  ;;  %v3413_v56 = vmul.f32 %v3099_v47, %v6990_v49  ;;  %vm4449_vm6 = vcmp.ge.f32.partialorder %v4243_v40, 0.0  ;;  %v4557_v57 = vmul.f32 %v4243_v40, %v6990_v49 }
 0x1e5   :  { %5097 = vst.msk [vmem:[%s9040_s4 + $0xa4] sm:$0xf] %vm5055_vm9, %v4988_v51  ;;  %v1018_v60 = vmul.f32 %v6990_v49, %v704_v53  ;;  %vm909_vm7 = vcmp.ge.f32.partialorder %v704_v53, 0.0  ;;  %v2162_v63 = vmul.f32 %v1849_v54, %v6990_v49  ;;  %vm2054_vm8 = vcmp.ge.f32.partialorder %v1849_v54, 0.0 }
 0x1e6   :  { %v3521_v58 = vsel %vm3305_vm5, %v3099_v47, %v3413_v56  ;;  %v4665_v59 = vsel %vm4449_vm6, %v4243_v40, %v4557_v57  ;;  %v6613_v40 = vld [vmem:[%s9038_s0 + $0xf8] sm:$0xff]  ;;  %v6775_v57 = vld [vmem:[%s9038_s0 + $0x608] sm:$0xff] }
 0x1e7   :  { %v4773_v62 = vmax.f32 %v3521_v58, %v4665_v59  ;;  %v1126_v5 = vsel %vm909_vm7, %v704_v53, %v1018_v60  ;;  %v2270_v12 = vsel %vm2054_vm8, %v1849_v54, %v2162_v63  ;;  %v6721_v56 = vld [vmem:[%s9038_s0 + $0x458] sm:$0xff] }
 0x1e8   :  { %v2378_v21 = vmax.f32 %v1126_v5, %v2270_v12 }
 0x1e9   :  { %v4881_v0 = vmax.f32 %v2377_v61, %v4773_v62  ;;  %v3100_v1 = vpop.f32.mrf.mxu2  ;;  %v4244_v2 = vpop.f32.mrf.mxu3 }
 0x1ea   :  { %v3101_v6 = vadd.f32 %v7701_v15, %v3100_v1  ;;  %v4245_v7 = vadd.f32 %v7701_v15, %v4244_v2  ;;  %v706_v8 = vpop.f32.mrf.mxu0  ;;  %v1851_v55 = vpop.f32.mrf.mxu1 }
 0x1eb   :  { %v4989_v11 = vpack.c.bf16 %v4881_v0, %v4881_v0  ;;  %v707_v13 = vadd.f32 %v7701_v15, %v706_v8  ;;  %v1852_v14 = vadd.f32 %v7701_v15, %v1851_v55 }
 0x1ec   :  { %vm3306_vm10 = vcmp.ge.f32.partialorder %v3101_v6, 0.0  ;;  %v3414_v16 = vmul.f32 %v3101_v6, %v6990_v49  ;;  %vm4450_vm11 = vcmp.ge.f32.partialorder %v4245_v7, 0.0  ;;  %v4558_v17 = vmul.f32 %v4245_v7, %v6990_v49 }
 0x1ed   :  { %5098 = vst.msk [vmem:[%s9040_s4 + $0xa8] sm:$0xf] %vm5055_vm9, %v4989_v11  ;;  %5422 = vmatmul.msk.bf16.gmra.mxu0 %vm417_vm2, %v6612_v3  ;;  %5800 = vmatmul.msk.bf16.gmra.mxu1 %vm417_vm2, %v6666_v4  ;;  %v1019_v20 = vmul.f32 %v6990_v49, %v707_v13  ;;  %vm910_vm12 = vcmp.ge.f32.partialorder %v707_v13, 0.0  ;;  %v2163_v23 = vmul.f32 %v1852_v14, %v6990_v49  ;;  %vm2055_vm13 = vcmp.ge.f32.partialorder %v1852_v14, 0.0 }
 0x1ee   :  { %v3522_v18 = vsel %vm3306_vm10, %v3101_v6, %v3414_v16  ;;  %v4666_v19 = vsel %vm4450_vm11, %v4245_v7, %v4558_v17  ;;  %6178 = vmatmul.msk.bf16.gmra.mxu2 %vm417_vm2, %v6720_v9  ;;  %6556 = vmatmul.msk.bf16.gmra.mxu3 %vm417_vm2, %v6774_v10 }
 0x1ef   :  { %v4774_v22 = vmax.f32 %v3522_v18, %v4666_v19  ;;  %v1127_v27 = vsel %vm910_vm12, %v707_v13, %v1019_v20  ;;  %v2271_v33 = vsel %vm2055_vm13, %v1852_v14, %v2163_v23 }
 0x1f0   :  { %v2379_v42 = vmax.f32 %v1127_v27, %v2271_v33 }
 0x1f1   :  { %v4882_v24 = vmax.f32 %v2378_v21, %v4774_v22  ;;  %v3103_v25 = vpop.f32.mrf.mxu2  ;;  %v4247_v26 = vpop.f32.mrf.mxu3 }
 0x1f2   :  { %v3104_v28 = vadd.f32 %v7701_v15, %v3103_v25  ;;  %v4248_v29 = vadd.f32 %v7701_v15, %v4247_v26  ;;  %v708_v30 = vpop.f32.mrf.mxu0  ;;  %v1853_v31 = vpop.f32.mrf.mxu1 }
 0x1f3   :  { %v4990_v32 = vpack.c.bf16 %v4882_v24, %v4882_v24  ;;  %v709_v34 = vadd.f32 %v7701_v15, %v708_v30  ;;  %v1854_v35 = vadd.f32 %v7701_v15, %v1853_v31  ;;  %v6668_v30 = vld [vmem:[%s9038_s0 + $0x2b0] sm:$0xff] }
 0x1f4   :  { %vm3307_vm14 = vcmp.ge.f32.partialorder %v3104_v28, 0.0  ;;  %v3415_v36 = vmul.f32 %v3104_v28, %v6990_v49  ;;  %vm4451_vm15 = vcmp.ge.f32.partialorder %v4248_v29, 0.0  ;;  %v4559_v37 = vmul.f32 %v4248_v29, %v6990_v49 }
 0x1f5   :  { %5099 = vst.msk [vmem:[%s9040_s4 + $0xac] sm:$0xf] %vm5055_vm9, %v4990_v32  ;;  %v1020_v41 = vmul.f32 %v6990_v49, %v709_v34  ;;  %vm911_vm0 = vcmp.ge.f32.partialorder %v709_v34, 0.0  ;;  %v2164_v44 = vmul.f32 %v1854_v35, %v6990_v49  ;;  %vm2056_vm1 = vcmp.ge.f32.partialorder %v1854_v35, 0.0 }
 0x1f6   :  { %v3523_v38 = vsel %vm3307_vm14, %v3104_v28, %v3415_v36  ;;  %v4667_v39 = vsel %vm4451_vm15, %v4248_v29, %v4559_v37  ;;  %v6614_v29 = vld [vmem:[%s9038_s0 + $0x100] sm:$0xff]  ;;  %v6776_v37 = vld [vmem:[%s9038_s0 + $0x610] sm:$0xff] }
 0x1f7   :  { %v4775_v43 = vmax.f32 %v3523_v38, %v4667_v39  ;;  %v1128_v50 = vsel %vm911_vm0, %v709_v34, %v1020_v41  ;;  %v2272_v59 = vsel %vm2056_vm1, %v1854_v35, %v2164_v44  ;;  %v6722_v36 = vld [vmem:[%s9038_s0 + $0x460] sm:$0xff] }
 0x1f8   :  { %v2380_v3 = vmax.f32 %v1128_v50, %v2272_v59 }
 0x1f9   :  { %v4883_v45 = vmax.f32 %v2379_v42, %v4775_v43  ;;  %v3105_v46 = vpop.f32.mrf.mxu2  ;;  %v4249_v47 = vpop.f32.mrf.mxu3 }
 0x1fa   :  { %v3106_v51 = vadd.f32 %v7701_v15, %v3105_v46  ;;  %v4250_v52 = vadd.f32 %v7701_v15, %v4249_v47  ;;  %v711_v53 = vpop.f32.mrf.mxu0  ;;  %v1856_v54 = vpop.f32.mrf.mxu1 }
 0x1fb   :  { %v4991_v58 = vpack.c.bf16 %v4883_v45, %v4883_v45  ;;  %v712_v60 = vadd.f32 %v7701_v15, %v711_v53  ;;  %v1857_v61 = vadd.f32 %v7701_v15, %v1856_v54 }
 0x1fc   :  { %vm3308_vm3 = vcmp.ge.f32.partialorder %v3106_v51, 0.0  ;;  %v3416_v62 = vmul.f32 %v3106_v51, %v6990_v49  ;;  %vm4452_vm4 = vcmp.ge.f32.partialorder %v4250_v52, 0.0  ;;  %v4560_v63 = vmul.f32 %v4250_v52, %v6990_v49 }
 0x1fd   :  { %5100 = vst.msk [vmem:[%s9040_s4 + $0xb0] sm:$0xf] %vm5055_vm9, %v4991_v58  ;;  %5423 = vmatmul.msk.bf16.gmra.mxu0 %vm417_vm2, %v6613_v40  ;;  %5801 = vmatmul.msk.bf16.gmra.mxu1 %vm417_vm2, %v6667_v48  ;;  %v1021_v2 = vmul.f32 %v6990_v49, %v712_v60  ;;  %vm912_vm5 = vcmp.ge.f32.partialorder %v712_v60, 0.0  ;;  %v2165_v5 = vmul.f32 %v1857_v61, %v6990_v49  ;;  %vm2057_vm6 = vcmp.ge.f32.partialorder %v1857_v61, 0.0 }
 0x1fe   :  { %v3524_v0 = vsel %vm3308_vm3, %v3106_v51, %v3416_v62  ;;  %v4668_v1 = vsel %vm4452_vm4, %v4250_v52, %v4560_v63  ;;  %6179 = vmatmul.msk.bf16.gmra.mxu2 %vm417_vm2, %v6721_v56  ;;  %6557 = vmatmul.msk.bf16.gmra.mxu3 %vm417_vm2, %v6775_v57 }
 0x1ff   :  { %v4776_v4 = vmax.f32 %v3524_v0, %v4668_v1  ;;  %v1129_v55 = vsel %vm912_vm5, %v712_v60, %v1021_v2  ;;  %v2273_v14 = vsel %vm2057_vm6, %v1857_v61, %v2165_v5 }
 0x200   :  { %v2381_v23 = vmax.f32 %v1129_v55, %v2273_v14 }
 0x201   :  { %v4884_v6 = vmax.f32 %v2380_v3, %v4776_v4  ;;  %v3108_v7 = vpop.f32.mrf.mxu2  ;;  %v4252_v8 = vpop.f32.mrf.mxu3 }
 0x202   :  { %v3109_v9 = vadd.f32 %v7701_v15, %v3108_v7  ;;  %v4253_v10 = vadd.f32 %v7701_v15, %v4252_v8  ;;  %v713_v11 = vpop.f32.mrf.mxu0  ;;  %v1858_v12 = vpop.f32.mrf.mxu1 }
 0x203   :  { %v4992_v13 = vpack.c.bf16 %v4884_v6, %v4884_v6  ;;  %v714_v16 = vadd.f32 %v7701_v15, %v713_v11  ;;  %v1859_v17 = vadd.f32 %v7701_v15, %v1858_v12  ;;  %v6669_v11 = vld [vmem:[%s9038_s0 + $0x2b8] sm:$0xff] }
 0x204   :  { %vm3309_vm7 = vcmp.ge.f32.partialorder %v3109_v9, 0.0  ;;  %v3417_v18 = vmul.f32 %v3109_v9, %v6990_v49  ;;  %vm4453_vm8 = vcmp.ge.f32.partialorder %v4253_v10, 0.0  ;;  %v4561_v19 = vmul.f32 %v4253_v10, %v6990_v49 }
 0x205   :  { %5101 = vst.msk [vmem:[%s9040_s4 + $0xb4] sm:$0xf] %vm5055_vm9, %v4992_v13  ;;  %v1022_v22 = vmul.f32 %v6990_v49, %v714_v16  ;;  %vm913_vm10 = vcmp.ge.f32.partialorder %v714_v16, 0.0  ;;  %v2166_v25 = vmul.f32 %v1859_v17, %v6990_v49  ;;  %vm2058_vm11 = vcmp.ge.f32.partialorder %v1859_v17, 0.0 }
 0x206   :  { %v3525_v20 = vsel %vm3309_vm7, %v3109_v9, %v3417_v18  ;;  %v4669_v21 = vsel %vm4453_vm8, %v4253_v10, %v4561_v19  ;;  %v6615_v10 = vld [vmem:[%s9038_s0 + $0x108] sm:$0xff]  ;;  %v6777_v19 = vld [vmem:[%s9038_s0 + $0x618] sm:$0xff] }
 0x207   :  { %v4777_v24 = vmax.f32 %v3525_v20, %v4669_v21  ;;  %v1130_v31 = vsel %vm913_vm10, %v714_v16, %v1022_v22  ;;  %v2274_v39 = vsel %vm2058_vm11, %v1859_v17, %v2166_v25  ;;  %v6723_v18 = vld [vmem:[%s9038_s0 + $0x468] sm:$0xff] }
 0x208   :  { %v2382_v40 = vmax.f32 %v1130_v31, %v2274_v39 }
 0x209   :  { %v4885_v26 = vmax.f32 %v2381_v23, %v4777_v24  ;;  %v3110_v27 = vpop.f32.mrf.mxu2  ;;  %v4254_v28 = vpop.f32.mrf.mxu3 }
 0x20a   :  { %v3111_v32 = vadd.f32 %v7701_v15, %v3110_v27  ;;  %v4255_v33 = vadd.f32 %v7701_v15, %v4254_v28  ;;  %v716_v34 = vpop.f32.mrf.mxu0  ;;  %v1861_v35 = vpop.f32.mrf.mxu1 }
 0x20b   :  { %v4993_v38 = vpack.c.bf16 %v4885_v26, %v4885_v26  ;;  %v717_v41 = vadd.f32 %v7701_v15, %v716_v34  ;;  %v1862_v42 = vadd.f32 %v7701_v15, %v1861_v35 }
 0x20c   :  { %vm3310_vm12 = vcmp.ge.f32.partialorder %v3111_v32, 0.0  ;;  %v3418_v43 = vmul.f32 %v3111_v32, %v6990_v49  ;;  %vm4454_vm13 = vcmp.ge.f32.partialorder %v4255_v33, 0.0  ;;  %v4562_v44 = vmul.f32 %v4255_v33, %v6990_v49 }
 0x20d   :  { %5102 = vst.msk [vmem:[%s9040_s4 + $0xb8] sm:$0xf] %vm5055_vm9, %v4993_v38  ;;  %5424 = vmatmul.msk.bf16.gmra.mxu0 %vm417_vm2, %v6614_v29  ;;  %5802 = vmatmul.msk.bf16.gmra.mxu1 %vm417_vm2, %v6668_v30  ;;  %v1023_v47 = vmul.f32 %v6990_v49, %v717_v41  ;;  %vm914_vm14 = vcmp.ge.f32.partialorder %v717_v41, 0.0  ;;  %v2167_v50 = vmul.f32 %v1862_v42, %v6990_v49  ;;  %vm2059_vm15 = vcmp.ge.f32.partialorder %v1862_v42, 0.0 }
 0x20e   :  { %v3526_v45 = vsel %vm3310_vm12, %v3111_v32, %v3418_v43  ;;  %v4670_v46 = vsel %vm4454_vm13, %v4255_v33, %v4562_v44  ;;  %6180 = vmatmul.msk.bf16.gmra.mxu2 %vm417_vm2, %v6722_v36  ;;  %6558 = vmatmul.msk.bf16.gmra.mxu3 %vm417_vm2, %v6776_v37 }
 0x20f   :  { %v4778_v48 = vmax.f32 %v3526_v45, %v4670_v46  ;;  %v1131_v54 = vsel %vm914_vm14, %v717_v41, %v1023_v47  ;;  %v2275_v61 = vsel %vm2059_vm15, %v1862_v42, %v2167_v50 }
 0x210   :  { %v2383_v5 = vmax.f32 %v1131_v54, %v2275_v61 }
 0x211   :  { %v4886_v51 = vmax.f32 %v2382_v40, %v4778_v48  ;;  %v3113_v52 = vpop.f32.mrf.mxu2  ;;  %v4257_v53 = vpop.f32.mrf.mxu3 }
 0x212   :  { %v3114_v56 = vadd.f32 %v7701_v15, %v3113_v52  ;;  %v4258_v57 = vadd.f32 %v7701_v15, %v4257_v53  ;;  %v718_v58 = vpop.f32.mrf.mxu0  ;;  %v1863_v59 = vpop.f32.mrf.mxu1 }
 0x213   :  { %v4994_v60 = vpack.c.bf16 %v4886_v51, %v4886_v51  ;;  %v719_v62 = vadd.f32 %v7701_v15, %v718_v58  ;;  %v1864_v63 = vadd.f32 %v7701_v15, %v1863_v59  ;;  %v6670_v58 = vld [vmem:[%s9038_s0 + $0x2c0] sm:$0xff] }
 0x214   :  { %vm3311_vm0 = vcmp.ge.f32.partialorder %v3114_v56, 0.0  ;;  %v3419_v0 = vmul.f32 %v3114_v56, %v6990_v49  ;;  %vm4455_vm1 = vcmp.ge.f32.partialorder %v4258_v57, 0.0  ;;  %v4563_v1 = vmul.f32 %v4258_v57, %v6990_v49 }
 0x215   :  { %5103 = vst.msk [vmem:[%s9040_s4 + $0xbc] sm:$0xf] %vm5055_vm9, %v4994_v60  ;;  %v1024_v4 = vmul.f32 %v6990_v49, %v719_v62  ;;  %vm915_vm3 = vcmp.ge.f32.partialorder %v719_v62, 0.0  ;;  %v2168_v7 = vmul.f32 %v1864_v63, %v6990_v49  ;;  %vm2060_vm4 = vcmp.ge.f32.partialorder %v1864_v63, 0.0 }
 0x216   :  { %v3527_v2 = vsel %vm3311_vm0, %v3114_v56, %v3419_v0  ;;  %v4671_v3 = vsel %vm4455_vm1, %v4258_v57, %v4563_v1  ;;  %v6616_v57 = vld [vmem:[%s9038_s0 + $0x110] sm:$0xff]  ;;  %v6778_v1 = vld [vmem:[%s9038_s0 + $0x620] sm:$0xff] }
 0x217   :  { %v4779_v6 = vmax.f32 %v3527_v2, %v4671_v3  ;;  %v1132_v12 = vsel %vm915_vm3, %v719_v62, %v1024_v4  ;;  %v2276_v21 = vsel %vm2060_vm4, %v1864_v63, %v2168_v7  ;;  %v6724_v0 = vld [vmem:[%s9038_s0 + $0x470] sm:$0xff] }
 0x218   :  { %v2384_v29 = vmax.f32 %v1132_v12, %v2276_v21 }
 0x219   :  { %v4887_v8 = vmax.f32 %v2383_v5, %v4779_v6  ;;  %v3115_v55 = vpop.f32.mrf.mxu2  ;;  %v4259_v9 = vpop.f32.mrf.mxu3 }
 0x21a   :  { %v3116_v13 = vadd.f32 %v7701_v15, %v3115_v55  ;;  %v4260_v14 = vadd.f32 %v7701_v15, %v4259_v9  ;;  %v721_v16 = vpop.f32.mrf.mxu0  ;;  %v1866_v17 = vpop.f32.mrf.mxu1 }
 0x21b   :  { %v4995_v20 = vpack.c.bf16 %v4887_v8, %v4887_v8  ;;  %v722_v22 = vadd.f32 %v7701_v15, %v721_v16  ;;  %v1867_v23 = vadd.f32 %v7701_v15, %v1866_v17 }
 0x21c   :  { %vm3312_vm5 = vcmp.ge.f32.partialorder %v3116_v13, 0.0  ;;  %v3420_v24 = vmul.f32 %v3116_v13, %v6990_v49  ;;  %vm4456_vm6 = vcmp.ge.f32.partialorder %v4260_v14, 0.0  ;;  %v4564_v25 = vmul.f32 %v4260_v14, %v6990_v49 }
 0x21d   :  { %5104 = vst.msk [vmem:[%s9040_s4 + $0xc0] sm:$0xf] %vm5055_vm9, %v4995_v20  ;;  %5425 = vmatmul.msk.bf16.gmra.mxu0 %vm417_vm2, %v6615_v10  ;;  %5803 = vmatmul.msk.bf16.gmra.mxu1 %vm417_vm2, %v6669_v11  ;;  %v1025_v28 = vmul.f32 %v6990_v49, %v722_v22  ;;  %vm916_vm7 = vcmp.ge.f32.partialorder %v722_v22, 0.0  ;;  %v2169_v31 = vmul.f32 %v1867_v23, %v6990_v49  ;;  %vm2061_vm8 = vcmp.ge.f32.partialorder %v1867_v23, 0.0 }
 0x21e   :  { %v3528_v26 = vsel %vm3312_vm5, %v3116_v13, %v3420_v24  ;;  %v4672_v27 = vsel %vm4456_vm6, %v4260_v14, %v4564_v25  ;;  %6181 = vmatmul.msk.bf16.gmra.mxu2 %vm417_vm2, %v6723_v18  ;;  %6559 = vmatmul.msk.bf16.gmra.mxu3 %vm417_vm2, %v6777_v19 }
 0x21f   :  { %v4780_v30 = vmax.f32 %v3528_v26, %v4672_v27  ;;  %v1133_v35 = vsel %vm916_vm7, %v722_v22, %v1025_v28  ;;  %v2277_v42 = vsel %vm2061_vm8, %v1867_v23, %v2169_v31 }
 0x220   :  { %v2385_v50 = vmax.f32 %v1133_v35, %v2277_v42 }
 0x221   :  { %v4888_v32 = vmax.f32 %v2384_v29, %v4780_v30  ;;  %v3118_v33 = vpop.f32.mrf.mxu2  ;;  %v4262_v34 = vpop.f32.mrf.mxu3 }
 0x222   :  { %v3119_v36 = vadd.f32 %v7701_v15, %v3118_v33  ;;  %v4263_v37 = vadd.f32 %v7701_v15, %v4262_v34  ;;  %v723_v38 = vpop.f32.mrf.mxu0  ;;  %v1868_v39 = vpop.f32.mrf.mxu1 }
 0x223   :  { %v4996_v41 = vpack.c.bf16 %v4888_v32, %v4888_v32  ;;  %v724_v43 = vadd.f32 %v7701_v15, %v723_v38  ;;  %v1869_v44 = vadd.f32 %v7701_v15, %v1868_v39  ;;  %v8066_v39 = vld [vmem:[%s9037_s2] ss:$0 sm:$0xff] }
 0x224   :  { %vm3313_vm10 = vcmp.ge.f32.partialorder %v3119_v36, 0.0  ;;  %v3421_v45 = vmul.f32 %v3119_v36, %v6990_v49  ;;  %vm4457_vm11 = vcmp.ge.f32.partialorder %v4263_v37, 0.0  ;;  %v4565_v46 = vmul.f32 %v4263_v37, %v6990_v49 }
 0x225   :  { %5105 = vst.msk [vmem:[%s9040_s4 + $0xc4] sm:$0xf] %vm5055_vm9, %v4996_v41  ;;  %v1026_v48 = vmul.f32 %v6990_v49, %v724_v43  ;;  %vm917_vm12 = vcmp.ge.f32.partialorder %v724_v43, 0.0  ;;  %v2170_v52 = vmul.f32 %v1869_v44, %v6990_v49  ;;  %vm2062_vm13 = vcmp.ge.f32.partialorder %v1869_v44, 0.0 }
 0x226   :  { %v3529_v47 = vsel %vm3313_vm10, %v3119_v36, %v3421_v45  ;;  %v4673_v40 = vsel %vm4457_vm11, %v4263_v37, %v4565_v46  ;;  %v6617_v36 = vld [vmem:[%s9038_s0 + $0x118] sm:$0xff]  ;;  %v6671_v37 = vld [vmem:[%s9038_s0 + $0x2c8] sm:$0xff] }
 0x227   :  { %v4781_v51 = vmax.f32 %v3529_v47, %v4673_v40  ;;  %v1134_v59 = vsel %vm917_vm12, %v724_v43, %v1026_v48  ;;  %v2278_v3 = vsel %vm2062_vm13, %v1869_v44, %v2170_v52  ;;  %v6725_v45 = vld [vmem:[%s9038_s0 + $0x478] sm:$0xff]  ;;  %v6779_v46 = vld [vmem:[%s9038_s0 + $0x628] sm:$0xff] }
 0x228   :  { %v2386_v10 = vmax.f32 %v1134_v59, %v2278_v3 }
 0x229   :  { %v4889_v53 = vmax.f32 %v2385_v50, %v4781_v51  ;;  %v3120_v54 = vpop.f32.mrf.mxu2  ;;  %v4264_v56 = vpop.f32.mrf.mxu3 }
 0x22a   :  { %v3121_v60 = vadd.f32 %v7701_v15, %v3120_v54  ;;  %v4265_v61 = vadd.f32 %v7701_v15, %v4264_v56  ;;  %v726_v62 = vpop.f32.mrf.mxu0  ;;  %v1871_v63 = vpop.f32.mrf.mxu1 }
 0x22b   :  { %v4997_v2 = vpack.c.bf16 %v4889_v53, %v4889_v53  ;;  %v727_v4 = vadd.f32 %v7701_v15, %v726_v62  ;;  %v1872_v5 = vadd.f32 %v7701_v15, %v1871_v63 }
 0x22c   :  { %vm3314_vm14 = vcmp.ge.f32.partialorder %v3121_v60, 0.0  ;;  %v3422_v6 = vmul.f32 %v3121_v60, %v6990_v49  ;;  %vm4458_vm15 = vcmp.ge.f32.partialorder %v4265_v61, 0.0  ;;  %v4566_v7 = vmul.f32 %v4265_v61, %v6990_v49 }
 0x22d   :  { %5106 = vst.msk [vmem:[%s9040_s4 + $0xc8] sm:$0xf] %vm5055_vm9, %v4997_v2  ;;  %5426 = vmatmul.msk.bf16.gmra.mxu0 %vm417_vm2, %v6616_v57  ;;  %5804 = vmatmul.msk.bf16.gmra.mxu1 %vm417_vm2, %v6670_v58  ;;  %v1027_v9 = vmul.f32 %v6990_v49, %v727_v4  ;;  %vm918_vm0 = vcmp.ge.f32.partialorder %v727_v4, 0.0  ;;  %v2171_v12 = vmul.f32 %v1872_v5, %v6990_v49  ;;  %vm2063_vm1 = vcmp.ge.f32.partialorder %v1872_v5, 0.0 }
 0x22e   :  { %v3530_v8 = vsel %vm3314_vm14, %v3121_v60, %v3422_v6  ;;  %v4674_v55 = vsel %vm4458_vm15, %v4265_v61, %v4566_v7  ;;  %6182 = vmatmul.msk.bf16.gmra.mxu2 %vm417_vm2, %v6724_v0  ;;  %6560 = vmatmul.msk.bf16.gmra.mxu3 %vm417_vm2, %v6778_v1 }
 0x22f   :  { %v4782_v11 = vmax.f32 %v3530_v8, %v4674_v55  ;;  %v1135_v17 = vsel %vm918_vm0, %v727_v4, %v1027_v9  ;;  %v2279_v23 = vsel %vm2063_vm1, %v1872_v5, %v2171_v12 }
 0x230   :  { %v2387_v31 = vmax.f32 %v1135_v17, %v2279_v23 }
 0x231   :  { %v4890_v13 = vmax.f32 %v2386_v10, %v4782_v11  ;;  %v3123_v14 = vpop.f32.mrf.mxu2  ;;  %v4267_v16 = vpop.f32.mrf.mxu3 }
 0x232   :  { %v3124_v18 = vadd.f32 %v7701_v15, %v3123_v14  ;;  %v4268_v19 = vadd.f32 %v7701_v15, %v4267_v16  ;;  %v728_v20 = vpop.f32.mrf.mxu0  ;;  %v1873_v21 = vpop.f32.mrf.mxu1 }
 0x233   :  { %v4998_v22 = vpack.c.bf16 %v4890_v13, %v4890_v13  ;;  %v729_v24 = vadd.f32 %v7701_v15, %v728_v20  ;;  %v1874_v25 = vadd.f32 %v7701_v15, %v1873_v21  ;;  %v6672_v20 = vld [vmem:[%s9038_s0 + $0x2d0] sm:$0xff] }
 0x234   :  { %vm3315_vm3 = vcmp.ge.f32.partialorder %v3124_v18, 0.0  ;;  %v3423_v26 = vmul.f32 %v3124_v18, %v6990_v49  ;;  %vm4459_vm4 = vcmp.ge.f32.partialorder %v4268_v19, 0.0  ;;  %v4567_v27 = vmul.f32 %v4268_v19, %v6990_v49 }
 0x235   :  { %5107 = vst.msk [vmem:[%s9040_s4 + $0xcc] sm:$0xf] %vm5055_vm9, %v4998_v22  ;;  %v1028_v30 = vmul.f32 %v6990_v49, %v729_v24  ;;  %vm919_vm5 = vcmp.ge.f32.partialorder %v729_v24, 0.0  ;;  %v2172_v15 = vmul.f32 %v1874_v25, %v6990_v49  ;;  %vm2064_vm6 = vcmp.ge.f32.partialorder %v1874_v25, 0.0 }
 0x236   :  { %v3531_v28 = vsel %vm3315_vm3, %v3124_v18, %v3423_v26  ;;  %v4675_v29 = vsel %vm4459_vm4, %v4268_v19, %v4567_v27  ;;  %v6618_v19 = vld [vmem:[%s9038_s0 + $0x120] sm:$0xff]  ;;  %v6780_v27 = vld [vmem:[%s9038_s0 + $0x630] sm:$0xff] }
 0x237   :  { %v4783_v32 = vmax.f32 %v3531_v28, %v4675_v29  ;;  %v1136_v38 = vsel %vm919_vm5, %v729_v24, %v1028_v30  ;;  %v2280_v40 = vsel %vm2064_vm6, %v1874_v25, %v2172_v15  ;;  %v6726_v26 = vld [vmem:[%s9038_s0 + $0x480] sm:$0xff] }
 0x238   :  { %v2388_v57 = vmax.f32 %v1136_v38, %v2280_v40 }
 0x239   :  { %v4891_v33 = vmax.f32 %v2387_v31, %v4783_v32  ;;  %v3125_v34 = vpop.f32.mrf.mxu2  ;;  %v4269_v35 = vpop.f32.mrf.mxu3 }
 0x23a   :  { %v3126_v41 = vadd.f32 %v8066_v39, %v3125_v34  ;;  %v4270_v42 = vadd.f32 %v8066_v39, %v4269_v35  ;;  %v731_v43 = vpop.f32.mrf.mxu0  ;;  %v1876_v44 = vpop.f32.mrf.mxu1 }
 0x23b   :  { %v4999_v47 = vpack.c.bf16 %v4891_v33, %v4891_v33  ;;  %v732_v48 = vadd.f32 %v8066_v39, %v731_v43  ;;  %v1877_v50 = vadd.f32 %v8066_v39, %v1876_v44 }
 0x23c   :  { %vm3316_vm7 = vcmp.ge.f32.partialorder %v3126_v41, 0.0  ;;  %v3424_v51 = vmul.f32 %v3126_v41, %v6990_v49  ;;  %vm4460_vm8 = vcmp.ge.f32.partialorder %v4270_v42, 0.0  ;;  %v4568_v52 = vmul.f32 %v4270_v42, %v6990_v49 }
 0x23d   :  { %5108 = vst.msk [vmem:[%s9040_s4 + $0xd0] sm:$0xf] %vm5055_vm9, %v4999_v47  ;;  %5427 = vmatmul.msk.bf16.gmra.mxu0 %vm417_vm2, %v6617_v36  ;;  %5805 = vmatmul.msk.bf16.gmra.mxu1 %vm417_vm2, %v6671_v37  ;;  %v1029_v56 = vmul.f32 %v6990_v49, %v732_v48  ;;  %vm920_vm10 = vcmp.ge.f32.partialorder %v732_v48, 0.0  ;;  %v2173_v59 = vmul.f32 %v1877_v50, %v6990_v49  ;;  %vm2065_vm11 = vcmp.ge.f32.partialorder %v1877_v50, 0.0 }
 0x23e   :  { %v3532_v53 = vsel %vm3316_vm7, %v3126_v41, %v3424_v51  ;;  %v4676_v54 = vsel %vm4460_vm8, %v4270_v42, %v4568_v52  ;;  %6183 = vmatmul.msk.bf16.gmra.mxu2 %vm417_vm2, %v6725_v45  ;;  %6561 = vmatmul.msk.bf16.gmra.mxu3 %vm417_vm2, %v6779_v46 }
 0x23f   :  { %v4784_v58 = vmax.f32 %v3532_v53, %v4676_v54  ;;  %v1137_v63 = vsel %vm920_vm10, %v732_v48, %v1029_v56  ;;  %v2281_v5 = vsel %vm2065_vm11, %v1877_v50, %v2173_v59 }
 0x240   :  { %v2389_v12 = vmax.f32 %v1137_v63, %v2281_v5 }
 0x241   :  { %v4892_v60 = vmax.f32 %v2388_v57, %v4784_v58  ;;  %v3128_v61 = vpop.f32.mrf.mxu2  ;;  %v4272_v62 = vpop.f32.mrf.mxu3 }
 0x242   :  { %v3129_v0 = vadd.f32 %v8066_v39, %v3128_v61  ;;  %v4273_v1 = vadd.f32 %v8066_v39, %v4272_v62  ;;  %v733_v2 = vpop.f32.mrf.mxu0  ;;  %v1878_v3 = vpop.f32.mrf.mxu1 }
 0x243   :  { %v5000_v4 = vpack.c.bf16 %v4892_v60, %v4892_v60  ;;  %v734_v6 = vadd.f32 %v8066_v39, %v733_v2  ;;  %v1879_v7 = vadd.f32 %v8066_v39, %v1878_v3  ;;  %v6673_v2 = vld [vmem:[%s9038_s0 + $0x2d8] sm:$0xff] }
 0x244   :  { %vm3317_vm12 = vcmp.ge.f32.partialorder %v3129_v0, 0.0  ;;  %v3425_v8 = vmul.f32 %v3129_v0, %v6990_v49  ;;  %vm4461_vm13 = vcmp.ge.f32.partialorder %v4273_v1, 0.0  ;;  %v4569_v55 = vmul.f32 %v4273_v1, %v6990_v49 }
 0x245   :  { %5109 = vst.msk [vmem:[%s9040_s4 + $0xd4] sm:$0xf] %vm5055_vm9, %v5000_v4  ;;  %v1030_v11 = vmul.f32 %v6990_v49, %v734_v6  ;;  %vm921_vm14 = vcmp.ge.f32.partialorder %v734_v6, 0.0  ;;  %v2174_v14 = vmul.f32 %v1879_v7, %v6990_v49  ;;  %vm2066_vm15 = vcmp.ge.f32.partialorder %v1879_v7, 0.0 }
 0x246   :  { %v3533_v9 = vsel %vm3317_vm12, %v3129_v0, %v3425_v8  ;;  %v4677_v10 = vsel %vm4461_vm13, %v4273_v1, %v4569_v55  ;;  %v6619_v1 = vld [vmem:[%s9038_s0 + $0x128] sm:$0xff]  ;;  %v6781_v55 = vld [vmem:[%s9038_s0 + $0x638] sm:$0xff] }
 0x247   :  { %v4785_v13 = vmax.f32 %v3533_v9, %v4677_v10  ;;  %v1138_v21 = vsel %vm921_vm14, %v734_v6, %v1030_v11  ;;  %v2282_v29 = vsel %vm2066_vm15, %v1879_v7, %v2174_v14  ;;  %v6727_v8 = vld [vmem:[%s9038_s0 + $0x488] sm:$0xff] }
 0x248   :  { %v2390_v36 = vmax.f32 %v1138_v21, %v2282_v29 }
 0x249   :  { %v4893_v16 = vmax.f32 %v2389_v12, %v4785_v13  ;;  %v3130_v17 = vpop.f32.mrf.mxu2  ;;  %v4274_v18 = vpop.f32.mrf.mxu3 }
 0x24a   :  { %v3131_v22 = vadd.f32 %v8066_v39, %v3130_v17  ;;  %v4275_v23 = vadd.f32 %v8066_v39, %v4274_v18  ;;  %v736_v24 = vpop.f32.mrf.mxu0  ;;  %v1881_v25 = vpop.f32.mrf.mxu1 }
 0x24b   :  { %v5001_v28 = vpack.c.bf16 %v4893_v16, %v4893_v16  ;;  %v737_v30 = vadd.f32 %v8066_v39, %v736_v24  ;;  %v1882_v31 = vadd.f32 %v8066_v39, %v1881_v25 }
 0x24c   :  { %vm3318_vm0 = vcmp.ge.f32.partialorder %v3131_v22, 0.0  ;;  %v3426_v32 = vmul.f32 %v3131_v22, %v6990_v49  ;;  %vm4462_vm1 = vcmp.ge.f32.partialorder %v4275_v23, 0.0  ;;  %v4570_v15 = vmul.f32 %v4275_v23, %v6990_v49 }
 0x24d   :  { %5110 = vst.msk [vmem:[%s9040_s4 + $0xd8] sm:$0xf] %vm5055_vm9, %v5001_v28  ;;  %5428 = vmatmul.msk.bf16.gmra.mxu0 %vm417_vm2, %v6618_v19  ;;  %5806 = vmatmul.msk.bf16.gmra.mxu1 %vm417_vm2, %v6672_v20  ;;  %v1031_v35 = vmul.f32 %v6990_v49, %v737_v30  ;;  %vm922_vm3 = vcmp.ge.f32.partialorder %v737_v30, 0.0  ;;  %v2175_v38 = vmul.f32 %v1882_v31, %v6990_v49  ;;  %vm2067_vm4 = vcmp.ge.f32.partialorder %v1882_v31, 0.0 }
 0x24e   :  { %v3534_v33 = vsel %vm3318_vm0, %v3131_v22, %v3426_v32  ;;  %v4678_v34 = vsel %vm4462_vm1, %v4275_v23, %v4570_v15  ;;  %6184 = vmatmul.msk.bf16.gmra.mxu2 %vm417_vm2, %v6726_v26  ;;  %6562 = vmatmul.msk.bf16.gmra.mxu3 %vm417_vm2, %v6780_v27 }
 0x24f   :  { %v4786_v37 = vmax.f32 %v3534_v33, %v4678_v34  ;;  %v1139_v44 = vsel %vm922_vm3, %v737_v30, %v1031_v35  ;;  %v2283_v50 = vsel %vm2067_vm4, %v1882_v31, %v2175_v38 }
 0x250   :  { %v2391_v59 = vmax.f32 %v1139_v44, %v2283_v50 }
 0x251   :  { %v4894_v41 = vmax.f32 %v2390_v36, %v4786_v37  ;;  %v3133_v42 = vpop.f32.mrf.mxu2  ;;  %v4277_v43 = vpop.f32.mrf.mxu3 }
 0x252   :  { %v3134_v45 = vadd.f32 %v8066_v39, %v3133_v42  ;;  %v4278_v46 = vadd.f32 %v8066_v39, %v4277_v43  ;;  %v738_v47 = vpop.f32.mrf.mxu0  ;;  %v1883_v40 = vpop.f32.mrf.mxu1 }
 0x253   :  { %v5002_v48 = vpack.c.bf16 %v4894_v41, %v4894_v41  ;;  %v739_v51 = vadd.f32 %v8066_v39, %v738_v47  ;;  %v1884_v52 = vadd.f32 %v8066_v39, %v1883_v40  ;;  %v6674_v47 = vld [vmem:[%s9038_s0 + $0x2e0] sm:$0xff] }
 0x254   :  { %vm3319_vm5 = vcmp.ge.f32.partialorder %v3134_v45, 0.0  ;;  %v3427_v53 = vmul.f32 %v3134_v45, %v6990_v49  ;;  %vm4463_vm6 = vcmp.ge.f32.partialorder %v4278_v46, 0.0  ;;  %v4571_v54 = vmul.f32 %v4278_v46, %v6990_v49 }
 0x255   :  { %5111 = vst.msk [vmem:[%s9040_s4 + $0xdc] sm:$0xf] %vm5055_vm9, %v5002_v48  ;;  %v1032_v58 = vmul.f32 %v6990_v49, %v739_v51  ;;  %vm923_vm7 = vcmp.ge.f32.partialorder %v739_v51, 0.0  ;;  %v2176_v61 = vmul.f32 %v1884_v52, %v6990_v49  ;;  %vm2068_vm8 = vcmp.ge.f32.partialorder %v1884_v52, 0.0 }
 0x256   :  { %v3535_v56 = vsel %vm3319_vm5, %v3134_v45, %v3427_v53  ;;  %v4679_v57 = vsel %vm4463_vm6, %v4278_v46, %v4571_v54  ;;  %v6620_v46 = vld [vmem:[%s9038_s0 + $0x130] sm:$0xff]  ;;  %v6782_v54 = vld [vmem:[%s9038_s0 + $0x640] sm:$0xff] }
 0x257   :  { %v4787_v60 = vmax.f32 %v3535_v56, %v4679_v57  ;;  %v1140_v3 = vsel %vm923_vm7, %v739_v51, %v1032_v58  ;;  %v2284_v10 = vsel %vm2068_vm8, %v1884_v52, %v2176_v61  ;;  %v6728_v53 = vld [vmem:[%s9038_s0 + $0x490] sm:$0xff] }
 0x258   :  { %v2392_v19 = vmax.f32 %v1140_v3, %v2284_v10 }
 0x259   :  { %v4895_v62 = vmax.f32 %v2391_v59, %v4787_v60  ;;  %v3135_v63 = vpop.f32.mrf.mxu2  ;;  %v4279_v0 = vpop.f32.mrf.mxu3 }
 0x25a   :  { %v3136_v4 = vadd.f32 %v8066_v39, %v3135_v63  ;;  %v4280_v5 = vadd.f32 %v8066_v39, %v4279_v0  ;;  %v741_v6 = vpop.f32.mrf.mxu0  ;;  %v1886_v7 = vpop.f32.mrf.mxu1 }
 0x25b   :  { %v5003_v9 = vpack.c.bf16 %v4895_v62, %v4895_v62  ;;  %v742_v11 = vadd.f32 %v8066_v39, %v741_v6  ;;  %v1887_v12 = vadd.f32 %v8066_v39, %v1886_v7 }
 0x25c   :  { %vm3320_vm10 = vcmp.ge.f32.partialorder %v3136_v4, 0.0  ;;  %v3428_v13 = vmul.f32 %v3136_v4, %v6990_v49  ;;  %vm4464_vm11 = vcmp.ge.f32.partialorder %v4280_v5, 0.0  ;;  %v4572_v14 = vmul.f32 %v4280_v5, %v6990_v49 }
 0x25d   :  { %5112 = vst.msk [vmem:[%s9040_s4 + $0xe0] sm:$0xf] %vm5055_vm9, %v5003_v9  ;;  %5429 = vmatmul.msk.bf16.gmra.mxu0 %vm417_vm2, %v6619_v1  ;;  %5807 = vmatmul.msk.bf16.gmra.mxu1 %vm417_vm2, %v6673_v2  ;;  %v1033_v18 = vmul.f32 %v6990_v49, %v742_v11  ;;  %vm924_vm12 = vcmp.ge.f32.partialorder %v742_v11, 0.0  ;;  %v2177_v21 = vmul.f32 %v1887_v12, %v6990_v49  ;;  %vm2069_vm13 = vcmp.ge.f32.partialorder %v1887_v12, 0.0 }
 0x25e   :  { %v3536_v16 = vsel %vm3320_vm10, %v3136_v4, %v3428_v13  ;;  %v4680_v17 = vsel %vm4464_vm11, %v4280_v5, %v4572_v14  ;;  %6185 = vmatmul.msk.bf16.gmra.mxu2 %vm417_vm2, %v6727_v8  ;;  %6563 = vmatmul.msk.bf16.gmra.mxu3 %vm417_vm2, %v6781_v55 }
 0x25f   :  { %v4788_v20 = vmax.f32 %v3536_v16, %v4680_v17  ;;  %v1141_v25 = vsel %vm924_vm12, %v742_v11, %v1033_v18  ;;  %v2285_v31 = vsel %vm2069_vm13, %v1887_v12, %v2177_v21 }
 0x260   :  { %v2393_v38 = vmax.f32 %v1141_v25, %v2285_v31 }
 0x261   :  { %v4896_v22 = vmax.f32 %v2392_v19, %v4788_v20  ;;  %v3138_v23 = vpop.f32.mrf.mxu2  ;;  %v4282_v24 = vpop.f32.mrf.mxu3 }
 0x262   :  { %v3139_v26 = vadd.f32 %v8066_v39, %v3138_v23  ;;  %v4283_v27 = vadd.f32 %v8066_v39, %v4282_v24  ;;  %v743_v28 = vpop.f32.mrf.mxu0  ;;  %v1888_v29 = vpop.f32.mrf.mxu1 }
 0x263   :  { %v5004_v30 = vpack.c.bf16 %v4896_v22, %v4896_v22  ;;  %v744_v32 = vadd.f32 %v8066_v39, %v743_v28  ;;  %v1889_v15 = vadd.f32 %v8066_v39, %v1888_v29  ;;  %v6675_v28 = vld [vmem:[%s9038_s0 + $0x2e8] sm:$0xff] }
 0x264   :  { %vm3321_vm14 = vcmp.ge.f32.partialorder %v3139_v26, 0.0  ;;  %v3429_v33 = vmul.f32 %v3139_v26, %v6990_v49  ;;  %vm4465_vm15 = vcmp.ge.f32.partialorder %v4283_v27, 0.0  ;;  %v4573_v34 = vmul.f32 %v4283_v27, %v6990_v49 }
 0x265   :  { %5113 = vst.msk [vmem:[%s9040_s4 + $0xe4] sm:$0xf] %vm5055_vm9, %v5004_v30  ;;  %v1034_v37 = vmul.f32 %v6990_v49, %v744_v32  ;;  %vm925_vm0 = vcmp.ge.f32.partialorder %v744_v32, 0.0  ;;  %v2178_v42 = vmul.f32 %v1889_v15, %v6990_v49  ;;  %vm2070_vm1 = vcmp.ge.f32.partialorder %v1889_v15, 0.0 }
 0x266   :  { %v3537_v35 = vsel %vm3321_vm14, %v3139_v26, %v3429_v33  ;;  %v4681_v36 = vsel %vm4465_vm15, %v4283_v27, %v4573_v34  ;;  %v6621_v27 = vld [vmem:[%s9038_s0 + $0x138] sm:$0xff]  ;;  %v6783_v34 = vld [vmem:[%s9038_s0 + $0x648] sm:$0xff] }
 0x267   :  { %v4789_v41 = vmax.f32 %v3537_v35, %v4681_v36  ;;  %v1142_v40 = vsel %vm925_vm0, %v744_v32, %v1034_v37  ;;  %v2286_v57 = vsel %vm2070_vm1, %v1889_v15, %v2178_v42  ;;  %v6729_v33 = vld [vmem:[%s9038_s0 + $0x498] sm:$0xff] }
 0x268   :  { %v2394_v1 = vmax.f32 %v1142_v40, %v2286_v57 }
 0x269   :  { %v4897_v43 = vmax.f32 %v2393_v38, %v4789_v41  ;;  %v3140_v44 = vpop.f32.mrf.mxu2  ;;  %v4284_v45 = vpop.f32.mrf.mxu3 }
 0x26a   :  { %v3141_v48 = vadd.f32 %v8066_v39, %v3140_v44  ;;  %v4285_v50 = vadd.f32 %v8066_v39, %v4284_v45  ;;  %v746_v51 = vpop.f32.mrf.mxu0  ;;  %v1891_v52 = vpop.f32.mrf.mxu1 }
 0x26b   :  { %v5005_v56 = vpack.c.bf16 %v4897_v43, %v4897_v43  ;;  %v747_v58 = vadd.f32 %v8066_v39, %v746_v51  ;;  %v1892_v59 = vadd.f32 %v8066_v39, %v1891_v52 }
 0x26c   :  { %vm3322_vm3 = vcmp.ge.f32.partialorder %v3141_v48, 0.0  ;;  %v3430_v60 = vmul.f32 %v3141_v48, %v6990_v49  ;;  %vm4466_vm4 = vcmp.ge.f32.partialorder %v4285_v50, 0.0  ;;  %v4574_v61 = vmul.f32 %v4285_v50, %v6990_v49 }
 0x26d   :  { %5114 = vst.msk [vmem:[%s9040_s4 + $0xe8] sm:$0xf] %vm5055_vm9, %v5005_v56  ;;  %5430 = vmatmul.msk.bf16.gmra.mxu0 %vm417_vm2, %v6620_v46  ;;  %5808 = vmatmul.msk.bf16.gmra.mxu1 %vm417_vm2, %v6674_v47  ;;  %v1035_v0 = vmul.f32 %v6990_v49, %v747_v58  ;;  %vm926_vm5 = vcmp.ge.f32.partialorder %v747_v58, 0.0  ;;  %v2179_v3 = vmul.f32 %v1892_v59, %v6990_v49  ;;  %vm2071_vm6 = vcmp.ge.f32.partialorder %v1892_v59, 0.0 }
 0x26e   :  { %v3538_v62 = vsel %vm3322_vm3, %v3141_v48, %v3430_v60  ;;  %v4682_v63 = vsel %vm4466_vm4, %v4285_v50, %v4574_v61  ;;  %6186 = vmatmul.msk.bf16.gmra.mxu2 %vm417_vm2, %v6728_v53  ;;  %6564 = vmatmul.msk.bf16.gmra.mxu3 %vm417_vm2, %v6782_v54 }
 0x26f   :  { %v4790_v2 = vmax.f32 %v3538_v62, %v4682_v63  ;;  %v1143_v7 = vsel %vm926_vm5, %v747_v58, %v1035_v0  ;;  %v2287_v12 = vsel %vm2071_vm6, %v1892_v59, %v2179_v3 }
 0x270   :  { %v2395_v21 = vmax.f32 %v1143_v7, %v2287_v12 }
 0x271   :  { %v4898_v4 = vmax.f32 %v2394_v1, %v4790_v2  ;;  %v3143_v5 = vpop.f32.mrf.mxu2  ;;  %v4287_v6 = vpop.f32.mrf.mxu3 }
 0x272   :  { %v3144_v8 = vadd.f32 %v8066_v39, %v3143_v5  ;;  %v4288_v55 = vadd.f32 %v8066_v39, %v4287_v6  ;;  %v748_v9 = vpop.f32.mrf.mxu0  ;;  %v1893_v10 = vpop.f32.mrf.mxu1 }
 0x273   :  { %v5006_v11 = vpack.c.bf16 %v4898_v4, %v4898_v4  ;;  %v749_v13 = vadd.f32 %v8066_v39, %v748_v9  ;;  %v1894_v14 = vadd.f32 %v8066_v39, %v1893_v10  ;;  %v6676_v9 = vld [vmem:[%s9038_s0 + $0x2f0] sm:$0xff] }
 0x274   :  { %vm3323_vm7 = vcmp.ge.f32.partialorder %v3144_v8, 0.0  ;;  %v3431_v16 = vmul.f32 %v3144_v8, %v6990_v49  ;;  %vm4467_vm8 = vcmp.ge.f32.partialorder %v4288_v55, 0.0  ;;  %v4575_v17 = vmul.f32 %v4288_v55, %v6990_v49 }
 0x275   :  { %5115 = vst.msk [vmem:[%s9040_s4 + $0xec] sm:$0xf] %vm5055_vm9, %v5006_v11  ;;  %v1036_v20 = vmul.f32 %v6990_v49, %v749_v13  ;;  %vm927_vm10 = vcmp.ge.f32.partialorder %v749_v13, 0.0  ;;  %v2180_v23 = vmul.f32 %v1894_v14, %v6990_v49  ;;  %vm2072_vm11 = vcmp.ge.f32.partialorder %v1894_v14, 0.0 }
 0x276   :  { %v3539_v18 = vsel %vm3323_vm7, %v3144_v8, %v3431_v16  ;;  %v4683_v19 = vsel %vm4467_vm8, %v4288_v55, %v4575_v17  ;;  %v6622_v55 = vld [vmem:[%s9038_s0 + $0x140] sm:$0xff]  ;;  %v6784_v17 = vld [vmem:[%s9038_s0 + $0x650] sm:$0xff] }
 0x277   :  { %v4791_v22 = vmax.f32 %v3539_v18, %v4683_v19  ;;  %v1144_v29 = vsel %vm927_vm10, %v749_v13, %v1036_v20  ;;  %v2288_v36 = vsel %vm2072_vm11, %v1894_v14, %v2180_v23  ;;  %v6730_v16 = vld [vmem:[%s9038_s0 + $0x4a0] sm:$0xff] }
 0x278   :  { %v2396_v46 = vmax.f32 %v1144_v29, %v2288_v36 }
 0x279   :  { %v4899_v24 = vmax.f32 %v2395_v21, %v4791_v22  ;;  %v3145_v25 = vpop.f32.mrf.mxu2  ;;  %v4289_v26 = vpop.f32.mrf.mxu3 }
 0x27a   :  { %v3146_v30 = vadd.f32 %v8066_v39, %v3145_v25  ;;  %v4290_v31 = vadd.f32 %v8066_v39, %v4289_v26  ;;  %v751_v32 = vpop.f32.mrf.mxu0  ;;  %v1896_v15 = vpop.f32.mrf.mxu1 }
 0x27b   :  { %v5007_v35 = vpack.c.bf16 %v4899_v24, %v4899_v24  ;;  %v752_v37 = vadd.f32 %v8066_v39, %v751_v32  ;;  %v1897_v38 = vadd.f32 %v8066_v39, %v1896_v15 }
 0x27c   :  { %vm3324_vm12 = vcmp.ge.f32.partialorder %v3146_v30, 0.0  ;;  %v3432_v41 = vmul.f32 %v3146_v30, %v6990_v49  ;;  %vm4468_vm13 = vcmp.ge.f32.partialorder %v4290_v31, 0.0  ;;  %v4576_v42 = vmul.f32 %v4290_v31, %v6990_v49 }
 0x27d   :  { %5116 = vst.msk [vmem:[%s9040_s4 + $0xf0] sm:$0xf] %vm5055_vm9, %v5007_v35  ;;  %5431 = vmatmul.msk.bf16.gmra.mxu0 %vm417_vm2, %v6621_v27  ;;  %5809 = vmatmul.msk.bf16.gmra.mxu1 %vm417_vm2, %v6675_v28  ;;  %v1037_v45 = vmul.f32 %v6990_v49, %v752_v37  ;;  %vm928_vm14 = vcmp.ge.f32.partialorder %v752_v37, 0.0  ;;  %v2181_v40 = vmul.f32 %v1897_v38, %v6990_v49  ;;  %vm2073_vm15 = vcmp.ge.f32.partialorder %v1897_v38, 0.0 }
 0x27e   :  { %v3540_v43 = vsel %vm3324_vm12, %v3146_v30, %v3432_v41  ;;  %v4684_v44 = vsel %vm4468_vm13, %v4290_v31, %v4576_v42  ;;  %6187 = vmatmul.msk.bf16.gmra.mxu2 %vm417_vm2, %v6729_v33  ;;  %6565 = vmatmul.msk.bf16.gmra.mxu3 %vm417_vm2, %v6783_v34 }
 0x27f   :  { %v4792_v47 = vmax.f32 %v3540_v43, %v4684_v44  ;;  %v1145_v52 = vsel %vm928_vm14, %v752_v37, %v1037_v45  ;;  %v2289_v59 = vsel %vm2073_vm15, %v1897_v38, %v2181_v40 }
 0x280   :  { %v2397_v3 = vmax.f32 %v1145_v52, %v2289_v59 }
 0x281   :  { %v4900_v48 = vmax.f32 %v2396_v46, %v4792_v47  ;;  %v3148_v50 = vpop.f32.mrf.mxu2  ;;  %v4292_v51 = vpop.f32.mrf.mxu3 }
 0x282   :  { %v3149_v53 = vadd.f32 %v8066_v39, %v3148_v50  ;;  %v4293_v54 = vadd.f32 %v8066_v39, %v4292_v51  ;;  %v753_v56 = vpop.f32.mrf.mxu0  ;;  %v1898_v57 = vpop.f32.mrf.mxu1 }
 0x283   :  { %v5008_v58 = vpack.c.bf16 %v4900_v48, %v4900_v48  ;;  %v754_v60 = vadd.f32 %v8066_v39, %v753_v56  ;;  %v1899_v61 = vadd.f32 %v8066_v39, %v1898_v57  ;;  %v6677_v56 = vld [vmem:[%s9038_s0 + $0x2f8] sm:$0xff] }
 0x284   :  { %vm3325_vm0 = vcmp.ge.f32.partialorder %v3149_v53, 0.0  ;;  %v3433_v62 = vmul.f32 %v3149_v53, %v6990_v49  ;;  %vm4469_vm1 = vcmp.ge.f32.partialorder %v4293_v54, 0.0  ;;  %v4577_v63 = vmul.f32 %v4293_v54, %v6990_v49 }
 0x285   :  { %5117 = vst.msk [vmem:[%s9040_s4 + $0xf4] sm:$0xf] %vm5055_vm9, %v5008_v58  ;;  %v1038_v2 = vmul.f32 %v6990_v49, %v754_v60  ;;  %vm929_vm3 = vcmp.ge.f32.partialorder %v754_v60, 0.0  ;;  %v2182_v5 = vmul.f32 %v1899_v61, %v6990_v49  ;;  %vm2074_vm4 = vcmp.ge.f32.partialorder %v1899_v61, 0.0 }
 0x286   :  { %v3541_v0 = vsel %vm3325_vm0, %v3149_v53, %v3433_v62  ;;  %v4685_v1 = vsel %vm4469_vm1, %v4293_v54, %v4577_v63  ;;  %v6623_v54 = vld [vmem:[%s9038_s0 + $0x148] sm:$0xff]  ;;  %v6785_v63 = vld [vmem:[%s9038_s0 + $0x658] sm:$0xff] }
 0x287   :  { %v4793_v4 = vmax.f32 %v3541_v0, %v4685_v1  ;;  %v1146_v10 = vsel %vm929_vm3, %v754_v60, %v1038_v2  ;;  %v2290_v19 = vsel %vm2074_vm4, %v1899_v61, %v2182_v5  ;;  %v6731_v62 = vld [vmem:[%s9038_s0 + $0x4a8] sm:$0xff] }
 0x288   :  { %v2398_v27 = vmax.f32 %v1146_v10, %v2290_v19 }
 0x289   :  { %v4901_v6 = vmax.f32 %v2397_v3, %v4793_v4  ;;  %v3150_v7 = vpop.f32.mrf.mxu2  ;;  %v4294_v8 = vpop.f32.mrf.mxu3 }
 0x28a   :  { %v3151_v11 = vadd.f32 %v8066_v39, %v3150_v7  ;;  %v4295_v12 = vadd.f32 %v8066_v39, %v4294_v8  ;;  %v756_v13 = vpop.f32.mrf.mxu0  ;;  %v1901_v14 = vpop.f32.mrf.mxu1 }
 0x28b   :  { %v5009_v18 = vpack.c.bf16 %v4901_v6, %v4901_v6  ;;  %v757_v20 = vadd.f32 %v8066_v39, %v756_v13  ;;  %v1902_v21 = vadd.f32 %v8066_v39, %v1901_v14 }
 0x28c   :  { %vm3326_vm5 = vcmp.ge.f32.partialorder %v3151_v11, 0.0  ;;  %v3434_v22 = vmul.f32 %v3151_v11, %v6990_v49  ;;  %vm4470_vm6 = vcmp.ge.f32.partialorder %v4295_v12, 0.0  ;;  %v4578_v23 = vmul.f32 %v4295_v12, %v6990_v49 }
 0x28d   :  { %5118 = vst.msk [vmem:[%s9040_s4 + $0xf8] sm:$0xf] %vm5055_vm9, %v5009_v18  ;;  %5432 = vmatmul.msk.bf16.gmra.mxu0 %vm417_vm2, %v6622_v55  ;;  %5810 = vmatmul.msk.bf16.gmra.mxu1 %vm417_vm2, %v6676_v9  ;;  %v1039_v26 = vmul.f32 %v6990_v49, %v757_v20  ;;  %vm930_vm7 = vcmp.ge.f32.partialorder %v757_v20, 0.0  ;;  %v2183_v29 = vmul.f32 %v1902_v21, %v6990_v49  ;;  %vm2075_vm8 = vcmp.ge.f32.partialorder %v1902_v21, 0.0 }
 0x28e   :  { %v3542_v24 = vsel %vm3326_vm5, %v3151_v11, %v3434_v22  ;;  %v4686_v25 = vsel %vm4470_vm6, %v4295_v12, %v4578_v23  ;;  %6188 = vmatmul.msk.bf16.gmra.mxu2 %vm417_vm2, %v6730_v16  ;;  %6566 = vmatmul.msk.bf16.gmra.mxu3 %vm417_vm2, %v6784_v17 }
 0x28f   :  { %v4794_v28 = vmax.f32 %v3542_v24, %v4686_v25  ;;  %v1147_v15 = vsel %vm930_vm7, %v757_v20, %v1039_v26  ;;  %v2291_v38 = vsel %vm2075_vm8, %v1902_v21, %v2183_v29 }
 0x290   :  { %v2399_v40 = vmax.f32 %v1147_v15, %v2291_v38 }
 0x291   :  { %v4902_v30 = vmax.f32 %v2398_v27, %v4794_v28  ;;  %v3153_v31 = vpop.f32.mrf.mxu2  ;;  %v4297_v32 = vpop.f32.mrf.mxu3 }
 0x292   :  { %v3154_v33 = vadd.f32 %v8066_v39, %v3153_v31  ;;  %v4298_v34 = vadd.f32 %v8066_v39, %v4297_v32  ;;  %v758_v35 = vpop.f32.mrf.mxu0  ;;  %v1903_v36 = vpop.f32.mrf.mxu1 }
 0x293   :  { %v5010_v37 = vpack.c.bf16 %v4902_v30, %v4902_v30  ;;  %v759_v41 = vadd.f32 %v8066_v39, %v758_v35  ;;  %v1904_v42 = vadd.f32 %v8066_v39, %v1903_v36  ;;  %v6678_v35 = vld [vmem:[%s9038_s0 + $0x300] sm:$0xff] }
 0x294   :  { %vm3327_vm10 = vcmp.ge.f32.partialorder %v3154_v33, 0.0  ;;  %v3435_v43 = vmul.f32 %v3154_v33, %v6990_v49  ;;  %vm4471_vm11 = vcmp.ge.f32.partialorder %v4298_v34, 0.0  ;;  %v4579_v44 = vmul.f32 %v4298_v34, %v6990_v49 }
 0x295   :  { %5119 = vst.msk [vmem:[%s9040_s4 + $0xfc] sm:$0xf] %vm5055_vm9, %v5010_v37  ;;  %v1040_v47 = vmul.f32 %v6990_v49, %v759_v41  ;;  %vm931_vm12 = vcmp.ge.f32.partialorder %v759_v41, 0.0  ;;  %v2184_v50 = vmul.f32 %v1904_v42, %v6990_v49  ;;  %vm2076_vm13 = vcmp.ge.f32.partialorder %v1904_v42, 0.0 }
 0x296   :  { %v3543_v45 = vsel %vm3327_vm10, %v3154_v33, %v3435_v43  ;;  %v4687_v46 = vsel %vm4471_vm11, %v4298_v34, %v4579_v44  ;;  %v6624_v34 = vld [vmem:[%s9038_s0 + $0x150] sm:$0xff]  ;;  %v6786_v44 = vld [vmem:[%s9038_s0 + $0x660] sm:$0xff] }
 0x297   :  { %v4795_v48 = vmax.f32 %v3543_v45, %v4687_v46  ;;  %v1148_v57 = vsel %vm931_vm12, %v759_v41, %v1040_v47  ;;  %v2292_v1 = vsel %vm2076_vm13, %v1904_v42, %v2184_v50  ;;  %v6732_v43 = vld [vmem:[%s9038_s0 + $0x4b0] sm:$0xff] }
 0x298   :  { %v2400_v55 = vmax.f32 %v1148_v57, %v2292_v1 }
 0x299   :  { %v4903_v51 = vmax.f32 %v2399_v40, %v4795_v48  ;;  %v3155_v52 = vpop.f32.mrf.mxu2  ;;  %v4299_v53 = vpop.f32.mrf.mxu3 }
 0x29a   :  { %v3156_v58 = vadd.f32 %v8066_v39, %v3155_v52  ;;  %v4300_v59 = vadd.f32 %v8066_v39, %v4299_v53  ;;  %v761_v60 = vpop.f32.mrf.mxu0  ;;  %v1906_v61 = vpop.f32.mrf.mxu1 }
 0x29b   :  { %v5011_v0 = vpack.c.bf16 %v4903_v51, %v4903_v51  ;;  %v762_v2 = vadd.f32 %v8066_v39, %v761_v60  ;;  %v1907_v3 = vadd.f32 %v8066_v39, %v1906_v61 }
 0x29c   :  { %vm3328_vm14 = vcmp.ge.f32.partialorder %v3156_v58, 0.0  ;;  %v3436_v4 = vmul.f32 %v3156_v58, %v6990_v49  ;;  %vm4472_vm15 = vcmp.ge.f32.partialorder %v4300_v59, 0.0  ;;  %v4580_v5 = vmul.f32 %v4300_v59, %v6990_v49 }
 0x29d   :  { %5120 = vst.msk [vmem:[%s9040_s4 + $0x100] sm:$0xf] %vm5055_vm9, %v5011_v0  ;;  %5433 = vmatmul.msk.bf16.gmra.mxu0 %vm417_vm2, %v6623_v54  ;;  %5811 = vmatmul.msk.bf16.gmra.mxu1 %vm417_vm2, %v6677_v56  ;;  %v1041_v8 = vmul.f32 %v6990_v49, %v762_v2  ;;  %vm932_vm0 = vcmp.ge.f32.partialorder %v762_v2, 0.0  ;;  %v2185_v10 = vmul.f32 %v1907_v3, %v6990_v49  ;;  %vm2077_vm1 = vcmp.ge.f32.partialorder %v1907_v3, 0.0 }
 0x29e   :  { %v3544_v6 = vsel %vm3328_vm14, %v3156_v58, %v3436_v4  ;;  %v4688_v7 = vsel %vm4472_vm15, %v4300_v59, %v4580_v5  ;;  %6189 = vmatmul.msk.bf16.gmra.mxu2 %vm417_vm2, %v6731_v62  ;;  %6567 = vmatmul.msk.bf16.gmra.mxu3 %vm417_vm2, %v6785_v63 }
 0x29f   :  { %v4796_v9 = vmax.f32 %v3544_v6, %v4688_v7  ;;  %v1149_v14 = vsel %vm932_vm0, %v762_v2, %v1041_v8  ;;  %v2293_v21 = vsel %vm2077_vm1, %v1907_v3, %v2185_v10 }
 0x2a0   :  { %v2401_v29 = vmax.f32 %v1149_v14, %v2293_v21 }
 0x2a1   :  { %v4904_v11 = vmax.f32 %v2400_v55, %v4796_v9  ;;  %v3158_v12 = vpop.f32.mrf.mxu2  ;;  %v4302_v13 = vpop.f32.mrf.mxu3 }
 0x2a2   :  { %v3159_v16 = vadd.f32 %v8066_v39, %v3158_v12  ;;  %v4303_v17 = vadd.f32 %v8066_v39, %v4302_v13  ;;  %v763_v18 = vpop.f32.mrf.mxu0  ;;  %v1908_v19 = vpop.f32.mrf.mxu1 }
 0x2a3   :  { %v5012_v20 = vpack.c.bf16 %v4904_v11, %v4904_v11  ;;  %v764_v22 = vadd.f32 %v8066_v39, %v763_v18  ;;  %v1909_v23 = vadd.f32 %v8066_v39, %v1908_v19  ;;  %v6679_v18 = vld [vmem:[%s9038_s0 + $0x308] sm:$0xff] }
 0x2a4   :  { %vm3329_vm3 = vcmp.ge.f32.partialorder %v3159_v16, 0.0  ;;  %v3437_v24 = vmul.f32 %v3159_v16, %v6990_v49  ;;  %vm4473_vm4 = vcmp.ge.f32.partialorder %v4303_v17, 0.0  ;;  %v4581_v25 = vmul.f32 %v4303_v17, %v6990_v49 }
 0x2a5   :  { %5121 = vst.msk [vmem:[%s9040_s4 + $0x104] sm:$0xf] %vm5055_vm9, %v5012_v20  ;;  %v1042_v28 = vmul.f32 %v6990_v49, %v764_v22  ;;  %vm933_vm5 = vcmp.ge.f32.partialorder %v764_v22, 0.0  ;;  %v2186_v31 = vmul.f32 %v1909_v23, %v6990_v49  ;;  %vm2078_vm6 = vcmp.ge.f32.partialorder %v1909_v23, 0.0 }
 0x2a6   :  { %v3545_v26 = vsel %vm3329_vm3, %v3159_v16, %v3437_v24  ;;  %v4689_v27 = vsel %vm4473_vm4, %v4303_v17, %v4581_v25  ;;  %v6625_v17 = vld [vmem:[%s9038_s0 + $0x158] sm:$0xff]  ;;  %v6787_v25 = vld [vmem:[%s9038_s0 + $0x668] sm:$0xff] }
 0x2a7   :  { %v4797_v30 = vmax.f32 %v3545_v26, %v4689_v27  ;;  %v1150_v36 = vsel %vm933_vm5, %v764_v22, %v1042_v28  ;;  %v2294_v46 = vsel %vm2078_vm6, %v1909_v23, %v2186_v31  ;;  %v6733_v24 = vld [vmem:[%s9038_s0 + $0x4b8] sm:$0xff] }
 0x2a8   :  { %v2402_v54 = vmax.f32 %v1150_v36, %v2294_v46 }
 0x2a9   :  { %v4905_v32 = vmax.f32 %v2401_v29, %v4797_v30  ;;  %v3160_v15 = vpop.f32.mrf.mxu2  ;;  %v4304_v33 = vpop.f32.mrf.mxu3 }
 0x2aa   :  { %v3161_v37 = vadd.f32 %v8066_v39, %v3160_v15  ;;  %v4305_v38 = vadd.f32 %v8066_v39, %v4304_v33  ;;  %v766_v41 = vpop.f32.mrf.mxu0  ;;  %v1911_v42 = vpop.f32.mrf.mxu1 }
 0x2ab   :  { %v5013_v45 = vpack.c.bf16 %v4905_v32, %v4905_v32  ;;  %v767_v47 = vadd.f32 %v8066_v39, %v766_v41  ;;  %v1912_v40 = vadd.f32 %v8066_v39, %v1911_v42 }
 0x2ac   :  { %vm3330_vm7 = vcmp.ge.f32.partialorder %v3161_v37, 0.0  ;;  %v3438_v48 = vmul.f32 %v3161_v37, %v6990_v49  ;;  %vm4474_vm8 = vcmp.ge.f32.partialorder %v4305_v38, 0.0  ;;  %v4582_v50 = vmul.f32 %v4305_v38, %v6990_v49 }
 0x2ad   :  { %5122 = vst.msk [vmem:[%s9040_s4 + $0x108] sm:$0xf] %vm5055_vm9, %v5013_v45  ;;  %5434 = vmatmul.msk.bf16.gmra.mxu0 %vm417_vm2, %v6624_v34  ;;  %5812 = vmatmul.msk.bf16.gmra.mxu1 %vm417_vm2, %v6678_v35  ;;  %v1043_v53 = vmul.f32 %v6990_v49, %v767_v47  ;;  %vm934_vm10 = vcmp.ge.f32.partialorder %v767_v47, 0.0  ;;  %v2187_v57 = vmul.f32 %v1912_v40, %v6990_v49  ;;  %vm2079_vm11 = vcmp.ge.f32.partialorder %v1912_v40, 0.0 }
 0x2ae   :  { %v3546_v51 = vsel %vm3330_vm7, %v3161_v37, %v3438_v48  ;;  %v4690_v52 = vsel %vm4474_vm8, %v4305_v38, %v4582_v50  ;;  %6190 = vmatmul.msk.bf16.gmra.mxu2 %vm417_vm2, %v6732_v43  ;;  %6568 = vmatmul.msk.bf16.gmra.mxu3 %vm417_vm2, %v6786_v44 }
 0x2af   :  { %v4798_v56 = vmax.f32 %v3546_v51, %v4690_v52  ;;  %v1151_v61 = vsel %vm934_vm10, %v767_v47, %v1043_v53  ;;  %v2295_v3 = vsel %vm2079_vm11, %v1912_v40, %v2187_v57 }
 0x2b0   :  { %v2403_v10 = vmax.f32 %v1151_v61, %v2295_v3 }
 0x2b1   :  { %v4906_v58 = vmax.f32 %v2402_v54, %v4798_v56  ;;  %v3163_v59 = vpop.f32.mrf.mxu2  ;;  %v4307_v60 = vpop.f32.mrf.mxu3 }
 0x2b2   :  { %v3164_v62 = vadd.f32 %v8066_v39, %v3163_v59  ;;  %v4308_v63 = vadd.f32 %v8066_v39, %v4307_v60  ;;  %v768_v0 = vpop.f32.mrf.mxu0  ;;  %v1913_v1 = vpop.f32.mrf.mxu1 }
 0x2b3   :  { %v5014_v2 = vpack.c.bf16 %v4906_v58, %v4906_v58  ;;  %v769_v4 = vadd.f32 %v8066_v39, %v768_v0  ;;  %v1914_v5 = vadd.f32 %v8066_v39, %v1913_v1  ;;  %v8431_v1 = vld [vmem:[%s9037_s2] ss:$0 sm:$0xff] }
 0x2b4   :  { %vm3331_vm12 = vcmp.ge.f32.partialorder %v3164_v62, 0.0  ;;  %v3439_v6 = vmul.f32 %v3164_v62, %v6990_v49  ;;  %vm4475_vm13 = vcmp.ge.f32.partialorder %v4308_v63, 0.0  ;;  %v4583_v7 = vmul.f32 %v4308_v63, %v6990_v49 }
 0x2b5   :  { %5123 = vst.msk [vmem:[%s9040_s4 + $0x10c] sm:$0xf] %vm5055_vm9, %v5014_v2  ;;  %v1044_v9 = vmul.f32 %v6990_v49, %v769_v4  ;;  %vm935_vm14 = vcmp.ge.f32.partialorder %v769_v4, 0.0  ;;  %v2188_v12 = vmul.f32 %v1914_v5, %v6990_v49  ;;  %vm2080_vm15 = vcmp.ge.f32.partialorder %v1914_v5, 0.0 }
 0x2b6   :  { %v3547_v8 = vsel %vm3331_vm12, %v3164_v62, %v3439_v6  ;;  %v4691_v55 = vsel %vm4475_vm13, %v4308_v63, %v4583_v7  ;;  %v6626_v62 = vld [vmem:[%s9038_s0 + $0x160] sm:$0xff]  ;;  %v6680_v63 = vld [vmem:[%s9038_s0 + $0x310] sm:$0xff] }
 0x2b7   :  { %v4799_v11 = vmax.f32 %v3547_v8, %v4691_v55  ;;  %v1152_v19 = vsel %vm935_vm14, %v769_v4, %v1044_v9  ;;  %v2296_v27 = vsel %vm2080_vm15, %v1914_v5, %v2188_v12  ;;  %v6734_v6 = vld [vmem:[%s9038_s0 + $0x4c0] sm:$0xff]  ;;  %v6788_v7 = vld [vmem:[%s9038_s0 + $0x670] sm:$0xff] }
 0x2b8   :  { %v2404_v34 = vmax.f32 %v1152_v19, %v2296_v27 }
 0x2b9   :  { %v4907_v13 = vmax.f32 %v2403_v10, %v4799_v11  ;;  %v3165_v14 = vpop.f32.mrf.mxu2  ;;  %v4309_v16 = vpop.f32.mrf.mxu3 }
 0x2ba   :  { %v3166_v20 = vadd.f32 %v8066_v39, %v3165_v14  ;;  %v4310_v21 = vadd.f32 %v8066_v39, %v4309_v16  ;;  %v771_v22 = vpop.f32.mrf.mxu0  ;;  %v1916_v23 = vpop.f32.mrf.mxu1 }
 0x2bb   :  { %v5015_v26 = vpack.c.bf16 %v4907_v13, %v4907_v13  ;;  %v772_v28 = vadd.f32 %v8066_v39, %v771_v22  ;;  %v1917_v29 = vadd.f32 %v8066_v39, %v1916_v23 }
 0x2bc   :  { %vm3332_vm0 = vcmp.ge.f32.partialorder %v3166_v20, 0.0  ;;  %v3440_v30 = vmul.f32 %v3166_v20, %v6990_v49  ;;  %vm4476_vm1 = vcmp.ge.f32.partialorder %v4310_v21, 0.0  ;;  %v4584_v31 = vmul.f32 %v4310_v21, %v6990_v49 }
 0x2bd   :  { %5124 = vst.msk [vmem:[%s9040_s4 + $0x110] sm:$0xf] %vm5055_vm9, %v5015_v26  ;;  %5435 = vmatmul.msk.bf16.gmra.mxu0 %vm417_vm2, %v6625_v17  ;;  %5813 = vmatmul.msk.bf16.gmra.mxu1 %vm417_vm2, %v6679_v18  ;;  %v1045_v33 = vmul.f32 %v6990_v49, %v772_v28  ;;  %vm936_vm3 = vcmp.ge.f32.partialorder %v772_v28, 0.0  ;;  %v2189_v36 = vmul.f32 %v1917_v29, %v6990_v49  ;;  %vm2081_vm4 = vcmp.ge.f32.partialorder %v1917_v29, 0.0 }
 0x2be   :  { %v3548_v32 = vsel %vm3332_vm0, %v3166_v20, %v3440_v30  ;;  %v4692_v15 = vsel %vm4476_vm1, %v4310_v21, %v4584_v31  ;;  %6191 = vmatmul.msk.bf16.gmra.mxu2 %vm417_vm2, %v6733_v24  ;;  %6569 = vmatmul.msk.bf16.gmra.mxu3 %vm417_vm2, %v6787_v25 }
 0x2bf   :  { %v4800_v35 = vmax.f32 %v3548_v32, %v4692_v15  ;;  %v1153_v42 = vsel %vm936_vm3, %v772_v28, %v1045_v33  ;;  %v2297_v40 = vsel %vm2081_vm4, %v1917_v29, %v2189_v36 }
 0x2c0   :  { %v2405_v57 = vmax.f32 %v1153_v42, %v2297_v40 }
 0x2c1   :  { %v4908_v37 = vmax.f32 %v2404_v34, %v4800_v35  ;;  %v3168_v38 = vpop.f32.mrf.mxu2  ;;  %v4312_v41 = vpop.f32.mrf.mxu3 }
 0x2c2   :  { %v3169_v43 = vadd.f32 %v8066_v39, %v3168_v38  ;;  %v4313_v44 = vadd.f32 %v8066_v39, %v4312_v41  ;;  %v773_v45 = vpop.f32.mrf.mxu0  ;;  %v1918_v46 = vpop.f32.mrf.mxu1 }
 0x2c3   :  { %v5016_v47 = vpack.c.bf16 %v4908_v37, %v4908_v37  ;;  %v774_v48 = vadd.f32 %v8066_v39, %v773_v45  ;;  %v1919_v50 = vadd.f32 %v8066_v39, %v1918_v46  ;;  %v6681_v45 = vld [vmem:[%s9038_s0 + $0x318] sm:$0xff] }
 0x2c4   :  { %vm3333_vm5 = vcmp.ge.f32.partialorder %v3169_v43, 0.0  ;;  %v3441_v51 = vmul.f32 %v3169_v43, %v6990_v49  ;;  %vm4477_vm6 = vcmp.ge.f32.partialorder %v4313_v44, 0.0  ;;  %v4585_v52 = vmul.f32 %v4313_v44, %v6990_v49 }
 0x2c5   :  { %5125 = vst.msk [vmem:[%s9040_s4 + $0x114] sm:$0xf] %vm5055_vm9, %v5016_v47  ;;  %v1046_v56 = vmul.f32 %v6990_v49, %v774_v48  ;;  %vm937_vm7 = vcmp.ge.f32.partialorder %v774_v48, 0.0  ;;  %v2190_v39 = vmul.f32 %v1919_v50, %v6990_v49  ;;  %vm2082_vm8 = vcmp.ge.f32.partialorder %v1919_v50, 0.0 }
 0x2c6   :  { %v3549_v53 = vsel %vm3333_vm5, %v3169_v43, %v3441_v51  ;;  %v4693_v54 = vsel %vm4477_vm6, %v4313_v44, %v4585_v52  ;;  %v6627_v44 = vld [vmem:[%s9038_s0 + $0x168] sm:$0xff]  ;;  %v6789_v52 = vld [vmem:[%s9038_s0 + $0x678] sm:$0xff] }
 0x2c7   :  { %v4801_v58 = vmax.f32 %v3549_v53, %v4693_v54  ;;  %v1154_v0 = vsel %vm937_vm7, %v774_v48, %v1046_v56  ;;  %v2298_v55 = vsel %vm2082_vm8, %v1919_v50, %v2190_v39  ;;  %v6735_v51 = vld [vmem:[%s9038_s0 + $0x4c8] sm:$0xff] }
 0x2c8   :  { %v2406_v17 = vmax.f32 %v1154_v0, %v2298_v55 }
 0x2c9   :  { %v4909_v59 = vmax.f32 %v2405_v57, %v4801_v58  ;;  %v3170_v60 = vpop.f32.mrf.mxu2  ;;  %v4314_v61 = vpop.f32.mrf.mxu3 }
 0x2ca   :  { %v3171_v2 = vadd.f32 %v8431_v1, %v3170_v60  ;;  %v4315_v3 = vadd.f32 %v8431_v1, %v4314_v61  ;;  %v776_v4 = vpop.f32.mrf.mxu0  ;;  %v1921_v5 = vpop.f32.mrf.mxu1 }
 0x2cb   :  { %v5017_v8 = vpack.c.bf16 %v4909_v59, %v4909_v59  ;;  %v777_v9 = vadd.f32 %v8431_v1, %v776_v4  ;;  %v1922_v10 = vadd.f32 %v8431_v1, %v1921_v5 }
 0x2cc   :  { %vm3334_vm10 = vcmp.ge.f32.partialorder %v3171_v2, 0.0  ;;  %v3442_v11 = vmul.f32 %v3171_v2, %v6990_v49  ;;  %vm4478_vm11 = vcmp.ge.f32.partialorder %v4315_v3, 0.0  ;;  %v4586_v12 = vmul.f32 %v4315_v3, %v6990_v49 }
 0x2cd   :  { %5126 = vst.msk [vmem:[%s9040_s4 + $0x118] sm:$0xf] %vm5055_vm9, %v5017_v8  ;;  %5436 = vmatmul.msk.bf16.gmra.mxu0 %vm417_vm2, %v6626_v62  ;;  %5814 = vmatmul.msk.bf16.gmra.mxu1 %vm417_vm2, %v6680_v63  ;;  %v1047_v16 = vmul.f32 %v6990_v49, %v777_v9  ;;  %vm938_vm12 = vcmp.ge.f32.partialorder %v777_v9, 0.0  ;;  %v2191_v19 = vmul.f32 %v1922_v10, %v6990_v49  ;;  %vm2083_vm13 = vcmp.ge.f32.partialorder %v1922_v10, 0.0 }
 0x2ce   :  { %v3550_v13 = vsel %vm3334_vm10, %v3171_v2, %v3442_v11  ;;  %v4694_v14 = vsel %vm4478_vm11, %v4315_v3, %v4586_v12  ;;  %6192 = vmatmul.msk.bf16.gmra.mxu2 %vm417_vm2, %v6734_v6  ;;  %6570 = vmatmul.msk.bf16.gmra.mxu3 %vm417_vm2, %v6788_v7 }
 0x2cf   :  { %v4802_v18 = vmax.f32 %v3550_v13, %v4694_v14  ;;  %v1155_v23 = vsel %vm938_vm12, %v777_v9, %v1047_v16  ;;  %v2299_v29 = vsel %vm2083_vm13, %v1922_v10, %v2191_v19 }
 0x2d0   :  { %v2407_v36 = vmax.f32 %v1155_v23, %v2299_v29 }
 0x2d1   :  { %v4910_v20 = vmax.f32 %v2406_v17, %v4802_v18  ;;  %v3173_v21 = vpop.f32.mrf.mxu2  ;;  %v4317_v22 = vpop.f32.mrf.mxu3 }
 0x2d2   :  { %v3174_v24 = vadd.f32 %v8431_v1, %v3173_v21  ;;  %v4318_v25 = vadd.f32 %v8431_v1, %v4317_v22  ;;  %v778_v26 = vpop.f32.mrf.mxu0  ;;  %v1923_v27 = vpop.f32.mrf.mxu1 }
 0x2d3   :  { %v5018_v28 = vpack.c.bf16 %v4910_v20, %v4910_v20  ;;  %v779_v30 = vadd.f32 %v8431_v1, %v778_v26  ;;  %v1924_v31 = vadd.f32 %v8431_v1, %v1923_v27  ;;  %v6682_v26 = vld [vmem:[%s9038_s0 + $0x320] sm:$0xff] }
 0x2d4   :  { %vm3335_vm14 = vcmp.ge.f32.partialorder %v3174_v24, 0.0  ;;  %v3443_v32 = vmul.f32 %v3174_v24, %v6990_v49  ;;  %vm4479_vm15 = vcmp.ge.f32.partialorder %v4318_v25, 0.0  ;;  %v4587_v15 = vmul.f32 %v4318_v25, %v6990_v49 }
 0x2d5   :  { %5127 = vst.msk [vmem:[%s9040_s4 + $0x11c] sm:$0xf] %vm5055_vm9, %v5018_v28  ;;  %v1048_v35 = vmul.f32 %v6990_v49, %v779_v30  ;;  %vm939_vm0 = vcmp.ge.f32.partialorder %v779_v30, 0.0  ;;  %v2192_v38 = vmul.f32 %v1924_v31, %v6990_v49  ;;  %vm2084_vm1 = vcmp.ge.f32.partialorder %v1924_v31, 0.0 }
 0x2d6   :  { %v3551_v33 = vsel %vm3335_vm14, %v3174_v24, %v3443_v32  ;;  %v4695_v34 = vsel %vm4479_vm15, %v4318_v25, %v4587_v15  ;;  %v6628_v25 = vld [vmem:[%s9038_s0 + $0x170] sm:$0xff]  ;;  %v6790_v15 = vld [vmem:[%s9038_s0 + $0x680] sm:$0xff] }
 0x2d7   :  { %v4803_v37 = vmax.f32 %v3551_v33, %v4695_v34  ;;  %v1156_v46 = vsel %vm939_vm0, %v779_v30, %v1048_v35  ;;  %v2300_v54 = vsel %vm2084_vm1, %v1924_v31, %v2192_v38  ;;  %v6736_v32 = vld [vmem:[%s9038_s0 + $0x4d0] sm:$0xff] }
 0x2d8   :  { %v2408_v62 = vmax.f32 %v1156_v46, %v2300_v54 }
 0x2d9   :  { %v4911_v41 = vmax.f32 %v2407_v36, %v4803_v37  ;;  %v3175_v42 = vpop.f32.mrf.mxu2  ;;  %v4319_v43 = vpop.f32.mrf.mxu3 }
 0x2da   :  { %v3176_v47 = vadd.f32 %v8431_v1, %v3175_v42  ;;  %v4320_v40 = vadd.f32 %v8431_v1, %v4319_v43  ;;  %v781_v48 = vpop.f32.mrf.mxu0  ;;  %v1926_v50 = vpop.f32.mrf.mxu1 }
 0x2db   :  { %v5019_v53 = vpack.c.bf16 %v4911_v41, %v4911_v41  ;;  %v782_v56 = vadd.f32 %v8431_v1, %v781_v48  ;;  %v1927_v57 = vadd.f32 %v8431_v1, %v1926_v50 }
 0x2dc   :  { %vm3336_vm3 = vcmp.ge.f32.partialorder %v3176_v47, 0.0  ;;  %v3444_v58 = vmul.f32 %v3176_v47, %v6990_v49  ;;  %vm4480_vm4 = vcmp.ge.f32.partialorder %v4320_v40, 0.0  ;;  %v4588_v39 = vmul.f32 %v4320_v40, %v6990_v49 }
 0x2dd   :  { %5128 = vst.msk [vmem:[%s9040_s4 + $0x120] sm:$0xf] %vm5055_vm9, %v5019_v53  ;;  %5437 = vmatmul.msk.bf16.gmra.mxu0 %vm417_vm2, %v6627_v44  ;;  %5815 = vmatmul.msk.bf16.gmra.mxu1 %vm417_vm2, %v6681_v45  ;;  %v1049_v61 = vmul.f32 %v6990_v49, %v782_v56  ;;  %vm940_vm5 = vcmp.ge.f32.partialorder %v782_v56, 0.0  ;;  %v2193_v0 = vmul.f32 %v1927_v57, %v6990_v49  ;;  %vm2085_vm6 = vcmp.ge.f32.partialorder %v1927_v57, 0.0 }
 0x2de   :  { %v3552_v59 = vsel %vm3336_vm3, %v3176_v47, %v3444_v58  ;;  %v4696_v60 = vsel %vm4480_vm4, %v4320_v40, %v4588_v39  ;;  %6193 = vmatmul.msk.bf16.gmra.mxu2 %vm417_vm2, %v6735_v51  ;;  %6571 = vmatmul.msk.bf16.gmra.mxu3 %vm417_vm2, %v6789_v52 }
 0x2df   :  { %v4804_v63 = vmax.f32 %v3552_v59, %v4696_v60  ;;  %v1157_v5 = vsel %vm940_vm5, %v782_v56, %v1049_v61  ;;  %v2301_v10 = vsel %vm2085_vm6, %v1927_v57, %v2193_v0 }
 0x2e0   :  { %v2409_v19 = vmax.f32 %v1157_v5, %v2301_v10 }
 0x2e1   :  { %v4912_v2 = vmax.f32 %v2408_v62, %v4804_v63  ;;  %v3178_v3 = vpop.f32.mrf.mxu2  ;;  %v4322_v4 = vpop.f32.mrf.mxu3 }
 0x2e2   :  { %v3179_v6 = vadd.f32 %v8431_v1, %v3178_v3  ;;  %v4323_v7 = vadd.f32 %v8431_v1, %v4322_v4  ;;  %v783_v8 = vpop.f32.mrf.mxu0  ;;  %v1928_v55 = vpop.f32.mrf.mxu1 }
 0x2e3   :  { %v5020_v9 = vpack.c.bf16 %v4912_v2, %v4912_v2  ;;  %v784_v11 = vadd.f32 %v8431_v1, %v783_v8  ;;  %v1929_v12 = vadd.f32 %v8431_v1, %v1928_v55  ;;  %v6683_v8 = vld [vmem:[%s9038_s0 + $0x328] sm:$0xff] }
 0x2e4   :  { %vm3337_vm7 = vcmp.ge.f32.partialorder %v3179_v6, 0.0  ;;  %v3445_v13 = vmul.f32 %v3179_v6, %v6990_v49  ;;  %vm4481_vm8 = vcmp.ge.f32.partialorder %v4323_v7, 0.0  ;;  %v4589_v14 = vmul.f32 %v4323_v7, %v6990_v49 }
 0x2e5   :  { %5129 = vst.msk [vmem:[%s9040_s4 + $0x124] sm:$0xf] %vm5055_vm9, %v5020_v9  ;;  %v1050_v18 = vmul.f32 %v6990_v49, %v784_v11  ;;  %vm941_vm10 = vcmp.ge.f32.partialorder %v784_v11, 0.0  ;;  %v2194_v21 = vmul.f32 %v1929_v12, %v6990_v49  ;;  %vm2086_vm11 = vcmp.ge.f32.partialorder %v1929_v12, 0.0 }
 0x2e6   :  { %v3553_v16 = vsel %vm3337_vm7, %v3179_v6, %v3445_v13  ;;  %v4697_v17 = vsel %vm4481_vm8, %v4323_v7, %v4589_v14  ;;  %v6629_v7 = vld [vmem:[%s9038_s0 + $0x178] sm:$0xff]  ;;  %v6791_v14 = vld [vmem:[%s9038_s0 + $0x688] sm:$0xff] }
 0x2e7   :  { %v4805_v20 = vmax.f32 %v3553_v16, %v4697_v17  ;;  %v1158_v27 = vsel %vm941_vm10, %v784_v11, %v1050_v18  ;;  %v2302_v34 = vsel %vm2086_vm11, %v1929_v12, %v2194_v21  ;;  %v6737_v13 = vld [vmem:[%s9038_s0 + $0x4d8] sm:$0xff] }
 0x2e8   :  { %v2410_v44 = vmax.f32 %v1158_v27, %v2302_v34 }
 0x2e9   :  { %v4913_v22 = vmax.f32 %v2409_v19, %v4805_v20  ;;  %v3180_v23 = vpop.f32.mrf.mxu2  ;;  %v4324_v24 = vpop.f32.mrf.mxu3 }
 0x2ea   :  { %v3181_v28 = vadd.f32 %v8431_v1, %v3180_v23  ;;  %v4325_v29 = vadd.f32 %v8431_v1, %v4324_v24  ;;  %v786_v30 = vpop.f32.mrf.mxu0  ;;  %v1931_v31 = vpop.f32.mrf.mxu1 }
 0x2eb   :  { %v5021_v33 = vpack.c.bf16 %v4913_v22, %v4913_v22  ;;  %v787_v35 = vadd.f32 %v8431_v1, %v786_v30  ;;  %v1932_v36 = vadd.f32 %v8431_v1, %v1931_v31 }
 0x2ec   :  { %vm3338_vm12 = vcmp.ge.f32.partialorder %v3181_v28, 0.0  ;;  %v3446_v37 = vmul.f32 %v3181_v28, %v6990_v49  ;;  %vm4482_vm13 = vcmp.ge.f32.partialorder %v4325_v29, 0.0  ;;  %v4590_v38 = vmul.f32 %v4325_v29, %v6990_v49 }
 0x2ed   :  { %5130 = vst.msk [vmem:[%s9040_s4 + $0x128] sm:$0xf] %vm5055_vm9, %v5021_v33  ;;  %5438 = vmatmul.msk.bf16.gmra.mxu0 %vm417_vm2, %v6628_v25  ;;  %5816 = vmatmul.msk.bf16.gmra.mxu1 %vm417_vm2, %v6682_v26  ;;  %v1051_v43 = vmul.f32 %v6990_v49, %v787_v35  ;;  %vm942_vm14 = vcmp.ge.f32.partialorder %v787_v35, 0.0  ;;  %v2195_v46 = vmul.f32 %v1932_v36, %v6990_v49  ;;  %vm2087_vm15 = vcmp.ge.f32.partialorder %v1932_v36, 0.0 }
 0x2ee   :  { %v3554_v41 = vsel %vm3338_vm12, %v3181_v28, %v3446_v37  ;;  %v4698_v42 = vsel %vm4482_vm13, %v4325_v29, %v4590_v38  ;;  %6194 = vmatmul.msk.bf16.gmra.mxu2 %vm417_vm2, %v6736_v32  ;;  %6572 = vmatmul.msk.bf16.gmra.mxu3 %vm417_vm2, %v6790_v15 }
 0x2ef   :  { %v4806_v45 = vmax.f32 %v3554_v41, %v4698_v42  ;;  %v1159_v50 = vsel %vm942_vm14, %v787_v35, %v1051_v43  ;;  %v2303_v57 = vsel %vm2087_vm15, %v1932_v36, %v2195_v46 }
 0x2f0   :  { %v2411_v0 = vmax.f32 %v1159_v50, %v2303_v57 }
 0x2f1   :  { %v4914_v47 = vmax.f32 %v2410_v44, %v4806_v45  ;;  %v3183_v40 = vpop.f32.mrf.mxu2  ;;  %v4327_v48 = vpop.f32.mrf.mxu3 }
 0x2f2   :  { %v3184_v51 = vadd.f32 %v8431_v1, %v3183_v40  ;;  %v4328_v52 = vadd.f32 %v8431_v1, %v4327_v48  ;;  %v788_v53 = vpop.f32.mrf.mxu0  ;;  %v1933_v54 = vpop.f32.mrf.mxu1 }
 0x2f3   :  { %v5022_v56 = vpack.c.bf16 %v4914_v47, %v4914_v47  ;;  %v789_v58 = vadd.f32 %v8431_v1, %v788_v53  ;;  %v1934_v39 = vadd.f32 %v8431_v1, %v1933_v54  ;;  %v6684_v53 = vld [vmem:[%s9038_s0 + $0x330] sm:$0xff] }
 0x2f4   :  { %vm3339_vm0 = vcmp.ge.f32.partialorder %v3184_v51, 0.0  ;;  %v3447_v59 = vmul.f32 %v3184_v51, %v6990_v49  ;;  %vm4483_vm1 = vcmp.ge.f32.partialorder %v4328_v52, 0.0  ;;  %v4591_v60 = vmul.f32 %v4328_v52, %v6990_v49 }
 0x2f5   :  { %5131 = vst.msk [vmem:[%s9040_s4 + $0x12c] sm:$0xf] %vm5055_vm9, %v5022_v56  ;;  %v1052_v63 = vmul.f32 %v6990_v49, %v789_v58  ;;  %vm943_vm3 = vcmp.ge.f32.partialorder %v789_v58, 0.0  ;;  %v2196_v3 = vmul.f32 %v1934_v39, %v6990_v49  ;;  %vm2088_vm4 = vcmp.ge.f32.partialorder %v1934_v39, 0.0 }
 0x2f6   :  { %v3555_v61 = vsel %vm3339_vm0, %v3184_v51, %v3447_v59  ;;  %v4699_v62 = vsel %vm4483_vm1, %v4328_v52, %v4591_v60  ;;  %v6630_v52 = vld [vmem:[%s9038_s0 + $0x180] sm:$0xff]  ;;  %v6792_v60 = vld [vmem:[%s9038_s0 + $0x690] sm:$0xff] }
 0x2f7   :  { %v4807_v2 = vmax.f32 %v3555_v61, %v4699_v62  ;;  %v1160_v55 = vsel %vm943_vm3, %v789_v58, %v1052_v63  ;;  %v2304_v17 = vsel %vm2088_vm4, %v1934_v39, %v2196_v3  ;;  %v6738_v59 = vld [vmem:[%s9038_s0 + $0x4e0] sm:$0xff] }
 0x2f8   :  { %v2412_v25 = vmax.f32 %v1160_v55, %v2304_v17 }
 0x2f9   :  { %v4915_v4 = vmax.f32 %v2411_v0, %v4807_v2  ;;  %v3185_v5 = vpop.f32.mrf.mxu2  ;;  %v4329_v6 = vpop.f32.mrf.mxu3 }
 0x2fa   :  { %v3186_v9 = vadd.f32 %v8431_v1, %v3185_v5  ;;  %v4330_v10 = vadd.f32 %v8431_v1, %v4329_v6  ;;  %v791_v11 = vpop.f32.mrf.mxu0  ;;  %v1936_v12 = vpop.f32.mrf.mxu1 }
 0x2fb   :  { %v5023_v16 = vpack.c.bf16 %v4915_v4, %v4915_v4  ;;  %v792_v18 = vadd.f32 %v8431_v1, %v791_v11  ;;  %v1937_v19 = vadd.f32 %v8431_v1, %v1936_v12 }
 0x2fc   :  { %vm3340_vm5 = vcmp.ge.f32.partialorder %v3186_v9, 0.0  ;;  %v3448_v20 = vmul.f32 %v3186_v9, %v6990_v49  ;;  %vm4484_vm6 = vcmp.ge.f32.partialorder %v4330_v10, 0.0  ;;  %v4592_v21 = vmul.f32 %v4330_v10, %v6990_v49 }
 0x2fd   :  { %5132 = vst.msk [vmem:[%s9040_s4 + $0x130] sm:$0xf] %vm5055_vm9, %v5023_v16  ;;  %5439 = vmatmul.msk.bf16.gmra.mxu0 %vm417_vm2, %v6629_v7  ;;  %5817 = vmatmul.msk.bf16.gmra.mxu1 %vm417_vm2, %v6683_v8  ;;  %v1053_v24 = vmul.f32 %v6990_v49, %v792_v18  ;;  %vm944_vm7 = vcmp.ge.f32.partialorder %v792_v18, 0.0  ;;  %v2197_v27 = vmul.f32 %v1937_v19, %v6990_v49  ;;  %vm2089_vm8 = vcmp.ge.f32.partialorder %v1937_v19, 0.0 }
 0x2fe   :  { %v3556_v22 = vsel %vm3340_vm5, %v3186_v9, %v3448_v20  ;;  %v4700_v23 = vsel %vm4484_vm6, %v4330_v10, %v4592_v21  ;;  %6195 = vmatmul.msk.bf16.gmra.mxu2 %vm417_vm2, %v6737_v13  ;;  %6573 = vmatmul.msk.bf16.gmra.mxu3 %vm417_vm2, %v6791_v14 }
 0x2ff   :  { %v4808_v26 = vmax.f32 %v3556_v22, %v4700_v23  ;;  %v1161_v31 = vsel %vm944_vm7, %v792_v18, %v1053_v24  ;;  %v2305_v36 = vsel %vm2089_vm8, %v1937_v19, %v2197_v27 }
 0x300   :  { %v2413_v46 = vmax.f32 %v1161_v31, %v2305_v36 }
 0x301   :  { %v4916_v28 = vmax.f32 %v2412_v25, %v4808_v26  ;;  %v3188_v29 = vpop.f32.mrf.mxu2  ;;  %v4332_v30 = vpop.f32.mrf.mxu3 }
 0x302   :  { %v3189_v32 = vadd.f32 %v8431_v1, %v3188_v29  ;;  %v4333_v15 = vadd.f32 %v8431_v1, %v4332_v30  ;;  %v793_v33 = vpop.f32.mrf.mxu0  ;;  %v1938_v34 = vpop.f32.mrf.mxu1 }
 0x303   :  { %v5024_v35 = vpack.c.bf16 %v4916_v28, %v4916_v28  ;;  %v794_v37 = vadd.f32 %v8431_v1, %v793_v33  ;;  %v1939_v38 = vadd.f32 %v8431_v1, %v1938_v34  ;;  %v6685_v33 = vld [vmem:[%s9038_s0 + $0x338] sm:$0xff] }
 0x304   :  { %vm3341_vm10 = vcmp.ge.f32.partialorder %v3189_v32, 0.0  ;;  %v3449_v41 = vmul.f32 %v3189_v32, %v6990_v49  ;;  %vm4485_vm11 = vcmp.ge.f32.partialorder %v4333_v15, 0.0  ;;  %v4593_v42 = vmul.f32 %v4333_v15, %v6990_v49 }
 0x305   :  { %5133 = vst.msk [vmem:[%s9040_s4 + $0x134] sm:$0xf] %vm5055_vm9, %v5024_v35  ;;  %v1054_v45 = vmul.f32 %v6990_v49, %v794_v37  ;;  %vm945_vm12 = vcmp.ge.f32.partialorder %v794_v37, 0.0  ;;  %v2198_v40 = vmul.f32 %v1939_v38, %v6990_v49  ;;  %vm2090_vm13 = vcmp.ge.f32.partialorder %v1939_v38, 0.0 }
 0x306   :  { %v3557_v43 = vsel %vm3341_vm10, %v3189_v32, %v3449_v41  ;;  %v4701_v44 = vsel %vm4485_vm11, %v4333_v15, %v4593_v42  ;;  %v6631_v15 = vld [vmem:[%s9038_s0 + $0x188] sm:$0xff]  ;;  %v6793_v42 = vld [vmem:[%s9038_s0 + $0x698] sm:$0xff] }
 0x307   :  { %v4809_v47 = vmax.f32 %v3557_v43, %v4701_v44  ;;  %v1162_v54 = vsel %vm945_vm12, %v794_v37, %v1054_v45  ;;  %v2306_v62 = vsel %vm2090_vm13, %v1939_v38, %v2198_v40  ;;  %v6739_v41 = vld [vmem:[%s9038_s0 + $0x4e8] sm:$0xff] }
 0x308   :  { %v2414_v7 = vmax.f32 %v1162_v54, %v2306_v62 }
 0x309   :  { %v4917_v48 = vmax.f32 %v2413_v46, %v4809_v47  ;;  %v3190_v50 = vpop.f32.mrf.mxu2  ;;  %v4334_v51 = vpop.f32.mrf.mxu3 }
 0x30a   :  { %v3191_v56 = vadd.f32 %v8431_v1, %v3190_v50  ;;  %v4335_v57 = vadd.f32 %v8431_v1, %v4334_v51  ;;  %v796_v58 = vpop.f32.mrf.mxu0  ;;  %v1941_v39 = vpop.f32.mrf.mxu1 }
 0x30b   :  { %v5025_v61 = vpack.c.bf16 %v4917_v48, %v4917_v48  ;;  %v797_v63 = vadd.f32 %v8431_v1, %v796_v58  ;;  %v1942_v0 = vadd.f32 %v8431_v1, %v1941_v39 }
 0x30c   :  { %vm3342_vm14 = vcmp.ge.f32.partialorder %v3191_v56, 0.0  ;;  %v3450_v2 = vmul.f32 %v3191_v56, %v6990_v49  ;;  %vm4486_vm15 = vcmp.ge.f32.partialorder %v4335_v57, 0.0  ;;  %v4594_v3 = vmul.f32 %v4335_v57, %v6990_v49 }
 0x30d   :  { %5134 = vst.msk [vmem:[%s9040_s4 + $0x138] sm:$0xf] %vm5055_vm9, %v5025_v61  ;;  %5440 = vmatmul.msk.bf16.gmra.mxu0 %vm417_vm2, %v6630_v52  ;;  %5818 = vmatmul.msk.bf16.gmra.mxu1 %vm417_vm2, %v6684_v53  ;;  %v1055_v6 = vmul.f32 %v6990_v49, %v797_v63  ;;  %vm946_vm0 = vcmp.ge.f32.partialorder %v797_v63, 0.0  ;;  %v2199_v55 = vmul.f32 %v1942_v0, %v6990_v49  ;;  %vm2091_vm1 = vcmp.ge.f32.partialorder %v1942_v0, 0.0 }
 0x30e   :  { %v3558_v4 = vsel %vm3342_vm14, %v3191_v56, %v3450_v2  ;;  %v4702_v5 = vsel %vm4486_vm15, %v4335_v57, %v4594_v3  ;;  %6196 = vmatmul.msk.bf16.gmra.mxu2 %vm417_vm2, %v6738_v59  ;;  %6574 = vmatmul.msk.bf16.gmra.mxu3 %vm417_vm2, %v6792_v60 }
 0x30f   :  { %v4810_v8 = vmax.f32 %v3558_v4, %v4702_v5  ;;  %v1163_v12 = vsel %vm946_vm0, %v797_v63, %v1055_v6  ;;  %v2307_v19 = vsel %vm2091_vm1, %v1942_v0, %v2199_v55 }
 0x310   :  { %v2415_v27 = vmax.f32 %v1163_v12, %v2307_v19 }
 0x311   :  { %v4918_v9 = vmax.f32 %v2414_v7, %v4810_v8  ;;  %v3193_v10 = vpop.f32.mrf.mxu2  ;;  %v4337_v11 = vpop.f32.mrf.mxu3 }
 0x312   :  { %v3194_v13 = vadd.f32 %v8431_v1, %v3193_v10  ;;  %v4338_v14 = vadd.f32 %v8431_v1, %v4337_v11  ;;  %v798_v16 = vpop.f32.mrf.mxu0  ;;  %v1943_v17 = vpop.f32.mrf.mxu1 }
 0x313   :  { %v5026_v18 = vpack.c.bf16 %v4918_v9, %v4918_v9  ;;  %v799_v20 = vadd.f32 %v8431_v1, %v798_v16  ;;  %v1944_v21 = vadd.f32 %v8431_v1, %v1943_v17  ;;  %v6686_v16 = vld [vmem:[%s9038_s0 + $0x340] sm:$0xff] }
 0x314   :  { %vm3343_vm3 = vcmp.ge.f32.partialorder %v3194_v13, 0.0  ;;  %v3451_v22 = vmul.f32 %v3194_v13, %v6990_v49  ;;  %vm4487_vm4 = vcmp.ge.f32.partialorder %v4338_v14, 0.0  ;;  %v4595_v23 = vmul.f32 %v4338_v14, %v6990_v49 }
 0x315   :  { %5135 = vst.msk [vmem:[%s9040_s4 + $0x13c] sm:$0xf] %vm5055_vm9, %v5026_v18  ;;  %v1056_v26 = vmul.f32 %v6990_v49, %v799_v20  ;;  %vm947_vm5 = vcmp.ge.f32.partialorder %v799_v20, 0.0  ;;  %v2200_v29 = vmul.f32 %v1944_v21, %v6990_v49  ;;  %vm2092_vm6 = vcmp.ge.f32.partialorder %v1944_v21, 0.0 }
 0x316   :  { %v3559_v24 = vsel %vm3343_vm3, %v3194_v13, %v3451_v22  ;;  %v4703_v25 = vsel %vm4487_vm4, %v4338_v14, %v4595_v23  ;;  %v6632_v14 = vld [vmem:[%s9038_s0 + $0x190] sm:$0xff]  ;;  %v6794_v23 = vld [vmem:[%s9038_s0 + $0x6a0] sm:$0xff] }
 0x317   :  { %v4811_v28 = vmax.f32 %v3559_v24, %v4703_v25  ;;  %v1164_v34 = vsel %vm947_vm5, %v799_v20, %v1056_v26  ;;  %v2308_v44 = vsel %vm2092_vm6, %v1944_v21, %v2200_v29  ;;  %v6740_v22 = vld [vmem:[%s9038_s0 + $0x4f0] sm:$0xff] }
 0x318   :  { %v2416_v52 = vmax.f32 %v1164_v34, %v2308_v44 }
 0x319   :  { %v4919_v30 = vmax.f32 %v2415_v27, %v4811_v28  ;;  %v3195_v31 = vpop.f32.mrf.mxu2  ;;  %v4339_v32 = vpop.f32.mrf.mxu3 }
 0x31a   :  { %v3196_v35 = vadd.f32 %v8431_v1, %v3195_v31  ;;  %v4340_v36 = vadd.f32 %v8431_v1, %v4339_v32  ;;  %v801_v37 = vpop.f32.mrf.mxu0  ;;  %v1946_v38 = vpop.f32.mrf.mxu1 }
 0x31b   :  { %v5027_v43 = vpack.c.bf16 %v4919_v30, %v4919_v30  ;;  %v802_v45 = vadd.f32 %v8431_v1, %v801_v37  ;;  %v1947_v46 = vadd.f32 %v8431_v1, %v1946_v38 }
 0x31c   :  { %vm3344_vm7 = vcmp.ge.f32.partialorder %v3196_v35, 0.0  ;;  %v3452_v47 = vmul.f32 %v3196_v35, %v6990_v49  ;;  %vm4488_vm8 = vcmp.ge.f32.partialorder %v4340_v36, 0.0  ;;  %v4596_v40 = vmul.f32 %v4340_v36, %v6990_v49 }
 0x31d   :  { %5136 = vst.msk [vmem:[%s9040_s4 + $0x140] sm:$0xf] %vm5055_vm9, %v5027_v43  ;;  %5441 = vmatmul.msk.bf16.gmra.mxu0 %vm417_vm2, %v6631_v15  ;;  %5819 = vmatmul.msk.bf16.gmra.mxu1 %vm417_vm2, %v6685_v33  ;;  %v1057_v51 = vmul.f32 %v6990_v49, %v802_v45  ;;  %vm948_vm10 = vcmp.ge.f32.partialorder %v802_v45, 0.0  ;;  %v2201_v54 = vmul.f32 %v1947_v46, %v6990_v49  ;;  %vm2093_vm11 = vcmp.ge.f32.partialorder %v1947_v46, 0.0 }
 0x31e   :  { %v3560_v48 = vsel %vm3344_vm7, %v3196_v35, %v3452_v47  ;;  %v4704_v50 = vsel %vm4488_vm8, %v4340_v36, %v4596_v40  ;;  %6197 = vmatmul.msk.bf16.gmra.mxu2 %vm417_vm2, %v6739_v41  ;;  %6575 = vmatmul.msk.bf16.gmra.mxu3 %vm417_vm2, %v6793_v42 }
 0x31f   :  { %v4812_v53 = vmax.f32 %v3560_v48, %v4704_v50  ;;  %v1165_v39 = vsel %vm948_vm10, %v802_v45, %v1057_v51  ;;  %v2309_v0 = vsel %vm2093_vm11, %v1947_v46, %v2201_v54 }
 0x320   :  { %v2417_v55 = vmax.f32 %v1165_v39, %v2309_v0 }
 0x321   :  { %v4920_v56 = vmax.f32 %v2416_v52, %v4812_v53  ;;  %v3198_v57 = vpop.f32.mrf.mxu2  ;;  %v4342_v58 = vpop.f32.mrf.mxu3 }
 0x322   :  { %v3199_v59 = vadd.f32 %v8431_v1, %v3198_v57  ;;  %v4343_v60 = vadd.f32 %v8431_v1, %v4342_v58  ;;  %v803_v61 = vpop.f32.mrf.mxu0  ;;  %v1948_v62 = vpop.f32.mrf.mxu1 }
 0x323   :  { %v5028_v63 = vpack.c.bf16 %v4920_v56, %v4920_v56  ;;  %v804_v2 = vadd.f32 %v8431_v1, %v803_v61  ;;  %v1949_v3 = vadd.f32 %v8431_v1, %v1948_v62  ;;  %v6687_v61 = vld [vmem:[%s9038_s0 + $0x348] sm:$0xff] }
 0x324   :  { %vm3345_vm12 = vcmp.ge.f32.partialorder %v3199_v59, 0.0  ;;  %v3453_v4 = vmul.f32 %v3199_v59, %v6990_v49  ;;  %vm4489_vm13 = vcmp.ge.f32.partialorder %v4343_v60, 0.0  ;;  %v4597_v5 = vmul.f32 %v4343_v60, %v6990_v49 }
 0x325   :  { %5137 = vst.msk [vmem:[%s9040_s4 + $0x144] sm:$0xf] %vm5055_vm9, %v5028_v63  ;;  %v1058_v8 = vmul.f32 %v6990_v49, %v804_v2  ;;  %vm949_vm14 = vcmp.ge.f32.partialorder %v804_v2, 0.0  ;;  %v2202_v10 = vmul.f32 %v1949_v3, %v6990_v49  ;;  %vm2094_vm15 = vcmp.ge.f32.partialorder %v1949_v3, 0.0 }
 0x326   :  { %v3561_v6 = vsel %vm3345_vm12, %v3199_v59, %v3453_v4  ;;  %v4705_v7 = vsel %vm4489_vm13, %v4343_v60, %v4597_v5  ;;  %v6633_v60 = vld [vmem:[%s9038_s0 + $0x198] sm:$0xff]  ;;  %v6795_v5 = vld [vmem:[%s9038_s0 + $0x6a8] sm:$0xff] }
 0x327   :  { %v4813_v9 = vmax.f32 %v3561_v6, %v4705_v7  ;;  %v1166_v17 = vsel %vm949_vm14, %v804_v2, %v1058_v8  ;;  %v2310_v25 = vsel %vm2094_vm15, %v1949_v3, %v2202_v10  ;;  %v6741_v4 = vld [vmem:[%s9038_s0 + $0x4f8] sm:$0xff] }
 0x328   :  { %v2418_v15 = vmax.f32 %v1166_v17, %v2310_v25 }
 0x329   :  { %v4921_v11 = vmax.f32 %v2417_v55, %v4813_v9  ;;  %v3200_v12 = vpop.f32.mrf.mxu2  ;;  %v4344_v13 = vpop.f32.mrf.mxu3 }
 0x32a   :  { %v3201_v18 = vadd.f32 %v8431_v1, %v3200_v12  ;;  %v4345_v19 = vadd.f32 %v8431_v1, %v4344_v13  ;;  %v806_v20 = vpop.f32.mrf.mxu0  ;;  %v1951_v21 = vpop.f32.mrf.mxu1 }
 0x32b   :  { %v5029_v24 = vpack.c.bf16 %v4921_v11, %v4921_v11  ;;  %v807_v26 = vadd.f32 %v8431_v1, %v806_v20  ;;  %v1952_v27 = vadd.f32 %v8431_v1, %v1951_v21 }
 0x32c   :  { %vm3346_vm0 = vcmp.ge.f32.partialorder %v3201_v18, 0.0  ;;  %v3454_v28 = vmul.f32 %v3201_v18, %v6990_v49  ;;  %vm4490_vm1 = vcmp.ge.f32.partialorder %v4345_v19, 0.0  ;;  %v4598_v29 = vmul.f32 %v4345_v19, %v6990_v49 }
 0x32d   :  { %5138 = vst.msk [vmem:[%s9040_s4 + $0x148] sm:$0xf] %vm5055_vm9, %v5029_v24  ;;  %5442 = vmatmul.msk.bf16.gmra.mxu0 %vm417_vm2, %v6632_v14  ;;  %5820 = vmatmul.msk.bf16.gmra.mxu1 %vm417_vm2, %v6686_v16  ;;  %v1059_v32 = vmul.f32 %v6990_v49, %v807_v26  ;;  %vm950_vm3 = vcmp.ge.f32.partialorder %v807_v26, 0.0  ;;  %v2203_v34 = vmul.f32 %v1952_v27, %v6990_v49  ;;  %vm2095_vm4 = vcmp.ge.f32.partialorder %v1952_v27, 0.0 }
 0x32e   :  { %v3562_v30 = vsel %vm3346_vm0, %v3201_v18, %v3454_v28  ;;  %v4706_v31 = vsel %vm4490_vm1, %v4345_v19, %v4598_v29  ;;  %6198 = vmatmul.msk.bf16.gmra.mxu2 %vm417_vm2, %v6740_v22  ;;  %6576 = vmatmul.msk.bf16.gmra.mxu3 %vm417_vm2, %v6794_v23 }
 0x32f   :  { %v4814_v33 = vmax.f32 %v3562_v30, %v4706_v31  ;;  %v1167_v38 = vsel %vm950_vm3, %v807_v26, %v1059_v32  ;;  %v2311_v46 = vsel %vm2095_vm4, %v1952_v27, %v2203_v34 }
 0x330   :  { %v2419_v54 = vmax.f32 %v1167_v38, %v2311_v46 }
 0x331   :  { %v4922_v35 = vmax.f32 %v2418_v15, %v4814_v33  ;;  %v3203_v36 = vpop.f32.mrf.mxu2  ;;  %v4347_v37 = vpop.f32.mrf.mxu3 }
 0x332   :  { %v3204_v41 = vadd.f32 %v8431_v1, %v3203_v36  ;;  %v4348_v42 = vadd.f32 %v8431_v1, %v4347_v37  ;;  %v808_v43 = vpop.f32.mrf.mxu0  ;;  %v1953_v44 = vpop.f32.mrf.mxu1 }
 0x333   :  { %v5030_v45 = vpack.c.bf16 %v4922_v35, %v4922_v35  ;;  %v809_v47 = vadd.f32 %v8431_v1, %v808_v43  ;;  %v1954_v40 = vadd.f32 %v8431_v1, %v1953_v44  ;;  %v6688_v43 = vld [vmem:[%s9038_s0 + $0x350] sm:$0xff] }
 0x334   :  { %vm3347_vm5 = vcmp.ge.f32.partialorder %v3204_v41, 0.0  ;;  %v3455_v48 = vmul.f32 %v3204_v41, %v6990_v49  ;;  %vm4491_vm6 = vcmp.ge.f32.partialorder %v4348_v42, 0.0  ;;  %v4599_v50 = vmul.f32 %v4348_v42, %v6990_v49 }
 0x335   :  { %5139 = vst.msk [vmem:[%s9040_s4 + $0x14c] sm:$0xf] %vm5055_vm9, %v5030_v45  ;;  %v1060_v53 = vmul.f32 %v6990_v49, %v809_v47  ;;  %vm951_vm7 = vcmp.ge.f32.partialorder %v809_v47, 0.0  ;;  %v2204_v57 = vmul.f32 %v1954_v40, %v6990_v49  ;;  %vm2096_vm8 = vcmp.ge.f32.partialorder %v1954_v40, 0.0 }
 0x336   :  { %v3563_v51 = vsel %vm3347_vm5, %v3204_v41, %v3455_v48  ;;  %v4707_v52 = vsel %vm4491_vm6, %v4348_v42, %v4599_v50  ;;  %v6634_v42 = vld [vmem:[%s9038_s0 + $0x1a0] sm:$0xff]  ;;  %v6796_v50 = vld [vmem:[%s9038_s0 + $0x6b0] sm:$0xff] }
 0x337   :  { %v4815_v56 = vmax.f32 %v3563_v51, %v4707_v52  ;;  %v1168_v62 = vsel %vm951_vm7, %v809_v47, %v1060_v53  ;;  %v2312_v7 = vsel %vm2096_vm8, %v1954_v40, %v2204_v57  ;;  %v6742_v48 = vld [vmem:[%s9038_s0 + $0x500] sm:$0xff] }
 0x338   :  { %v2420_v14 = vmax.f32 %v1168_v62, %v2312_v7 }
 0x339   :  { %v4923_v58 = vmax.f32 %v2419_v54, %v4815_v56  ;;  %v3205_v39 = vpop.f32.mrf.mxu2  ;;  %v4349_v59 = vpop.f32.mrf.mxu3 }
 0x33a   :  { %v3206_v63 = vadd.f32 %v8431_v1, %v3205_v39  ;;  %v4350_v0 = vadd.f32 %v8431_v1, %v4349_v59  ;;  %v811_v2 = vpop.f32.mrf.mxu0  ;;  %v1956_v3 = vpop.f32.mrf.mxu1 }
 0x33b   :  { %v5031_v6 = vpack.c.bf16 %v4923_v58, %v4923_v58  ;;  %v812_v8 = vadd.f32 %v8431_v1, %v811_v2  ;;  %v1957_v55 = vadd.f32 %v8431_v1, %v1956_v3 }
 0x33c   :  { %vm3348_vm10 = vcmp.ge.f32.partialorder %v3206_v63, 0.0  ;;  %v3456_v9 = vmul.f32 %v3206_v63, %v6990_v49  ;;  %vm4492_vm11 = vcmp.ge.f32.partialorder %v4350_v0, 0.0  ;;  %v4600_v10 = vmul.f32 %v4350_v0, %v6990_v49 }
 0x33d   :  { %5140 = vst.msk [vmem:[%s9040_s4 + $0x150] sm:$0xf] %vm5055_vm9, %v5031_v6  ;;  %5443 = vmatmul.msk.bf16.gmra.mxu0 %vm417_vm2, %v6633_v60  ;;  %5821 = vmatmul.msk.bf16.gmra.mxu1 %vm417_vm2, %v6687_v61  ;;  %v1061_v13 = vmul.f32 %v6990_v49, %v812_v8  ;;  %vm952_vm12 = vcmp.ge.f32.partialorder %v812_v8, 0.0  ;;  %v2205_v17 = vmul.f32 %v1957_v55, %v6990_v49  ;;  %vm2097_vm13 = vcmp.ge.f32.partialorder %v1957_v55, 0.0 }
 0x33e   :  { %v3564_v11 = vsel %vm3348_vm10, %v3206_v63, %v3456_v9  ;;  %v4708_v12 = vsel %vm4492_vm11, %v4350_v0, %v4600_v10  ;;  %6199 = vmatmul.msk.bf16.gmra.mxu2 %vm417_vm2, %v6741_v4  ;;  %6577 = vmatmul.msk.bf16.gmra.mxu3 %vm417_vm2, %v6795_v5 }
 0x33f   :  { %v4816_v16 = vmax.f32 %v3564_v11, %v4708_v12  ;;  %v1169_v21 = vsel %vm952_vm12, %v812_v8, %v1061_v13  ;;  %v2313_v27 = vsel %vm2097_vm13, %v1957_v55, %v2205_v17 }
 0x340   :  { %v2421_v34 = vmax.f32 %v1169_v21, %v2313_v27 }
 0x341   :  { %v4924_v18 = vmax.f32 %v2420_v14, %v4816_v16  ;;  %v3208_v19 = vpop.f32.mrf.mxu2  ;;  %v4352_v20 = vpop.f32.mrf.mxu3 }
 0x342   :  { %v3209_v22 = vadd.f32 %v8431_v1, %v3208_v19  ;;  %v4353_v23 = vadd.f32 %v8431_v1, %v4352_v20  ;;  %v813_v24 = vpop.f32.mrf.mxu0  ;;  %v1958_v25 = vpop.f32.mrf.mxu1 }
 0x343   :  { %v5032_v26 = vpack.c.bf16 %v4924_v18, %v4924_v18  ;;  %v814_v28 = vadd.f32 %v8431_v1, %v813_v24  ;;  %v1959_v29 = vadd.f32 %v8431_v1, %v1958_v25  ;;  %v8796_v25 = vld [vmem:[%s9037_s2] ss:$0 sm:$0xff] }
 0x344   :  { %vm3349_vm14 = vcmp.ge.f32.partialorder %v3209_v22, 0.0  ;;  %v3457_v30 = vmul.f32 %v3209_v22, %v6990_v49  ;;  %vm4493_vm15 = vcmp.ge.f32.partialorder %v4353_v23, 0.0  ;;  %v4601_v31 = vmul.f32 %v4353_v23, %v6990_v49 }
 0x345   :  { %5141 = vst.msk [vmem:[%s9040_s4 + $0x154] sm:$0xf] %vm5055_vm9, %v5032_v26  ;;  %v1062_v33 = vmul.f32 %v6990_v49, %v814_v28  ;;  %vm953_vm0 = vcmp.ge.f32.partialorder %v814_v28, 0.0  ;;  %v2206_v36 = vmul.f32 %v1959_v29, %v6990_v49  ;;  %vm2098_vm1 = vcmp.ge.f32.partialorder %v1959_v29, 0.0 }
 0x346   :  { %v3565_v32 = vsel %vm3349_vm14, %v3209_v22, %v3457_v30  ;;  %v4709_v15 = vsel %vm4493_vm15, %v4353_v23, %v4601_v31  ;;  %v6635_v22 = vld [vmem:[%s9038_s0 + $0x1a8] sm:$0xff]  ;;  %v6689_v23 = vld [vmem:[%s9038_s0 + $0x358] sm:$0xff] }
 0x347   :  { %v4817_v35 = vmax.f32 %v3565_v32, %v4709_v15  ;;  %v1170_v44 = vsel %vm953_vm0, %v814_v28, %v1062_v33  ;;  %v2314_v52 = vsel %vm2098_vm1, %v1959_v29, %v2206_v36  ;;  %v6743_v30 = vld [vmem:[%s9038_s0 + $0x508] sm:$0xff]  ;;  %v6797_v31 = vld [vmem:[%s9038_s0 + $0x6b8] sm:$0xff] }
 0x348   :  { %v2422_v60 = vmax.f32 %v1170_v44, %v2314_v52 }
 0x349   :  { %v4925_v37 = vmax.f32 %v2421_v34, %v4817_v35  ;;  %v3210_v38 = vpop.f32.mrf.mxu2  ;;  %v4354_v41 = vpop.f32.mrf.mxu3 }
 0x34a   :  { %v3211_v45 = vadd.f32 %v8431_v1, %v3210_v38  ;;  %v4355_v46 = vadd.f32 %v8431_v1, %v4354_v41  ;;  %v816_v47 = vpop.f32.mrf.mxu0  ;;  %v1961_v40 = vpop.f32.mrf.mxu1 }
 0x34b   :  { %v5033_v51 = vpack.c.bf16 %v4925_v37, %v4925_v37  ;;  %v817_v53 = vadd.f32 %v8431_v1, %v816_v47  ;;  %v1962_v54 = vadd.f32 %v8431_v1, %v1961_v40 }
 0x34c   :  { %vm3350_vm3 = vcmp.ge.f32.partialorder %v3211_v45, 0.0  ;;  %v3458_v56 = vmul.f32 %v3211_v45, %v6990_v49  ;;  %vm4494_vm4 = vcmp.ge.f32.partialorder %v4355_v46, 0.0  ;;  %v4602_v57 = vmul.f32 %v4355_v46, %v6990_v49 }
 0x34d   :  { %5142 = vst.msk [vmem:[%s9040_s4 + $0x158] sm:$0xf] %vm5055_vm9, %v5033_v51  ;;  %5444 = vmatmul.msk.bf16.gmra.mxu0 %vm417_vm2, %v6634_v42  ;;  %5822 = vmatmul.msk.bf16.gmra.mxu1 %vm417_vm2, %v6688_v43  ;;  %v1063_v59 = vmul.f32 %v6990_v49, %v817_v53  ;;  %vm954_vm5 = vcmp.ge.f32.partialorder %v817_v53, 0.0  ;;  %v2207_v62 = vmul.f32 %v1962_v54, %v6990_v49  ;;  %vm2099_vm6 = vcmp.ge.f32.partialorder %v1962_v54, 0.0 }
 0x34e   :  { %v3566_v58 = vsel %vm3350_vm3, %v3211_v45, %v3458_v56  ;;  %v4710_v39 = vsel %vm4494_vm4, %v4355_v46, %v4602_v57  ;;  %6200 = vmatmul.msk.bf16.gmra.mxu2 %vm417_vm2, %v6742_v48  ;;  %6578 = vmatmul.msk.bf16.gmra.mxu3 %vm417_vm2, %v6796_v50 }
 0x34f   :  { %v4818_v61 = vmax.f32 %v3566_v58, %v4710_v39  ;;  %v1171_v3 = vsel %vm954_vm5, %v817_v53, %v1063_v59  ;;  %v2315_v55 = vsel %vm2099_vm6, %v1962_v54, %v2207_v62 }
 0x350   :  { %v2423_v17 = vmax.f32 %v1171_v3, %v2315_v55 }
 0x351   :  { %v4926_v63 = vmax.f32 %v2422_v60, %v4818_v61  ;;  %v3213_v0 = vpop.f32.mrf.mxu2  ;;  %v4357_v2 = vpop.f32.mrf.mxu3 }
 0x352   :  { %v3214_v4 = vadd.f32 %v8431_v1, %v3213_v0  ;;  %v4358_v5 = vadd.f32 %v8431_v1, %v4357_v2  ;;  %v818_v6 = vpop.f32.mrf.mxu0  ;;  %v1963_v7 = vpop.f32.mrf.mxu1 }
 0x353   :  { %v5034_v8 = vpack.c.bf16 %v4926_v63, %v4926_v63  ;;  %v819_v9 = vadd.f32 %v8431_v1, %v818_v6  ;;  %v1964_v10 = vadd.f32 %v8431_v1, %v1963_v7 }
 0x354   :  { %vm3351_vm7 = vcmp.ge.f32.partialorder %v3214_v4, 0.0  ;;  %v3459_v11 = vmul.f32 %v3214_v4, %v6990_v49  ;;  %vm4495_vm8 = vcmp.ge.f32.partialorder %v4358_v5, 0.0  ;;  %v4603_v12 = vmul.f32 %v4358_v5, %v6990_v49 }
 0x355   :  { %5143 = vst.msk [vmem:[%s9040_s4 + $0x15c] sm:$0xf] %vm5055_vm9, %v5034_v8  ;;  %v1064_v16 = vmul.f32 %v6990_v49, %v819_v9  ;;  %vm955_vm10 = vcmp.ge.f32.partialorder %v819_v9, 0.0  ;;  %v2208_v1 = vmul.f32 %v1964_v10, %v6990_v49  ;;  %vm2100_vm11 = vcmp.ge.f32.partialorder %v1964_v10, 0.0 }
 0x356   :  { %v3567_v13 = vsel %vm3351_vm7, %v3214_v4, %v3459_v11  ;;  %v4711_v14 = vsel %vm4495_vm8, %v4358_v5, %v4603_v12 }
 0x357   :  { %v4819_v18 = vmax.f32 %v3567_v13, %v4711_v14  ;;  %v1172_v24 = vsel %vm955_vm10, %v819_v9, %v1064_v16  ;;  %v2316_v15 = vsel %vm2100_vm11, %v1964_v10, %v2208_v1 }
 0x358   :  { %v2424_v42 = vmax.f32 %v1172_v24, %v2316_v15 }
 0x359   :  { %v4927_v19 = vmax.f32 %v2423_v17, %v4819_v18  ;;  %v3215_v20 = vpop.f32.mrf.mxu2  ;;  %v4359_v21 = vpop.f32.mrf.mxu3 }
 0x35a   :  { %v3216_v26 = vadd.f32 %v8796_v25, %v3215_v20  ;;  %v4360_v27 = vadd.f32 %v8796_v25, %v4359_v21  ;;  %v821_v28 = vpop.f32.mrf.mxu0  ;;  %v1966_v29 = vpop.f32.mrf.mxu1 }
 0x35b   :  { %v5035_v32 = vpack.c.bf16 %v4927_v19, %v4927_v19  ;;  %v822_v33 = vadd.f32 %v8796_v25, %v821_v28  ;;  %v1967_v34 = vadd.f32 %v8796_v25, %v1966_v29 }
 0x35c   :  { %vm3352_vm12 = vcmp.ge.f32.partialorder %v3216_v26, 0.0  ;;  %v3460_v35 = vmul.f32 %v3216_v26, %v6990_v49  ;;  %vm4496_vm13 = vcmp.ge.f32.partialorder %v4360_v27, 0.0  ;;  %v4604_v36 = vmul.f32 %v4360_v27, %v6990_v49 }
 0x35d   :  { %5144 = vst.msk [vmem:[%s9040_s4 + $0x160] sm:$0xf] %vm5055_vm9, %v5035_v32  ;;  %5445 = vmatmul.msk.bf16.gmra.mxu0 %vm417_vm2, %v6635_v22  ;;  %5823 = vmatmul.msk.bf16.gmra.mxu1 %vm417_vm2, %v6689_v23  ;;  %v1065_v41 = vmul.f32 %v6990_v49, %v822_v33  ;;  %vm956_vm14 = vcmp.ge.f32.partialorder %v822_v33, 0.0  ;;  %v2209_v44 = vmul.f32 %v1967_v34, %v6990_v49  ;;  %vm2101_vm15 = vcmp.ge.f32.partialorder %v1967_v34, 0.0 }
 0x35e   :  { %v3568_v37 = vsel %vm3352_vm12, %v3216_v26, %v3460_v35  ;;  %v4712_v38 = vsel %vm4496_vm13, %v4360_v27, %v4604_v36  ;;  %6201 = vmatmul.msk.bf16.gmra.mxu2 %vm417_vm2, %v6743_v30  ;;  %6579 = vmatmul.msk.bf16.gmra.mxu3 %vm417_vm2, %v6797_v31 }
 0x35f   :  { %v4820_v43 = vmax.f32 %v3568_v37, %v4712_v38  ;;  %v1173_v40 = vsel %vm956_vm14, %v822_v33, %v1065_v41  ;;  %v2317_v54 = vsel %vm2101_vm15, %v1967_v34, %v2209_v44 }
 0x360   :  { %v2425_v62 = vmax.f32 %v1173_v40, %v2317_v54 }
 0x361   :  { %v4928_v45 = vmax.f32 %v2424_v42, %v4820_v43  ;;  %v3218_v46 = vpop.f32.mrf.mxu2  ;;  %v4362_v47 = vpop.f32.mrf.mxu3 }
 0x362   :  { %v3219_v48 = vadd.f32 %v8796_v25, %v3218_v46  ;;  %v4363_v50 = vadd.f32 %v8796_v25, %v4362_v47  ;;  %v823_v51 = vpop.f32.mrf.mxu0  ;;  %v1968_v52 = vpop.f32.mrf.mxu1 }
 0x363   :  { %v5036_v53 = vpack.c.bf16 %v4928_v45, %v4928_v45  ;;  %v824_v56 = vadd.f32 %v8796_v25, %v823_v51  ;;  %v1969_v57 = vadd.f32 %v8796_v25, %v1968_v52 }
 0x364   :  { %vm3353_vm2 = vcmp.ge.f32.partialorder %v3219_v48, 0.0  ;;  %v3461_v58 = vmul.f32 %v3219_v48, %v6990_v49  ;;  %vm4497_vm0 = vcmp.ge.f32.partialorder %v4363_v50, 0.0  ;;  %v4605_v39 = vmul.f32 %v4363_v50, %v6990_v49 }
 0x365   :  { %5145 = vst.msk [vmem:[%s9040_s4 + $0x164] sm:$0xf] %vm5055_vm9, %v5036_v53  ;;  %v1066_v61 = vmul.f32 %v6990_v49, %v824_v56  ;;  %vm957_vm1 = vcmp.ge.f32.partialorder %v824_v56, 0.0  ;;  %v2210_v0 = vmul.f32 %v1969_v57, %v6990_v49  ;;  %vm2102_vm3 = vcmp.ge.f32.partialorder %v1969_v57, 0.0 }
 0x366   :  { %v3569_v59 = vsel %vm3353_vm2, %v3219_v48, %v3461_v58  ;;  %v4713_v60 = vsel %vm4497_vm0, %v4363_v50, %v4605_v39 }
 0x367   :  { %v4821_v63 = vmax.f32 %v3569_v59, %v4713_v60  ;;  %v1174_v5 = vsel %vm957_vm1, %v824_v56, %v1066_v61  ;;  %v2318_v10 = vsel %vm2102_vm3, %v1969_v57, %v2210_v0 }
 0x368   :  { %v2426_v1 = vmax.f32 %v1174_v5, %v2318_v10 }
 0x369   :  { %v4929_v2 = vmax.f32 %v2425_v62, %v4821_v63  ;;  %v3220_v3 = vpop.f32.mrf.mxu2  ;;  %v4364_v4 = vpop.f32.mrf.mxu3 }
 0x36a   :  { %v3221_v6 = vadd.f32 %v8796_v25, %v3220_v3  ;;  %v4365_v7 = vadd.f32 %v8796_v25, %v4364_v4  ;;  %v826_v8 = vpop.f32.mrf.mxu0  ;;  %v1971_v55 = vpop.f32.mrf.mxu1 }
 0x36b   :  { %v5037_v9 = vpack.c.bf16 %v4929_v2, %v4929_v2  ;;  %v827_v11 = vadd.f32 %v8796_v25, %v826_v8  ;;  %v1972_v12 = vadd.f32 %v8796_v25, %v1971_v55 }
 0x36c   :  { %vm3354_vm4 = vcmp.ge.f32.partialorder %v3221_v6, 0.0  ;;  %v3462_v13 = vmul.f32 %v3221_v6, %v6990_v49  ;;  %vm4498_vm5 = vcmp.ge.f32.partialorder %v4365_v7, 0.0  ;;  %v4606_v14 = vmul.f32 %v4365_v7, %v6990_v49 }
 0x36d   :  { %5146 = vst.msk [vmem:[%s9040_s4 + $0x168] sm:$0xf] %vm5055_vm9, %v5037_v9  ;;  %v1067_v18 = vmul.f32 %v6990_v49, %v827_v11  ;;  %vm958_vm6 = vcmp.ge.f32.partialorder %v827_v11, 0.0  ;;  %v2211_v20 = vmul.f32 %v1972_v12, %v6990_v49  ;;  %vm2103_vm7 = vcmp.ge.f32.partialorder %v1972_v12, 0.0 }
 0x36e   :  { %v3570_v16 = vsel %vm3354_vm4, %v3221_v6, %v3462_v13  ;;  %v4714_v17 = vsel %vm4498_vm5, %v4365_v7, %v4606_v14 }
 0x36f   :  { %v4822_v19 = vmax.f32 %v3570_v16, %v4714_v17  ;;  %v1175_v24 = vsel %vm958_vm6, %v827_v11, %v1067_v18  ;;  %v2319_v31 = vsel %vm2103_vm7, %v1972_v12, %v2211_v20 }
 0x370   :  { %v2427_v38 = vmax.f32 %v1175_v24, %v2319_v31 }
 0x371   :  { %v4930_v21 = vmax.f32 %v2426_v1, %v4822_v19  ;;  %v3223_v22 = vpop.f32.mrf.mxu2  ;;  %v4367_v23 = vpop.f32.mrf.mxu3 }
 0x372   :  { %v3224_v26 = vadd.f32 %v8796_v25, %v3223_v22  ;;  %v4368_v27 = vadd.f32 %v8796_v25, %v4367_v23  ;;  %v828_v28 = vpop.f32.mrf.mxu0  ;;  %v1973_v29 = vpop.f32.mrf.mxu1 }
 0x373   :  { %v5038_v30 = vpack.c.bf16 %v4930_v21, %v4930_v21  ;;  %v829_v32 = vadd.f32 %v8796_v25, %v828_v28  ;;  %v1974_v15 = vadd.f32 %v8796_v25, %v1973_v29 }
 0x374   :  { %vm3355_vm8 = vcmp.ge.f32.partialorder %v3224_v26, 0.0  ;;  %v3463_v33 = vmul.f32 %v3224_v26, %v6990_v49  ;;  %vm4499_vm10 = vcmp.ge.f32.partialorder %v4368_v27, 0.0  ;;  %v4607_v34 = vmul.f32 %v4368_v27, %v6990_v49 }
 0x375   :  { %5147 = vst.msk [vmem:[%s9040_s4 + $0x16c] sm:$0xf] %vm5055_vm9, %v5038_v30  ;;  %v1068_v37 = vmul.f32 %v6990_v49, %v829_v32  ;;  %vm959_vm11 = vcmp.ge.f32.partialorder %v829_v32, 0.0  ;;  %v2212_v42 = vmul.f32 %v1974_v15, %v6990_v49  ;;  %vm2104_vm12 = vcmp.ge.f32.partialorder %v1974_v15, 0.0 }
 0x376   :  { %v3571_v35 = vsel %vm3355_vm8, %v3224_v26, %v3463_v33  ;;  %v4715_v36 = vsel %vm4499_vm10, %v4368_v27, %v4607_v34 }
 0x377   :  { %v4823_v41 = vmax.f32 %v3571_v35, %v4715_v36  ;;  %v1176_v46 = vsel %vm959_vm11, %v829_v32, %v1068_v37  ;;  %v2320_v52 = vsel %vm2104_vm12, %v1974_v15, %v2212_v42 }
 0x378   :  { %v2428_v60 = vmax.f32 %v1176_v46, %v2320_v52 }
 0x379   :  { %v4931_v43 = vmax.f32 %v2427_v38, %v4823_v41  ;;  %v3225_v44 = vpop.f32.mrf.mxu2  ;;  %v4369_v45 = vpop.f32.mrf.mxu3 }
 0x37a   :  { %v3226_v47 = vadd.f32 %v8796_v25, %v3225_v44  ;;  %v4370_v40 = vadd.f32 %v8796_v25, %v4369_v45  ;;  %v831_v48 = vpop.f32.mrf.mxu0  ;;  %v1976_v50 = vpop.f32.mrf.mxu1 }
 0x37b   :  { %v5039_v51 = vpack.c.bf16 %v4931_v43, %v4931_v43  ;;  %v832_v53 = vadd.f32 %v8796_v25, %v831_v48  ;;  %v1977_v54 = vadd.f32 %v8796_v25, %v1976_v50 }
 0x37c   :  { %vm3356_vm13 = vcmp.ge.f32.partialorder %v3226_v47, 0.0  ;;  %v3464_v56 = vmul.f32 %v3226_v47, %v6990_v49  ;;  %vm4500_vm14 = vcmp.ge.f32.partialorder %v4370_v40, 0.0  ;;  %v4608_v57 = vmul.f32 %v4370_v40, %v6990_v49 }
 0x37d   :  { %5148 = vst.msk [vmem:[%s9040_s4 + $0x170] sm:$0xf] %vm5055_vm9, %v5039_v51  ;;  %v1069_v59 = vmul.f32 %v6990_v49, %v832_v53  ;;  %vm960_vm15 = vcmp.ge.f32.partialorder %v832_v53, 0.0  ;;  %v2213_v62 = vmul.f32 %v1977_v54, %v6990_v49  ;;  %vm2105_vm2 = vcmp.ge.f32.partialorder %v1977_v54, 0.0 }
 0x37e   :  { %v3572_v58 = vsel %vm3356_vm13, %v3226_v47, %v3464_v56  ;;  %v4716_v39 = vsel %vm4500_vm14, %v4370_v40, %v4608_v57 }
 0x37f   :  { %v4824_v61 = vmax.f32 %v3572_v58, %v4716_v39  ;;  %v1177_v3 = vsel %vm960_vm15, %v832_v53, %v1069_v59  ;;  %v2321_v55 = vsel %vm2105_vm2, %v1977_v54, %v2213_v62 }
 0x380   :  { %v2429_v17 = vmax.f32 %v1177_v3, %v2321_v55 }
 0x381   :  { %v4932_v63 = vmax.f32 %v2428_v60, %v4824_v61  ;;  %v3228_v0 = vpop.f32.mrf.mxu2  ;;  %v4372_v2 = vpop.f32.mrf.mxu3 }
 0x382   :  { %v3229_v4 = vadd.f32 %v8796_v25, %v3228_v0  ;;  %v4373_v5 = vadd.f32 %v8796_v25, %v4372_v2  ;;  %v833_v6 = vpop.f32.mrf.mxu0  ;;  %v1978_v7 = vpop.f32.mrf.mxu1 }
 0x383   :  { %v5040_v8 = vpack.c.bf16 %v4932_v63, %v4932_v63  ;;  %v834_v9 = vadd.f32 %v8796_v25, %v833_v6  ;;  %v1979_v10 = vadd.f32 %v8796_v25, %v1978_v7 }
 0x384   :  { %vm3357_vm0 = vcmp.ge.f32.partialorder %v3229_v4, 0.0  ;;  %v3465_v11 = vmul.f32 %v3229_v4, %v6990_v49  ;;  %vm4501_vm1 = vcmp.ge.f32.partialorder %v4373_v5, 0.0  ;;  %v4609_v12 = vmul.f32 %v4373_v5, %v6990_v49 }
 0x385   :  { %5149 = vst.msk [vmem:[%s9040_s4 + $0x174] sm:$0xf] %vm5055_vm9, %v5040_v8  ;;  %v1070_v16 = vmul.f32 %v6990_v49, %v834_v9  ;;  %vm961_vm3 = vcmp.ge.f32.partialorder %v834_v9, 0.0  ;;  %v2214_v1 = vmul.f32 %v1979_v10, %v6990_v49  ;;  %vm2106_vm4 = vcmp.ge.f32.partialorder %v1979_v10, 0.0 }
 0x386   :  { %v3573_v13 = vsel %vm3357_vm0, %v3229_v4, %v3465_v11  ;;  %v4717_v14 = vsel %vm4501_vm1, %v4373_v5, %v4609_v12 }
 0x387   :  { %v4825_v18 = vmax.f32 %v3573_v13, %v4717_v14  ;;  %v1178_v22 = vsel %vm961_vm3, %v834_v9, %v1070_v16  ;;  %v2322_v29 = vsel %vm2106_vm4, %v1979_v10, %v2214_v1 }
 0x388   :  { %v2430_v36 = vmax.f32 %v1178_v22, %v2322_v29 }
 0x389   :  { %v4933_v19 = vmax.f32 %v2429_v17, %v4825_v18  ;;  %v3230_v20 = vpop.f32.mrf.mxu2  ;;  %v4374_v21 = vpop.f32.mrf.mxu3 }
 0x38a   :  { %v3231_v23 = vadd.f32 %v8796_v25, %v3230_v20  ;;  %v4375_v24 = vadd.f32 %v8796_v25, %v4374_v21  ;;  %v836_v26 = vpop.f32.mrf.mxu0  ;;  %v1981_v27 = vpop.f32.mrf.mxu1 }
 0x38b   :  { %v5041_v28 = vpack.c.bf16 %v4933_v19, %v4933_v19  ;;  %v837_v30 = vadd.f32 %v8796_v25, %v836_v26  ;;  %v1982_v31 = vadd.f32 %v8796_v25, %v1981_v27 }
 0x38c   :  { %vm3358_vm5 = vcmp.ge.f32.partialorder %v3231_v23, 0.0  ;;  %v3466_v32 = vmul.f32 %v3231_v23, %v6990_v49  ;;  %vm4502_vm6 = vcmp.ge.f32.partialorder %v4375_v24, 0.0  ;;  %v4610_v15 = vmul.f32 %v4375_v24, %v6990_v49 }
 0x38d   :  { %5150 = vst.msk [vmem:[%s9040_s4 + $0x178] sm:$0xf] %vm5055_vm9, %v5041_v28  ;;  %v1071_v35 = vmul.f32 %v6990_v49, %v837_v30  ;;  %vm962_vm7 = vcmp.ge.f32.partialorder %v837_v30, 0.0  ;;  %v2215_v38 = vmul.f32 %v1982_v31, %v6990_v49  ;;  %vm2107_vm8 = vcmp.ge.f32.partialorder %v1982_v31, 0.0 }
 0x38e   :  { %v3574_v33 = vsel %vm3358_vm5, %v3231_v23, %v3466_v32  ;;  %v4718_v34 = vsel %vm4502_vm6, %v4375_v24, %v4610_v15 }
 0x38f   :  { %v4826_v37 = vmax.f32 %v3574_v33, %v4718_v34  ;;  %v1179_v44 = vsel %vm962_vm7, %v837_v30, %v1071_v35  ;;  %v2323_v50 = vsel %vm2107_vm8, %v1982_v31, %v2215_v38 }
 0x390   :  { %v2431_v39 = vmax.f32 %v1179_v44, %v2323_v50 }
 0x391   :  { %v4934_v41 = vmax.f32 %v2430_v36, %v4826_v37  ;;  %v3233_v42 = vpop.f32.mrf.mxu2  ;;  %v4377_v43 = vpop.f32.mrf.mxu3 }
 0x392   :  { %v3234_v45 = vadd.f32 %v8796_v25, %v3233_v42  ;;  %v4378_v46 = vadd.f32 %v8796_v25, %v4377_v43  ;;  %v838_v47 = vpop.f32.mrf.mxu0  ;;  %v1983_v40 = vpop.f32.mrf.mxu1 }
 0x393   :  { %v5042_v48 = vpack.c.bf16 %v4934_v41, %v4934_v41  ;;  %v839_v51 = vadd.f32 %v8796_v25, %v838_v47  ;;  %v1984_v52 = vadd.f32 %v8796_v25, %v1983_v40 }
 0x394   :  { %vm3359_vm10 = vcmp.ge.f32.partialorder %v3234_v45, 0.0  ;;  %v3467_v53 = vmul.f32 %v3234_v45, %v6990_v49  ;;  %vm4503_vm11 = vcmp.ge.f32.partialorder %v4378_v46, 0.0  ;;  %v4611_v54 = vmul.f32 %v4378_v46, %v6990_v49 }
 0x395   :  { %5151 = vst.msk [vmem:[%s9040_s4 + $0x17c] sm:$0xf] %vm5055_vm9, %v5042_v48  ;;  %v1072_v58 = vmul.f32 %v6990_v49, %v839_v51  ;;  %vm963_vm12 = vcmp.ge.f32.partialorder %v839_v51, 0.0  ;;  %v2216_v60 = vmul.f32 %v1984_v52, %v6990_v49  ;;  %vm2108_vm13 = vcmp.ge.f32.partialorder %v1984_v52, 0.0 }
 0x396   :  { %v3575_v56 = vsel %vm3359_vm10, %v3234_v45, %v3467_v53  ;;  %v4719_v57 = vsel %vm4503_vm11, %v4378_v46, %v4611_v54 }
 0x397   :  { %v4827_v59 = vmax.f32 %v3575_v56, %v4719_v57  ;;  %v1180_v0 = vsel %vm963_vm12, %v839_v51, %v1072_v58  ;;  %v2324_v7 = vsel %vm2108_vm13, %v1984_v52, %v2216_v60 }
 0x398   :  { %v2432_v14 = vmax.f32 %v1180_v0, %v2324_v7 }
 0x399   :  { %v4935_v61 = vmax.f32 %v2431_v39, %v4827_v59  ;;  %v3235_v62 = vpop.f32.mrf.mxu2  ;;  %v4379_v63 = vpop.f32.mrf.mxu3 }
 0x39a   :  { %v3236_v2 = vadd.f32 %v8796_v25, %v3235_v62  ;;  %v4380_v3 = vadd.f32 %v8796_v25, %v4379_v63  ;;  %v841_v4 = vpop.f32.mrf.mxu0  ;;  %v1986_v5 = vpop.f32.mrf.mxu1 }
 0x39b   :  { %v5043_v6 = vpack.c.bf16 %v4935_v61, %v4935_v61  ;;  %v842_v8 = vadd.f32 %v8796_v25, %v841_v4  ;;  %v1987_v55 = vadd.f32 %v8796_v25, %v1986_v5 }
 0x39c   :  { %vm3360_vm14 = vcmp.ge.f32.partialorder %v3236_v2, 0.0  ;;  %v3468_v9 = vmul.f32 %v3236_v2, %v6990_v49  ;;  %vm4504_vm15 = vcmp.ge.f32.partialorder %v4380_v3, 0.0  ;;  %v4612_v10 = vmul.f32 %v4380_v3, %v6990_v49 }
 0x39d   :  { %5152 = vst.msk [vmem:[%s9040_s4 + $0x180] sm:$0xf] %vm5055_vm9, %v5043_v6  ;;  %v1073_v13 = vmul.f32 %v6990_v49, %v842_v8  ;;  %vm964_vm2 = vcmp.ge.f32.partialorder %v842_v8, 0.0  ;;  %v2217_v17 = vmul.f32 %v1987_v55, %v6990_v49  ;;  %vm2109_vm0 = vcmp.ge.f32.partialorder %v1987_v55, 0.0 }
 0x39e   :  { %v3576_v11 = vsel %vm3360_vm14, %v3236_v2, %v3468_v9  ;;  %v4720_v12 = vsel %vm4504_vm15, %v4380_v3, %v4612_v10 }
 0x39f   :  { %v4828_v16 = vmax.f32 %v3576_v11, %v4720_v12  ;;  %v1181_v20 = vsel %vm964_vm2, %v842_v8, %v1073_v13  ;;  %v2325_v27 = vsel %vm2109_vm0, %v1987_v55, %v2217_v17 }
 0x3a0   :  { %v2433_v34 = vmax.f32 %v1181_v20, %v2325_v27 }
 0x3a1   :  { %v4936_v18 = vmax.f32 %v2432_v14, %v4828_v16  ;;  %v3238_v1 = vpop.f32.mrf.mxu2  ;;  %v4382_v19 = vpop.f32.mrf.mxu3 }
 0x3a2   :  { %v3239_v21 = vadd.f32 %v8796_v25, %v3238_v1  ;;  %v4383_v22 = vadd.f32 %v8796_v25, %v4382_v19  ;;  %v843_v23 = vpop.f32.mrf.mxu0  ;;  %v1988_v24 = vpop.f32.mrf.mxu1 }
 0x3a3   :  { %v5044_v26 = vpack.c.bf16 %v4936_v18, %v4936_v18  ;;  %v844_v28 = vadd.f32 %v8796_v25, %v843_v23  ;;  %v1989_v29 = vadd.f32 %v8796_v25, %v1988_v24 }
 0x3a4   :  { %vm3361_vm1 = vcmp.ge.f32.partialorder %v3239_v21, 0.0  ;;  %v3469_v30 = vmul.f32 %v3239_v21, %v6990_v49  ;;  %vm4505_vm3 = vcmp.ge.f32.partialorder %v4383_v22, 0.0  ;;  %v4613_v31 = vmul.f32 %v4383_v22, %v6990_v49 }
 0x3a5   :  { %5153 = vst.msk [vmem:[%s9040_s4 + $0x184] sm:$0xf] %vm5055_vm9, %v5044_v26  ;;  %v1074_v33 = vmul.f32 %v6990_v49, %v844_v28  ;;  %vm965_vm4 = vcmp.ge.f32.partialorder %v844_v28, 0.0  ;;  %v2218_v36 = vmul.f32 %v1989_v29, %v6990_v49  ;;  %vm2110_vm5 = vcmp.ge.f32.partialorder %v1989_v29, 0.0 }
 0x3a6   :  { %v3577_v32 = vsel %vm3361_vm1, %v3239_v21, %v3469_v30  ;;  %v4721_v15 = vsel %vm4505_vm3, %v4383_v22, %v4613_v31 }
 0x3a7   :  { %v4829_v35 = vmax.f32 %v3577_v32, %v4721_v15  ;;  %v1182_v42 = vsel %vm965_vm4, %v844_v28, %v1074_v33  ;;  %v2326_v40 = vsel %vm2110_vm5, %v1989_v29, %v2218_v36 }
 0x3a8   :  { %v2434_v57 = vmax.f32 %v1182_v42, %v2326_v40 }
 0x3a9   :  { %v4937_v37 = vmax.f32 %v2433_v34, %v4829_v35  ;;  %v3240_v38 = vpop.f32.mrf.mxu2  ;;  %v4384_v41 = vpop.f32.mrf.mxu3 }
 0x3aa   :  { %v3241_v43 = vadd.f32 %v8796_v25, %v3240_v38  ;;  %v4385_v44 = vadd.f32 %v8796_v25, %v4384_v41  ;;  %v846_v45 = vpop.f32.mrf.mxu0  ;;  %v1991_v46 = vpop.f32.mrf.mxu1 }
 0x3ab   :  { %v5045_v47 = vpack.c.bf16 %v4937_v37, %v4937_v37  ;;  %v847_v48 = vadd.f32 %v8796_v25, %v846_v45  ;;  %v1992_v50 = vadd.f32 %v8796_v25, %v1991_v46 }
 0x3ac   :  { %vm3362_vm6 = vcmp.ge.f32.partialorder %v3241_v43, 0.0  ;;  %v3470_v51 = vmul.f32 %v3241_v43, %v6990_v49  ;;  %vm4506_vm7 = vcmp.ge.f32.partialorder %v4385_v44, 0.0  ;;  %v4614_v52 = vmul.f32 %v4385_v44, %v6990_v49 }
 0x3ad   :  { %5154 = vst.msk [vmem:[%s9040_s4 + $0x188] sm:$0xf] %vm5055_vm9, %v5045_v47  ;;  %v1075_v56 = vmul.f32 %v6990_v49, %v847_v48  ;;  %vm966_vm8 = vcmp.ge.f32.partialorder %v847_v48, 0.0  ;;  %v2219_v39 = vmul.f32 %v1992_v50, %v6990_v49  ;;  %vm2111_vm10 = vcmp.ge.f32.partialorder %v1992_v50, 0.0 }
 0x3ae   :  { %v3578_v53 = vsel %vm3362_vm6, %v3241_v43, %v3470_v51  ;;  %v4722_v54 = vsel %vm4506_vm7, %v4385_v44, %v4614_v52 }
 0x3af   :  { %v4830_v58 = vmax.f32 %v3578_v53, %v4722_v54  ;;  %v1183_v62 = vsel %vm966_vm8, %v847_v48, %v1075_v56  ;;  %v2327_v5 = vsel %vm2111_vm10, %v1992_v50, %v2219_v39 }
 0x3b0   :  { %v2435_v12 = vmax.f32 %v1183_v62, %v2327_v5 }
 0x3b1   :  { %v4938_v59 = vmax.f32 %v2434_v57, %v4830_v58  ;;  %v3243_v60 = vpop.f32.mrf.mxu2  ;;  %v4387_v61 = vpop.f32.mrf.mxu3 }
 0x3b2   :  { %v3244_v63 = vadd.f32 %v8796_v25, %v3243_v60  ;;  %v4388_v0 = vadd.f32 %v8796_v25, %v4387_v61  ;;  %v848_v2 = vpop.f32.mrf.mxu0  ;;  %v1993_v3 = vpop.f32.mrf.mxu1 }
 0x3b3   :  { %v5046_v4 = vpack.c.bf16 %v4938_v59, %v4938_v59  ;;  %v849_v6 = vadd.f32 %v8796_v25, %v848_v2  ;;  %v1994_v7 = vadd.f32 %v8796_v25, %v1993_v3 }
 0x3b4   :  { %vm3363_vm11 = vcmp.ge.f32.partialorder %v3244_v63, 0.0  ;;  %v3471_v8 = vmul.f32 %v3244_v63, %v6990_v49  ;;  %vm4507_vm12 = vcmp.ge.f32.partialorder %v4388_v0, 0.0  ;;  %v4615_v55 = vmul.f32 %v4388_v0, %v6990_v49 }
 0x3b5   :  { %5155 = vst.msk [vmem:[%s9040_s4 + $0x18c] sm:$0xf] %vm5055_vm9, %v5046_v4  ;;  %v1076_v11 = vmul.f32 %v6990_v49, %v849_v6  ;;  %vm967_vm13 = vcmp.ge.f32.partialorder %v849_v6, 0.0  ;;  %v2220_v14 = vmul.f32 %v1994_v7, %v6990_v49  ;;  %vm2112_vm14 = vcmp.ge.f32.partialorder %v1994_v7, 0.0 }
 0x3b6   :  { %v3579_v9 = vsel %vm3363_vm11, %v3244_v63, %v3471_v8  ;;  %v4723_v10 = vsel %vm4507_vm12, %v4388_v0, %v4615_v55 }
 0x3b7   :  { %v4831_v13 = vmax.f32 %v3579_v9, %v4723_v10  ;;  %v1184_v1 = vsel %vm967_vm13, %v849_v6, %v1076_v11  ;;  %v2328_v24 = vsel %vm2112_vm14, %v1994_v7, %v2220_v14 }
 0x3b8   :  { %v2436_v15 = vmax.f32 %v1184_v1, %v2328_v24 }
 0x3b9   :  { %v4939_v16 = vmax.f32 %v2435_v12, %v4831_v13  ;;  %v3245_v17 = vpop.f32.mrf.mxu2  ;;  %v4389_v18 = vpop.f32.mrf.mxu3 }
 0x3ba   :  { %v3246_v19 = vadd.f32 %v8796_v25, %v3245_v17  ;;  %v4390_v20 = vadd.f32 %v8796_v25, %v4389_v18  ;;  %v851_v21 = vpop.f32.mrf.mxu0  ;;  %v1996_v22 = vpop.f32.mrf.mxu1 }
 0x3bb   :  { %v5047_v23 = vpack.c.bf16 %v4939_v16, %v4939_v16  ;;  %v852_v26 = vadd.f32 %v8796_v25, %v851_v21  ;;  %v1997_v27 = vadd.f32 %v8796_v25, %v1996_v22 }
 0x3bc   :  { %vm3364_vm15 = vcmp.ge.f32.partialorder %v3246_v19, 0.0  ;;  %v3472_v28 = vmul.f32 %v3246_v19, %v6990_v49  ;;  %vm4508_vm2 = vcmp.ge.f32.partialorder %v4390_v20, 0.0  ;;  %v4616_v29 = vmul.f32 %v4390_v20, %v6990_v49 }
 0x3bd   :  { %5156 = vst.msk [vmem:[%s9040_s4 + $0x190] sm:$0xf] %vm5055_vm9, %v5047_v23  ;;  %v1077_v32 = vmul.f32 %v6990_v49, %v852_v26  ;;  %vm968_vm0 = vcmp.ge.f32.partialorder %v852_v26, 0.0  ;;  %v2221_v34 = vmul.f32 %v1997_v27, %v6990_v49  ;;  %vm2113_vm1 = vcmp.ge.f32.partialorder %v1997_v27, 0.0 }
 0x3be   :  { %v3580_v30 = vsel %vm3364_vm15, %v3246_v19, %v3472_v28  ;;  %v4724_v31 = vsel %vm4508_vm2, %v4390_v20, %v4616_v29 }
 0x3bf   :  { %v4832_v33 = vmax.f32 %v3580_v30, %v4724_v31  ;;  %v1185_v38 = vsel %vm968_vm0, %v852_v26, %v1077_v32  ;;  %v2329_v46 = vsel %vm2113_vm1, %v1997_v27, %v2221_v34 }
 0x3c0   :  { %v2437_v54 = vmax.f32 %v1185_v38, %v2329_v46 }
 0x3c1   :  { %v4940_v35 = vmax.f32 %v2436_v15, %v4832_v33  ;;  %v3248_v36 = vpop.f32.mrf.mxu2  ;;  %v4392_v37 = vpop.f32.mrf.mxu3 }
 0x3c2   :  { %v3249_v41 = vadd.f32 %v8796_v25, %v3248_v36  ;;  %v4393_v42 = vadd.f32 %v8796_v25, %v4392_v37  ;;  %v853_v43 = vpop.f32.mrf.mxu0  ;;  %v1998_v44 = vpop.f32.mrf.mxu1 }
 0x3c3   :  { %v5048_v45 = vpack.c.bf16 %v4940_v35, %v4940_v35  ;;  %v854_v47 = vadd.f32 %v8796_v25, %v853_v43  ;;  %v1999_v40 = vadd.f32 %v8796_v25, %v1998_v44 }
 0x3c4   :  { %vm3365_vm3 = vcmp.ge.f32.partialorder %v3249_v41, 0.0  ;;  %v3473_v48 = vmul.f32 %v3249_v41, %v6990_v49  ;;  %vm4509_vm4 = vcmp.ge.f32.partialorder %v4393_v42, 0.0  ;;  %v4617_v50 = vmul.f32 %v4393_v42, %v6990_v49 }
 0x3c5   :  { %5157 = vst.msk [vmem:[%s9040_s4 + $0x194] sm:$0xf] %vm5055_vm9, %v5048_v45  ;;  %v1078_v53 = vmul.f32 %v6990_v49, %v854_v47  ;;  %vm969_vm5 = vcmp.ge.f32.partialorder %v854_v47, 0.0  ;;  %v2222_v57 = vmul.f32 %v1999_v40, %v6990_v49  ;;  %vm2114_vm6 = vcmp.ge.f32.partialorder %v1999_v40, 0.0 }
 0x3c6   :  { %v3581_v51 = vsel %vm3365_vm3, %v3249_v41, %v3473_v48  ;;  %v4725_v52 = vsel %vm4509_vm4, %v4393_v42, %v4617_v50 }
 0x3c7   :  { %v4833_v56 = vmax.f32 %v3581_v51, %v4725_v52  ;;  %v1186_v60 = vsel %vm969_vm5, %v854_v47, %v1078_v53  ;;  %v2330_v3 = vsel %vm2114_vm6, %v1999_v40, %v2222_v57 }
 0x3c8   :  { %v2438_v10 = vmax.f32 %v1186_v60, %v2330_v3 }
 0x3c9   :  { %v4941_v58 = vmax.f32 %v2437_v54, %v4833_v56  ;;  %v3250_v39 = vpop.f32.mrf.mxu2  ;;  %v4394_v59 = vpop.f32.mrf.mxu3 }
 0x3ca   :  { %v3251_v61 = vadd.f32 %v8796_v25, %v3250_v39  ;;  %v4395_v62 = vadd.f32 %v8796_v25, %v4394_v59  ;;  %v856_v63 = vpop.f32.mrf.mxu0  ;;  %v2001_v0 = vpop.f32.mrf.mxu1 }
 0x3cb   :  { %v5049_v2 = vpack.c.bf16 %v4941_v58, %v4941_v58  ;;  %v857_v4 = vadd.f32 %v8796_v25, %v856_v63  ;;  %v2002_v5 = vadd.f32 %v8796_v25, %v2001_v0 }
 0x3cc   :  { %vm3366_vm7 = vcmp.ge.f32.partialorder %v3251_v61, 0.0  ;;  %v3474_v6 = vmul.f32 %v3251_v61, %v6990_v49  ;;  %vm4510_vm8 = vcmp.ge.f32.partialorder %v4395_v62, 0.0  ;;  %v4618_v7 = vmul.f32 %v4395_v62, %v6990_v49 }
 0x3cd   :  { %5158 = vst.msk [vmem:[%s9040_s4 + $0x198] sm:$0xf] %vm5055_vm9, %v5049_v2  ;;  %v1079_v9 = vmul.f32 %v6990_v49, %v857_v4  ;;  %vm970_vm10 = vcmp.ge.f32.partialorder %v857_v4, 0.0  ;;  %v2223_v12 = vmul.f32 %v2002_v5, %v6990_v49  ;;  %vm2115_vm11 = vcmp.ge.f32.partialorder %v2002_v5, 0.0 }
 0x3ce   :  { %v3582_v8 = vsel %vm3366_vm7, %v3251_v61, %v3474_v6  ;;  %v4726_v55 = vsel %vm4510_vm8, %v4395_v62, %v4618_v7 }
 0x3cf   :  { %v4834_v11 = vmax.f32 %v3582_v8, %v4726_v55  ;;  %v1187_v17 = vsel %vm970_vm10, %v857_v4, %v1079_v9  ;;  %v2331_v22 = vsel %vm2115_vm11, %v2002_v5, %v2223_v12 }
 0x3d0   :  { %v2439_v31 = vmax.f32 %v1187_v17, %v2331_v22 }
 0x3d1   :  { %v4942_v13 = vmax.f32 %v2438_v10, %v4834_v11  ;;  %v3253_v14 = vpop.f32.mrf.mxu2  ;;  %v4397_v16 = vpop.f32.mrf.mxu3 }
 0x3d2   :  { %v3254_v18 = vadd.f32 %v8796_v25, %v3253_v14  ;;  %v4398_v1 = vadd.f32 %v8796_v25, %v4397_v16  ;;  %v858_v19 = vpop.f32.mrf.mxu0  ;;  %v2003_v20 = vpop.f32.mrf.mxu1 }
 0x3d3   :  { %v5050_v21 = vpack.c.bf16 %v4942_v13, %v4942_v13  ;;  %v859_v23 = vadd.f32 %v8796_v25, %v858_v19  ;;  %v2004_v24 = vadd.f32 %v8796_v25, %v2003_v20 }
 0x3d4   :  { %vm3367_vm12 = vcmp.ge.f32.partialorder %v3254_v18, 0.0  ;;  %v3475_v26 = vmul.f32 %v3254_v18, %v6990_v49  ;;  %vm4511_vm13 = vcmp.ge.f32.partialorder %v4398_v1, 0.0  ;;  %v4619_v27 = vmul.f32 %v4398_v1, %v6990_v49 }
 0x3d5   :  { %5159 = vst.msk [vmem:[%s9040_s4 + $0x19c] sm:$0xf] %vm5055_vm9, %v5050_v21  ;;  %v1080_v30 = vmul.f32 %v6990_v49, %v859_v23  ;;  %vm971_vm14 = vcmp.ge.f32.partialorder %v859_v23, 0.0  ;;  %v2224_v15 = vmul.f32 %v2004_v24, %v6990_v49  ;;  %vm2116_vm15 = vcmp.ge.f32.partialorder %v2004_v24, 0.0 }
 0x3d6   :  { %v3583_v28 = vsel %vm3367_vm12, %v3254_v18, %v3475_v26  ;;  %v4727_v29 = vsel %vm4511_vm13, %v4398_v1, %v4619_v27 }
 0x3d7   :  { %v4835_v32 = vmax.f32 %v3583_v28, %v4727_v29  ;;  %v1188_v36 = vsel %vm971_vm14, %v859_v23, %v1080_v30  ;;  %v2332_v44 = vsel %vm2116_vm15, %v2004_v24, %v2224_v15 }
 0x3d8   :  { %v2440_v52 = vmax.f32 %v1188_v36, %v2332_v44 }
 0x3d9   :  { %v4943_v33 = vmax.f32 %v2439_v31, %v4835_v32  ;;  %v3255_v34 = vpop.f32.mrf.mxu2  ;;  %v4399_v35 = vpop.f32.mrf.mxu3 }
 0x3da   :  { %v3256_v37 = vadd.f32 %v8796_v25, %v3255_v34  ;;  %v4400_v38 = vadd.f32 %v8796_v25, %v4399_v35  ;;  %v861_v41 = vpop.f32.mrf.mxu0  ;;  %v2006_v42 = vpop.f32.mrf.mxu1 }
 0x3db   :  { %v5051_v43 = vpack.c.bf16 %v4943_v33, %v4943_v33  ;;  %v862_v45 = vadd.f32 %v8796_v25, %v861_v41  ;;  %v2007_v46 = vadd.f32 %v8796_v25, %v2006_v42 }
 0x3dc   :  { %vm3368_vm2 = vcmp.ge.f32.partialorder %v3256_v37, 0.0  ;;  %v3476_v47 = vmul.f32 %v3256_v37, %v6990_v49  ;;  %vm4512_vm0 = vcmp.ge.f32.partialorder %v4400_v38, 0.0  ;;  %v4620_v40 = vmul.f32 %v4400_v38, %v6990_v49 }
 0x3dd   :  { %5160 = vst.msk [vmem:[%s9040_s4 + $0x1a0] sm:$0xf] %vm5055_vm9, %v5051_v43  ;;  %v1081_v51 = vmul.f32 %v6990_v49, %v862_v45  ;;  %vm972_vm1 = vcmp.ge.f32.partialorder %v862_v45, 0.0  ;;  %v2225_v54 = vmul.f32 %v2007_v46, %v6990_v49  ;;  %vm2117_vm3 = vcmp.ge.f32.partialorder %v2007_v46, 0.0 }
 0x3de   :  { %v3584_v48 = vsel %vm3368_vm2, %v3256_v37, %v3476_v47  ;;  %v4728_v50 = vsel %vm4512_vm0, %v4400_v38, %v4620_v40 }
 0x3df   :  { %v4836_v53 = vmax.f32 %v3584_v48, %v4728_v50  ;;  %v1189_v39 = vsel %vm972_vm1, %v862_v45, %v1081_v51  ;;  %v2333_v0 = vsel %vm2117_vm3, %v2007_v46, %v2225_v54 }
 0x3e0   :  { %v2441_v8 = vmax.f32 %v1189_v39, %v2333_v0 }
 0x3e1   :  { %v4944_v56 = vmax.f32 %v2440_v52, %v4836_v53  ;;  %v3258_v57 = vpop.f32.mrf.mxu2  ;;  %v4402_v58 = vpop.f32.mrf.mxu3 }
 0x3e2   :  { %v3259_v59 = vadd.f32 %v8796_v25, %v3258_v57  ;;  %v4403_v60 = vadd.f32 %v8796_v25, %v4402_v58  ;;  %v863_v61 = vpop.f32.mrf.mxu0  ;;  %v2008_v62 = vpop.f32.mrf.mxu1 }
 0x3e3   :  { %v5052_v63 = vpack.c.bf16 %v4944_v56, %v4944_v56  ;;  %v864_v2 = vadd.f32 %v8796_v25, %v863_v61  ;;  %v2009_v3 = vadd.f32 %v8796_v25, %v2008_v62 }
 0x3e4   :  { %vm3369_vm4 = vcmp.ge.f32.partialorder %v3259_v59, 0.0  ;;  %v3477_v4 = vmul.f32 %v3259_v59, %v6990_v49  ;;  %vm4513_vm5 = vcmp.ge.f32.partialorder %v4403_v60, 0.0  ;;  %v4621_v5 = vmul.f32 %v4403_v60, %v6990_v49 }
 0x3e5   :  { %5161 = vst.msk [vmem:[%s9040_s4 + $0x1a4] sm:$0xf] %vm5055_vm9, %v5052_v63  ;;  %v1082_v9 = vmul.f32 %v6990_v49, %v864_v2  ;;  %v2226_v10 = vmul.f32 %v2009_v3, %v6990_v49  ;;  %vm973_vm6 = vcmp.ge.f32.partialorder %v864_v2, 0.0  ;;  %vm2118_vm7 = vcmp.ge.f32.partialorder %v2009_v3, 0.0 }
 0x3e6   :  { %v3585_v6 = vsel %vm3369_vm4, %v3259_v59, %v3477_v4  ;;  %v4729_v7 = vsel %vm4513_vm5, %v4403_v60, %v4621_v5 }
 0x3e7   :  { %v4837_v55 = vmax.f32 %v3585_v6, %v4729_v7  ;;  %v1190_v18 = vsel %vm973_vm6, %v864_v2, %v1082_v9  ;;  %v2334_v1 = vsel %vm2118_vm7, %v2009_v3, %v2226_v10 }
 0x3e8   :  { %v2442_v23 = vmax.f32 %v1190_v18, %v2334_v1 }
 0x3e9   :  { %v4945_v11 = vmax.f32 %v2441_v8, %v4837_v55  ;;  %v3260_v12 = vpop.f32.mrf.mxu2  ;;  %v4404_v13 = vpop.f32.mrf.mxu3 }
 0x3ea   :  { %v3261_v14 = vadd.f32 %v8796_v25, %v3260_v12  ;;  %v4405_v16 = vadd.f32 %v8796_v25, %v4404_v13 }
 0x3eb   :  { %v5053_v17 = vpack.c.bf16 %v4945_v11, %v4945_v11 }
 0x3ec   :  { %vm3370_vm8 = vcmp.ge.f32.partialorder %v3261_v14, 0.0  ;;  %v3478_v19 = vmul.f32 %v3261_v14, %v6990_v49  ;;  %vm4514_vm10 = vcmp.ge.f32.partialorder %v4405_v16, 0.0  ;;  %v4622_v20 = vmul.f32 %v4405_v16, %v6990_v49 }
 0x3ed   :  { %5162 = vst.msk [vmem:[%s9040_s4 + $0x1a8] sm:$0xf] %vm5055_vm9, %v5053_v17 }
 0x3ee   :  { %v3586_v21 = vsel %vm3370_vm8, %v3261_v14, %v3478_v19  ;;  %v4730_v22 = vsel %vm4514_vm10, %v4405_v16, %v4622_v20 }
 0x3ef   :  { %v4838_v24 = vmax.f32 %v3586_v21, %v4730_v22 }
 0x3f1   :  { %v4946_v26 = vmax.f32 %v2442_v23, %v4838_v24 }
 0x3f3   :  { %v5054_v25 = vpack.c.bf16 %v4946_v26, %v4946_v26 }
 0x3f5   :  { %5163 = vst.msk [vmem:[%s9040_s4 + $0x1ac] sm:$0xf] %vm5055_vm9, %v5054_v25 }

// kernel: triplet_forward.5
= control target key start
LH: loop header
LB: loop body
LE: loop exit
PB: predicated region body
PF: predicated region fallthrough
CT: control target
= control target key end

     0   :  { %13 = vsyncpa [#allocation3], 0  ;;  %s2114_s30 = smov [#allocation2]   ;;  %s3064_s0 = inlined_call_operand.vmem [shape: bf16[6,1024], index: 0, kind: input, shape index: {}]   ;;  %s3065_s1 = inlined_call_operand.vmem [shape: bf16[1024,256], index: 1, kind: input, shape index: {}]   ;;  %s3066_s2 = inlined_call_operand.vmem [shape: f32[1,256], index: 2, kind: input, shape index: {}]   ;;  %s3067_s3 = inlined_call_operand.vmem [shape: bf16[256,128], index: 3, kind: input, shape index: {}]   ;;  %s3068_s4 = inlined_call_operand.vmem [shape: f32[1,128], index: 4, kind: input, shape index: {}]   ;;  %s3069_s5 = inlined_call_operand.vmem [shape: bf16[128,64], index: 5, kind: input, shape index: {}]   ;;  %s3070_s6 = inlined_call_operand.vmem [shape: f32[1,64], index: 6, kind: input, shape index: {}]   ;;  %s3071_s7 = inlined_call_operand.vmem [shape: f32[2], index: 7, kind: input, shape index: {}]   ;;  %s3072_s8 = inlined_call_operand.vmem [shape: f32[6,64], index: 8, kind: output, shape index: {}]  }
   0x1   :  { %s33_s29 = sshll.u32 %s3071_s7, 4  ;;  %s34_s29 = int_to_ptr.vmem [resolvable:$true] %s33_s29 }
   0x2   :  { %36 = dma.vmem_to_smem %s34_s29, 16, %s2114_s30, [#allocation3]  }
   0x3   :  { %2112 = dma.done.wait [#allocation3], 16  }
   0x4   :  { %2113 = vsyncadd [#allocation3], 4294967280 }
   0x5   :  { %41 = sfence }
   0x6   :  { %v1393_v0 = vld [vmem:[%s3065_s1 + $0x70] sm:$0xf]  ;;  %v1958_v1 = vld [vmem:[%s3065_s1 + $0x74] sm:$0xf0]  ;;  %v1385_v11 = vld [vmem:[%s3065_s1 + $0x60] sm:$0xf] }
   0x7   :  { %v1457_v2 = vld [vmem:[%s3065_s1 + $0xf0] sm:$0xf]  ;;  %v1394_v3 = vor.u32 %v1958_v1, %v1393_v0  ;;  %v1974_v4 = vld [vmem:[%s3065_s1 + $0xf4] sm:$0xf0]  ;;  %v1956_v13 = vld [vmem:[%s3065_s1 + $0x64] sm:$0xf0] }
   0x8   :  { %v1521_v5 = vld [vmem:[%s3065_s1 + $0x170] sm:$0xf]  ;;  %v1990_v6 = vld [vmem:[%s3065_s1 + $0x174] sm:$0xf0]  ;;  %v1458_v7 = vor.u32 %v1974_v4, %v1457_v2  ;;  %v1449_v14 = vld [vmem:[%s3065_s1 + $0xe0] sm:$0xf]  ;;  %v1386_v16 = vor.u32 %v1956_v13, %v1385_v11 }
   0x9   :  { %v1522_v8 = vor.u32 %v1990_v6, %v1521_v5  ;;  %v1585_v9 = vld [vmem:[%s3065_s1 + $0x1f0] sm:$0xf]  ;;  %v2006_v10 = vld [vmem:[%s3065_s1 + $0x1f4] sm:$0xf0]  ;;  %850 = vmatpush.bf16.msra.mxu0 %v1394_v3  ;;  %v1972_v15 = vld [vmem:[%s3065_s1 + $0xe4] sm:$0xf0] }
   0xa   :  { %v1586_v12 = vor.u32 %v2006_v10, %v1585_v9  ;;  %863 = vmatpush.bf16.msra.mxu1 %v1458_v7  ;;  %v1450_v17 = vor.u32 %v1972_v15, %v1449_v14  ;;  %v1513_v18 = vld [vmem:[%s3065_s1 + $0x160] sm:$0xf]  ;;  %v1988_v19 = vld [vmem:[%s3065_s1 + $0x164] sm:$0xf0]  ;;  %v1377_v23 = vld [vmem:[%s3065_s1 + $0x50] sm:$0xf] }
   0xb   :  { %876 = vmatpush.bf16.msra.mxu2 %v1522_v8  ;;  %v1577_v20 = vld [vmem:[%s3065_s1 + $0x1e0] sm:$0xf]  ;;  %v1514_v21 = vor.u32 %v1988_v19, %v1513_v18  ;;  %v2004_v22 = vld [vmem:[%s3065_s1 + $0x1e4] sm:$0xf0]  ;;  %v1954_v24 = vld [vmem:[%s3065_s1 + $0x54] sm:$0xf0] }
   0xc   :  { %889 = vmatpush.bf16.msra.mxu3 %v1586_v12  ;;  %v1578_v25 = vor.u32 %v2004_v22, %v1577_v20  ;;  %v1441_v26 = vld [vmem:[%s3065_s1 + $0xd0] sm:$0xf]  ;;  %v1970_v27 = vld [vmem:[%s3065_s1 + $0xd4] sm:$0xf0]  ;;  %v1378_v29 = vor.u32 %v1954_v24, %v1377_v23  ;;  %v1369_v35 = vld [vmem:[%s3065_s1 + $0x40] sm:$0xf] }
   0xd   :  { %v1505_v28 = vld [vmem:[%s3065_s1 + $0x150] sm:$0xf]  ;;  %851 = vmatpush.bf16.msra.mxu0 %v1386_v16  ;;  %v1986_v30 = vld [vmem:[%s3065_s1 + $0x154] sm:$0xf0]  ;;  %v1442_v33 = vor.u32 %v1970_v27, %v1441_v26  ;;  %v1952_v36 = vld [vmem:[%s3065_s1 + $0x44] sm:$0xf0] }
   0xe   :  { %v1569_v31 = vld [vmem:[%s3065_s1 + $0x1d0] sm:$0xf]  ;;  %v2002_v32 = vld [vmem:[%s3065_s1 + $0x1d4] sm:$0xf0]  ;;  %864 = vmatpush.bf16.msra.mxu1 %v1450_v17  ;;  %v1506_v34 = vor.u32 %v1986_v30, %v1505_v28  ;;  %v1433_v37 = vld [vmem:[%s3065_s1 + $0xc0] sm:$0xf]  ;;  %v1370_v44 = vor.u32 %v1952_v36, %v1369_v35 }
   0xf   :  { %877 = vmatpush.bf16.msra.mxu2 %v1514_v21  ;;  %v1570_v38 = vor.u32 %v2002_v32, %v1569_v31  ;;  %v1968_v39 = vld [vmem:[%s3065_s1 + $0xc4] sm:$0xf0]  ;;  %v1497_v40 = vld [vmem:[%s3065_s1 + $0x140] sm:$0xf]  ;;  %v1361_v47 = vld [vmem:[%s3065_s1 + $0x30] sm:$0xf] }
  0x10   :  { %890 = vmatpush.bf16.msra.mxu3 %v1578_v25  ;;  %v1984_v41 = vld [vmem:[%s3065_s1 + $0x144] sm:$0xf0]  ;;  %v1561_v42 = vld [vmem:[%s3065_s1 + $0x1c0] sm:$0xf]  ;;  %v1434_v45 = vor.u32 %v1968_v39, %v1433_v37  ;;  %v1950_v48 = vld [vmem:[%s3065_s1 + $0x34] sm:$0xf0] }
  0x11   :  { %v2000_v43 = vld [vmem:[%s3065_s1 + $0x1c4] sm:$0xf0]  ;;  %852 = vmatpush.bf16.msra.mxu0 %v1378_v29  ;;  %v1498_v46 = vor.u32 %v1984_v41, %v1497_v40  ;;  %v1425_v49 = vld [vmem:[%s3065_s1 + $0xb0] sm:$0xf]  ;;  %v1966_v51 = vld [vmem:[%s3065_s1 + $0xb4] sm:$0xf0]  ;;  %v1362_v56 = vor.u32 %v1950_v48, %v1361_v47 }
  0x12   :  { %865 = vmatpush.bf16.msra.mxu1 %v1442_v33  ;;  %v1562_v50 = vor.u32 %v2000_v43, %v1561_v42  ;;  %v1489_v52 = vld [vmem:[%s3065_s1 + $0x130] sm:$0xf]  ;;  %v1982_v53 = vld [vmem:[%s3065_s1 + $0x134] sm:$0xf0]  ;;  %v1426_v57 = vor.u32 %v1966_v51, %v1425_v49  ;;  %v1353_v59 = vld [vmem:[%s3065_s1 + $0x20] sm:$0xf] }
  0x13   :  { %878 = vmatpush.bf16.msra.mxu2 %v1506_v34  ;;  %v1553_v54 = vld [vmem:[%s3065_s1 + $0x1b0] sm:$0xf]  ;;  %v1998_v55 = vld [vmem:[%s3065_s1 + $0x1b4] sm:$0xf0]  ;;  %v1490_v58 = vor.u32 %v1982_v53, %v1489_v52  ;;  %v1948_v60 = vld [vmem:[%s3065_s1 + $0x24] sm:$0xf0] }
  0x14   :  { %891 = vmatpush.bf16.msra.mxu3 %v1570_v38  ;;  %v1417_v61 = vld [vmem:[%s3065_s1 + $0xa0] sm:$0xf]  ;;  %v1554_v62 = vor.u32 %v1998_v55, %v1553_v54  ;;  %v1964_v63 = vld [vmem:[%s3065_s1 + $0xa4] sm:$0xf0]  ;;  %v1354_v4 = vor.u32 %v1948_v60, %v1353_v59  ;;  %v1345_v7 = vld [vmem:[%s3065_s1 + $0x10] sm:$0xf] }
  0x15   :  { %853 = vmatpush.bf16.msra.mxu0 %v1370_v44  ;;  %v1481_v0 = vld [vmem:[%s3065_s1 + $0x120] sm:$0xf]  ;;  %v1980_v1 = vld [vmem:[%s3065_s1 + $0x124] sm:$0xf0]  ;;  %v1418_v5 = vor.u32 %v1964_v63, %v1417_v61  ;;  %v1946_v8 = vld [vmem:[%s3065_s1 + $0x14] sm:$0xf0] }
  0x16   :  { %866 = vmatpush.bf16.msra.mxu1 %v1434_v45  ;;  %v1545_v2 = vld [vmem:[%s3065_s1 + $0x1a0] sm:$0xf]  ;;  %v1996_v3 = vld [vmem:[%s3065_s1 + $0x1a4] sm:$0xf0]  ;;  %v1482_v6 = vor.u32 %v1980_v1, %v1481_v0  ;;  %v1409_v9 = vld [vmem:[%s3065_s1 + $0x90] sm:$0xf]  ;;  %v1346_v16 = vor.u32 %v1946_v8, %v1345_v7 }
  0x17   :  { %879 = vmatpush.bf16.msra.mxu2 %v1498_v46  ;;  %v1546_v10 = vor.u32 %v1996_v3, %v1545_v2  ;;  %v1962_v11 = vld [vmem:[%s3065_s1 + $0x94] sm:$0xf0]  ;;  %v1473_v12 = vld [vmem:[%s3065_s1 + $0x110] sm:$0xf]  ;;  %v1337_v17 = vld [vmem:[%s3065_s1] sm:$0xf] }
  0x18   :  { %892 = vmatpush.bf16.msra.mxu3 %v1562_v50  ;;  %v1978_v13 = vld [vmem:[%s3065_s1 + $0x114] sm:$0xf0]  ;;  %v1537_v14 = vld [vmem:[%s3065_s1 + $0x190] sm:$0xf]  ;;  %v1944_v18 = vld [vmem:[%s3065_s1 + $0x4] sm:$0xf0]  ;;  %v1410_v19 = vor.u32 %v1962_v11, %v1409_v9 }
  0x19   :  { %854 = vmatpush.bf16.msra.mxu0 %v1362_v56  ;;  %v1994_v15 = vld [vmem:[%s3065_s1 + $0x194] sm:$0xf0]  ;;  %v1474_v20 = vor.u32 %v1978_v13, %v1473_v12  ;;  %v1401_v21 = vld [vmem:[%s3065_s1 + $0x80] sm:$0xf]  ;;  %v1960_v22 = vld [vmem:[%s3065_s1 + $0x84] sm:$0xf0]  ;;  %v1338_v31 = vor.u32 %v1944_v18, %v1337_v17 }
  0x1a   :  { %867 = vmatpush.bf16.msra.mxu1 %v1426_v57  ;;  %v1465_v23 = vld [vmem:[%s3065_s1 + $0x100] sm:$0xf]  ;;  %v1538_v24 = vor.u32 %v1994_v15, %v1537_v14  ;;  %v1976_v25 = vld [vmem:[%s3065_s1 + $0x104] sm:$0xf0]  ;;  %v1649_v28 = vld [vmem:[%s3065_s1 + $0x270] sm:$0xf]  ;;  %v1402_v35 = vor.u32 %v1960_v22, %v1401_v21 }
  0x1b   :  { %880 = vmatpush.bf16.msra.mxu2 %v1490_v58  ;;  %v1529_v26 = vld [vmem:[%s3065_s1 + $0x180] sm:$0xf]  ;;  %v1992_v27 = vld [vmem:[%s3065_s1 + $0x184] sm:$0xf0]  ;;  %v2022_v29 = vld [vmem:[%s3065_s1 + $0x274] sm:$0xf0]  ;;  %v1466_v36 = vor.u32 %v1976_v25, %v1465_v23 }
  0x1c   :  { %893 = vmatpush.bf16.msra.mxu3 %v1554_v62  ;;  %v1713_v30 = vld [vmem:[%s3065_s1 + $0x2f0] sm:$0xf]  ;;  %v2038_v32 = vld [vmem:[%s3065_s1 + $0x2f4] sm:$0xf0]  ;;  %v1530_v39 = vor.u32 %v1992_v27, %v1529_v26  ;;  %v1650_v40 = vor.u32 %v2022_v29, %v1649_v28  ;;  %v1641_v43 = vld [vmem:[%s3065_s1 + $0x260] sm:$0xf] }
  0x1d   :  { %855 = vmatpush.bf16.msra.mxu0 %v1354_v4  ;;  %v1777_v33 = vld [vmem:[%s3065_s1 + $0x370] sm:$0xf]  ;;  %v2054_v34 = vld [vmem:[%s3065_s1 + $0x374] sm:$0xf0]  ;;  %v1714_v41 = vor.u32 %v2038_v32, %v1713_v30  ;;  %v2020_v44 = vld [vmem:[%s3065_s1 + $0x264] sm:$0xf0] }
  0x1e   :  { %868 = vmatpush.bf16.msra.mxu1 %v1418_v5  ;;  %v1841_v37 = vld [vmem:[%s3065_s1 + $0x3f0] sm:$0xf]  ;;  %v2070_v38 = vld [vmem:[%s3065_s1 + $0x3f4] sm:$0xf0]  ;;  %v1778_v42 = vor.u32 %v2054_v34, %v1777_v33  ;;  %v1705_v45 = vld [vmem:[%s3065_s1 + $0x2e0] sm:$0xf]  ;;  %v1642_v53 = vor.u32 %v2020_v44, %v1641_v43 }
  0x1f   :  { %881 = vmatpush.bf16.msra.mxu2 %v1482_v6  ;;  %v1842_v46 = vor.u32 %v2070_v38, %v1841_v37  ;;  %v2036_v47 = vld [vmem:[%s3065_s1 + $0x2e4] sm:$0xf0]  ;;  %v1769_v48 = vld [vmem:[%s3065_s1 + $0x360] sm:$0xf]  ;;  %v1633_v54 = vld [vmem:[%s3065_s1 + $0x250] sm:$0xf] }
  0x20   :  { %894 = vmatpush.bf16.msra.mxu3 %v1546_v10  ;;  %v2052_v49 = vld [vmem:[%s3065_s1 + $0x364] sm:$0xf0]  ;;  %v1833_v50 = vld [vmem:[%s3065_s1 + $0x3e0] sm:$0xf]  ;;  %v1706_v57 = vor.u32 %v2036_v47, %v1705_v45  ;;  %v2018_v59 = vld [vmem:[%s3065_s1 + $0x254] sm:$0xf0] }
  0x21   :  { %856 = vmatpush.bf16.msra.mxu0 %v1346_v16  ;;  %v2068_v51 = vld [vmem:[%s3065_s1 + $0x3e4] sm:$0xf0]  ;;  %v1770_v58 = vor.u32 %v2052_v49, %v1769_v48  ;;  %v1697_v60 = vld [vmem:[%s3065_s1 + $0x2d0] sm:$0xf]  ;;  %v2034_v61 = vld [vmem:[%s3065_s1 + $0x2d4] sm:$0xf0]  ;;  %v1634_v8 = vor.u32 %v2018_v59, %v1633_v54 }
  0x22   :  { %869 = vmatpush.bf16.msra.mxu1 %v1410_v19  ;;  %v45_v52 = vld [vmem:[%s3064_s0 + $0x8] sm:$0x77]  ;;  %v1834_v62 = vor.u32 %v2068_v51, %v1833_v50  ;;  %v1761_v63 = vld [vmem:[%s3065_s1 + $0x350] sm:$0xf]  ;;  %v2050_v0 = vld [vmem:[%s3065_s1 + $0x354] sm:$0xf0]  ;;  %v1698_v9 = vor.u32 %v2034_v61, %v1697_v60 }
  0x23   :  { %882 = vmatpush.bf16.msra.mxu2 %v1474_v20  ;;  %v188_v55 = vunpack.c.l.b16 %v45_v52  ;;  %v189_v56 = vunpack.c.h.b16 %v45_v52  ;;  %v44_v2 = vld [vmem:[%s3064_s0] sm:$0x77]  ;;  %v1825_v3 = vld [vmem:[%s3065_s1 + $0x3d0] sm:$0xf]  ;;  %v2066_v4 = vld [vmem:[%s3065_s1 + $0x3d4] sm:$0xf0]  ;;  %v1762_v10 = vor.u32 %v2050_v0, %v1761_v63 }
  0x24   :  { %895 = vmatpush.bf16.msra.mxu3 %v1538_v24  ;;  %v186_v5 = vunpack.c.l.b16 %v44_v2  ;;  %v187_v7 = vunpack.c.h.b16 %v44_v2  ;;  %v1625_v11 = vld [vmem:[%s3065_s1 + $0x240] sm:$0xf]  ;;  %v2016_v12 = vld [vmem:[%s3065_s1 + $0x244] sm:$0xf0]  ;;  %v1826_v16 = vor.u32 %v2066_v4, %v1825_v3  ;;  %v1617_v25 = vld [vmem:[%s3065_s1 + $0x230] sm:$0xf] }
  0x25   :  { %857 = vmatpush.bf16.msra.mxu0 %v1338_v31  ;;  %v2424_v1 = vpack.c.b16 %v188_v55, %v188_v55  ;;  %v2435_v6 = vpack.c.b16 %v189_v56, %v189_v56  ;;  %v1689_v13 = vld [vmem:[%s3065_s1 + $0x2c0] sm:$0xf]  ;;  %v2032_v17 = vld [vmem:[%s3065_s1 + $0x2c4] sm:$0xf0]  ;;  %v1626_v22 = vor.u32 %v2016_v12, %v1625_v11  ;;  %v2014_v26 = vld [vmem:[%s3065_s1 + $0x234] sm:$0xf0] }
  0x26   :  { %870 = vmatpush.bf16.msra.mxu1 %v1402_v35  ;;  %v2447_v14 = vpack.c.b16 %v186_v5, %v186_v5  ;;  %v2449_v15 = vpack.c.b16 %v187_v7, %v187_v7  ;;  %v1753_v18 = vld [vmem:[%s3065_s1 + $0x340] sm:$0xf]  ;;  %v2048_v19 = vld [vmem:[%s3065_s1 + $0x344] sm:$0xf0]  ;;  %v1690_v23 = vor.u32 %v2032_v17, %v1689_v13  ;;  %v1681_v27 = vld [vmem:[%s3065_s1 + $0x2b0] sm:$0xf]  ;;  %v1618_v34 = vor.u32 %v2014_v26, %v1617_v25 }
  0x27   :  { %883 = vmatpush.bf16.msra.mxu2 %v1466_v36  ;;  %v1817_v20 = vld [vmem:[%s3065_s1 + $0x3c0] sm:$0xf]  ;;  %v2064_v21 = vld [vmem:[%s3065_s1 + $0x3c4] sm:$0xf0]  ;;  %v1754_v24 = vor.u32 %v2048_v19, %v1753_v18  ;;  %v2030_v29 = vld [vmem:[%s3065_s1 + $0x2b4] sm:$0xf0] }
  0x28   :  { %896 = vmatpush.bf16.msra.mxu3 %v1530_v39  ;;  %858 = vmatmul.bf16.vlgmr.msra.gmra.mxu0 %v2447_v14  ;;  %v1818_v28 = vor.u32 %v2064_v21, %v1817_v20  ;;  %v1745_v30 = vld [vmem:[%s3065_s1 + $0x330] sm:$0xf]  ;;  %v2046_v31 = vld [vmem:[%s3065_s1 + $0x334] sm:$0xf0]  ;;  %v1682_v35 = vor.u32 %v2030_v29, %v1681_v27  ;;  %v1609_v37 = vld [vmem:[%s3065_s1 + $0x220] sm:$0xf] }
  0x29   :  { %902 = vmatpush.bf16.msrb.mxu0 %v1650_v40  ;;  %871 = vmatmul.bf16.vlgmr.msra.gmra.mxu1 %v2449_v15  ;;  %v1809_v32 = vld [vmem:[%s3065_s1 + $0x3b0] sm:$0xf]  ;;  %v2062_v33 = vld [vmem:[%s3065_s1 + $0x3b4] sm:$0xf0]  ;;  %v1746_v36 = vor.u32 %v2046_v31, %v1745_v30  ;;  %v2012_v38 = vld [vmem:[%s3065_s1 + $0x224] sm:$0xf0] }
  0x2a   :  { %915 = vmatpush.bf16.msrb.mxu1 %v1714_v41  ;;  %884 = vmatmul.bf16.vlgmr.msra.gmra.mxu2 %v2424_v1  ;;  %v1673_v39 = vld [vmem:[%s3065_s1 + $0x2a0] sm:$0xf]  ;;  %v1810_v40 = vor.u32 %v2062_v33, %v1809_v32  ;;  %v2028_v41 = vld [vmem:[%s3065_s1 + $0x2a4] sm:$0xf0]  ;;  %v1601_v49 = vld [vmem:[%s3065_s1 + $0x210] sm:$0xf] }
  0x2b   :  { %928 = vmatpush.bf16.msrb.mxu2 %v1778_v42  ;;  %897 = vmatmul.bf16.vlgmr.msra.gmra.mxu3 %v2435_v6  ;;  %v1737_v42 = vld [vmem:[%s3065_s1 + $0x320] sm:$0xf]  ;;  %v2044_v43 = vld [vmem:[%s3065_s1 + $0x324] sm:$0xf0]  ;;  %v1674_v47 = vor.u32 %v2028_v41, %v1673_v39  ;;  %v2010_v50 = vld [vmem:[%s3065_s1 + $0x214] sm:$0xf0] }
  0x2c   :  { %941 = vmatpush.bf16.msrb.mxu3 %v1842_v46  ;;  %v1801_v44 = vld [vmem:[%s3065_s1 + $0x3a0] sm:$0xf]  ;;  %v2060_v45 = vld [vmem:[%s3065_s1 + $0x3a4] sm:$0xf0]  ;;  %v1610_v46 = vor.u32 %v2012_v38, %v1609_v37  ;;  %v1738_v48 = vor.u32 %v2044_v43, %v1737_v42  ;;  %v1665_v51 = vld [vmem:[%s3065_s1 + $0x290] sm:$0xf]  ;;  %v1602_v59 = vor.u32 %v2010_v50, %v1601_v49 }
  0x2d   :  { %903 = vmatpush.bf16.msrb.mxu0 %v1642_v53  ;;  %v1802_v52 = vor.u32 %v2060_v45, %v1801_v44  ;;  %v2026_v53 = vld [vmem:[%s3065_s1 + $0x294] sm:$0xf0]  ;;  %v1729_v54 = vld [vmem:[%s3065_s1 + $0x310] sm:$0xf]  ;;  %v2008_v60 = vld [vmem:[%s3065_s1 + $0x204] sm:$0xf0] }
  0x2e   :  { %916 = vmatpush.bf16.msrb.mxu1 %v1706_v57  ;;  %v2042_v55 = vld [vmem:[%s3065_s1 + $0x314] sm:$0xf0]  ;;  %v1793_v56 = vld [vmem:[%s3065_s1 + $0x390] sm:$0xf]  ;;  %v1657_v61 = vld [vmem:[%s3065_s1 + $0x280] sm:$0xf]  ;;  %v1666_v63 = vor.u32 %v2026_v53, %v1665_v51 }
  0x2f   :  { %929 = vmatpush.bf16.msrb.mxu2 %v1770_v58  ;;  %v2058_v57 = vld [vmem:[%s3065_s1 + $0x394] sm:$0xf0]  ;;  %v1593_v58 = vld [vmem:[%s3065_s1 + $0x200] sm:$0xf]  ;;  %v1730_v0 = vor.u32 %v2042_v55, %v1729_v54  ;;  %v2040_v3 = vld [vmem:[%s3065_s1 + $0x304] sm:$0xf0] }
  0x30   :  { %942 = vmatpush.bf16.msrb.mxu3 %v1834_v62  ;;  %v2024_v62 = vld [vmem:[%s3065_s1 + $0x284] sm:$0xf0]  ;;  %v1721_v2 = vld [vmem:[%s3065_s1 + $0x300] sm:$0xf]  ;;  %v47_v4 = vld [vmem:[%s3064_s0 + $0x18] sm:$0x77]  ;;  %v1794_v5 = vor.u32 %v2058_v57, %v1793_v56  ;;  %v1594_v13 = vor.u32 %v2008_v60, %v1593_v58 }
  0x31   :  { %904 = vmatpush.bf16.msrb.mxu0 %v1634_v8  ;;  %v1785_v7 = vld [vmem:[%s3065_s1 + $0x380] sm:$0xf]  ;;  %v2056_v8 = vld [vmem:[%s3065_s1 + $0x384] sm:$0xf0]  ;;  %v1395_v11 = vld [vmem:[%s3065_s1 + $0x78] sm:$0xf0]  ;;  %v192_v19 = vunpack.c.l.b16 %v47_v4  ;;  %v1658_v20 = vor.u32 %v2024_v62, %v1657_v61  ;;  %v1722_v21 = vor.u32 %v2040_v3, %v1721_v2  ;;  %v193_v25 = vunpack.c.h.b16 %v47_v4 }
  0x32   :  { %917 = vmatpush.bf16.msrb.mxu1 %v1698_v9  ;;  %v46_v9 = vld [vmem:[%s3064_s0 + $0x10] sm:$0x77]  ;;  %v1523_v18 = vld [vmem:[%s3065_s1 + $0x178] sm:$0xf0]  ;;  %v1786_v26 = vor.u32 %v2056_v8, %v1785_v7  ;;  %v1955_v31 = vld [vmem:[%s3065_s1 + $0x64] sm:$0xf] }
  0x33   :  { %930 = vmatpush.bf16.msrb.mxu2 %v1762_v10  ;;  %v1957_v10 = vld [vmem:[%s3065_s1 + $0x74] sm:$0xf]  ;;  %v1387_v32 = vld [vmem:[%s3065_s1 + $0x68] sm:$0xf0]  ;;  %v1971_v33 = vld [vmem:[%s3065_s1 + $0xe4] sm:$0xf] }
  0x34   :  { %943 = vmatpush.bf16.msrb.mxu3 %v1826_v16  ;;  %v1973_v12 = vld [vmem:[%s3065_s1 + $0xf4] sm:$0xf]  ;;  %v1459_v16 = vld [vmem:[%s3065_s1 + $0xf8] sm:$0xf0]  ;;  %v1398_v27 = vor.u32 %v1957_v10, %v1395_v11  ;;  %v1987_v37 = vld [vmem:[%s3065_s1 + $0x164] sm:$0xf]  ;;  %v1390_v43 = vor.u32 %v1955_v31, %v1387_v32 }
  0x35   :  { %905 = vmatpush.bf16.msrb.mxu0 %v1626_v22  ;;  %v1989_v17 = vld [vmem:[%s3065_s1 + $0x174] sm:$0xf]  ;;  %v1462_v29 = vor.u32 %v1973_v12, %v1459_v16  ;;  %v1515_v38 = vld [vmem:[%s3065_s1 + $0x168] sm:$0xf0]  ;;  %v2003_v41 = vld [vmem:[%s3065_s1 + $0x1e4] sm:$0xf] }
  0x36   :  { %918 = vmatpush.bf16.msrb.mxu1 %v1690_v23  ;;  %v2005_v22 = vld [vmem:[%s3065_s1 + $0x1f4] sm:$0xf]  ;;  %v1587_v23 = vld [vmem:[%s3065_s1 + $0x1f8] sm:$0xf0]  ;;  %v1526_v30 = vor.u32 %v1989_v17, %v1523_v18  ;;  %v1579_v42 = vld [vmem:[%s3065_s1 + $0x1e8] sm:$0xf0] }
  0x37   :  { %931 = vmatpush.bf16.msrb.mxu2 %v1754_v24  ;;  %v190_v24 = vunpack.c.l.b16 %v46_v9  ;;  %v1969_v49 = vld [vmem:[%s3065_s1 + $0xd4] sm:$0xf]  ;;  %v1582_v50 = vor.u32 %v2003_v41, %v1579_v42  ;;  %v1443_v51 = vld [vmem:[%s3065_s1 + $0xd8] sm:$0xf0]  ;;  %v1371_v60 = vld [vmem:[%s3065_s1 + $0x48] sm:$0xf0] }
  0x38   :  { %944 = vmatpush.bf16.msrb.mxu3 %v1818_v28  ;;  %v191_v28 = vunpack.c.h.b16 %v46_v9  ;;  %v1507_v53 = vld [vmem:[%s3065_s1 + $0x158] sm:$0xf0]  ;;  %v2001_v54 = vld [vmem:[%s3065_s1 + $0x1d4] sm:$0xf]  ;;  %v1446_v57 = vor.u32 %v1969_v49, %v1443_v51  ;;  %v1967_v61 = vld [vmem:[%s3065_s1 + $0xc4] sm:$0xf] }
  0x39   :  { %906 = vmatpush.bf16.msrb.mxu0 %v1618_v34  ;;  %v1590_v34 = vor.u32 %v2005_v22, %v1587_v23  ;;  %v2615_v39 = vpack.c.b16 %v190_v24, %v190_v24  ;;  %v1571_v55 = vld [vmem:[%s3065_s1 + $0x1d8] sm:$0xf0]  ;;  %v1499_v2 = vld [vmem:[%s3065_s1 + $0x148] sm:$0xf0]  ;;  %v1999_v3 = vld [vmem:[%s3065_s1 + $0x1c4] sm:$0xf] }
  0x3a   :  { %919 = vmatpush.bf16.msrb.mxu1 %v1682_v35  ;;  %v2604_v35 = vpack.c.b16 %v192_v19, %v192_v19  ;;  %v2625_v44 = vpack.c.b16 %v191_v28, %v191_v28  ;;  %v1574_v62 = vor.u32 %v2001_v54, %v1571_v55  ;;  %v1563_v4 = vld [vmem:[%s3065_s1 + $0x1c8] sm:$0xf0]  ;;  %v1949_v9 = vld [vmem:[%s3065_s1 + $0x34] sm:$0xf]  ;;  %v1363_v10 = vld [vmem:[%s3065_s1 + $0x38] sm:$0xf0] }
  0x3b   :  { %932 = vmatpush.bf16.msrb.mxu2 %v1746_v36  ;;  %v1451_v36 = vld [vmem:[%s3065_s1 + $0xe8] sm:$0xf0]  ;;  %v1965_v11 = vld [vmem:[%s3065_s1 + $0xb4] sm:$0xf]  ;;  %v1566_v12 = vor.u32 %v1999_v3, %v1563_v4  ;;  %v1491_v17 = vld [vmem:[%s3065_s1 + $0x138] sm:$0xf0] }
  0x3c   :  { %945 = vmatpush.bf16.msrb.mxu3 %v1810_v40  ;;  %v2617_v40 = vpack.c.b16 %v193_v25, %v193_v25  ;;  %v1454_v45 = vor.u32 %v1971_v33, %v1451_v36  ;;  %v1981_v16 = vld [vmem:[%s3065_s1 + $0x134] sm:$0xf]  ;;  %v1555_v19 = vld [vmem:[%s3065_s1 + $0x1b8] sm:$0xf0]  ;;  %v1947_v23 = vld [vmem:[%s3065_s1 + $0x24] sm:$0xf] }
  0x3d   :  { %907 = vmatpush.bf16.msrb.mxu0 %v1610_v46  ;;  %v1518_v46 = vor.u32 %v1987_v37, %v1515_v38  ;;  %v1997_v18 = vld [vmem:[%s3065_s1 + $0x1b4] sm:$0xf]  ;;  %v1494_v22 = vor.u32 %v1981_v16, %v1491_v17  ;;  %v1355_v24 = vld [vmem:[%s3065_s1 + $0x28] sm:$0xf0]  ;;  %v1963_v25 = vld [vmem:[%s3065_s1 + $0xa4] sm:$0xf] }
  0x3e   :  { %920 = vmatpush.bf16.msrb.mxu1 %v1674_v47  ;;  %v1953_v47 = vld [vmem:[%s3065_s1 + $0x54] sm:$0xf]  ;;  %v1979_v28 = vld [vmem:[%s3065_s1 + $0x124] sm:$0xf]  ;;  %v1547_v31 = vld [vmem:[%s3065_s1 + $0x1a8] sm:$0xf0]  ;;  %v1358_v32 = vor.u32 %v1947_v23, %v1355_v24 }
  0x3f   :  { %933 = vmatpush.bf16.msrb.mxu2 %v1738_v48  ;;  %v1379_v48 = vld [vmem:[%s3065_s1 + $0x58] sm:$0xf0]  ;;  %v1945_v36 = vld [vmem:[%s3065_s1 + $0x14] sm:$0xf]  ;;  %v1943_v49 = vld [vmem:[%s3065_s1 + $0x4] sm:$0xf] }
  0x40   :  { %946 = vmatpush.bf16.msrb.mxu3 %v1802_v52  ;;  %v1985_v52 = vld [vmem:[%s3065_s1 + $0x154] sm:$0xf]  ;;  %v1382_v56 = vor.u32 %v1953_v47, %v1379_v48  ;;  %v1347_v37 = vld [vmem:[%s3065_s1 + $0x18] sm:$0xf0]  ;;  %v1403_v54 = vld [vmem:[%s3065_s1 + $0x88] sm:$0xf0] }
  0x41   :  { %908 = vmatpush.bf16.msrb.mxu0 %v1602_v59  ;;  %v1510_v58 = vor.u32 %v1985_v52, %v1507_v53  ;;  %v1951_v59 = vld [vmem:[%s3065_s1 + $0x44] sm:$0xf]  ;;  %v1961_v38 = vld [vmem:[%s3065_s1 + $0x94] sm:$0xf]  ;;  %v1411_v42 = vld [vmem:[%s3065_s1 + $0x98] sm:$0xf0]  ;;  %v1350_v48 = vor.u32 %v1945_v36, %v1347_v37 }
  0x42   :  { %921 = vmatpush.bf16.msrb.mxu1 %v1666_v63  ;;  %v1435_v63 = vld [vmem:[%s3065_s1 + $0xc8] sm:$0xf0]  ;;  %v1539_v47 = vld [vmem:[%s3065_s1 + $0x198] sm:$0xf0]  ;;  %v1414_v51 = vor.u32 %v1961_v38, %v1411_v42  ;;  %v1959_v53 = vld [vmem:[%s3065_s1 + $0x84] sm:$0xf] }
  0x43   :  { %934 = vmatpush.bf16.msrb.mxu2 %v1730_v0  ;;  %v1983_v0 = vld [vmem:[%s3065_s1 + $0x144] sm:$0xf]  ;;  %v1438_v7 = vor.u32 %v1967_v61, %v1435_v63  ;;  %v1651_v61 = vld [vmem:[%s3065_s1 + $0x278] sm:$0xf0]  ;;  %v1406_v4 = vor.u32 %v1959_v53, %v1403_v54  ;;  %v1643_v16 = vld [vmem:[%s3065_s1 + $0x268] sm:$0xf0] }
  0x44   :  { %947 = vmatpush.bf16.msrb.mxu3 %v1794_v5  ;;  %v1374_v5 = vor.u32 %v1951_v59, %v1371_v60  ;;  %v1502_v8 = vor.u32 %v1983_v0, %v1499_v2  ;;  %v1975_v55 = vld [vmem:[%s3065_s1 + $0x104] sm:$0xf]  ;;  %v1531_v59 = vld [vmem:[%s3065_s1 + $0x188] sm:$0xf0]  ;;  %v2021_v60 = vld [vmem:[%s3065_s1 + $0x274] sm:$0xf] }
  0x45   :  { %909 = vmatpush.bf16.msrb.mxu0 %v1594_v13  ;;  %v1427_v13 = vld [vmem:[%s3065_s1 + $0xb8] sm:$0xf0]  ;;  %v2053_v2 = vld [vmem:[%s3065_s1 + $0x374] sm:$0xf]  ;;  %v2035_v17 = vld [vmem:[%s3065_s1 + $0x2e4] sm:$0xf] }
  0x46   :  { %922 = vmatpush.bf16.msrb.mxu1 %v1658_v20  ;;  %v1366_v20 = vor.u32 %v1949_v9, %v1363_v10  ;;  %v1715_v0 = vld [vmem:[%s3065_s1 + $0x2f8] sm:$0xf0]  ;;  %v1654_v10 = vor.u32 %v2021_v60, %v1651_v61  ;;  %v1835_v23 = vld [vmem:[%s3065_s1 + $0x3e8] sm:$0xf0]  ;;  %v2029_v53 = vld [vmem:[%s3065_s1 + $0x2b4] sm:$0xf] }
  0x47   :  { %935 = vmatpush.bf16.msrb.mxu2 %v1722_v21  ;;  %v1430_v21 = vor.u32 %v1965_v11, %v1427_v13  ;;  %v1779_v3 = vld [vmem:[%s3065_s1 + $0x378] sm:$0xf0]  ;;  %v2019_v13 = vld [vmem:[%s3065_s1 + $0x264] sm:$0xf]  ;;  %v1627_v42 = vld [vmem:[%s3065_s1 + $0x248] sm:$0xf0] }
  0x48   :  { %948 = vmatpush.bf16.msrb.mxu3 %v1786_v26  ;;  %910 = vmatmul.bf16.vlgmr.msrb.gmra.mxu0 %v2615_v39  ;;  %v1558_v26 = vor.u32 %v1997_v18, %v1555_v19  ;;  %v1707_v19 = vld [vmem:[%s3065_s1 + $0x2e8] sm:$0xf0]  ;;  %v1646_v24 = vor.u32 %v2019_v13, %v1643_v16  ;;  %v2009_v13 = vld [vmem:[%s3065_s1 + $0x214] sm:$0xf]  ;;  %v1603_v16 = vld [vmem:[%s3065_s1 + $0x218] sm:$0xf0] }
  0x49   :  { %954 = vmatpush.bf16.msra.mxu0 %v1398_v27  ;;  %923 = vmatmul.bf16.vlgmr.msrb.gmra.mxu1 %v2625_v44  ;;  %v1419_v27 = vld [vmem:[%s3065_s1 + $0xa8] sm:$0xf0]  ;;  %s3002_s0 = sld [smem:[#allocation2]]  ;;  %vm1312_vm3 = vcmask 521216  }
  0x4a   :  { %967 = vmatpush.bf16.msra.mxu1 %v1462_v29  ;;  %936 = vmatmul.bf16.vlgmr.msrb.gmra.mxu2 %v2604_v35  ;;  %v1483_v29 = vld [vmem:[%s3065_s1 + $0x128] sm:$0xf0]  ;;  %v1422_v33 = vor.u32 %v1963_v25, %v1419_v27  ;;  %v1710_v25 = vor.u32 %v2035_v17, %v1707_v19  ;;  %v2017_v27 = vld [vmem:[%s3065_s1 + $0x254] sm:$0xf]  ;;  %v1667_v19 = vld [vmem:[%s3065_s1 + $0x298] sm:$0xf0] }
  0x4b   :  { %980 = vmatpush.bf16.msra.mxu2 %v1526_v30  ;;  %949 = vmatmul.bf16.vlgmr.msrb.gmra.mxu3 %v2617_v40  ;;  %v1995_v30 = vld [vmem:[%s3065_s1 + $0x1a4] sm:$0xf]  ;;  %v2025_v17 = vld [vmem:[%s3065_s1 + $0x294] sm:$0xf]  ;;  %s1334_s10 = sld [smem:[#allocation2 + $0x1]] }
  0x4c   :  { %993 = vmatpush.bf16.msra.mxu3 %v1590_v34  ;;  %v1486_v34 = vor.u32 %v1979_v28, %v1483_v29  ;;  %v1550_v41 = vor.u32 %v1995_v30, %v1547_v31  ;;  %v1635_v28 = vld [vmem:[%s3065_s1 + $0x258] sm:$0xf0]  ;;  %v2033_v29 = vld [vmem:[%s3065_s1 + $0x2d4] sm:$0xf] }
  0x4d   :  { %955 = vmatpush.bf16.msra.mxu0 %v1390_v43  ;;  %v1977_v43 = vld [vmem:[%s3065_s1 + $0x114] sm:$0xf]  ;;  %v1699_v31 = vld [vmem:[%s3065_s1 + $0x2d8] sm:$0xf0]  ;;  %v1638_v36 = vor.u32 %v2017_v27, %v1635_v28  ;;  %v2007_v27 = vld [vmem:[%s3065_s1 + $0x204] sm:$0xf] }
  0x4e   :  { %968 = vmatpush.bf16.msra.mxu1 %v1454_v45  ;;  %v1475_v45 = vld [vmem:[%s3065_s1 + $0x118] sm:$0xf0]  ;;  %v1702_v37 = vor.u32 %v2033_v29, %v1699_v31  ;;  %v1595_v28 = vld [vmem:[%s3065_s1 + $0x208] sm:$0xf0]  ;;  %v2023_v29 = vld [vmem:[%s3065_s1 + $0x284] sm:$0xf] }
  0x4f   :  { %981 = vmatpush.bf16.msra.mxu2 %v1518_v46  ;;  %v1993_v46 = vld [vmem:[%s3065_s1 + $0x194] sm:$0xf]  ;;  %v1478_v52 = vor.u32 %v1977_v43, %v1475_v45  ;;  %v2047_v43 = vld [vmem:[%s3065_s1 + $0x344] sm:$0xf]  ;;  %v1755_v45 = vld [vmem:[%s3065_s1 + $0x348] sm:$0xf0] }
  0x50   :  { %994 = vmatpush.bf16.msra.mxu3 %v1582_v50  ;;  %v1339_v50 = vld [vmem:[%s3065_s1 + $0x8] sm:$0xf0] }
  0x51   :  { %956 = vmatpush.bf16.msra.mxu0 %v1382_v56  ;;  %v1542_v56 = vor.u32 %v1993_v46, %v1539_v47  ;;  %v1342_v63 = vor.u32 %v1943_v49, %v1339_v50  ;;  %v2063_v46 = vld [vmem:[%s3065_s1 + $0x3c4] sm:$0xf]  ;;  %v1819_v47 = vld [vmem:[%s3065_s1 + $0x3c8] sm:$0xf0]  ;;  %v1758_v50 = vor.u32 %v2047_v43, %v1755_v45 }
  0x52   :  { %969 = vmatpush.bf16.msra.mxu1 %v1446_v57  ;;  %v1467_v57 = vld [vmem:[%s3065_s1 + $0x108] sm:$0xf0]  ;;  %v1822_v54 = vor.u32 %v2063_v46, %v1819_v47  ;;  %v176_v46 = vld [vmem:[%s3066_s2] sm:$0x3] }
  0x53   :  { %982 = vmatpush.bf16.msra.mxu2 %v1510_v58  ;;  %v1991_v58 = vld [vmem:[%s3065_s1 + $0x184] sm:$0xf]  ;;  %v1659_v31 = vld [vmem:[%s3065_s1 + $0x288] sm:$0xf0] }
  0x54   :  { %995 = vmatpush.bf16.msra.mxu3 %v1574_v62  ;;  %v2037_v62 = vld [vmem:[%s3065_s1 + $0x2f4] sm:$0xf]  ;;  %v1534_v9 = vor.u32 %v1991_v58, %v1531_v59  ;;  %v1811_v59 = vld [vmem:[%s3065_s1 + $0x3b8] sm:$0xf0]  ;;  %v2072_v45 = vld [vmem:[%s3067_s3 + $0x8] sm:$0xff] }
  0x55   :  { %957 = vmatpush.bf16.msra.mxu0 %v1374_v5  ;;  %v1470_v5 = vor.u32 %v1975_v55, %v1467_v57  ;;  %v1718_v11 = vor.u32 %v2037_v62, %v1715_v0  ;;  %v1683_v55 = vld [vmem:[%s3065_s1 + $0x2b8] sm:$0xf0]  ;;  %v2061_v58 = vld [vmem:[%s3065_s1 + $0x3b4] sm:$0xf]  ;;  %v1611_v0 = vld [vmem:[%s3065_s1 + $0x228] sm:$0xf0] }
  0x56   :  { %970 = vmatpush.bf16.msra.mxu1 %v1438_v7  ;;  %v2069_v7 = vld [vmem:[%s3065_s1 + $0x3f4] sm:$0xf]  ;;  %v1747_v57 = vld [vmem:[%s3065_s1 + $0x338] sm:$0xf0]  ;;  %v1686_v61 = vor.u32 %v2029_v53, %v1683_v55 }
  0x57   :  { %983 = vmatpush.bf16.msra.mxu2 %v1502_v8  ;;  %v1843_v8 = vld [vmem:[%s3065_s1 + $0x3f8] sm:$0xf0] }
  0x58   :  { %996 = vmatpush.bf16.msra.mxu3 %v1566_v12  ;;  %v1782_v12 = vor.u32 %v2053_v2, %v1779_v3  ;;  %v1846_v18 = vor.u32 %v2069_v7, %v1843_v8  ;;  %v2027_v2 = vld [vmem:[%s3065_s1 + $0x2a4] sm:$0xf]  ;;  %v1814_v3 = vor.u32 %v2061_v58, %v1811_v59  ;;  %v1739_v7 = vld [vmem:[%s3065_s1 + $0x328] sm:$0xf0] }
  0x59   :  { %958 = vmatpush.bf16.msra.mxu0 %v1366_v20  ;;  %v2051_v20 = vld [vmem:[%s3065_s1 + $0x364] sm:$0xf] }
  0x5a   :  { %971 = vmatpush.bf16.msra.mxu1 %v1430_v21  ;;  %v1771_v21 = vld [vmem:[%s3065_s1 + $0x368] sm:$0xf0]  ;;  %v2059_v8 = vld [vmem:[%s3065_s1 + $0x3a4] sm:$0xf] }
  0x5b   :  { %984 = vmatpush.bf16.msra.mxu2 %v1494_v22  ;;  %v2067_v22 = vld [vmem:[%s3065_s1 + $0x3e4] sm:$0xf] }
  0x5c   :  { %997 = vmatpush.bf16.msra.mxu3 %v1558_v26  ;;  %v1774_v26 = vor.u32 %v2051_v20, %v1771_v21  ;;  %v1838_v30 = vor.u32 %v2067_v22, %v1835_v23  ;;  %v2041_v20 = vld [vmem:[%s3065_s1 + $0x314] sm:$0xf]  ;;  %v1731_v21 = vld [vmem:[%s3065_s1 + $0x318] sm:$0xf0] }
  0x5d   :  { %959 = vmatpush.bf16.msra.mxu0 %v1358_v32  ;;  %v2049_v32 = vld [vmem:[%s3065_s1 + $0x354] sm:$0xf]  ;;  %v1795_v23 = vld [vmem:[%s3065_s1 + $0x398] sm:$0xf0] }
  0x5e   :  { %972 = vmatpush.bf16.msra.mxu1 %v1422_v33  ;;  %v1763_v33 = vld [vmem:[%s3065_s1 + $0x358] sm:$0xf0]  ;;  %v2057_v22 = vld [vmem:[%s3065_s1 + $0x394] sm:$0xf] }
  0x5f   :  { %985 = vmatpush.bf16.msra.mxu2 %v1486_v34  ;;  %v2065_v34 = vld [vmem:[%s3065_s1 + $0x3d4] sm:$0xf]  ;;  %v1766_v38 = vor.u32 %v2049_v32, %v1763_v33  ;;  %v2039_v32 = vld [vmem:[%s3065_s1 + $0x304] sm:$0xf]  ;;  %v1723_v33 = vld [vmem:[%s3065_s1 + $0x308] sm:$0xf0] }
  0x60   :  { %998 = vmatpush.bf16.msra.mxu3 %v1550_v41  ;;  %v2015_v41 = vld [vmem:[%s3065_s1 + $0x244] sm:$0xf] }
  0x61   :  { %960 = vmatpush.bf16.msra.mxu0 %v1350_v48  ;;  %v1630_v48 = vor.u32 %v2015_v41, %v1627_v42  ;;  %v2078_v42 = vld [vmem:[%s3067_s3 + $0x38] sm:$0xff] }
  0x62   :  { %973 = vmatpush.bf16.msra.mxu1 %v1414_v51  ;;  %v2013_v51 = vld [vmem:[%s3065_s1 + $0x234] sm:$0xf] }
  0x63   :  { %986 = vmatpush.bf16.msra.mxu2 %v1478_v52  ;;  %v1619_v52 = vld [vmem:[%s3065_s1 + $0x238] sm:$0xf0] }
  0x64   :  { %999 = vmatpush.bf16.msra.mxu3 %v1542_v56  ;;  %v2045_v56 = vld [vmem:[%s3065_s1 + $0x334] sm:$0xf]  ;;  %v1622_v60 = vor.u32 %v2013_v51, %v1619_v52 }
  0x65   :  { %961 = vmatpush.bf16.msra.mxu0 %v1342_v63  ;;  %v1750_v62 = vor.u32 %v2045_v56, %v1747_v57  ;;  %v2011_v63 = vld [vmem:[%s3065_s1 + $0x224] sm:$0xf] }
  0x66   :  { %974 = vmatpush.bf16.msra.mxu1 %v1406_v4  ;;  %v1675_v4 = vld [vmem:[%s3065_s1 + $0x2a8] sm:$0xf0] }
  0x67   :  { %987 = vmatpush.bf16.msra.mxu2 %v1470_v5  ;;  %v2043_v5 = vld [vmem:[%s3065_s1 + $0x324] sm:$0xf] }
  0x68   :  { %1000 = vmatpush.bf16.msra.mxu3 %v1534_v9  ;;  %962 = vmatmul.bf16.vlgmr.msra.gmra.mxu0 %v2447_v14  ;;  %v1803_v9 = vld [vmem:[%s3065_s1 + $0x3a8] sm:$0xf0] }
  0x69   :  { %1006 = vmatpush.bf16.msrb.mxu0 %v1654_v10  ;;  %975 = vmatmul.bf16.vlgmr.msra.gmra.mxu1 %v2449_v15  ;;  %v1691_v15 = vld [vmem:[%s3065_s1 + $0x2c8] sm:$0xf0]  ;;  %v1614_v10 = vor.u32 %v2011_v63, %v1611_v0 }
  0x6a   :  { %1019 = vmatpush.bf16.msrb.mxu1 %v1718_v11  ;;  %988 = vmatmul.bf16.vlgmr.msra.gmra.mxu2 %v2424_v1  ;;  %v1827_v1 = vld [vmem:[%s3065_s1 + $0x3d8] sm:$0xf0]  ;;  %v1678_v11 = vor.u32 %v2027_v2, %v1675_v4 }
  0x6b   :  { %1032 = vmatpush.bf16.msrb.mxu2 %v1782_v12  ;;  %1001 = vmatmul.bf16.vlgmr.msra.gmra.mxu3 %v2435_v6  ;;  %v2031_v6 = vld [vmem:[%s3065_s1 + $0x2c4] sm:$0xf]  ;;  %v1830_v14 = vor.u32 %v2065_v34, %v1827_v1  ;;  %v1742_v12 = vor.u32 %v2043_v5, %v1739_v7  ;;  %v1787_v1 = vld [vmem:[%s3065_s1 + $0x388] sm:$0xf0]  ;;  %v2086_v2 = vld [vmem:[%s3067_s3 + $0x78] sm:$0xff] }
  0x6c   :  { %1045 = vmatpush.bf16.msrb.mxu3 %v1846_v18  ;;  %v1694_v49 = vor.u32 %v2031_v6, %v1691_v15  ;;  %v1806_v18 = vor.u32 %v2059_v8, %v1803_v9  ;;  %v2055_v34 = vld [vmem:[%s3065_s1 + $0x384] sm:$0xf]  ;;  %v2077_v6 = vld [vmem:[%s3067_s3 + $0x30] sm:$0xff] }
  0x6d   :  { %1007 = vmatpush.bf16.msrb.mxu0 %v1646_v24  ;;  %v1606_v24 = vor.u32 %v2009_v13, %v1603_v16  ;;  %v1790_v41 = vor.u32 %v2055_v34, %v1787_v1  ;;  %v2085_v7 = vld [vmem:[%s3067_s3 + $0x70] sm:$0xff] }
  0x6e   :  { %1020 = vmatpush.bf16.msrb.mxu1 %v1710_v25  ;;  %v1670_v25 = vor.u32 %v2025_v17, %v1667_v19  ;;  %v2083_v17 = vld [vmem:[%s3067_s3 + $0x60] sm:$0xff]  ;;  %v2081_v19 = vld [vmem:[%s3067_s3 + $0x50] sm:$0xff] }
  0x6f   :  { %1033 = vmatpush.bf16.msrb.mxu2 %v1774_v26  ;;  %v1734_v26 = vor.u32 %v2041_v20, %v1731_v21 }
  0x70   :  { %1046 = vmatpush.bf16.msrb.mxu3 %v1838_v30  ;;  %v1798_v30 = vor.u32 %v2057_v22, %v1795_v23  ;;  %v2080_v23 = vld [vmem:[%s3067_s3 + $0x48] sm:$0xff] }
  0x71   :  { %1008 = vmatpush.bf16.msrb.mxu0 %v1638_v36  ;;  %v1598_v36 = vor.u32 %v2007_v27, %v1595_v28  ;;  %v2079_v27 = vld [vmem:[%s3067_s3 + $0x40] sm:$0xff]  ;;  %v179_v28 = vperm.slane %v176_v46, 1 }
  0x72   :  { %1021 = vmatpush.bf16.msrb.mxu1 %v1702_v37  ;;  %v1662_v37 = vor.u32 %v2023_v29, %v1659_v31 }
  0x73   :  { %1034 = vmatpush.bf16.msrb.mxu2 %v1766_v38  ;;  %v1726_v38 = vor.u32 %v2039_v32, %v1723_v33 }
  0x74   :  { %1047 = vmatpush.bf16.msrb.mxu3 %v1830_v14  ;;  %v2076_v14 = vld [vmem:[%s3067_s3 + $0x28] sm:$0xff] }
  0x75   :  { %1009 = vmatpush.bf16.msrb.mxu0 %v1630_v48  ;;  %v178_v48 = vperm.slane %v176_v46, 0  ;;  %v2094_v46 = vld [vmem:[%s3069_s5 + $0x38] sm:$0xff] }
  0x76   :  { %1022 = vmatpush.bf16.msrb.mxu1 %v1694_v49  ;;  %v2071_v49 = vld [vmem:[%s3067_s3] sm:$0xff] }
  0x77   :  { %1035 = vmatpush.bf16.msrb.mxu2 %v1758_v50 }
  0x78   :  { %1048 = vmatpush.bf16.msrb.mxu3 %v1822_v54 }
  0x79   :  { %1010 = vmatpush.bf16.msrb.mxu0 %v1622_v60 }
  0x7a   :  { %1023 = vmatpush.bf16.msrb.mxu1 %v1686_v61 }
  0x7b   :  { %1036 = vmatpush.bf16.msrb.mxu2 %v1750_v62 }
  0x7c   :  { %1049 = vmatpush.bf16.msrb.mxu3 %v1814_v3  ;;  %v1060_v3 = vstv %s3002_s0 }
  0x7d   :  { %1011 = vmatpush.bf16.msrb.mxu0 %v1614_v10 }
  0x7e   :  { %1024 = vmatpush.bf16.msrb.mxu1 %v1678_v11  ;;  %v2084_v11 = vld [vmem:[%s3067_s3 + $0x68] sm:$0xff] }
  0x7f   :  { %1037 = vmatpush.bf16.msrb.mxu2 %v1742_v12 }
  0x80   :  { %1050 = vmatpush.bf16.msrb.mxu3 %v1806_v18  ;;  %v2082_v18 = vld [vmem:[%s3067_s3 + $0x58] sm:$0xff] }
  0x81   :  { %1012 = vmatpush.bf16.msrb.mxu0 %v1606_v24 }
  0x82   :  { %1025 = vmatpush.bf16.msrb.mxu1 %v1670_v25 }
  0x83   :  { %1038 = vmatpush.bf16.msrb.mxu2 %v1734_v26 }
  0x84   :  { %1051 = vmatpush.bf16.msrb.mxu3 %v1798_v30 }
  0x85   :  { %1013 = vmatpush.bf16.msrb.mxu0 %v1598_v36 }
  0x86   :  { %1026 = vmatpush.bf16.msrb.mxu1 %v1662_v37 }
  0x87   :  { %1039 = vmatpush.bf16.msrb.mxu2 %v1726_v38 }
  0x88   :  { %1052 = vmatpush.bf16.msrb.mxu3 %v1790_v41  ;;  %1014 = vmatmul.bf16.vlgmr.msrb.gmra.mxu0 %v2615_v39  ;;  %v2075_v39 = vld [vmem:[%s3067_s3 + $0x20] sm:$0xff] }
  0x89   :  { %1199 = vmatpush.bf16.msra.mxu0 %v2078_v42  ;;  %1027 = vmatmul.bf16.vlgmr.msrb.gmra.mxu1 %v2625_v44 }
  0x8a   :  { %1040 = vmatmul.bf16.vlgmr.msrb.gmra.mxu2 %v2604_v35  ;;  %v2074_v35 = vld [vmem:[%s3067_s3 + $0x18] sm:$0xff]  ;;  %1212 = vmatpush.bf16.msra.mxu1 %v2086_v2  ;;  %v2097_v2 = vld [vmem:[%s3070_s6] ss:$0 sm:$0xff] }
  0x8b   :  { %1053 = vmatmul.bf16.vlgmr.msrb.gmra.mxu3 %v2617_v40  ;;  %v2073_v40 = vld [vmem:[%s3067_s3 + $0x10] sm:$0xff]  ;;  %1298 = vmatpush.bf16.msra.mxu2 %v2094_v46 }
  0x8d   :  { %1200 = vmatpush.bf16.msra.mxu0 %v2077_v6 }
  0x8e   :  { %1213 = vmatpush.bf16.msra.mxu1 %v2085_v7 }
  0x91   :  { %1201 = vmatpush.bf16.msra.mxu0 %v2076_v14 }
  0x92   :  { %1214 = vmatpush.bf16.msra.mxu1 %v2084_v11 }
  0x95   :  { %1202 = vmatpush.bf16.msra.mxu0 %v2075_v39 }
  0x96   :  { %1215 = vmatpush.bf16.msra.mxu1 %v2083_v17 }
  0x99   :  { %1203 = vmatpush.bf16.msra.mxu0 %v2074_v35 }
  0x9a   :  { %1216 = vmatpush.bf16.msra.mxu1 %v2082_v18 }
  0x9d   :  { %1204 = vmatpush.bf16.msra.mxu0 %v2073_v40 }
  0x9e   :  { %1217 = vmatpush.bf16.msra.mxu1 %v2081_v19 }
  0xa1   :  { %1205 = vmatpush.bf16.msra.mxu0 %v2072_v45 }
  0xa2   :  { %1218 = vmatpush.bf16.msra.mxu1 %v2080_v23 }
  0xa5   :  { %v859_v44 = vpop.f32.mrf.mxu0  ;;  %1206 = vmatpush.bf16.msra.mxu0 %v2071_v49  ;;  %v2091_v49 = vld [vmem:[%s3069_s5 + $0x20] sm:$0xff] }
  0xa6   :  { %v872_v15 = vpop.f32.mrf.mxu1  ;;  %v860_v52 = vadd.f32 %v859_v44, %v178_v48  ;;  %1219 = vmatpush.bf16.msra.mxu1 %v2079_v27  ;;  %v2092_v48 = vld [vmem:[%s3069_s5 + $0x28] sm:$0xff] }
  0xa8   :  { %v873_v55 = vadd.f32 %v872_v15, %v860_v52 }
  0xad   :  { %v885_v43 = vpop.f32.mrf.mxu2  ;;  %v861_v50 = vpop.f32.mrf.mxu0 }
  0xae   :  { %v898_v47 = vpop.f32.mrf.mxu3  ;;  %v874_v51 = vpop.f32.mrf.mxu1  ;;  %v886_v56 = vadd.f32 %v885_v43, %v873_v55  ;;  %v2090_v50 = vld [vmem:[%s3069_s5 + $0x18] sm:$0xff]  ;;  %v2087_v55 = vld [vmem:[%s3069_s5] sm:$0xff] }
  0xaf   :  { %v2089_v51 = vld [vmem:[%s3069_s5 + $0x10] sm:$0xff] }
  0xb0   :  { %v899_v57 = vadd.f32 %v898_v47, %v886_v56  ;;  %v2093_v47 = vld [vmem:[%s3069_s5 + $0x30] sm:$0xff]  ;;  %v2096_v56 = vld [vmem:[%s3068_s4] ss:$0 sm:$0xff] }
  0xb1   :  { %1299 = vmatpush.bf16.msra.mxu2 %v2093_v47 }
  0xb5   :  { %v887_v53 = vpop.f32.mrf.mxu2  ;;  %1300 = vmatpush.bf16.msra.mxu2 %v2092_v48 }
  0xb6   :  { %v900_v54 = vpop.f32.mrf.mxu3 }
  0xb7   :  { %v2088_v54 = vld [vmem:[%s3069_s5 + $0x8] sm:$0xff] }
  0xb9   :  { %1301 = vmatpush.bf16.msra.mxu2 %v2091_v49 }
  0xbd   :  { %1302 = vmatpush.bf16.msra.mxu2 %v2090_v50 }
  0xc1   :  { %1303 = vmatpush.bf16.msra.mxu2 %v2089_v51 }
  0xc5   :  { %v911_v58 = vpop.f32.mrf.mxu0  ;;  %1304 = vmatpush.bf16.msra.mxu2 %v2088_v54 }
  0xc6   :  { %v912_v59 = vadd.f32 %v911_v58, %v899_v57  ;;  %v924_v60 = vpop.f32.mrf.mxu1 }
  0xc8   :  { %v925_v61 = vadd.f32 %v924_v60, %v912_v59  ;;  %v1226_v59 = vstv %s1334_s10 }
  0xc9   :  { %1305 = vmatpush.bf16.msra.mxu2 %v2087_v55 }
  0xcd   :  { %v937_v62 = vpop.f32.mrf.mxu2  ;;  %v913_v5 = vpop.f32.mrf.mxu0 }
  0xce   :  { %v938_v63 = vadd.f32 %v937_v62, %v925_v61  ;;  %v950_v0 = vpop.f32.mrf.mxu3  ;;  %v926_v8 = vpop.f32.mrf.mxu1 }
  0xd0   :  { %v951_v4 = vadd.f32 %v950_v0, %v938_v63 }
  0xd2   :  { %vm1058_vm0 = vcmp.ge.f32.partialorder %v951_v4, 0.0  ;;  %v1061_v9 = vmul.f32 %v1060_v3, %v951_v4 }
  0xd4   :  { %v1063_v10 = vsel %vm1058_vm0, %v951_v4, %v1061_v9 }
  0xd5   :  { %v1065_v12 = vpack.c.bf16 %v1063_v10, %v1063_v10  ;;  %v939_v13 = vpop.f32.mrf.mxu2 }
  0xd6   :  { %v952_v16 = vpop.f32.mrf.mxu3 }
  0xd7   :  { %1207 = vmatmul.bf16.vlgmr.msra.gmra.mxu0 %v1065_v12 }
  0xe5   :  { %v963_v20 = vpop.f32.mrf.mxu0 }
  0xe6   :  { %v976_v21 = vpop.f32.mrf.mxu1  ;;  %v964_v31 = vadd.f32 %v963_v20, %v179_v28 }
  0xe8   :  { %v977_v32 = vadd.f32 %v976_v21, %v964_v31 }
  0xed   :  { %v989_v22 = vpop.f32.mrf.mxu2  ;;  %v965_v25 = vpop.f32.mrf.mxu0 }
  0xee   :  { %v1002_v24 = vpop.f32.mrf.mxu3  ;;  %v978_v26 = vpop.f32.mrf.mxu1  ;;  %v990_v33 = vadd.f32 %v989_v22, %v977_v32 }
  0xf0   :  { %v1003_v34 = vadd.f32 %v1002_v24, %v990_v33 }
  0xf5   :  { %v991_v29 = vpop.f32.mrf.mxu2 }
  0xf6   :  { %v1004_v30 = vpop.f32.mrf.mxu3 }
 0x105   :  { %v1015_v1 = vpop.f32.mrf.mxu0 }
 0x106   :  { %v1028_v36 = vpop.f32.mrf.mxu1  ;;  %v1016_v37 = vadd.f32 %v1015_v1, %v1003_v34 }
 0x108   :  { %v1029_v38 = vadd.f32 %v1028_v36, %v1016_v37 }
 0x10d   :  { %v1041_v41 = vpop.f32.mrf.mxu2  ;;  %v1017_v14 = vpop.f32.mrf.mxu0 }
 0x10e   :  { %v1042_v42 = vadd.f32 %v1041_v41, %v1029_v38  ;;  %v1054_v6 = vpop.f32.mrf.mxu3  ;;  %v1030_v39 = vpop.f32.mrf.mxu1 }
 0x110   :  { %v1055_v35 = vadd.f32 %v1054_v6, %v1042_v42 }
 0x112   :  { %vm1059_vm1 = vcmp.ge.f32.partialorder %v1055_v35, 0.0  ;;  %v1062_v40 = vmul.f32 %v1060_v3, %v1055_v35 }
 0x114   :  { %v1064_v44 = vsel %vm1059_vm1, %v1055_v35, %v1062_v40 }
 0x115   :  { %v1066_v15 = vpack.c.bf16 %v1064_v44, %v1064_v44  ;;  %v1043_v43 = vpop.f32.mrf.mxu2 }
 0x116   :  { %v1056_v45 = vpop.f32.mrf.mxu3 }
 0x117   :  { %1220 = vmatmul.bf16.vlgmr.msra.gmra.mxu1 %v1066_v15 }
 0x154   :  { %v1208_v52 = vpop.f32.mrf.mxu0 }
 0x155   :  { %v1209_v57 = vadd.f32 %v2096_v56, %v1208_v52 }
 0x15c   :  { %v1210_v53 = vpop.f32.mrf.mxu0 }
 0x194   :  { %v1221_v58 = vpop.f32.mrf.mxu1 }
 0x195   :  { %v1222_v60 = vadd.f32 %v1221_v58, %v1209_v57 }
 0x197   :  { %vm1225_vm2 = vcmp.ge.f32.partialorder %v1222_v60, 0.0  ;;  %v1227_v61 = vmul.f32 %v1226_v59, %v1222_v60 }
 0x199   :  { %v1228_v62 = vsel %vm1225_vm2, %v1222_v60, %v1227_v61 }
 0x19a   :  { %v1229_v63 = vpack.c.bf16 %v1228_v62, %v1228_v62 }
 0x19c   :  { %v1223_v0 = vpop.f32.mrf.mxu1  ;;  %1306 = vmatmul.bf16.vlgmr.msra.gmra.mxu2 %v1229_v63 }
 0x21f   :  { %v1307_v3 = vpop.f32.mrf.mxu2 }
 0x220   :  { %v1308_v4 = vadd.f32 %v2097_v2, %v1307_v3 }
 0x222   :  { %v1311_v5 = vmul.f32 %v1308_v4, %v1308_v4 }
 0x224   :  { %v1313_v7 = vsel %vm1312_vm3, %v1311_v5, 0.0 }
 0x225   :  { %1314 = vadd.xlane.f32.xlu0 %v1313_v7 }
 0x227   :  { %v1309_v8 = vpop.f32.mrf.mxu2 }
 0x298   :  { %v1315_v9 = vpop.xlane.xlu0 %1314 }
 0x299   :  { %v1316_v10 = vmax.f32 %v1315_v9, 1e-24 }
 0x29b   :  { %2098 = vrsqrt.f32 %v1316_v10  ;;  %vm1323_vm5 = vweird.f32 %v1316_v10 }
 0x2a1   :  { %v2099_v11 = vpop.eup %2098 }
 0x2a2   :  { %v1318_v12 = vmul.f32 %v2099_v11, %v1316_v10  ;;  %vm1324_vm4 = vweird.f32 %v2099_v11 }
 0x2a3   :  { %vm1325_vm6 = vmor %vm1323_vm5, %vm1324_vm4 }
 0x2a4   :  { %v1319_v13 = vmul.f32 %v2099_v11, %v1318_v12 }
 0x2a6   :  { %v1320_v16 = vmul.f32 0.5, %v1319_v13 }
 0x2a8   :  { %v1321_v17 = vsub.f32 1.5, %v1320_v16 }
 0x2aa   :  { %v1322_v18 = vmul.f32 %v2099_v11, %v1321_v17 }
 0x2ac   :  { %v1326_v19 = vsel %vm1325_vm6, %v2099_v11, %v1322_v18 }
 0x2ad   :  { %v1327_v20 = vmul.f32 %v1326_v19, %v1308_v4 }
 0x2af   :  { %1328 = vst.msk [vmem:[%s3072_s8] sm:$0x3f] %vm1312_vm3, %v1327_v20 }
 0x2b0   :  { %1333 = vsyncpa [#allocation3], 1 }

// kernel: triplet_forward.4
= control target key start
LH: loop header
LB: loop body
LE: loop exit
PB: predicated region body
PF: predicated region fallthrough
CT: control target
= control target key end

     0   :  { %vm682_vm0 = vcmask 261120   ;;  %s6366_s1 = inlined_call_operand.vmem [shape: bf16[800,64], index: 1, kind: input, shape index: {}]   ;;  %s6367_s2 = inlined_call_operand.vmem [shape: f32[1,64], index: 2, kind: input, shape index: {}]   ;;  %s6368_s0 = inlined_call_operand.vmem [shape: bf16[4,96,800], index: 0, kind: input, shape index: {}]   ;;  %s6369_s3 = inlined_call_operand.<no memory space> [shape: f32[1], index: 3, kind: input, shape index: {}]   ;;  %s6370_s4 = inlined_call_operand.vmem [shape: bf16[96,64], index: 4, kind: output, shape index: {}]  }
   0x1   :  { %v4173_v0 = vld [vmem:[%s6366_s1 + $0x38] sm:$0xff]  ;;  %v4195_v4 = vld [vmem:[%s6366_s1 + $0x30] sm:$0xff]  ;;  %v4219_v8 = vld [vmem:[%s6366_s1 + $0x28] sm:$0xff] }
   0x2   :  { %v4178_v1 = vld [vmem:[%s6366_s1 + $0x78] sm:$0xff]  ;;  %701 = vmatpush.bf16.msra.mxu0 %v4173_v0  ;;  %v4200_v5 = vld [vmem:[%s6366_s1 + $0x70] sm:$0xff]  ;;  %v4224_v9 = vld [vmem:[%s6366_s1 + $0x68] sm:$0xff] }
   0x3   :  { %v4183_v2 = vld [vmem:[%s6366_s1 + $0xb8] sm:$0xff]  ;;  %740 = vmatpush.bf16.msra.mxu1 %v4178_v1  ;;  %v4207_v6 = vld [vmem:[%s6366_s1 + $0xb0] sm:$0xff]  ;;  %v4231_v10 = vld [vmem:[%s6366_s1 + $0xa8] sm:$0xff] }
   0x4   :  { %v4188_v3 = vld [vmem:[%s6366_s1 + $0xf8] sm:$0xff]  ;;  %779 = vmatpush.bf16.msra.mxu2 %v4183_v2  ;;  %v4212_v7 = vld [vmem:[%s6366_s1 + $0xf0] sm:$0xff]  ;;  %v4236_v11 = vld [vmem:[%s6366_s1 + $0xe8] sm:$0xff] }
   0x5   :  { %818 = vmatpush.bf16.msra.mxu3 %v4188_v3  ;;  %v4243_v12 = vld [vmem:[%s6366_s1 + $0x20] sm:$0xff]  ;;  %v4267_v16 = vld [vmem:[%s6366_s1 + $0x18] sm:$0xff]  ;;  %v4291_v20 = vld [vmem:[%s6366_s1 + $0x10] sm:$0xff] }
   0x6   :  { %702 = vmatpush.bf16.msra.mxu0 %v4195_v4  ;;  %v4248_v13 = vld [vmem:[%s6366_s1 + $0x60] sm:$0xff]  ;;  %v4272_v17 = vld [vmem:[%s6366_s1 + $0x58] sm:$0xff]  ;;  %v4296_v21 = vld [vmem:[%s6366_s1 + $0x50] sm:$0xff] }
   0x7   :  { %741 = vmatpush.bf16.msra.mxu1 %v4200_v5  ;;  %v4255_v14 = vld [vmem:[%s6366_s1 + $0xa0] sm:$0xff]  ;;  %v4279_v18 = vld [vmem:[%s6366_s1 + $0x98] sm:$0xff]  ;;  %v4303_v22 = vld [vmem:[%s6366_s1 + $0x90] sm:$0xff] }
   0x8   :  { %780 = vmatpush.bf16.msra.mxu2 %v4207_v6  ;;  %v4260_v15 = vld [vmem:[%s6366_s1 + $0xe0] sm:$0xff]  ;;  %v4284_v19 = vld [vmem:[%s6366_s1 + $0xd8] sm:$0xff]  ;;  %v4308_v23 = vld [vmem:[%s6366_s1 + $0xd0] sm:$0xff] }
   0x9   :  { %819 = vmatpush.bf16.msra.mxu3 %v4212_v7  ;;  %v4315_v24 = vld [vmem:[%s6366_s1 + $0x8] sm:$0xff]  ;;  %v4337_v28 = vld [vmem:[%s6366_s1] sm:$0xff]  ;;  %v3927_v33 = vld [vmem:[%s6368_s0 + $0x18] sm:$0xf0] }
   0xa   :  { %703 = vmatpush.bf16.msra.mxu0 %v4219_v8  ;;  %v4320_v25 = vld [vmem:[%s6366_s1 + $0x48] sm:$0xff]  ;;  %v4342_v29 = vld [vmem:[%s6366_s1 + $0x40] sm:$0xff]  ;;  %v4390_v41 = vld [vmem:[%s6366_s1 + $0x138] sm:$0xff] }
   0xb   :  { %742 = vmatpush.bf16.msra.mxu1 %v4224_v9  ;;  %v4327_v26 = vld [vmem:[%s6366_s1 + $0x88] sm:$0xff]  ;;  %v4347_v30 = vld [vmem:[%s6366_s1 + $0x80] sm:$0xff]  ;;  %v4399_v46 = vld [vmem:[%s6366_s1 + $0x178] sm:$0xff] }
   0xc   :  { %781 = vmatpush.bf16.msra.mxu2 %v4231_v10  ;;  %v4332_v27 = vld [vmem:[%s6366_s1 + $0xc8] sm:$0xff]  ;;  %v4352_v31 = vld [vmem:[%s6366_s1 + $0xc0] sm:$0xff]  ;;  %v4406_v47 = vld [vmem:[%s6366_s1 + $0x130] sm:$0xff] }
   0xd   :  { %820 = vmatpush.bf16.msra.mxu3 %v4236_v11  ;;  %v2836_v32 = vld [vmem:[%s6368_s0] sm:$0xf]  ;;  %v3924_v34 = vld [vmem:[%s6368_s0 + $0x4] sm:$0xf]  ;;  %v2844_v36 = vld [vmem:[%s6368_s0 + $0x8] sm:$0xf] }
   0xe   :  { %704 = vmatpush.bf16.msra.mxu0 %v4243_v12  ;;  %v2838_v35 = vld [vmem:[%s6368_s0 + $0x1c] sm:$0xf0]  ;;  %v3928_v37 = vld [vmem:[%s6368_s0 + $0x20] sm:$0xf0]  ;;  %v3925_v38 = vld [vmem:[%s6368_s0 + $0xc] sm:$0xf]  ;;  %v2837_v42 = vor.u32 %v3927_v33, %v2836_v32 }
   0xf   :  { %743 = vmatpush.bf16.msra.mxu1 %v4248_v13  ;;  %v2846_v39 = vld [vmem:[%s6368_s0 + $0x24] sm:$0xf0]  ;;  %v2841_v43 = vor.u32 %v3924_v34, %v2838_v35  ;;  %v2845_v44 = vor.u32 %v3928_v37, %v2844_v36  ;;  %v4413_v48 = vld [vmem:[%s6366_s1 + $0x170] sm:$0xff]  ;;  %v4432_v51 = vld [vmem:[%s6366_s1 + $0x120] sm:$0xff] }
  0x10   :  { %782 = vmatpush.bf16.msra.mxu2 %v4255_v14  ;;  %v4385_v40 = vld [vmem:[%s6366_s1 + $0x188] sm:$0xff]  ;;  %v2849_v45 = vor.u32 %v3925_v38, %v2846_v39  ;;  %v2864_v52 = vld [vmem:[%s6368_s0 + $0x38] sm:$0xf]  ;;  %v3934_v53 = vld [vmem:[%s6368_s0 + $0x50] sm:$0xf0] }
  0x11   :  { %821 = vmatpush.bf16.msra.mxu3 %v4260_v15  ;;  %v4419_v49 = vld [vmem:[%s6366_s1 + $0x128] sm:$0xff]  ;;  %v3931_v54 = vld [vmem:[%s6368_s0 + $0x3c] sm:$0xf]  ;;  %v2866_v55 = vld [vmem:[%s6368_s0 + $0x54] sm:$0xf0]  ;;  %v2865_v61 = vor.u32 %v3934_v53, %v2864_v52 }
  0x12   :  { %705 = vmatpush.bf16.msra.mxu0 %v4267_v16  ;;  %v4426_v50 = vld [vmem:[%s6366_s1 + $0x168] sm:$0xff]  ;;  %v2872_v56 = vld [vmem:[%s6368_s0 + $0x40] sm:$0xf]  ;;  %v3935_v57 = vld [vmem:[%s6368_s0 + $0x58] sm:$0xf0]  ;;  %v2869_v62 = vor.u32 %v3931_v54, %v2866_v55 }
  0x13   :  { %744 = vmatpush.bf16.msra.mxu1 %v4272_v17  ;;  %v3932_v58 = vld [vmem:[%s6368_s0 + $0x44] sm:$0xf]  ;;  %v2874_v59 = vld [vmem:[%s6368_s0 + $0x5c] sm:$0xf0]  ;;  %v2873_v63 = vor.u32 %v3935_v57, %v2872_v56  ;;  %v4476_v34 = vld [vmem:[%s6366_s1 + $0x118] sm:$0xff] }
  0x14   :  { %783 = vmatpush.bf16.msra.mxu2 %v4279_v18  ;;  %v4463_v60 = vld [vmem:[%s6366_s1 + $0x160] sm:$0xff]  ;;  %v2877_v32 = vor.u32 %v3932_v58, %v2874_v59  ;;  %v4481_v35 = vld [vmem:[%s6366_s1 + $0x158] sm:$0xff]  ;;  %v4489_v36 = vld [vmem:[%s6366_s1 + $0x110] sm:$0xff] }
  0x15   :  { %822 = vmatpush.bf16.msra.mxu3 %v4284_v19  ;;  %v4471_v33 = vld [vmem:[%s6366_s1 + $0x180] sm:$0xff]  ;;  %v2892_v37 = vld [vmem:[%s6368_s0 + $0x70] sm:$0xf]  ;;  %v3941_v38 = vld [vmem:[%s6368_s0 + $0x88] sm:$0xf0] }
  0x16   :  { %706 = vmatpush.bf16.msra.mxu0 %v4291_v20  ;;  %v3938_v39 = vld [vmem:[%s6368_s0 + $0x74] sm:$0xf]  ;;  %v2902_v52 = vld [vmem:[%s6368_s0 + $0x94] sm:$0xf0]  ;;  %v2893_v53 = vor.u32 %v3941_v38, %v2892_v37  ;;  %v4532_v58 = vld [vmem:[%s6366_s1 + $0x108] sm:$0xff] }
  0x17   :  { %745 = vmatpush.bf16.msra.mxu1 %v4296_v21  ;;  %v4527_v57 = vld [vmem:[%s6366_s1 + $0x150] sm:$0xff]  ;;  %v4540_v59 = vld [vmem:[%s6366_s1 + $0x148] sm:$0xff] }
  0x18   :  { %784 = vmatpush.bf16.msra.mxu2 %v4303_v22  ;;  %v2928_v37 = vld [vmem:[%s6368_s0 + $0xb0] sm:$0xf]  ;;  %v3949_v38 = vld [vmem:[%s6368_s0 + $0xc8] sm:$0xf0] }
  0x19   :  { %823 = vmatpush.bf16.msra.mxu3 %v4308_v23 }
  0x1a   :  { %707 = vmatpush.bf16.msra.mxu0 %v4315_v24 }
  0x1b   :  { %746 = vmatpush.bf16.msra.mxu1 %v4320_v25 }
  0x1c   :  { %785 = vmatpush.bf16.msra.mxu2 %v4327_v26 }
  0x1d   :  { %824 = vmatpush.bf16.msra.mxu3 %v4332_v27 }
  0x1e   :  { %708 = vmatpush.bf16.msra.mxu0 %v4337_v28 }
  0x1f   :  { %747 = vmatpush.bf16.msra.mxu1 %v4342_v29 }
  0x20   :  { %786 = vmatpush.bf16.msra.mxu2 %v4347_v30 }
  0x21   :  { %825 = vmatpush.bf16.msra.mxu3 %v4352_v31  ;;  %709 = vmatmul.bf16.vlgmr.msra.gmra.mxu0 %v2837_v42  ;;  %v2894_v42 = vld [vmem:[%s6368_s0 + $0x8c] sm:$0xf0] }
  0x22   :  { %857 = vmatpush.bf16.msrb.mxu0 %v4390_v41  ;;  %748 = vmatmul.bf16.vlgmr.msra.gmra.mxu1 %v2841_v43  ;;  %v2900_v43 = vld [vmem:[%s6368_s0 + $0x78] sm:$0xf]  ;;  %v2897_v54 = vor.u32 %v3938_v39, %v2894_v42  ;;  %v3946_v39 = vld [vmem:[%s6368_s0 + $0xb4] sm:$0xf]  ;;  %v2930_v42 = vld [vmem:[%s6368_s0 + $0xcc] sm:$0xf0] }
  0x23   :  { %787 = vmatmul.bf16.vlgmr.msra.gmra.mxu2 %v2845_v44  ;;  %896 = vmatpush.bf16.msrb.mxu1 %v4399_v46  ;;  %v3942_v44 = vld [vmem:[%s6368_s0 + $0x90] sm:$0xf0] }
  0x24   :  { %941 = vmatpush.bf16.msrb.mxu2 %v4385_v40  ;;  %826 = vmatmul.bf16.vlgmr.msra.gmra.mxu3 %v2849_v45  ;;  %v3939_v45 = vld [vmem:[%s6368_s0 + $0x7c] sm:$0xf]  ;;  %v2901_v55 = vor.u32 %v3942_v44, %v2900_v43 }
  0x25   :  { %1288 = vmatpush.bf16.msrb.mxu3 %v4173_v0  ;;  %v2905_v56 = vor.u32 %v3939_v45, %v2902_v52  ;;  %v2929_v45 = vor.u32 %v3949_v38, %v2928_v37  ;;  %v2933_v52 = vor.u32 %v3946_v39, %v2930_v42  ;;  %v3953_v37 = vld [vmem:[%s6368_s0 + $0xec] sm:$0xf]  ;;  %v2958_v38 = vld [vmem:[%s6368_s0 + $0x104] sm:$0xf0] }
  0x26   :  { %858 = vmatpush.bf16.msrb.mxu0 %v4406_v47 }
  0x27   :  { %897 = vmatpush.bf16.msrb.mxu1 %v4413_v48 }
  0x28   :  { %942 = vmatpush.bf16.msrb.mxu2 %v4471_v33 }
  0x29   :  { %1289 = vmatpush.bf16.msrb.mxu3 %v4195_v4 }
  0x2a   :  { %859 = vmatpush.bf16.msrb.mxu0 %v4419_v49 }
  0x2b   :  { %898 = vmatpush.bf16.msrb.mxu1 %v4426_v50 }
  0x2c   :  { %1405 = vmatpush.bf16.msra.mxu2 %v4188_v3 }
  0x2d   :  { %1290 = vmatpush.bf16.msrb.mxu3 %v4219_v8 }
  0x2e   :  { %860 = vmatpush.bf16.msrb.mxu0 %v4432_v51 }
  0x2f   :  { %899 = vmatpush.bf16.msrb.mxu1 %v4463_v60 }
  0x30   :  { %1406 = vmatpush.bf16.msra.mxu2 %v4212_v7 }
  0x31   :  { %1291 = vmatpush.bf16.msrb.mxu3 %v4243_v12  ;;  %714 = vmatmul.bf16.gmra.mxu0 %v2865_v61  ;;  %v2920_v61 = vld [vmem:[%s6368_s0 + $0xa8] sm:$0xf] }
  0x32   :  { %753 = vmatmul.bf16.gmra.mxu1 %v2869_v62  ;;  %861 = vmatpush.bf16.msrb.mxu0 %v4476_v34  ;;  %v3948_v62 = vld [vmem:[%s6368_s0 + $0xc0] sm:$0xf0] }
  0x33   :  { %792 = vmatmul.bf16.gmra.mxu2 %v2873_v63  ;;  %900 = vmatpush.bf16.msrb.mxu1 %v4481_v35  ;;  %v3945_v63 = vld [vmem:[%s6368_s0 + $0xac] sm:$0xf]  ;;  %v2921_v43 = vor.u32 %v3948_v62, %v2920_v61  ;;  %v3952_v61 = vld [vmem:[%s6368_s0 + $0xe4] sm:$0xf]  ;;  %v2950_v62 = vld [vmem:[%s6368_s0 + $0xfc] sm:$0xf0] }
  0x34   :  { %831 = vmatmul.bf16.gmra.mxu3 %v2877_v32  ;;  %1407 = vmatpush.bf16.msra.mxu2 %v4236_v11  ;;  %v2922_v32 = vld [vmem:[%s6368_s0 + $0xc4] sm:$0xf0]  ;;  %v2953_v42 = vor.u32 %v3952_v61, %v2950_v62  ;;  %v2984_v61 = vld [vmem:[%s6368_s0 + $0x120] sm:$0xf]  ;;  %v3963_v62 = vld [vmem:[%s6368_s0 + $0x138] sm:$0xf0] }
  0x35   :  { %1292 = vmatpush.bf16.msrb.mxu3 %v4267_v16  ;;  %v2925_v44 = vor.u32 %v3945_v63, %v2922_v32  ;;  %v2956_v63 = vld [vmem:[%s6368_s0 + $0xe8] sm:$0xf]  ;;  %v3956_v32 = vld [vmem:[%s6368_s0 + $0x100] sm:$0xf0] }
  0x36   :  { %862 = vmatpush.bf16.msrb.mxu0 %v4489_v36 }
  0x37   :  { %901 = vmatpush.bf16.msrb.mxu1 %v4527_v57 }
  0x38   :  { %1408 = vmatpush.bf16.msra.mxu2 %v4260_v15 }
  0x39   :  { %1293 = vmatpush.bf16.msrb.mxu3 %v4291_v20 }
  0x3a   :  { %863 = vmatpush.bf16.msrb.mxu0 %v4532_v58 }
  0x3b   :  { %902 = vmatpush.bf16.msrb.mxu1 %v4540_v59 }
  0x3c   :  { %1409 = vmatpush.bf16.msra.mxu2 %v4284_v19 }
  0x3d   :  { %1294 = vmatpush.bf16.msrb.mxu3 %v4315_v24 }
  0x40   :  { %1410 = vmatpush.bf16.msra.mxu2 %v4308_v23 }
  0x41   :  { %1295 = vmatpush.bf16.msrb.mxu3 %v4337_v28  ;;  %719 = vmatmul.bf16.gmra.mxu0 %v2893_v53  ;;  %v4576_v53 = vld [vmem:[%s6366_s1 + $0x100] sm:$0xff] }
  0x42   :  { %758 = vmatmul.bf16.gmra.mxu1 %v2897_v54  ;;  %v4581_v54 = vld [vmem:[%s6366_s1 + $0x140] sm:$0xff]  ;;  %864 = vmatpush.bf16.msrb.mxu0 %v4576_v53 }
  0x43   :  { %797 = vmatmul.bf16.gmra.mxu2 %v2901_v55  ;;  %903 = vmatpush.bf16.msrb.mxu1 %v4581_v54  ;;  %v2948_v55 = vld [vmem:[%s6368_s0 + $0xe0] sm:$0xf] }
  0x44   :  { %836 = vmatmul.bf16.gmra.mxu3 %v2905_v56  ;;  %1411 = vmatpush.bf16.msra.mxu2 %v4332_v27  ;;  %v3955_v56 = vld [vmem:[%s6368_s0 + $0xf8] sm:$0xf0] }
  0x45   :  { %1444 = vmatpush.bf16.msra.mxu3 %v4390_v41  ;;  %v2949_v39 = vor.u32 %v3955_v56, %v2948_v55  ;;  %v3959_v55 = vld [vmem:[%s6368_s0 + $0x11c] sm:$0xf]  ;;  %v2978_v56 = vld [vmem:[%s6368_s0 + $0x134] sm:$0xf0] }
  0x46   :  { %1327 = vmatpush.bf16.msra.mxu0 %v4178_v1 }
  0x47   :  { %1366 = vmatpush.bf16.msra.mxu1 %v4183_v2 }
  0x48   :  { %1412 = vmatpush.bf16.msra.mxu2 %v4352_v31 }
  0x49   :  { %1445 = vmatpush.bf16.msra.mxu3 %v4406_v47 }
  0x4a   :  { %1328 = vmatpush.bf16.msra.mxu0 %v4200_v5 }
  0x4b   :  { %1367 = vmatpush.bf16.msra.mxu1 %v4207_v6 }
  0x4d   :  { %1446 = vmatpush.bf16.msra.mxu3 %v4419_v49 }
  0x4e   :  { %1329 = vmatpush.bf16.msra.mxu0 %v4224_v9 }
  0x4f   :  { %1368 = vmatpush.bf16.msra.mxu1 %v4231_v10 }
  0x51   :  { %1447 = vmatpush.bf16.msra.mxu3 %v4432_v51  ;;  %724 = vmatmul.bf16.gmra.mxu0 %v2921_v43  ;;  %v2957_v43 = vor.u32 %v3956_v32, %v2956_v63  ;;  %v3960_v63 = vld [vmem:[%s6368_s0 + $0x124] sm:$0xf]  ;;  %v2986_v32 = vld [vmem:[%s6368_s0 + $0x13c] sm:$0xf0] }
  0x52   :  { %763 = vmatmul.bf16.gmra.mxu1 %v2925_v44  ;;  %v2961_v44 = vor.u32 %v3953_v37, %v2958_v38  ;;  %1330 = vmatpush.bf16.msra.mxu0 %v4248_v13  ;;  %v2981_v38 = vor.u32 %v3959_v55, %v2978_v56  ;;  %v2860_v55 = vld [vmem:[%s6368_s0 + $0x18] sm:$0xf]  ;;  %v3930_v56 = vld [vmem:[%s6368_s0 + $0x30] sm:$0xf0] }
  0x53   :  { %802 = vmatmul.bf16.gmra.mxu2 %v2929_v45  ;;  %1369 = vmatpush.bf16.msra.mxu1 %v4255_v14  ;;  %v2976_v45 = vld [vmem:[%s6368_s0 + $0x118] sm:$0xf] }
  0x54   :  { %841 = vmatmul.bf16.gmra.mxu3 %v2933_v52  ;;  %v3962_v52 = vld [vmem:[%s6368_s0 + $0x130] sm:$0xf0] }
  0x55   :  { %1448 = vmatpush.bf16.msra.mxu3 %v4476_v34  ;;  %v2977_v37 = vor.u32 %v3962_v52, %v2976_v45  ;;  %v3926_v45 = vld [vmem:[%s6368_s0 + $0x14] sm:$0xf]  ;;  %v2854_v52 = vld [vmem:[%s6368_s0 + $0x2c] sm:$0xf0] }
  0x56   :  { %1331 = vmatpush.bf16.msra.mxu0 %v4272_v17 }
  0x57   :  { %1370 = vmatpush.bf16.msra.mxu1 %v4279_v18 }
  0x59   :  { %1449 = vmatpush.bf16.msra.mxu3 %v4489_v36 }
  0x5a   :  { %1332 = vmatpush.bf16.msra.mxu0 %v4296_v21 }
  0x5b   :  { %1371 = vmatpush.bf16.msra.mxu1 %v4303_v22 }
  0x5d   :  { %1450 = vmatpush.bf16.msra.mxu3 %v4532_v58 }
  0x5e   :  { %1333 = vmatpush.bf16.msra.mxu0 %v4320_v25 }
  0x5f   :  { %1372 = vmatpush.bf16.msra.mxu1 %v4327_v26 }
  0x61   :  { %1451 = vmatpush.bf16.msra.mxu3 %v4576_v53  ;;  %729 = vmatmul.bf16.gmra.mxu0 %v2949_v39  ;;  %v2985_v39 = vor.u32 %v3963_v62, %v2984_v61  ;;  %v3258_v61 = vld [vmem:[%s6368_s0 + $0x150] sm:$0xf]  ;;  %v3969_v62 = vld [vmem:[%s6368_s0 + $0x168] sm:$0xf0] }
  0x62   :  { %768 = vmatmul.bf16.gmra.mxu1 %v2953_v42  ;;  %v2989_v42 = vor.u32 %v3960_v63, %v2986_v32  ;;  %1334 = vmatpush.bf16.msra.mxu0 %v4342_v29  ;;  %v2857_v32 = vor.u32 %v3926_v45, %v2854_v52 }
  0x63   :  { %807 = vmatmul.bf16.gmra.mxu2 %v2957_v43  ;;  %1373 = vmatpush.bf16.msra.mxu1 %v4347_v30  ;;  %v2852_v43 = vld [vmem:[%s6368_s0 + $0x10] sm:$0xf] }
  0x64   :  { %846 = vmatmul.bf16.gmra.mxu3 %v2961_v44  ;;  %v3929_v44 = vld [vmem:[%s6368_s0 + $0x28] sm:$0xf0] }
  0x65   :  { %v2853_v63 = vor.u32 %v3929_v44, %v2852_v43 }
  0x71   :  { %734 = vmatmul.bf16.gmra.mxu0 %v2977_v37  ;;  %v2861_v37 = vor.u32 %v3930_v56, %v2860_v55  ;;  %v3983_v55 = vld [vmem:[%s6368_s0 + $0x1d8] sm:$0xf0] }
  0x72   :  { %773 = vmatmul.bf16.gmra.mxu1 %v2981_v38  ;;  %v3259_v38 = vor.u32 %v3969_v62, %v3258_v61 }
  0x73   :  { %812 = vmatmul.bf16.gmra.mxu2 %v2985_v39  ;;  %v2880_v39 = vld [vmem:[%s6368_s0 + $0x48] sm:$0xf] }
  0x74   :  { %851 = vmatmul.bf16.gmra.mxu3 %v2989_v42  ;;  %v3976_v42 = vld [vmem:[%s6368_s0 + $0x1a0] sm:$0xf0] }
  0x81   :  { %865 = vmatmul.bf16.vlgmr.msrb.gmra.mxu0 %v2853_v63 }
  0x82   :  { %904 = vmatmul.bf16.vlgmr.msrb.gmra.mxu1 %v2857_v32  ;;  %1483 = vmatpush.bf16.msrb.mxu0 %v4399_v46 }
  0x83   :  { %3202 = vmatmul.msk.bf16.vlgmr.msrb.gmra.mxu2 %vm682_vm0, %v2861_v37  ;;  %1528 = vmatpush.bf16.msrb.mxu1 %v4385_v40  ;;  %v3937_v40 = vld [vmem:[%s6368_s0 + $0x68] sm:$0xf0] }
  0x84   :  { %1296 = vmatmul.bf16.vlgmr.msrb.gmra.mxu3 %v3259_v38  ;;  %1886 = vmatpush.bf16.msrb.mxu2 %v4173_v0  ;;  %v3936_v0 = vld [vmem:[%s6368_s0 + $0x60] sm:$0xf0] }
  0x85   :  { %1925 = vmatpush.bf16.msrb.mxu3 %v4178_v1  ;;  %v3933_v1 = vld [vmem:[%s6368_s0 + $0x4c] sm:$0xf]  ;;  %v2881_v43 = vor.u32 %v3936_v0, %v2880_v39 }
  0x86   :  { %1484 = vmatpush.bf16.msrb.mxu0 %v4413_v48 }
  0x87   :  { %1529 = vmatpush.bf16.msrb.mxu1 %v4471_v33  ;;  %v3286_v33 = vld [vmem:[%s6368_s0 + $0x188] sm:$0xf] }
  0x88   :  { %1887 = vmatpush.bf16.msrb.mxu2 %v4195_v4  ;;  %v2882_v4 = vld [vmem:[%s6368_s0 + $0x64] sm:$0xf0]  ;;  %v3287_v52 = vor.u32 %v3976_v42, %v3286_v33  ;;  %v3950_v33 = vld [vmem:[%s6368_s0 + $0xd0] sm:$0xf0]  ;;  %v3947_v42 = vld [vmem:[%s6368_s0 + $0xbc] sm:$0xf] }
  0x89   :  { %1926 = vmatpush.bf16.msrb.mxu3 %v4200_v5  ;;  %v2888_v5 = vld [vmem:[%s6368_s0 + $0x50] sm:$0xf]  ;;  %v2885_v44 = vor.u32 %v3933_v1, %v2882_v4 }
  0x8a   :  { %1485 = vmatpush.bf16.msrb.mxu0 %v4426_v50  ;;  %v2889_v45 = vor.u32 %v3937_v40, %v2888_v5 }
  0x8c   :  { %1888 = vmatpush.bf16.msrb.mxu2 %v4219_v8  ;;  %v4727_v8 = vld [vmem:[%s6367_s2] ss:$0 sm:$0xff] }
  0x8d   :  { %1927 = vmatpush.bf16.msrb.mxu3 %v4224_v9  ;;  %v2908_v9 = vld [vmem:[%s6368_s0 + $0x80] sm:$0xf] }
  0x8e   :  { %1486 = vmatpush.bf16.msrb.mxu0 %v4463_v60 }
  0x90   :  { %1889 = vmatpush.bf16.msrb.mxu2 %v4243_v12  ;;  %v3943_v12 = vld [vmem:[%s6368_s0 + $0x98] sm:$0xf0] }
  0x91   :  { %1928 = vmatpush.bf16.msrb.mxu3 %v4248_v13  ;;  %870 = vmatmul.bf16.gmra.mxu0 %v2881_v43  ;;  %v3940_v13 = vld [vmem:[%s6368_s0 + $0x84] sm:$0xf]  ;;  %v2909_v56 = vor.u32 %v3943_v12, %v2908_v9  ;;  %v2938_v43 = vld [vmem:[%s6368_s0 + $0xd4] sm:$0xf0]  ;;  %v3990_v9 = vld [vmem:[%s6368_s0 + $0x210] sm:$0xf0] }
  0x92   :  { %909 = vmatmul.bf16.gmra.mxu1 %v2885_v44  ;;  %1487 = vmatpush.bf16.msrb.mxu0 %v4481_v35  ;;  %v2944_v44 = vld [vmem:[%s6368_s0 + $0xc0] sm:$0xf] }
  0x93   :  { %3203 = vmatmul.msk.bf16.gmra.mxu2 %vm682_vm0, %v2889_v45  ;;  %v3951_v45 = vld [vmem:[%s6368_s0 + $0xd8] sm:$0xf0] }
  0x94   :  { %1301 = vmatmul.bf16.gmra.mxu3 %v3287_v52  ;;  %1890 = vmatpush.bf16.msrb.mxu2 %v4267_v16  ;;  %v2910_v16 = vld [vmem:[%s6368_s0 + $0x9c] sm:$0xf0]  ;;  %v3342_v52 = vld [vmem:[%s6368_s0 + $0x1f8] sm:$0xf] }
  0x95   :  { %1929 = vmatpush.bf16.msrb.mxu3 %v4272_v17  ;;  %v2916_v17 = vld [vmem:[%s6368_s0 + $0x88] sm:$0xf]  ;;  %v2913_v61 = vor.u32 %v3940_v13, %v2910_v16 }
  0x96   :  { %1488 = vmatpush.bf16.msrb.mxu0 %v4527_v57 }
  0x98   :  { %1891 = vmatpush.bf16.msrb.mxu2 %v4291_v20  ;;  %v3944_v20 = vld [vmem:[%s6368_s0 + $0xa0] sm:$0xf0] }
  0x99   :  { %1930 = vmatpush.bf16.msrb.mxu3 %v4296_v21  ;;  %v3314_v21 = vld [vmem:[%s6368_s0 + $0x1c0] sm:$0xf]  ;;  %v2917_v32 = vor.u32 %v3944_v20, %v2916_v17  ;;  %v2941_v17 = vor.u32 %v3947_v42, %v2938_v43  ;;  %v2972_v42 = vld [vmem:[%s6368_s0 + $0xf8] sm:$0xf]  ;;  %v3958_v43 = vld [vmem:[%s6368_s0 + $0x110] sm:$0xf0] }
  0x9a   :  { %1489 = vmatpush.bf16.msrb.mxu0 %v4540_v59  ;;  %v3315_v37 = vor.u32 %v3983_v55, %v3314_v21 }
  0x9c   :  { %1892 = vmatpush.bf16.msrb.mxu2 %v4315_v24 }
  0x9d   :  { %1931 = vmatpush.bf16.msrb.mxu3 %v4320_v25 }
  0x9e   :  { %v710_v62 = vpop.f32.mrf.mxu0  ;;  %1490 = vmatpush.bf16.msrb.mxu0 %v4581_v54 }
  0x9f   :  { %v749_v63 = vpop.f32.mrf.mxu1  ;;  %v711_v38 = vadd.f32 %v4727_v8, %v710_v62 }
  0xa0   :  { %1893 = vmatpush.bf16.msrb.mxu2 %v4337_v28 }
  0xa1   :  { %1932 = vmatpush.bf16.msrb.mxu3 %v4342_v29  ;;  %v750_v39 = vadd.f32 %v749_v63, %v711_v38  ;;  %875 = vmatmul.bf16.gmra.mxu0 %v2909_v56  ;;  %v2936_v29 = vld [vmem:[%s6368_s0 + $0xb8] sm:$0xf]  ;;  %v2945_v56 = vor.u32 %v3951_v45, %v2944_v44  ;;  %v3370_v44 = vld [vmem:[%s6368_s0 + $0x230] sm:$0xf]  ;;  %v3997_v45 = vld [vmem:[%s6368_s0 + $0x248] sm:$0xf0] }
  0xa2   :  { %914 = vmatmul.bf16.gmra.mxu1 %v2913_v61  ;;  %v2937_v16 = vor.u32 %v3950_v33, %v2936_v29  ;;  %v3343_v61 = vor.u32 %v3990_v9, %v3342_v52  ;;  %v3954_v29 = vld [vmem:[%s6368_s0 + $0xf4] sm:$0xf]  ;;  %v2966_v33 = vld [vmem:[%s6368_s0 + $0x10c] sm:$0xf0] }
  0xa3   :  { %3204 = vmatmul.msk.bf16.gmra.mxu2 %vm682_vm0, %v2917_v32 }
  0xa4   :  { %1306 = vmatmul.bf16.gmra.mxu3 %v3315_v37 }
  0xa6   :  { %v788_v24 = vpop.f32.mrf.mxu2  ;;  %v712_v1 = vpop.f32.mrf.mxu0 }
  0xa7   :  { %v827_v25 = vpop.f32.mrf.mxu3  ;;  %v789_v0 = vadd.f32 %v788_v24, %v750_v39  ;;  %v751_v4 = vpop.f32.mrf.mxu1  ;;  %v713_v5 = vadd.f32 %v4727_v8, %v712_v1 }
  0xa9   :  { %v4762_v40 = vadd.f32 %v827_v25, %v789_v0  ;;  %v752_v28 = vadd.f32 %v751_v4, %v713_v5  ;;  %v2964_v5 = vld [vmem:[%s6368_s0 + $0xf0] sm:$0xf] }
  0xae   :  { %v790_v12 = vpop.f32.mrf.mxu2  ;;  %v715_v21 = vpop.f32.mrf.mxu0 }
  0xaf   :  { %v829_v13 = vpop.f32.mrf.mxu3  ;;  %v791_v20 = vadd.f32 %v790_v12, %v752_v28  ;;  %v754_v55 = vpop.f32.mrf.mxu1  ;;  %v716_v62 = vadd.f32 %v4727_v8, %v715_v21  ;;  %v3957_v28 = vld [vmem:[%s6368_s0 + $0x108] sm:$0xf0]  ;;  %v2973_v21 = vor.u32 %v3958_v43, %v2972_v42  ;;  %v3000_v42 = vld [vmem:[%s6368_s0 + $0x130] sm:$0xf] }
  0xb0   :  { %v2965_v12 = vor.u32 %v3957_v28, %v2964_v5  ;;  %v2992_v5 = vld [vmem:[%s6368_s0 + $0x128] sm:$0xf]  ;;  %v3964_v28 = vld [vmem:[%s6368_s0 + $0x140] sm:$0xf0]  ;;  %v3965_v43 = vld [vmem:[%s6368_s0 + $0x148] sm:$0xf0] }
  0xb1   :  { %v4789_v63 = vadd.f32 %v829_v13, %v791_v20  ;;  %v755_v32 = vadd.f32 %v754_v55, %v716_v62  ;;  %880 = vmatmul.bf16.gmra.mxu0 %v2937_v16  ;;  %v2969_v13 = vor.u32 %v3954_v29, %v2966_v33  ;;  %v3371_v55 = vor.u32 %v3997_v45, %v3370_v44  ;;  %v3961_v29 = vld [vmem:[%s6368_s0 + $0x12c] sm:$0xf]  ;;  %v2994_v33 = vld [vmem:[%s6368_s0 + $0x144] sm:$0xf0]  ;;  %v4004_v45 = vld [vmem:[%s6368_s0 + $0x280] sm:$0xf0] }
  0xb2   :  { %919 = vmatmul.bf16.gmra.mxu1 %v2941_v17  ;;  %v3398_v44 = vld [vmem:[%s6368_s0 + $0x268] sm:$0xf] }
  0xb3   :  { %3205 = vmatmul.msk.bf16.gmra.mxu2 %vm682_vm0, %v2945_v56 }
  0xb4   :  { %1311 = vmatmul.bf16.gmra.mxu3 %v3343_v61 }
  0xb6   :  { %v793_v37 = vpop.f32.mrf.mxu2  ;;  %v717_v24 = vpop.f32.mrf.mxu0 }
  0xb7   :  { %v832_v38 = vpop.f32.mrf.mxu3  ;;  %v794_v39 = vadd.f32 %v793_v37, %v755_v32  ;;  %v756_v25 = vpop.f32.mrf.mxu1  ;;  %v718_v0 = vadd.f32 %v4727_v8, %v717_v24 }
  0xb9   :  { %v4793_v1 = vadd.f32 %v832_v38, %v794_v39  ;;  %v757_v4 = vadd.f32 %v756_v25, %v718_v0 }
  0xbe   :  { %v795_v52 = vpop.f32.mrf.mxu2  ;;  %v720_v17 = vpop.f32.mrf.mxu0 }
  0xbf   :  { %v834_v9 = vpop.f32.mrf.mxu3  ;;  %v796_v16 = vadd.f32 %v795_v52, %v757_v4  ;;  %v759_v20 = vpop.f32.mrf.mxu1  ;;  %v721_v56 = vadd.f32 %v4727_v8, %v720_v17 }
  0xc1   :  { %v4820_v61 = vadd.f32 %v834_v9, %v796_v16  ;;  %v760_v62 = vadd.f32 %v759_v20, %v721_v56  ;;  %885 = vmatmul.bf16.gmra.mxu0 %v2965_v12  ;;  %v2993_v12 = vor.u32 %v3964_v28, %v2992_v5 }
  0xc2   :  { %924 = vmatmul.bf16.gmra.mxu1 %v2969_v13  ;;  %v2997_v13 = vor.u32 %v3961_v29, %v2994_v33  ;;  %v3966_v29 = vld [vmem:[%s6368_s0 + $0x154] sm:$0xf]  ;;  %v3260_v33 = vld [vmem:[%s6368_s0 + $0x16c] sm:$0xf0] }
  0xc3   :  { %3206 = vmatmul.msk.bf16.gmra.mxu2 %vm682_vm0, %v2973_v21  ;;  %v3001_v21 = vor.u32 %v3965_v43, %v3000_v42  ;;  %v3266_v42 = vld [vmem:[%s6368_s0 + $0x158] sm:$0xf]  ;;  %v3970_v43 = vld [vmem:[%s6368_s0 + $0x170] sm:$0xf0] }
  0xc4   :  { %1316 = vmatmul.bf16.gmra.mxu3 %v3371_v55  ;;  %v3399_v55 = vor.u32 %v4004_v45, %v3398_v44  ;;  %v3967_v44 = vld [vmem:[%s6368_s0 + $0x15c] sm:$0xf]  ;;  %v3268_v45 = vld [vmem:[%s6368_s0 + $0x174] sm:$0xf0] }
  0xc6   :  { %v798_v32 = vpop.f32.mrf.mxu2  ;;  %v722_v39 = vpop.f32.mrf.mxu0 }
  0xc7   :  { %v837_v37 = vpop.f32.mrf.mxu3  ;;  %v799_v38 = vadd.f32 %v798_v32, %v760_v62  ;;  %v761_v24 = vpop.f32.mrf.mxu1  ;;  %v723_v25 = vadd.f32 %v4727_v8, %v722_v39 }
  0xc9   :  { %v4824_v0 = vadd.f32 %v837_v37, %v799_v38  ;;  %v762_v4 = vadd.f32 %v761_v24, %v723_v25 }
  0xce   :  { %v800_v52 = vpop.f32.mrf.mxu2  ;;  %v725_v17 = vpop.f32.mrf.mxu0 }
  0xcf   :  { %v839_v9 = vpop.f32.mrf.mxu3  ;;  %v801_v16 = vadd.f32 %v800_v52, %v762_v4  ;;  %v764_v20 = vpop.f32.mrf.mxu1  ;;  %v726_v56 = vadd.f32 %v4727_v8, %v725_v17  ;;  %v3274_v52 = vld [vmem:[%s6368_s0 + $0x160] sm:$0xf]  ;;  %v3267_v17 = vor.u32 %v3970_v43, %v3266_v42  ;;  %v3978_v43 = vld [vmem:[%s6368_s0 + $0x1b0] sm:$0xf0] }
  0xd1   :  { %v4851_v62 = vadd.f32 %v839_v9, %v801_v16  ;;  %v765_v32 = vadd.f32 %v764_v20, %v726_v56  ;;  %890 = vmatmul.bf16.gmra.mxu0 %v2993_v12  ;;  %v3971_v9 = vld [vmem:[%s6368_s0 + $0x178] sm:$0xf0]  ;;  %v3263_v16 = vor.u32 %v3966_v29, %v3260_v33  ;;  %v3271_v56 = vor.u32 %v3967_v44, %v3268_v45 }
  0xd2   :  { %929 = vmatmul.bf16.gmra.mxu1 %v2997_v13 }
  0xd3   :  { %3207 = vmatmul.msk.bf16.gmra.mxu2 %vm682_vm0, %v3001_v21 }
  0xd4   :  { %1321 = vmatmul.bf16.gmra.mxu3 %v3399_v55 }
  0xd6   :  { %v803_v37 = vpop.f32.mrf.mxu2  ;;  %v727_v24 = vpop.f32.mrf.mxu0 }
  0xd7   :  { %v842_v38 = vpop.f32.mrf.mxu3  ;;  %v804_v39 = vadd.f32 %v803_v37, %v765_v32  ;;  %v766_v25 = vpop.f32.mrf.mxu1  ;;  %v728_v4 = vadd.f32 %v4727_v8, %v727_v24  ;;  %v3275_v32 = vor.u32 %v3971_v9, %v3274_v52 }
  0xd9   :  { %v4855_v5 = vadd.f32 %v842_v38, %v804_v39  ;;  %v767_v28 = vadd.f32 %v766_v25, %v728_v4 }
  0xde   :  { %v805_v12 = vpop.f32.mrf.mxu2  ;;  %v730_v21 = vpop.f32.mrf.mxu0 }
  0xdf   :  { %v844_v13 = vpop.f32.mrf.mxu3  ;;  %v806_v20 = vadd.f32 %v805_v12, %v767_v28  ;;  %v769_v55 = vpop.f32.mrf.mxu1  ;;  %v731_v37 = vadd.f32 %v4727_v8, %v730_v21 }
  0xe1   :  { %v4882_v38 = vadd.f32 %v844_v13, %v806_v20  ;;  %v770_v39 = vadd.f32 %v769_v55, %v731_v37  ;;  %1335 = vmatmul.bf16.vlgmr.msra.gmra.mxu0 %v3263_v16 }
  0xe2   :  { %1374 = vmatmul.bf16.vlgmr.msra.gmra.mxu1 %v3267_v17  ;;  %1964 = vmatpush.bf16.msra.mxu0 %v4183_v2 }
  0xe3   :  { %1413 = vmatmul.bf16.vlgmr.msra.gmra.mxu2 %v3271_v56  ;;  %2003 = vmatpush.bf16.msra.mxu1 %v4188_v3  ;;  %v3973_v3 = vld [vmem:[%s6368_s0 + $0x18c] sm:$0xf] }
  0xe4   :  { %1452 = vmatmul.bf16.vlgmr.msra.gmra.mxu3 %v3275_v32  ;;  %2042 = vmatpush.bf16.msra.mxu2 %v4390_v41  ;;  %v3288_v41 = vld [vmem:[%s6368_s0 + $0x1a4] sm:$0xf0]  ;;  %v3985_v56 = vld [vmem:[%s6368_s0 + $0x1e8] sm:$0xf0] }
  0xe5   :  { %2081 = vmatpush.bf16.msra.mxu3 %v4399_v46  ;;  %v3294_v46 = vld [vmem:[%s6368_s0 + $0x190] sm:$0xf]  ;;  %v3291_v52 = vor.u32 %v3973_v3, %v3288_v41 }
  0xe6   :  { %v808_v24 = vpop.f32.mrf.mxu2  ;;  %v732_v28 = vpop.f32.mrf.mxu0  ;;  %1965 = vmatpush.bf16.msra.mxu0 %v4207_v6  ;;  %v3977_v6 = vld [vmem:[%s6368_s0 + $0x1a8] sm:$0xf0] }
  0xe7   :  { %v847_v25 = vpop.f32.mrf.mxu3  ;;  %v809_v4 = vadd.f32 %v808_v24, %v770_v39  ;;  %v771_v29 = vpop.f32.mrf.mxu1  ;;  %v733_v33 = vadd.f32 %v4727_v8, %v732_v28  ;;  %2004 = vmatpush.bf16.msra.mxu1 %v4212_v7  ;;  %v3974_v7 = vld [vmem:[%s6368_s0 + $0x194] sm:$0xf]  ;;  %v3295_v9 = vor.u32 %v3977_v6, %v3294_v46  ;;  %v3350_v46 = vld [vmem:[%s6368_s0 + $0x200] sm:$0xf]  ;;  %v3991_v6 = vld [vmem:[%s6368_s0 + $0x218] sm:$0xf0] }
  0xe8   :  { %2043 = vmatpush.bf16.msra.mxu2 %v4406_v47  ;;  %v3296_v47 = vld [vmem:[%s6368_s0 + $0x1ac] sm:$0xf0] }
  0xe9   :  { %v4891_v42 = vadd.f32 %v847_v25, %v809_v4  ;;  %2082 = vmatpush.bf16.msra.mxu3 %v4413_v48  ;;  %v772_v2 = vadd.f32 %v771_v29, %v733_v33  ;;  %v3302_v48 = vld [vmem:[%s6368_s0 + $0x198] sm:$0xf]  ;;  %v3299_v17 = vor.u32 %v3974_v7, %v3296_v47  ;;  %v3352_v7 = vld [vmem:[%s6368_s0 + $0x21c] sm:$0xf0]  ;;  %v3358_v47 = vld [vmem:[%s6368_s0 + $0x208] sm:$0xf] }
  0xea   :  { %1966 = vmatpush.bf16.msra.mxu0 %v4231_v10  ;;  %v3303_v20 = vor.u32 %v3978_v43, %v3302_v48  ;;  %v3992_v48 = vld [vmem:[%s6368_s0 + $0x220] sm:$0xf0] }
  0xeb   :  { %2005 = vmatpush.bf16.msra.mxu1 %v4236_v11 }
  0xec   :  { %2044 = vmatpush.bf16.msra.mxu2 %v4419_v49 }
  0xed   :  { %2083 = vmatpush.bf16.msra.mxu3 %v4426_v50 }
  0xee   :  { %v810_v44 = vpop.f32.mrf.mxu2  ;;  %v735_v13 = vpop.f32.mrf.mxu0  ;;  %1967 = vmatpush.bf16.msra.mxu0 %v4255_v14 }
  0xef   :  { %v849_v45 = vpop.f32.mrf.mxu3  ;;  %v811_v12 = vadd.f32 %v810_v44, %v772_v2  ;;  %v774_v16 = vpop.f32.mrf.mxu1  ;;  %v736_v21 = vadd.f32 %v4727_v8, %v735_v13  ;;  %2006 = vmatpush.bf16.msra.mxu1 %v4260_v15 }
  0xf0   :  { %2045 = vmatpush.bf16.msra.mxu2 %v4432_v51 }
  0xf1   :  { %v4926_v10 = vadd.f32 %v849_v45, %v811_v12  ;;  %2084 = vmatpush.bf16.msra.mxu3 %v4463_v60  ;;  %v775_v11 = vadd.f32 %v774_v16, %v736_v21  ;;  %1340 = vmatmul.bf16.gmra.mxu0 %v3291_v52  ;;  %v3351_v52 = vor.u32 %v3991_v6, %v3350_v46  ;;  %v3408_v46 = vld [vmem:[%s6368_s0 + $0x28c] sm:$0xf0]  ;;  %v3414_v6 = vld [vmem:[%s6368_s0 + $0x278] sm:$0xf] }
  0xf2   :  { %1379 = vmatmul.bf16.gmra.mxu1 %v3295_v9  ;;  %1968 = vmatpush.bf16.msra.mxu0 %v4279_v18 }
  0xf3   :  { %1418 = vmatmul.bf16.gmra.mxu2 %v3299_v17  ;;  %2007 = vmatpush.bf16.msra.mxu1 %v4284_v19  ;;  %v3980_v19 = vld [vmem:[%s6368_s0 + $0x1c4] sm:$0xf]  ;;  %v3359_v17 = vor.u32 %v3992_v48, %v3358_v47 }
  0xf4   :  { %1457 = vmatmul.bf16.gmra.mxu3 %v3303_v20  ;;  %2046 = vmatpush.bf16.msra.mxu2 %v4476_v34  ;;  %v3316_v34 = vld [vmem:[%s6368_s0 + $0x1dc] sm:$0xf0] }
  0xf5   :  { %2085 = vmatpush.bf16.msra.mxu3 %v4481_v35  ;;  %v3322_v35 = vld [vmem:[%s6368_s0 + $0x1c8] sm:$0xf]  ;;  %v3319_v39 = vor.u32 %v3980_v19, %v3316_v34  ;;  %v3378_v19 = vld [vmem:[%s6368_s0 + $0x238] sm:$0xf]  ;;  %v3998_v34 = vld [vmem:[%s6368_s0 + $0x250] sm:$0xf0] }
  0xf6   :  { %v813_v14 = vpop.f32.mrf.mxu2  ;;  %v737_v51 = vpop.f32.mrf.mxu0  ;;  %1969 = vmatpush.bf16.msra.mxu0 %v4303_v22  ;;  %v3984_v22 = vld [vmem:[%s6368_s0 + $0x1e0] sm:$0xf0] }
  0xf7   :  { %v852_v49 = vpop.f32.mrf.mxu3  ;;  %v814_v50 = vadd.f32 %v813_v14, %v775_v11  ;;  %v776_v60 = vpop.f32.mrf.mxu1  ;;  %v738_v15 = vadd.f32 %v4727_v8, %v737_v51  ;;  %2008 = vmatpush.bf16.msra.mxu1 %v4308_v23  ;;  %v3981_v23 = vld [vmem:[%s6368_s0 + $0x1cc] sm:$0xf]  ;;  %v3323_v24 = vor.u32 %v3984_v22, %v3322_v35  ;;  %v3380_v35 = vld [vmem:[%s6368_s0 + $0x254] sm:$0xf0]  ;;  %v3386_v22 = vld [vmem:[%s6368_s0 + $0x240] sm:$0xf] }
  0xf8   :  { %2047 = vmatpush.bf16.msra.mxu2 %v4489_v36  ;;  %v3324_v36 = vld [vmem:[%s6368_s0 + $0x1e4] sm:$0xf0] }
  0xf9   :  { %v4937_v55 = vadd.f32 %v852_v49, %v814_v50  ;;  %2086 = vmatpush.bf16.msra.mxu3 %v4527_v57  ;;  %v777_v18 = vadd.f32 %v776_v60, %v738_v15  ;;  %v3330_v57 = vld [vmem:[%s6368_s0 + $0x1d0] sm:$0xf]  ;;  %v3327_v29 = vor.u32 %v3981_v23, %v3324_v36  ;;  %v3999_v23 = vld [vmem:[%s6368_s0 + $0x258] sm:$0xf0] }
  0xfa   :  { %1970 = vmatpush.bf16.msra.mxu0 %v4327_v26  ;;  %v3331_v33 = vor.u32 %v3985_v56, %v3330_v57 }
  0xfb   :  { %2009 = vmatpush.bf16.msra.mxu1 %v4332_v27 }
  0xfc   :  { %2048 = vmatpush.bf16.msra.mxu2 %v4532_v58 }
  0xfd   :  { %2087 = vmatpush.bf16.msra.mxu3 %v4540_v59 }
  0xfe   :  { %v815_v32 = vpop.f32.mrf.mxu2  ;;  %v866_v4 = vpop.f32.mrf.mxu0  ;;  %1971 = vmatpush.bf16.msra.mxu0 %v4347_v30 }
  0xff   :  { %v854_v37 = vpop.f32.mrf.mxu3  ;;  %v816_v25 = vadd.f32 %v815_v32, %v777_v18  ;;  %v905_v28 = vpop.f32.mrf.mxu1  ;;  %v867_v2 = vadd.f32 %v866_v4, %v4762_v40  ;;  %2010 = vmatpush.bf16.msra.mxu1 %v4352_v31  ;;  %v3344_v31 = vld [vmem:[%s6368_s0 + $0x214] sm:$0xf0]  ;;  %v3994_v18 = vld [vmem:[%s6368_s0 + $0x234] sm:$0xf]  ;;  %v3379_v32 = vor.u32 %v3998_v34, %v3378_v19  ;;  %v3387_v4 = vor.u32 %v3999_v23, %v3386_v22  ;;  %v3282_v19 = vld [vmem:[%s6368_s0 + $0x168] sm:$0xf] }
 0x100   :  { %2049 = vmatpush.bf16.msra.mxu2 %v4576_v53  ;;  %v3972_v34 = vld [vmem:[%s6368_s0 + $0x180] sm:$0xf0]  ;;  %v3482_v22 = vld [vmem:[%s6368_s0 + $0x2bc] sm:$0xf0] }
 0x101   :  { %v4972_v26 = vadd.f32 %v854_v37, %v816_v25  ;;  %2088 = vmatpush.bf16.msra.mxu3 %v4581_v54  ;;  %v906_v27 = vadd.f32 %v905_v28, %v867_v2  ;;  %1345 = vmatmul.bf16.gmra.mxu0 %v3319_v39  ;;  %v3987_v54 = vld [vmem:[%s6368_s0 + $0x1fc] sm:$0xf] }
 0x102   :  { %1384 = vmatmul.bf16.gmra.mxu1 %v3323_v24  ;;  %v3347_v45 = vor.u32 %v3987_v54, %v3344_v31  ;;  %v3406_v54 = vld [vmem:[%s6368_s0 + $0x270] sm:$0xf]  ;;  %v4005_v31 = vld [vmem:[%s6368_s0 + $0x288] sm:$0xf0] }
 0x103   :  { %1423 = vmatmul.bf16.gmra.mxu2 %v3327_v29 }
 0x104   :  { %1462 = vmatmul.bf16.gmra.mxu3 %v3331_v33 }
 0x106   :  { %v944_v58 = vpop.f32.mrf.mxu2  ;;  %v868_v40 = vpop.f32.mrf.mxu0 }
 0x107   :  { %v4976_v59 = vpop.f32.mrf.mxu3  ;;  %v4978_v3 = vadd.f32 %v944_v58, %v906_v27  ;;  %v907_v53 = vpop.f32.mrf.mxu1  ;;  %v869_v30 = vadd.f32 %v868_v40, %v4789_v63  ;;  %v3988_v63 = vld [vmem:[%s6368_s0 + $0x204] sm:$0xf] }
 0x108   :  { %v3355_v16 = vor.u32 %v3988_v63, %v3352_v7  ;;  %v4006_v63 = vld [vmem:[%s6368_s0 + $0x290] sm:$0xf0] }
 0x109   :  { %v908_v41 = vadd.f32 %v907_v53, %v869_v30  ;;  %vm974_vm1 = vcmp.ge.f32.partialorder %v4978_v3, 0.0 }
 0x10e   :  { %v946_v43 = vpop.f32.mrf.mxu2  ;;  %v871_v12 = vpop.f32.mrf.mxu0 }
 0x10f   :  { %v5005_v44 = vpop.f32.mrf.mxu3  ;;  %v5007_v9 = vadd.f32 %v946_v43, %v908_v41  ;;  %v910_v13 = vpop.f32.mrf.mxu1  ;;  %v872_v20 = vadd.f32 %v871_v12, %v4793_v1  ;;  %v3372_v1 = vld [vmem:[%s6368_s0 + $0x24c] sm:$0xf0]  ;;  %v4001_v41 = vld [vmem:[%s6368_s0 + $0x26c] sm:$0xf]  ;;  %v3407_v43 = vor.u32 %v4005_v31, %v3406_v54 }
 0x110   :  { %v3375_v56 = vor.u32 %v3994_v18, %v3372_v1  ;;  %v3968_v1 = vld [vmem:[%s6368_s0 + $0x164] sm:$0xf] }
 0x111   :  { %v911_v21 = vadd.f32 %v910_v13, %v872_v20  ;;  %1350 = vmatmul.bf16.gmra.mxu0 %v3347_v45  ;;  %vm975_vm3 = vcmp.ge.f32.partialorder %v5007_v9, 0.0 }
 0x112   :  { %1389 = vmatmul.bf16.gmra.mxu1 %v3351_v52 }
 0x113   :  { %1428 = vmatmul.bf16.gmra.mxu2 %v3355_v16  ;;  %v3415_v16 = vor.u32 %v4006_v63, %v3414_v6  ;;  %v5139_v6 = vld [vmem:[%s6366_s1 + $0x180] sm:$0xff]  ;;  %v4099_v63 = vld [vmem:[%s6366_s1 + $0xb0] sm:$0xff] }
 0x114   :  { %1467 = vmatmul.bf16.gmra.mxu3 %v3359_v17 }
 0x116   :  { %v949_v11 = vpop.f32.mrf.mxu2  ;;  %v873_v50 = vpop.f32.mrf.mxu0 }
 0x117   :  { %v5010_v14 = vpop.f32.mrf.mxu3  ;;  %v5012_v49 = vadd.f32 %v949_v11, %v911_v21  ;;  %v912_v51 = vpop.f32.mrf.mxu1  ;;  %v874_v60 = vadd.f32 %v873_v50, %v4820_v61  ;;  %v3995_v61 = vld [vmem:[%s6368_s0 + $0x23c] sm:$0xf] }
 0x118   :  { %v3383_v25 = vor.u32 %v3995_v61, %v3380_v35  ;;  %v4011_v61 = vld [vmem:[%s6368_s0 + $0x2b8] sm:$0xf0]  ;;  %v4008_v35 = vld [vmem:[%s6368_s0 + $0x2a4] sm:$0xf] }
 0x119   :  { %v913_v15 = vadd.f32 %v912_v51, %v874_v60  ;;  %vm976_vm5 = vcmp.ge.f32.partialorder %v5012_v49, 0.0 }
 0x11e   :  { %v951_v36 = vpop.f32.mrf.mxu2  ;;  %v876_v39 = vpop.f32.mrf.mxu0 }
 0x11f   :  { %v5039_v57 = vpop.f32.mrf.mxu3  ;;  %v5041_v37 = vadd.f32 %v951_v36, %v913_v15  ;;  %v915_v24 = vpop.f32.mrf.mxu1  ;;  %v877_v28 = vadd.f32 %v876_v39, %v4824_v0  ;;  %v3400_v0 = vld [vmem:[%s6368_s0 + $0x284] sm:$0xf0] }
 0x120   :  { %v3403_v48 = vor.u32 %v4001_v41, %v3400_v0 }
 0x121   :  { %v916_v29 = vadd.f32 %v915_v24, %v877_v28  ;;  %1355 = vmatmul.bf16.gmra.mxu0 %v3375_v56  ;;  %v3485_v28 = vor.u32 %v4008_v35, %v3482_v22  ;;  %vm977_vm7 = vcmp.ge.f32.partialorder %v5041_v37, 0.0 }
 0x122   :  { %1394 = vmatmul.bf16.gmra.mxu1 %v3379_v32  ;;  %v3283_v32 = vor.u32 %v3972_v34, %v3282_v19 }
 0x123   :  { %1433 = vmatmul.bf16.gmra.mxu2 %v3383_v25 }
 0x124   :  { %1472 = vmatmul.bf16.gmra.mxu3 %v3387_v4 }
 0x126   :  { %v954_v33 = vpop.f32.mrf.mxu2  ;;  %v878_v58 = vpop.f32.mrf.mxu0 }
 0x127   :  { %v5044_v2 = vpop.f32.mrf.mxu3  ;;  %v5046_v27 = vadd.f32 %v954_v33, %v916_v29  ;;  %v917_v40 = vpop.f32.mrf.mxu1  ;;  %v879_v53 = vadd.f32 %v878_v58, %v4851_v62  ;;  %v4002_v62 = vld [vmem:[%s6368_s0 + $0x274] sm:$0xf]  ;;  %v4093_v58 = vld [vmem:[%s6366_s1 + $0x78] sm:$0xff] }
 0x128   :  { %v3411_v13 = vor.u32 %v4002_v62, %v3408_v46  ;;  %v4097_v46 = vld [vmem:[%s6366_s1 + $0x70] sm:$0xff] }
 0x129   :  { %v918_v30 = vadd.f32 %v917_v40, %v879_v53  ;;  %v5119_v40 = vld [vmem:[%s6366_s1 + $0x188] sm:$0xff]  ;;  %v4096_v53 = vld [vmem:[%s6366_s1 + $0x38] sm:$0xff]  ;;  %vm978_vm9 = vcmp.ge.f32.partialorder %v5046_v27, 0.0 }
 0x12e   :  { %v956_v7 = vpop.f32.mrf.mxu2  ;;  %v881_v52 = vpop.f32.mrf.mxu0 }
 0x12f   :  { %v5073_v47 = vpop.f32.mrf.mxu3  ;;  %v5075_v45 = vadd.f32 %v956_v7, %v918_v30  ;;  %v920_v12 = vpop.f32.mrf.mxu1  ;;  %v882_v17 = vadd.f32 %v881_v52, %v4855_v5  ;;  %v3276_v5 = vld [vmem:[%s6368_s0 + $0x17c] sm:$0xf0] }
 0x130   :  { %v3279_v56 = vor.u32 %v3968_v1, %v3276_v5  ;;  %v3310_v52 = vld [vmem:[%s6368_s0 + $0x1a0] sm:$0xf] }
 0x131   :  { %v921_v20 = vadd.f32 %v920_v12, %v882_v17  ;;  %1360 = vmatmul.bf16.gmra.mxu0 %v3403_v48  ;;  %v3975_v48 = vld [vmem:[%s6368_s0 + $0x19c] sm:$0xf]  ;;  %vm979_vm11 = vcmp.ge.f32.partialorder %v5075_v45, 0.0 }
 0x132   :  { %1399 = vmatmul.bf16.gmra.mxu1 %v3407_v43  ;;  %v3304_v43 = vld [vmem:[%s6368_s0 + $0x1b4] sm:$0xf0]  ;;  %v3979_v12 = vld [vmem:[%s6368_s0 + $0x1b8] sm:$0xf0] }
 0x133   :  { %1438 = vmatmul.bf16.gmra.mxu2 %v3411_v13  ;;  %v3508_v13 = vld [vmem:[%s6368_s0 + $0x2d8] sm:$0xf]  ;;  %v4015_v17 = vld [vmem:[%s6368_s0 + $0x2dc] sm:$0xf]  ;;  %v3307_v1 = vor.u32 %v3975_v48, %v3304_v43  ;;  %v3311_v5 = vor.u32 %v3979_v12, %v3310_v52  ;;  %v4025_v48 = vld [vmem:[%s6368_s0 + $0x328] sm:$0xf0] }
 0x134   :  { %1477 = vmatmul.bf16.gmra.mxu3 %v3415_v16  ;;  %v4018_v16 = vld [vmem:[%s6368_s0 + $0x2f0] sm:$0xf0]  ;;  %v3538_v52 = vld [vmem:[%s6368_s0 + $0x32c] sm:$0xf0]  ;;  %v4113_v12 = vld [vmem:[%s6366_s1 + $0x48] sm:$0xff] }
 0x135   :  { %v4022_v43 = vld [vmem:[%s6368_s0 + $0x314] sm:$0xf] }
 0x136   :  { %v959_v21 = vpop.f32.mrf.mxu2  ;;  %v883_v51 = vpop.f32.mrf.mxu0 }
 0x137   :  { %v5078_v11 = vpop.f32.mrf.mxu3  ;;  %v5080_v50 = vadd.f32 %v959_v21, %v921_v20  ;;  %v922_v60 = vpop.f32.mrf.mxu1  ;;  %v884_v15 = vadd.f32 %v883_v51, %v4882_v38  ;;  %v3480_v38 = vld [vmem:[%s6368_s0 + $0x2a0] sm:$0xf]  ;;  %v3510_v20 = vld [vmem:[%s6368_s0 + $0x2f4] sm:$0xf0]  ;;  %v4101_v21 = vld [vmem:[%s6366_s1 + $0x68] sm:$0xff] }
 0x138   :  { %v3481_v4 = vor.u32 %v4011_v61, %v3480_v38  ;;  %v4102_v51 = vld [vmem:[%s6366_s1 + $0xa8] sm:$0xff]  ;;  %v3509_v61 = vor.u32 %v4018_v16, %v3508_v13  ;;  %v3513_v35 = vor.u32 %v4015_v17, %v3510_v20  ;;  %v1298_v17 = vadd.f32 %v4727_v8, %v4976_v59  ;;  %v4117_v59 = vld [vmem:[%s6366_s1 + $0x80] sm:$0xff] }
 0x139   :  { %v923_v18 = vadd.f32 %v922_v60, %v884_v15  ;;  %v4103_v60 = vld [vmem:[%s6366_s1 + $0x28] sm:$0xff]  ;;  %vm980_vm13 = vcmp.ge.f32.partialorder %v5080_v50, 0.0 }
 0x13a   :  { %v4114_v13 = vld [vmem:[%s6366_s1 + $0x88] sm:$0xff] }
 0x13b   :  { %v4115_v16 = vld [vmem:[%s6366_s1 + $0x8] sm:$0xff] }
 0x13e   :  { %v961_v23 = vpop.f32.mrf.mxu2  ;;  %v886_v24 = vpop.f32.mrf.mxu0 }
 0x13f   :  { %v5107_v36 = vpop.f32.mrf.mxu3  ;;  %v5109_v39 = vadd.f32 %v961_v23, %v923_v18  ;;  %v925_v25 = vpop.f32.mrf.mxu1  ;;  %v887_v29 = vadd.f32 %v886_v24, %v4891_v42  ;;  %v4095_v42 = vld [vmem:[%s6366_s1 + $0xb8] sm:$0xff]  ;;  %v4104_v23 = vld [vmem:[%s6366_s1 + $0x60] sm:$0xff] }
 0x141   :  { %v926_v33 = vadd.f32 %v925_v25, %v887_v29  ;;  %1491 = vmatmul.bf16.vlgmr.msrb.gmra.mxu0 %v3279_v56  ;;  %v4105_v56 = vld [vmem:[%s6366_s1 + $0xa0] sm:$0xff]  ;;  %v4108_v25 = vld [vmem:[%s6366_s1 + $0x98] sm:$0xff]  ;;  %vm981_vm15 = vcmp.ge.f32.partialorder %v5109_v39, 0.0 }
 0x142   :  { %3424 = vmatmul.msk.bf16.vlgmr.msrb.gmra.mxu1 %vm682_vm0, %v3283_v32  ;;  %2126 = vmatpush.bf16.msrb.mxu0 %v5119_v40  ;;  %v4106_v32 = vld [vmem:[%s6366_s1 + $0x20] sm:$0xff] }
 0x143   :  { %1894 = vmatmul.bf16.vlgmr.msrb.gmra.mxu2 %v3481_v4  ;;  %2472 = vmatpush.bf16.msrb.mxu1 %v4096_v53  ;;  %v4109_v4 = vld [vmem:[%s6366_s1 + $0x18] sm:$0xff] }
 0x144   :  { %1933 = vmatmul.bf16.vlgmr.msrb.gmra.mxu3 %v3485_v28  ;;  %2511 = vmatpush.bf16.msrb.mxu2 %v4093_v58 }
 0x145   :  { %2550 = vmatpush.bf16.msrb.mxu3 %v4095_v42 }
 0x146   :  { %v964_v30 = vpop.f32.mrf.mxu2  ;;  %v888_v54 = vpop.f32.mrf.mxu0  ;;  %2127 = vmatpush.bf16.msrb.mxu0 %v5139_v6 }
 0x147   :  { %v5128_v41 = vpop.f32.mrf.mxu3  ;;  %v5130_v0 = vadd.f32 %v964_v30, %v926_v33  ;;  %v927_v31 = vpop.f32.mrf.mxu1  ;;  %v889_v62 = vadd.f32 %v888_v54, %v4926_v10  ;;  %v4100_v10 = vld [vmem:[%s6366_s1 + $0x30] sm:$0xff] }
 0x148   :  { %2512 = vmatpush.bf16.msrb.mxu2 %v4097_v46  ;;  %2473 = vmatpush.bf16.msrb.mxu1 %v4100_v10  ;;  %v4110_v30 = vld [vmem:[%s6366_s1 + $0x50] sm:$0xff] }
 0x149   :  { %2551 = vmatpush.bf16.msrb.mxu3 %v4099_v63  ;;  %v928_v7 = vadd.f32 %v927_v31, %v889_v62  ;;  %v4111_v54 = vld [vmem:[%s6366_s1 + $0x90] sm:$0xff]  ;;  %v3338_v63 = vld [vmem:[%s6368_s0 + $0x1d8] sm:$0xf] }
 0x14a   :  { %v4112_v31 = vld [vmem:[%s6366_s1 + $0x10] sm:$0xff] }
 0x14b   :  { %v3332_v46 = vld [vmem:[%s6368_s0 + $0x1ec] sm:$0xf0]  ;;  %v3986_v10 = vld [vmem:[%s6368_s0 + $0x1f0] sm:$0xf0] }
 0x14c   :  { %2513 = vmatpush.bf16.msrb.mxu2 %v4101_v21  ;;  %2474 = vmatpush.bf16.msrb.mxu1 %v4103_v60  ;;  %v3339_v60 = vor.u32 %v3986_v10, %v3338_v63  ;;  %v1303_v63 = vadd.f32 %v4727_v8, %v5010_v14  ;;  %v1305_v14 = vadd.f32 %v4727_v8, %v5039_v57  ;;  %v3394_v57 = vld [vmem:[%s6368_s0 + $0x248] sm:$0xf] }
 0x14d   :  { %2552 = vmatpush.bf16.msrb.mxu3 %v4102_v51 }
 0x14e   :  { %v966_v15 = vpop.f32.mrf.mxu2  ;;  %v891_v34 = vpop.f32.mrf.mxu0 }
 0x14f   :  { %v5181_v18 = vpop.f32.mrf.mxu3  ;;  %v5183_v19 = vadd.f32 %v966_v15, %v928_v7  ;;  %v930_v38 = vpop.f32.mrf.mxu1  ;;  %v892_v22 = vadd.f32 %v891_v34, %v4937_v55  ;;  %v4107_v55 = vld [vmem:[%s6366_s1 + $0x58] sm:$0xff]  ;;  %v3536_v7 = vld [vmem:[%s6368_s0 + $0x310] sm:$0xf] }
 0x150   :  { %2514 = vmatpush.bf16.msrb.mxu2 %v4104_v23  ;;  %2475 = vmatpush.bf16.msrb.mxu1 %v4106_v32  ;;  %v3537_v34 = vor.u32 %v4025_v48, %v3536_v7 }
 0x151   :  { %2553 = vmatpush.bf16.msrb.mxu3 %v4105_v56  ;;  %v931_v24 = vadd.f32 %v930_v38, %v892_v22  ;;  %1496 = vmatmul.bf16.gmra.mxu0 %v3307_v1  ;;  %v3541_v38 = vor.u32 %v4022_v43, %v3538_v52  ;;  %v4118_v22 = vld [vmem:[%s6366_s1] sm:$0xff]  ;;  %v1300_v56 = vadd.f32 %v4727_v8, %v5005_v44  ;;  %v3366_v44 = vld [vmem:[%s6368_s0 + $0x210] sm:$0xf] }
 0x152   :  { %3425 = vmatmul.msk.bf16.gmra.mxu1 %vm682_vm0, %v3311_v5 }
 0x153   :  { %1899 = vmatmul.bf16.gmra.mxu2 %v3509_v61 }
 0x154   :  { %1938 = vmatmul.bf16.gmra.mxu3 %v3513_v35  ;;  %2515 = vmatpush.bf16.msrb.mxu2 %v4107_v55  ;;  %v4116_v35 = vld [vmem:[%s6366_s1 + $0x40] sm:$0xff] }
 0x155   :  { %2554 = vmatpush.bf16.msrb.mxu3 %v4108_v25  ;;  %2476 = vmatpush.bf16.msrb.mxu1 %v4109_v4 }
 0x156   :  { %v969_v28 = vpop.f32.mrf.mxu2  ;;  %v893_v58 = vpop.f32.mrf.mxu0 }
 0x157   :  { %v5205_v29 = vpop.f32.mrf.mxu3  ;;  %v5207_v33 = vadd.f32 %v969_v28, %v931_v24  ;;  %v932_v42 = vpop.f32.mrf.mxu1  ;;  %v894_v53 = vadd.f32 %v893_v58, %v4972_v26  ;;  %v3982_v26 = vld [vmem:[%s6368_s0 + $0x1d4] sm:$0xf] }
 0x158   :  { %2516 = vmatpush.bf16.msrb.mxu2 %v4110_v30  ;;  %v3335_v51 = vor.u32 %v3982_v26, %v3332_v46  ;;  %v3360_v30 = vld [vmem:[%s6368_s0 + $0x224] sm:$0xf0]  ;;  %v4029_v26 = vld [vmem:[%s6368_s0 + $0x34c] sm:$0xf] }
 0x159   :  { %2555 = vmatpush.bf16.msrb.mxu3 %v4111_v54  ;;  %2477 = vmatpush.bf16.msrb.mxu1 %v4112_v31  ;;  %v933_v62 = vadd.f32 %v932_v42, %v894_v53  ;;  %v3989_v53 = vld [vmem:[%s6368_s0 + $0x20c] sm:$0xf]  ;;  %v3564_v31 = vld [vmem:[%s6368_s0 + $0x348] sm:$0xf] }
 0x15a   :  { %v3993_v54 = vld [vmem:[%s6368_s0 + $0x228] sm:$0xf0]  ;;  %v3566_v46 = vld [vmem:[%s6368_s0 + $0x364] sm:$0xf0]  ;;  %v3363_v48 = vor.u32 %v3989_v53, %v3360_v30 }
 0x15b   :  { %v3367_v43 = vor.u32 %v3993_v54, %v3366_v44 }
 0x15c   :  { %2517 = vmatpush.bf16.msrb.mxu2 %v4113_v12 }
 0x15d   :  { %2556 = vmatpush.bf16.msrb.mxu3 %v4114_v13  ;;  %2478 = vmatpush.bf16.msrb.mxu1 %v4115_v16 }
 0x15e   :  { %v971_v20 = vpop.f32.mrf.mxu2  ;;  %v1336_v1 = vpop.f32.mrf.mxu0 }
 0x15f   :  { %v5254_v21 = vpop.f32.mrf.mxu3  ;;  %v5256_v15 = vadd.f32 %v971_v20, %v933_v62  ;;  %v1375_v5 = vpop.f32.mrf.mxu1  ;;  %v1337_v61 = vadd.f32 %v1336_v1, %v1298_v17  ;;  %v4032_v62 = vld [vmem:[%s6368_s0 + $0x360] sm:$0xf0]  ;;  %v3569_v17 = vor.u32 %v4029_v26, %v3566_v46 }
 0x160   :  { %2518 = vmatpush.bf16.msrb.mxu2 %v4116_v35  ;;  %v3565_v16 = vor.u32 %v4032_v62, %v3564_v31 }
 0x161   :  { %2557 = vmatpush.bf16.msrb.mxu3 %v4117_v59  ;;  %2479 = vmatpush.bf16.msrb.mxu1 %v4118_v22  ;;  %v1376_v23 = vadd.f32 %v1375_v5, %v1337_v61 }
 0x162   :  { %1501 = vmatmul.bf16.gmra.mxu0 %v3335_v51  ;;  %3426 = vmatmul.msk.bf16.gmra.mxu1 %vm682_vm0, %v3339_v60 }
 0x163   :  { %1904 = vmatmul.bf16.gmra.mxu2 %v3537_v34 }
 0x164   :  { %1943 = vmatmul.bf16.gmra.mxu3 %v3541_v38 }
 0x166   :  { %v1414_v32 = vpop.f32.mrf.mxu2  ;;  %v1338_v25 = vpop.f32.mrf.mxu0 }
 0x167   :  { %v1453_v24 = vpop.f32.mrf.mxu3  ;;  %v1415_v55 = vadd.f32 %v1414_v32, %v1376_v23  ;;  %v1377_v4 = vpop.f32.mrf.mxu1  ;;  %v1339_v28 = vadd.f32 %v1338_v25, %v1300_v56  ;;  %v3996_v23 = vld [vmem:[%s6368_s0 + $0x244] sm:$0xf]  ;;  %v3388_v56 = vld [vmem:[%s6368_s0 + $0x25c] sm:$0xf0] }
 0x168   :  { %v4000_v32 = vld [vmem:[%s6368_s0 + $0x260] sm:$0xf0]  ;;  %v3391_v30 = vor.u32 %v3996_v23, %v3388_v56 }
 0x169   :  { %v5270_v58 = vadd.f32 %v1453_v24, %v1415_v55  ;;  %v1378_v42 = vadd.f32 %v1377_v4, %v1339_v28  ;;  %v3592_v24 = vld [vmem:[%s6368_s0 + $0x380] sm:$0xf]  ;;  %v4039_v55 = vld [vmem:[%s6368_s0 + $0x398] sm:$0xf0]  ;;  %v4036_v25 = vld [vmem:[%s6368_s0 + $0x384] sm:$0xf]  ;;  %v1308_v28 = vadd.f32 %v4727_v8, %v5044_v2  ;;  %v3395_v44 = vor.u32 %v4000_v32, %v3394_v57 }
 0x16a   :  { %v3594_v4 = vld [vmem:[%s6368_s0 + $0x39c] sm:$0xf0]  ;;  %v3593_v26 = vor.u32 %v4039_v55, %v3592_v24 }
 0x16b   :  { %v3597_v46 = vor.u32 %v4036_v25, %v3594_v4  ;;  %v5337_v8 = vld [vmem:[%s6367_s2] ss:$0 sm:$0xff] }
 0x16c   :  { %v1310_v2 = vadd.f32 %v5337_v8, %v5073_v47  ;;  %v3422_v47 = vld [vmem:[%s6368_s0 + $0x280] sm:$0xf] }
 0x16e   :  { %v1416_v10 = vpop.f32.mrf.mxu2  ;;  %v1341_v12 = vpop.f32.mrf.mxu0 }
 0x16f   :  { %v1455_v7 = vpop.f32.mrf.mxu3  ;;  %v1417_v52 = vadd.f32 %v1416_v10, %v1378_v42  ;;  %v1380_v13 = vpop.f32.mrf.mxu1  ;;  %v1342_v20 = vadd.f32 %v1341_v12, %v1303_v63 }
 0x171   :  { %v5298_v51 = vadd.f32 %v1455_v7, %v1417_v52  ;;  %v1381_v60 = vadd.f32 %v1380_v13, %v1342_v20 }
 0x172   :  { %1506 = vmatmul.bf16.gmra.mxu0 %v3363_v48  ;;  %3427 = vmatmul.msk.bf16.gmra.mxu1 %vm682_vm0, %v3367_v43 }
 0x173   :  { %1909 = vmatmul.bf16.gmra.mxu2 %v3565_v16 }
 0x174   :  { %1948 = vmatmul.bf16.gmra.mxu3 %v3569_v17 }
 0x176   :  { %v1419_v1 = vpop.f32.mrf.mxu2  ;;  %v1343_v38 = vpop.f32.mrf.mxu0 }
 0x177   :  { %v1458_v5 = vpop.f32.mrf.mxu3  ;;  %v1420_v34 = vadd.f32 %v1419_v1, %v1381_v60  ;;  %v1382_v61 = vpop.f32.mrf.mxu1  ;;  %v1344_v35 = vadd.f32 %v1343_v38, %v1305_v14  ;;  %v4003_v60 = vld [vmem:[%s6368_s0 + $0x27c] sm:$0xf]  ;;  %v3416_v14 = vld [vmem:[%s6368_s0 + $0x294] sm:$0xf0] }
 0x178   :  { %v4007_v1 = vld [vmem:[%s6368_s0 + $0x298] sm:$0xf0]  ;;  %v3419_v56 = vor.u32 %v4003_v60, %v3416_v14 }
 0x179   :  { %v5303_v59 = vadd.f32 %v1458_v5, %v1420_v34  ;;  %v1383_v22 = vadd.f32 %v1382_v61, %v1344_v35  ;;  %v3620_v5 = vld [vmem:[%s6368_s0 + $0x3b8] sm:$0xf]  ;;  %v4046_v34 = vld [vmem:[%s6368_s0 + $0x3d0] sm:$0xf0]  ;;  %v4043_v38 = vld [vmem:[%s6368_s0 + $0x3bc] sm:$0xf]  ;;  %v1313_v35 = vadd.f32 %v5337_v8, %v5078_v11  ;;  %v3423_v57 = vor.u32 %v4007_v1, %v3422_v47 }
 0x17a   :  { %v3622_v61 = vld [vmem:[%s6368_s0 + $0x3d4] sm:$0xf0]  ;;  %v3621_v25 = vor.u32 %v4046_v34, %v3620_v5  ;;  %v1315_v11 = vadd.f32 %v5337_v8, %v5107_v36  ;;  %v4009_v36 = vld [vmem:[%s6368_s0 + $0x2ac] sm:$0xf] }
 0x17b   :  { %v3625_v4 = vor.u32 %v4043_v38, %v3622_v61 }
 0x17e   :  { %v1421_v42 = vpop.f32.mrf.mxu2  ;;  %v1346_v31 = vpop.f32.mrf.mxu0 }
 0x17f   :  { %v1460_v53 = vpop.f32.mrf.mxu3  ;;  %v1422_v54 = vadd.f32 %v1421_v42, %v1383_v22  ;;  %v1385_v62 = vpop.f32.mrf.mxu1  ;;  %v1347_v63 = vadd.f32 %v1346_v31, %v1308_v28 }
 0x181   :  { %v5331_v10 = vadd.f32 %v1460_v53, %v1422_v54  ;;  %v1386_v7 = vadd.f32 %v1385_v62, %v1347_v63 }
 0x182   :  { %1511 = vmatmul.bf16.gmra.mxu0 %v3391_v30  ;;  %3428 = vmatmul.msk.bf16.gmra.mxu1 %vm682_vm0, %v3395_v44 }
 0x183   :  { %1914 = vmatmul.bf16.gmra.mxu2 %v3593_v26 }
 0x184   :  { %1953 = vmatmul.bf16.gmra.mxu3 %v3597_v46 }
 0x186   :  { %v1424_v48 = vpop.f32.mrf.mxu2  ;;  %v1348_v12 = vpop.f32.mrf.mxu0 }
 0x187   :  { %v1463_v43 = vpop.f32.mrf.mxu3  ;;  %v1425_v52 = vadd.f32 %v1424_v48, %v1386_v7  ;;  %v1387_v13 = vpop.f32.mrf.mxu1  ;;  %v1349_v16 = vadd.f32 %v1348_v12, %v1310_v2  ;;  %v3488_v7 = vld [vmem:[%s6368_s0 + $0x2a8] sm:$0xf]  ;;  %v4012_v2 = vld [vmem:[%s6368_s0 + $0x2c0] sm:$0xf0]  ;;  %v4010_v12 = vld [vmem:[%s6368_s0 + $0x2b4] sm:$0xf] }
 0x188   :  { %v3490_v48 = vld [vmem:[%s6368_s0 + $0x2c4] sm:$0xf0]  ;;  %v3489_v14 = vor.u32 %v4012_v2, %v3488_v7  ;;  %v4017_v7 = vld [vmem:[%s6368_s0 + $0x2ec] sm:$0xf] }
 0x189   :  { %v5341_v17 = vadd.f32 %v1463_v43, %v1425_v52  ;;  %v1388_v20 = vadd.f32 %v1387_v13, %v1349_v16  ;;  %v3496_v43 = vld [vmem:[%s6368_s0 + $0x2b0] sm:$0xf]  ;;  %v4013_v52 = vld [vmem:[%s6368_s0 + $0x2c8] sm:$0xf0]  ;;  %v1318_v16 = vadd.f32 %v5337_v8, %v5128_v41  ;;  %v3493_v47 = vor.u32 %v4009_v36, %v3490_v48  ;;  %v4120_v41 = vld [vmem:[%s6366_s1 + $0x178] sm:$0xff] }
 0x18a   :  { %v3498_v13 = vld [vmem:[%s6368_s0 + $0x2cc] sm:$0xf0]  ;;  %v3497_v38 = vor.u32 %v4013_v52, %v3496_v43  ;;  %v3526_v2 = vld [vmem:[%s6368_s0 + $0x304] sm:$0xf0]  ;;  %v1323_v52 = vadd.f32 %v5337_v8, %v5205_v29 }
 0x18b   :  { %v3501_v61 = vor.u32 %v4010_v12, %v3498_v13  ;;  %v4126_v36 = vld [vmem:[%s6366_s1 + $0x168] sm:$0xff] }
 0x18c   :  { %v4127_v48 = vld [vmem:[%s6366_s1 + $0xe8] sm:$0xff] }
 0x18d   :  { %v4128_v43 = vld [vmem:[%s6366_s1 + $0x128] sm:$0xff] }
 0x18e   :  { %v1426_v22 = vpop.f32.mrf.mxu2  ;;  %v1351_v24 = vpop.f32.mrf.mxu0 }
 0x18f   :  { %v1465_v23 = vpop.f32.mrf.mxu3  ;;  %v1427_v32 = vadd.f32 %v1426_v22, %v1388_v20  ;;  %v1390_v55 = vpop.f32.mrf.mxu1  ;;  %v1352_v28 = vadd.f32 %v1351_v24, %v1313_v35 }
 0x191   :  { %v5369_v42 = vadd.f32 %v1465_v23, %v1427_v32  ;;  %v1391_v53 = vadd.f32 %v1390_v55, %v1352_v28  ;;  %v1320_v32 = vadd.f32 %v5337_v8, %v5181_v18  ;;  %v4125_v18 = vld [vmem:[%s6366_s1 + $0x130] sm:$0xff] }
 0x192   :  { %1516 = vmatmul.bf16.gmra.mxu0 %v3419_v56  ;;  %3429 = vmatmul.msk.bf16.gmra.mxu1 %vm682_vm0, %v3423_v57  ;;  %v4121_v56 = vld [vmem:[%s6366_s1 + $0xf8] sm:$0xff] }
 0x193   :  { %1919 = vmatmul.bf16.gmra.mxu2 %v3621_v25  ;;  %v4122_v57 = vld [vmem:[%s6366_s1 + $0x138] sm:$0xff] }
 0x194   :  { %1958 = vmatmul.bf16.gmra.mxu3 %v3625_v4 }
 0x196   :  { %v1429_v30 = vpop.f32.mrf.mxu2  ;;  %v1353_v31 = vpop.f32.mrf.mxu0 }
 0x197   :  { %v1468_v44 = vpop.f32.mrf.mxu3  ;;  %v1430_v54 = vadd.f32 %v1429_v30, %v1391_v53  ;;  %v1392_v62 = vpop.f32.mrf.mxu1  ;;  %v1354_v26 = vadd.f32 %v1353_v31, %v1315_v11  ;;  %v4123_v11 = vld [vmem:[%s6366_s1 + $0x170] sm:$0xff]  ;;  %v4019_v31 = vld [vmem:[%s6368_s0 + $0x2f8] sm:$0xf0] }
 0x199   :  { %v5374_v46 = vadd.f32 %v1468_v44, %v1430_v54  ;;  %v1393_v63 = vadd.f32 %v1392_v62, %v1354_v26  ;;  %v3516_v54 = vld [vmem:[%s6368_s0 + $0x2e0] sm:$0xf]  ;;  %v4016_v62 = vld [vmem:[%s6368_s0 + $0x2e4] sm:$0xf] }
 0x19a   :  { %v3518_v26 = vld [vmem:[%s6368_s0 + $0x2fc] sm:$0xf0] }
 0x19e   :  { %v1431_v20 = vpop.f32.mrf.mxu2  ;;  %v1356_v5 = vpop.f32.mrf.mxu0 }
 0x19f   :  { %v1470_v60 = vpop.f32.mrf.mxu3  ;;  %v1432_v1 = vadd.f32 %v1431_v20, %v1393_v63  ;;  %v1395_v34 = vpop.f32.mrf.mxu1  ;;  %v1357_v35 = vadd.f32 %v1356_v5, %v1318_v16  ;;  %v4020_v63 = vld [vmem:[%s6368_s0 + $0x300] sm:$0xf0]  ;;  %v3517_v16 = vor.u32 %v4019_v31, %v3516_v54  ;;  %v3521_v20 = vor.u32 %v4016_v62, %v3518_v26  ;;  %v3544_v54 = vld [vmem:[%s6368_s0 + $0x318] sm:$0xf]  ;;  %v4026_v31 = vld [vmem:[%s6368_s0 + $0x330] sm:$0xf0] }
 0x1a0   :  { %v3529_v5 = vor.u32 %v4017_v7, %v3526_v2  ;;  %v4023_v62 = vld [vmem:[%s6368_s0 + $0x31c] sm:$0xf]  ;;  %v3546_v26 = vld [vmem:[%s6368_s0 + $0x334] sm:$0xf0]  ;;  %v4024_v7 = vld [vmem:[%s6368_s0 + $0x324] sm:$0xf] }
 0x1a1   :  { %v5402_v22 = vadd.f32 %v1470_v60, %v1432_v1  ;;  %v1396_v23 = vadd.f32 %v1395_v34, %v1357_v35  ;;  %v4131_v35 = vld [vmem:[%s6366_s1 + $0x120] sm:$0xff] }
 0x1a2   :  { %1972 = vmatmul.bf16.vlgmr.msra.gmra.mxu0 %v3489_v14  ;;  %2011 = vmatmul.bf16.vlgmr.msra.gmra.mxu1 %v3493_v47  ;;  %v3554_v2 = vld [vmem:[%s6368_s0 + $0x33c] sm:$0xf0] }
 0x1a3   :  { %2050 = vmatmul.bf16.vlgmr.msra.gmra.mxu2 %v3497_v38  ;;  %2589 = vmatpush.bf16.msra.mxu0 %v4121_v56  ;;  %v4129_v38 = vld [vmem:[%s6366_s1 + $0x160] sm:$0xff]  ;;  %v4133_v56 = vld [vmem:[%s6366_s1 + $0xd8] sm:$0xff] }
 0x1a4   :  { %2089 = vmatmul.bf16.vlgmr.msra.gmra.mxu3 %v3501_v61  ;;  %2667 = vmatpush.bf16.msra.mxu2 %v4120_v41  ;;  %v4130_v61 = vld [vmem:[%s6366_s1 + $0xe0] sm:$0xff]  ;;  %v4132_v41 = vld [vmem:[%s6366_s1 + $0x158] sm:$0xff] }
 0x1a5   :  { %2712 = vmatpush.bf16.msra.mxu3 %v5119_v40  ;;  %2628 = vmatpush.bf16.msra.mxu1 %v4122_v57  ;;  %v4124_v40 = vld [vmem:[%s6366_s1 + $0xf0] sm:$0xff]  ;;  %v4134_v57 = vld [vmem:[%s6366_s1 + $0x118] sm:$0xff] }
 0x1a6   :  { %v1434_v24 = vpop.f32.mrf.mxu2  ;;  %v1358_v4 = vpop.f32.mrf.mxu0 }
 0x1a7   :  { %v1473_v55 = vpop.f32.mrf.mxu3  ;;  %v1435_v25 = vadd.f32 %v1434_v24, %v1396_v23  ;;  %v1397_v28 = vpop.f32.mrf.mxu1  ;;  %v1359_v53 = vadd.f32 %v1358_v4, %v1320_v32  ;;  %2590 = vmatpush.bf16.msra.mxu0 %v4124_v40  ;;  %v1325_v32 = vadd.f32 %v5337_v8, %v5254_v21  ;;  %v4136_v40 = vld [vmem:[%s6366_s1 + $0xd0] sm:$0xff] }
 0x1a8   :  { %2668 = vmatpush.bf16.msra.mxu2 %v4123_v11  ;;  %v4135_v11 = vld [vmem:[%s6366_s1 + $0x150] sm:$0xff] }
 0x1a9   :  { %v5422_v30 = vadd.f32 %v1473_v55, %v1435_v25  ;;  %2629 = vmatpush.bf16.msra.mxu1 %v4125_v18  ;;  %2713 = vmatpush.bf16.msra.mxu3 %v5139_v6  ;;  %v1398_v44 = vadd.f32 %v1397_v28, %v1359_v53  ;;  %v3524_v6 = vld [vmem:[%s6368_s0 + $0x2e8] sm:$0xf]  ;;  %v4137_v21 = vld [vmem:[%s6366_s1 + $0x110] sm:$0xff] }
 0x1aa   :  { %v3525_v1 = vor.u32 %v4020_v63, %v3524_v6  ;;  %v3552_v6 = vld [vmem:[%s6368_s0 + $0x320] sm:$0xf]  ;;  %v4027_v63 = vld [vmem:[%s6368_s0 + $0x338] sm:$0xf0] }
 0x1ab   :  { %2591 = vmatpush.bf16.msra.mxu0 %v4127_v48  ;;  %v4139_v48 = vld [vmem:[%s6366_s1 + $0xc8] sm:$0xff] }
 0x1ac   :  { %2669 = vmatpush.bf16.msra.mxu2 %v4126_v36  ;;  %v4138_v36 = vld [vmem:[%s6366_s1 + $0x148] sm:$0xff] }
 0x1ad   :  { %2630 = vmatpush.bf16.msra.mxu1 %v4128_v43  ;;  %v4140_v43 = vld [vmem:[%s6366_s1 + $0x108] sm:$0xff] }
 0x1ae   :  { %v1436_v12 = vpop.f32.mrf.mxu2  ;;  %v1361_v14 = vpop.f32.mrf.mxu0 }
 0x1af   :  { %v1475_v13 = vpop.f32.mrf.mxu3  ;;  %v1437_v60 = vadd.f32 %v1436_v12, %v1398_v44  ;;  %v1400_v47 = vpop.f32.mrf.mxu1  ;;  %v1362_v34 = vadd.f32 %v1361_v14, %v1323_v52  ;;  %2592 = vmatpush.bf16.msra.mxu0 %v4130_v61  ;;  %v4142_v61 = vld [vmem:[%s6366_s1 + $0xc0] sm:$0xff] }
 0x1b0   :  { %2670 = vmatpush.bf16.msra.mxu2 %v4129_v38  ;;  %v4141_v38 = vld [vmem:[%s6366_s1 + $0x140] sm:$0xff] }
 0x1b1   :  { %v5469_v29 = vadd.f32 %v1475_v13, %v1437_v60  ;;  %2631 = vmatpush.bf16.msra.mxu1 %v4131_v35  ;;  %v1401_v23 = vadd.f32 %v1400_v47, %v1362_v34  ;;  %v3545_v13 = vor.u32 %v4026_v31, %v3544_v54  ;;  %v4033_v54 = vld [vmem:[%s6368_s0 + $0x368] sm:$0xf0]  ;;  %v3574_v31 = vld [vmem:[%s6368_s0 + $0x36c] sm:$0xf0] }
 0x1b2   :  { %1977 = vmatmul.bf16.gmra.mxu0 %v3517_v16  ;;  %2016 = vmatmul.bf16.gmra.mxu1 %v3521_v20  ;;  %v3549_v16 = vor.u32 %v4023_v62, %v3546_v26  ;;  %v5532_v20 = vstv %s6369_s3  ;;  %v3580_v62 = vld [vmem:[%s6368_s0 + $0x358] sm:$0xf]  ;;  %v4034_v26 = vld [vmem:[%s6368_s0 + $0x370] sm:$0xf0] }
 0x1b3   :  { %2055 = vmatmul.bf16.gmra.mxu2 %v3525_v1  ;;  %2593 = vmatpush.bf16.msra.mxu0 %v4133_v56  ;;  %v3553_v1 = vor.u32 %v4027_v63, %v3552_v6  ;;  %v4031_v63 = vld [vmem:[%s6368_s0 + $0x35c] sm:$0xf] }
 0x1b4   :  { %2094 = vmatmul.bf16.gmra.mxu3 %v3529_v5  ;;  %2671 = vmatpush.bf16.msra.mxu2 %v4132_v41  ;;  %v3557_v5 = vor.u32 %v4024_v7, %v3554_v2  ;;  %v3582_v7 = vld [vmem:[%s6368_s0 + $0x374] sm:$0xf0] }
 0x1b5   :  { %2632 = vmatpush.bf16.msra.mxu1 %v4134_v57 }
 0x1b6   :  { %v1439_v24 = vpop.f32.mrf.mxu2  ;;  %v1363_v4 = vpop.f32.mrf.mxu0 }
 0x1b7   :  { %v1478_v55 = vpop.f32.mrf.mxu3  ;;  %v1440_v25 = vadd.f32 %v1439_v24, %v1401_v23  ;;  %v1402_v28 = vpop.f32.mrf.mxu1  ;;  %v1364_v53 = vadd.f32 %v1363_v4, %v1325_v32  ;;  %2594 = vmatpush.bf16.msra.mxu0 %v4136_v40  ;;  %v4143_v23 = vld [vmem:[%s6366_s1 + $0x100] sm:$0xff] }
 0x1b8   :  { %2672 = vmatpush.bf16.msra.mxu2 %v4135_v11 }
 0x1b9   :  { %v5491_v18 = vadd.f32 %v1478_v55, %v1440_v25  ;;  %2633 = vmatpush.bf16.msra.mxu1 %v4137_v21  ;;  %v1403_v44 = vadd.f32 %v1402_v28, %v1364_v53 }
 0x1bb   :  { %2595 = vmatpush.bf16.msra.mxu0 %v4139_v48 }
 0x1bc   :  { %2673 = vmatpush.bf16.msra.mxu2 %v4138_v36 }
 0x1bd   :  { %2634 = vmatpush.bf16.msra.mxu1 %v4140_v43 }
 0x1be   :  { %v1441_v52 = vpop.f32.mrf.mxu2  ;;  %v1492_v14 = vpop.f32.mrf.mxu0 }
 0x1bf   :  { %v1480_v12 = vpop.f32.mrf.mxu3  ;;  %v1442_v60 = vadd.f32 %v1441_v52, %v1403_v44  ;;  %v1531_v47 = vpop.f32.mrf.mxu1  ;;  %v1493_v34 = vadd.f32 %v1492_v14, %v5270_v58  ;;  %2596 = vmatpush.bf16.msra.mxu0 %v4142_v61  ;;  %v987_v58 = vmul.f32 %v5532_v20, %v4978_v3  ;;  %v3572_v44 = vld [vmem:[%s6368_s0 + $0x350] sm:$0xf] }
 0x1c0   :  { %2674 = vmatpush.bf16.msra.mxu2 %v4141_v38  ;;  %v3573_v52 = vor.u32 %v4033_v54, %v3572_v44  ;;  %v3602_v44 = vld [vmem:[%s6368_s0 + $0x3a4] sm:$0xf0]  ;;  %v3608_v54 = vld [vmem:[%s6368_s0 + $0x390] sm:$0xf] }
 0x1c1   :  { %v5541_v35 = vadd.f32 %v1480_v12, %v1442_v60  ;;  %2635 = vmatpush.bf16.msra.mxu1 %v4143_v23  ;;  %v1532_v41 = vadd.f32 %v1531_v47, %v1493_v34  ;;  %v5551_v57 = vsel %vm974_vm1, %v4978_v3, %v987_v58  ;;  %v988_v3 = vmul.f32 %v5532_v20, %v5007_v9 }
 0x1c2   :  { %1982 = vmatmul.bf16.gmra.mxu0 %v3545_v13  ;;  %2021 = vmatmul.bf16.gmra.mxu1 %v3549_v16  ;;  %v3581_v47 = vor.u32 %v4034_v26, %v3580_v62  ;;  %v4038_v62 = vld [vmem:[%s6368_s0 + $0x394] sm:$0xf]  ;;  %v3610_v26 = vld [vmem:[%s6368_s0 + $0x3ac] sm:$0xf0] }
 0x1c3   :  { %2060 = vmatmul.bf16.gmra.mxu2 %v3553_v1  ;;  %vm1561_vm2 = vcmp.ge.f32.partialorder %v1532_v41, 0.0  ;;  %v1573_v56 = vmul.f32 %v1532_v41, %v5532_v20  ;;  %v5590_v2 = vsel %vm975_vm3, %v5007_v9, %v988_v3  ;;  %v3585_v1 = vor.u32 %v4031_v63, %v3582_v7  ;;  %v3600_v3 = vld [vmem:[%s6368_s0 + $0x388] sm:$0xf] }
 0x1c4   :  { %2099 = vmatmul.bf16.gmra.mxu3 %v3557_v5  ;;  %v989_v9 = vmul.f32 %v5532_v20, %v5012_v49 }
 0x1c5   :  { %v5553_v32 = vsel %vm1561_vm2, %v1532_v41, %v1573_v56  ;;  %vm982_vm2 = vcmp.ge.f32.partialorder %v5130_v0, 0.0 }
 0x1c6   :  { %v1895_v24 = vpop.f32.mrf.mxu2  ;;  %v1494_v28 = vpop.f32.mrf.mxu0  ;;  %v5605_v23 = vsel %vm976_vm5, %v5012_v49, %v989_v9  ;;  %v990_v49 = vmul.f32 %v5532_v20, %v5041_v37 }
 0x1c7   :  { %v1934_v55 = vpop.f32.mrf.mxu3  ;;  %v1896_v4 = vadd.f32 %v5337_v8, %v1895_v24  ;;  %v1533_v53 = vpop.f32.mrf.mxu1  ;;  %v1495_v11 = vadd.f32 %v1494_v28, %v5298_v51  ;;  %v4030_v51 = vld [vmem:[%s6368_s0 + $0x354] sm:$0xf] }
 0x1c8   :  { %v3577_v12 = vor.u32 %v4030_v51, %v3574_v31  ;;  %v4041_v51 = vld [vmem:[%s6368_s0 + $0x3a8] sm:$0xf0] }
 0x1c9   :  { %v5560_v40 = vadd.f32 %v1934_v55, %v1896_v4  ;;  %v1534_v21 = vadd.f32 %v1533_v53, %v1495_v11 }
 0x1cb   :  { %vm1562_vm4 = vcmp.ge.f32.partialorder %v1534_v21, 0.0  ;;  %v1574_v6 = vmul.f32 %v1534_v21, %v5532_v20 }
 0x1cd   :  { %v5592_v36 = vsel %vm1562_vm4, %v1534_v21, %v1574_v6  ;;  %v4040_v21 = vld [vmem:[%s6368_s0 + $0x3a0] sm:$0xf0]  ;;  %v5644_v6 = vsel %vm977_vm7, %v5041_v37, %v990_v49  ;;  %v991_v37 = vmul.f32 %v5532_v20, %v5046_v27  ;;  %vm983_vm4 = vcmp.ge.f32.partialorder %v5183_v19, 0.0 }
 0x1ce   :  { %v1897_v48 = vpop.f32.mrf.mxu2  ;;  %v1497_v60 = vpop.f32.mrf.mxu0 }
 0x1cf   :  { %v1936_v43 = vpop.f32.mrf.mxu3  ;;  %v1898_v16 = vadd.f32 %v5337_v8, %v1897_v48  ;;  %v1536_v14 = vpop.f32.mrf.mxu1  ;;  %v1498_v5 = vadd.f32 %v1497_v60, %v5303_v59 }
 0x1d1   :  { %v5598_v34 = vadd.f32 %v1936_v43, %v1898_v16  ;;  %v1537_v38 = vadd.f32 %v1536_v14, %v1498_v5  ;;  %v3601_v43 = vor.u32 %v4040_v21, %v3600_v3 }
 0x1d2   :  { %1987 = vmatmul.bf16.gmra.mxu0 %v3573_v52  ;;  %2026 = vmatmul.bf16.gmra.mxu1 %v3577_v12 }
 0x1d3   :  { %2065 = vmatmul.bf16.gmra.mxu2 %v3581_v47  ;;  %vm1563_vm6 = vcmp.ge.f32.partialorder %v1537_v38, 0.0  ;;  %v1575_v61 = vmul.f32 %v1537_v38, %v5532_v20  ;;  %v3609_v47 = vor.u32 %v4041_v51, %v3608_v54  ;;  %v3630_v54 = vld [vmem:[%s6368_s0 + $0x3dc] sm:$0xf0]  ;;  %v3636_v51 = vld [vmem:[%s6368_s0 + $0x3c8] sm:$0xf] }
 0x1d4   :  { %2104 = vmatmul.bf16.gmra.mxu3 %v3585_v1  ;;  %v3613_v1 = vor.u32 %v4038_v62, %v3610_v26  ;;  %v4045_v26 = vld [vmem:[%s6368_s0 + $0x3cc] sm:$0xf] }
 0x1d5   :  { %v5607_v58 = vsel %vm1563_vm6, %v1537_v38, %v1575_v61  ;;  %vm984_vm6 = vcmp.ge.f32.partialorder %v5207_v33, 0.0 }
 0x1d6   :  { %v1900_v59 = vpop.f32.mrf.mxu2  ;;  %v1499_v55 = vpop.f32.mrf.mxu0 }
 0x1d7   :  { %v1939_v41 = vpop.f32.mrf.mxu3  ;;  %v1901_v24 = vadd.f32 %v5337_v8, %v1900_v59  ;;  %v1538_v4 = vpop.f32.mrf.mxu1  ;;  %v1500_v28 = vadd.f32 %v1499_v55, %v5331_v10  ;;  %v4037_v10 = vld [vmem:[%s6368_s0 + $0x38c] sm:$0xf]  ;;  %v5659_v59 = vsel %vm978_vm9, %v5046_v27, %v991_v37  ;;  %v992_v27 = vmul.f32 %v5532_v20, %v5075_v45 }
 0x1d8   :  { %v3605_v52 = vor.u32 %v4037_v10, %v3602_v44  ;;  %v3628_v10 = vld [vmem:[%s6368_s0 + $0x3c0] sm:$0xf]  ;;  %v4047_v44 = vld [vmem:[%s6368_s0 + $0x3d8] sm:$0xf0] }
 0x1d9   :  { %v5614_v53 = vadd.f32 %v1939_v41, %v1901_v24  ;;  %v1539_v11 = vadd.f32 %v1538_v4, %v1500_v28 }
 0x1db   :  { %vm1564_vm8 = vcmp.ge.f32.partialorder %v1539_v11, 0.0  ;;  %v1576_v31 = vmul.f32 %v1539_v11, %v5532_v20 }
 0x1dd   :  { %v5646_v63 = vsel %vm1564_vm8, %v1539_v11, %v1576_v31  ;;  %v4048_v31 = vld [vmem:[%s6368_s0 + $0x3e0] sm:$0xf0]  ;;  %vm985_vm8 = vcmp.ge.f32.partialorder %v5256_v15, 0.0 }
 0x1de   :  { %v1902_v7 = vpop.f32.mrf.mxu2 }
 0x1df   :  { %v1941_v48 = vpop.f32.mrf.mxu3  ;;  %v1903_v16 = vadd.f32 %v5337_v8, %v1902_v7  ;;  %v1502_v60 = vpop.f32.mrf.mxu0  ;;  %v3638_v7 = vld [vmem:[%s6368_s0 + $0x3e4] sm:$0xf0] }
 0x1e0   :  { %v1541_v14 = vpop.f32.mrf.mxu1  ;;  %v1503_v5 = vadd.f32 %v1502_v60, %v5341_v17  ;;  %v3629_v60 = vor.u32 %v4047_v44, %v3628_v10 }
 0x1e1   :  { %v5652_v9 = vadd.f32 %v1941_v48, %v1903_v16  ;;  %v5698_v48 = vsel %vm979_vm11, %v5075_v45, %v992_v27  ;;  %v993_v45 = vmul.f32 %v5532_v20, %v5080_v50  ;;  %vm2817_vm11 = vcmask 519168  }
 0x1e2   :  { %v1542_v38 = vadd.f32 %v1541_v14, %v1503_v5  ;;  %1992 = vmatmul.bf16.gmra.mxu0 %v3601_v43  ;;  %2031 = vmatmul.bf16.gmra.mxu1 %v3605_v52 }
 0x1e3   :  { %2070 = vmatmul.bf16.gmra.mxu2 %v3609_v47 }
 0x1e4   :  { %2109 = vmatmul.bf16.gmra.mxu3 %v3613_v1  ;;  %vm1565_vm10 = vcmp.ge.f32.partialorder %v1542_v38, 0.0  ;;  %v1577_v61 = vmul.f32 %v1542_v38, %v5532_v20 }
 0x1e6   :  { %v5661_v41 = vsel %vm1565_vm10, %v1542_v38, %v1577_v61  ;;  %v1905_v17 = vpop.f32.mrf.mxu2  ;;  %v3637_v38 = vor.u32 %v4048_v31, %v3636_v51  ;;  %v3641_v61 = vor.u32 %v4045_v26, %v3638_v7  ;;  %v4014_v26 = vld [vmem:[%s6368_s0 + $0x2d0] sm:$0xf0]  ;;  %v4053_v7 = vld [vmem:[%s6368_s0 + $0x408] sm:$0xf0] }
 0x1e7   :  { %v1944_v24 = vpop.f32.mrf.mxu3  ;;  %v1906_v4 = vadd.f32 %v5337_v8, %v1905_v17  ;;  %v1504_v28 = vpop.f32.mrf.mxu0 }
 0x1e8   :  { %v1543_v49 = vpop.f32.mrf.mxu1  ;;  %v1505_v11 = vadd.f32 %v1504_v28, %v5369_v42  ;;  %v4044_v42 = vld [vmem:[%s6368_s0 + $0x3c4] sm:$0xf] }
 0x1e9   :  { %v5668_v3 = vadd.f32 %v1944_v24, %v1906_v4  ;;  %v3633_v14 = vor.u32 %v4044_v42, %v3630_v54 }
 0x1ea   :  { %v1544_v21 = vadd.f32 %v1543_v49, %v1505_v11  ;;  %v5713_v49 = vsel %vm980_vm13, %v5080_v50, %v993_v45  ;;  %v994_v50 = vmul.f32 %v5532_v20, %v5109_v39 }
 0x1ec   :  { %vm1566_vm12 = vcmp.ge.f32.partialorder %v1544_v21, 0.0  ;;  %v1578_v62 = vmul.f32 %v1544_v21, %v5532_v20 }
 0x1ee   :  { %v5700_v43 = vsel %vm1566_vm12, %v1544_v21, %v1578_v62  ;;  %v1907_v52 = vpop.f32.mrf.mxu2  ;;  %v3504_v62 = vld [vmem:[%s6368_s0 + $0x2b8] sm:$0xf] }
 0x1ef   :  { %v1946_v16 = vpop.f32.mrf.mxu3  ;;  %v1908_v1 = vadd.f32 %v5337_v8, %v1907_v52  ;;  %v1507_v5 = vpop.f32.mrf.mxu0  ;;  %v4050_v52 = vld [vmem:[%s6368_s0 + $0x3f4] sm:$0xf] }
 0x1f0   :  { %v1546_v37 = vpop.f32.mrf.mxu1  ;;  %v1508_v17 = vadd.f32 %v1507_v5, %v5374_v46  ;;  %v5752_v5 = vsel %vm981_vm15, %v5109_v39, %v994_v50  ;;  %v995_v39 = vmul.f32 %v5532_v20, %v5130_v0 }
 0x1f1   :  { %v5706_v24 = vadd.f32 %v1946_v16, %v1908_v1  ;;  %v3704_v16 = vld [vmem:[%s6368_s0 + $0x40c] sm:$0xf0]  ;;  %v4054_v1 = vld [vmem:[%s6368_s0 + $0x410] sm:$0xf0] }
 0x1f2   :  { %v1547_v4 = vadd.f32 %v1546_v37, %v1508_v17  ;;  %1997 = vmatmul.bf16.gmra.mxu0 %v3629_v60  ;;  %2036 = vmatmul.bf16.gmra.mxu1 %v3633_v14  ;;  %v3710_v14 = vld [vmem:[%s6368_s0 + $0x3f8] sm:$0xf]  ;;  %v3505_v17 = vor.u32 %v4014_v26, %v3504_v62  ;;  %v5768_v62 = vsel %vm982_vm2, %v5130_v0, %v995_v39 }
 0x1f3   :  { %2075 = vmatmul.bf16.gmra.mxu2 %v3637_v38  ;;  %v996_v0 = vmul.f32 %v5532_v20, %v5183_v19 }
 0x1f4   :  { %2114 = vmatmul.bf16.gmra.mxu3 %v3641_v61  ;;  %vm1567_vm14 = vcmp.ge.f32.partialorder %v1547_v4, 0.0  ;;  %v1579_v28 = vmul.f32 %v1547_v4, %v5532_v20 }
 0x1f6   :  { %v5715_v11 = vsel %vm1567_vm14, %v1547_v4, %v1579_v28  ;;  %v1910_v46 = vpop.f32.mrf.mxu2 }
 0x1f7   :  { %v1949_v27 = vpop.f32.mrf.mxu3  ;;  %v1911_v10 = vadd.f32 %v5337_v8, %v1910_v46  ;;  %v1509_v44 = vpop.f32.mrf.mxu0 }
 0x1f8   :  { %v1548_v42 = vpop.f32.mrf.mxu1  ;;  %v1510_v54 = vadd.f32 %v1509_v44, %v5402_v22  ;;  %v3702_v22 = vld [vmem:[%s6368_s0 + $0x3f0] sm:$0xf]  ;;  %v3711_v44 = vor.u32 %v4054_v1, %v3710_v14 }
 0x1f9   :  { %v5722_v51 = vadd.f32 %v1949_v27, %v1911_v10  ;;  %v3703_v45 = vor.u32 %v4053_v7, %v3702_v22  ;;  %v3707_v10 = vor.u32 %v4050_v52, %v3704_v16 }
 0x1fa   :  { %v1549_v31 = vadd.f32 %v1548_v42, %v1510_v54 }
 0x1fc   :  { %vm1568_vm1 = vcmp.ge.f32.partialorder %v1549_v31, 0.0  ;;  %v1580_v60 = vmul.f32 %v1549_v31, %v5532_v20 }
 0x1fe   :  { %v5754_v37 = vsel %vm1568_vm1, %v1549_v31, %v1580_v60  ;;  %v1912_v38 = vpop.f32.mrf.mxu2 }
 0x1ff   :  { %v1951_v61 = vpop.f32.mrf.mxu3  ;;  %v1913_v28 = vadd.f32 %v5337_v8, %v1912_v38  ;;  %v1512_v46 = vpop.f32.mrf.mxu0 }
 0x200   :  { %v1551_v27 = vpop.f32.mrf.mxu1  ;;  %v1513_v42 = vadd.f32 %v1512_v46, %v5422_v30  ;;  %v3732_v46 = vld [vmem:[%s6368_s0 + $0x444] sm:$0xf0] }
 0x201   :  { %v5760_v54 = vadd.f32 %v1951_v61, %v1913_v28  ;;  %v3532_v61 = vld [vmem:[%s6368_s0 + $0x2f0] sm:$0xf]  ;;  %v4057_v28 = vld [vmem:[%s6368_s0 + $0x42c] sm:$0xf] }
 0x202   :  { %v1552_v50 = vadd.f32 %v1551_v27, %v1513_v42  ;;  %3646 = vmatmul.msk.bf16.vlgmr.msrb.gmra.mxu0 %vm682_vm0, %v3505_v17  ;;  %2480 = vmatmul.bf16.vlgmr.msrb.gmra.mxu1 %v3703_v45  ;;  %v4021_v17 = vld [vmem:[%s6368_s0 + $0x308] sm:$0xf0]  ;;  %v4060_v45 = vld [vmem:[%s6368_s0 + $0x440] sm:$0xf0]  ;;  %v5807_v42 = vsel %vm983_vm4, %v5183_v19, %v996_v0  ;;  %v3735_v7 = vor.u32 %v4057_v28, %v3732_v46 }
 0x203   :  { %2519 = vmatmul.bf16.vlgmr.msrb.gmra.mxu2 %v3707_v10  ;;  %v3738_v10 = vld [vmem:[%s6368_s0 + $0x430] sm:$0xf]  ;;  %v997_v19 = vmul.f32 %v5532_v20, %v5207_v33 }
 0x204   :  { %2558 = vmatmul.bf16.vlgmr.msrb.gmra.mxu3 %v3711_v44  ;;  %vm1569_vm3 = vcmp.ge.f32.partialorder %v1552_v50, 0.0  ;;  %v1581_v31 = vmul.f32 %v1552_v50, %v5532_v20  ;;  %v4061_v44 = vld [vmem:[%s6368_s0 + $0x448] sm:$0xf0] }
 0x205   :  { %v3739_v4 = vor.u32 %v4061_v44, %v3738_v10  ;;  %v3560_v10 = vld [vmem:[%s6368_s0 + $0x328] sm:$0xf]  ;;  %v4028_v44 = vld [vmem:[%s6368_s0 + $0x340] sm:$0xf0] }
 0x206   :  { %v5770_v30 = vsel %vm1569_vm3, %v1552_v50, %v1581_v31  ;;  %v1915_v26 = vpop.f32.mrf.mxu2 }
 0x207   :  { %v1954_v22 = vpop.f32.mrf.mxu3  ;;  %v1916_v52 = vadd.f32 %v5337_v8, %v1915_v26  ;;  %v1514_v16 = vpop.f32.mrf.mxu0  ;;  %v3533_v26 = vor.u32 %v4021_v17, %v3532_v61  ;;  %v5823_v61 = vsel %vm984_vm6, %v5207_v33, %v997_v19  ;;  %v998_v33 = vmul.f32 %v5532_v20, %v5256_v15 }
 0x208   :  { %v1553_v60 = vpop.f32.mrf.mxu1  ;;  %v1515_v14 = vadd.f32 %v1514_v16, %v5469_v29  ;;  %v3730_v29 = vld [vmem:[%s6368_s0 + $0x428] sm:$0xf] }
 0x209   :  { %v5777_v1 = vadd.f32 %v1954_v22, %v1916_v52  ;;  %v3731_v22 = vor.u32 %v4060_v45, %v3730_v29 }
 0x20a   :  { %v1554_v38 = vadd.f32 %v1553_v60, %v1515_v14 }
 0x20c   :  { %vm1570_vm5 = vcmp.ge.f32.partialorder %v1554_v38, 0.0  ;;  %v1582_v27 = vmul.f32 %v1554_v38, %v5532_v20 }
 0x20e   :  { %v5809_v39 = vsel %vm1570_vm5, %v1554_v38, %v1582_v27  ;;  %v1917_v50 = vpop.f32.mrf.mxu2 }
 0x20f   :  { %v1956_v31 = vpop.f32.mrf.mxu3  ;;  %v1918_v16 = vadd.f32 %v5337_v8, %v1917_v50  ;;  %v1517_v60 = vpop.f32.mrf.mxu0  ;;  %v4067_v50 = vld [vmem:[%s6368_s0 + $0x478] sm:$0xf0] }
 0x210   :  { %v1556_v14 = vpop.f32.mrf.mxu1  ;;  %v1518_v21 = vadd.f32 %v1517_v60, %v5491_v18  ;;  %v4068_v60 = vld [vmem:[%s6368_s0 + $0x480] sm:$0xf0] }
 0x211   :  { %v5815_v47 = vadd.f32 %v1956_v31, %v1918_v16  ;;  %v4064_v31 = vld [vmem:[%s6368_s0 + $0x464] sm:$0xf]  ;;  %v3766_v16 = vld [vmem:[%s6368_s0 + $0x468] sm:$0xf] }
 0x212   :  { %v1557_v0 = vadd.f32 %v1556_v14, %v1518_v21  ;;  %3647 = vmatmul.msk.bf16.gmra.mxu0 %vm682_vm0, %v3533_v26  ;;  %2485 = vmatmul.bf16.gmra.mxu1 %v3731_v22  ;;  %v3760_v26 = vld [vmem:[%s6368_s0 + $0x47c] sm:$0xf0]  ;;  %v5862_v14 = vsel %vm985_vm8, %v5256_v15, %v998_v33  ;;  %v3767_v52 = vor.u32 %v4068_v60, %v3766_v16  ;;  %v4075_v16 = vld [vmem:[%s6368_s0 + $0x4b8] sm:$0xf0] }
 0x213   :  { %2524 = vmatmul.bf16.gmra.mxu2 %v3735_v7  ;;  %6375 = vst [vmem:[#allocation4_spill] sm:$0xff] %v5862_v14  ;;  %v3763_v21 = vor.u32 %v4064_v31, %v3760_v26  ;;  %v3788_v26 = vld [vmem:[%s6368_s0 + $0x4b4] sm:$0xf0] }
 0x214   :  { %2563 = vmatmul.bf16.gmra.mxu3 %v3739_v4  ;;  %vm1571_vm7 = vcmp.ge.f32.partialorder %v1557_v0, 0.0  ;;  %v1583_v38 = vmul.f32 %v1557_v0, %v5532_v20 }
 0x216   :  { %v5825_v18 = vsel %vm1571_vm7, %v1557_v0, %v1583_v38  ;;  %v1920_v17 = vpop.f32.mrf.mxu2 }
 0x217   :  { %6374 = vst [vmem:[#allocation3_spill] sm:$0xff] %v5825_v18  ;;  %v1959_v29 = vpop.f32.mrf.mxu3  ;;  %v1921_v45 = vadd.f32 %v5337_v8, %v1920_v17  ;;  %v1519_v28 = vpop.f32.mrf.mxu0  ;;  %v3561_v17 = vor.u32 %v4028_v44, %v3560_v10 }
 0x218   :  { %v1558_v46 = vpop.f32.mrf.mxu1  ;;  %v1520_v7 = vadd.f32 %v1519_v28, %v5541_v35  ;;  %v3758_v35 = vld [vmem:[%s6368_s0 + $0x460] sm:$0xf] }
 0x219   :  { %v5832_v4 = vadd.f32 %v1959_v29, %v1921_v45  ;;  %v3759_v29 = vor.u32 %v4067_v50, %v3758_v35 }
 0x21a   :  { %v1559_v27 = vadd.f32 %v1558_v46, %v1520_v7 }
 0x21c   :  { %vm1572_vm9 = vcmp.ge.f32.partialorder %v1559_v27, 0.0  ;;  %v1584_v22 = vmul.f32 %v1559_v27, %v5532_v20 }
 0x21e   :  { %v5864_v19 = vsel %vm1572_vm9, %v1559_v27, %v1584_v22  ;;  %v1922_v0 = vpop.f32.mrf.mxu2  ;;  %v3794_v22 = vld [vmem:[%s6368_s0 + $0x4a0] sm:$0xf] }
 0x21f   :  { %6376 = vst [vmem:[#allocation5_spill] sm:$0xff] %v5864_v19  ;;  %v1961_v38 = vpop.f32.mrf.mxu3  ;;  %v1923_v28 = vadd.f32 %v5337_v8, %v1922_v0  ;;  %v1973_v46 = vpop.f32.mrf.mxu0 }
 0x220   :  { %v2012_v7 = vpop.f32.mrf.mxu1  ;;  %v1974_v55 = vadd.f32 %v1973_v46, %v5560_v40  ;;  %v3588_v40 = vld [vmem:[%s6368_s0 + $0x360] sm:$0xf] }
 0x221   :  { %v5870_v12 = vadd.f32 %v1961_v38, %v1923_v28 }
 0x222   :  { %v2013_v15 = vadd.f32 %v2012_v7, %v1974_v55  ;;  %3648 = vmatmul.msk.bf16.gmra.mxu0 %vm682_vm0, %v3561_v17  ;;  %2490 = vmatmul.bf16.gmra.mxu1 %v3759_v29  ;;  %v4035_v55 = vld [vmem:[%s6368_s0 + $0x378] sm:$0xf0] }
 0x223   :  { %2529 = vmatmul.bf16.gmra.mxu2 %v3763_v21  ;;  %v4074_v21 = vld [vmem:[%s6368_s0 + $0x4b0] sm:$0xf0]  ;;  %v3589_v38 = vor.u32 %v4035_v55, %v3588_v40 }
 0x224   :  { %2568 = vmatmul.bf16.gmra.mxu3 %v3767_v52  ;;  %v3786_v52 = vld [vmem:[%s6368_s0 + $0x498] sm:$0xf] }
 0x225   :  { %v3787_v17 = vor.u32 %v4074_v21, %v3786_v52 }
 0x226   :  { %v2051_v33 = vpop.f32.mrf.mxu2 }
 0x227   :  { %v2090_v27 = vpop.f32.mrf.mxu3  ;;  %v2052_v10 = vadd.f32 %v2051_v33, %v2013_v15  ;;  %v1975_v44 = vpop.f32.mrf.mxu0  ;;  %v3795_v15 = vor.u32 %v4075_v16, %v3794_v22  ;;  %v4081_v22 = vld [vmem:[%s6368_s0 + $0x4e8] sm:$0xf0]  ;;  %v3816_v16 = vld [vmem:[%s6368_s0 + $0x4ec] sm:$0xf0] }
 0x228   :  { %v2014_v35 = vpop.f32.mrf.mxu1  ;;  %v1976_v8 = vadd.f32 %v1975_v44, %v5598_v34  ;;  %v4071_v34 = vld [vmem:[%s6368_s0 + $0x49c] sm:$0xf] }
 0x229   :  { %v5874_v50 = vadd.f32 %v2090_v27, %v2052_v10  ;;  %v3791_v7 = vor.u32 %v4071_v34, %v3788_v26  ;;  %v4042_v34 = vld [vmem:[%s6368_s0 + $0x3b0] sm:$0xf0]  ;;  %v3814_v26 = vld [vmem:[%s6368_s0 + $0x4d0] sm:$0xf] }
 0x22a   :  { %v2015_v31 = vadd.f32 %v2014_v35, %v1976_v8 }
 0x22e   :  { %v2053_v60 = vpop.f32.mrf.mxu2 }
 0x22f   :  { %v2092_v0 = vpop.f32.mrf.mxu3  ;;  %v2054_v29 = vadd.f32 %v2053_v60, %v2015_v31  ;;  %v1978_v28 = vpop.f32.mrf.mxu0  ;;  %v3822_v60 = vld [vmem:[%s6368_s0 + $0x4d8] sm:$0xf] }
 0x230   :  { %v2017_v46 = vpop.f32.mrf.mxu1  ;;  %v1979_v33 = vadd.f32 %v1978_v28, %v5614_v53  ;;  %v3616_v53 = vld [vmem:[%s6368_s0 + $0x398] sm:$0xf]  ;;  %v3815_v28 = vor.u32 %v4081_v22, %v3814_v26 }
 0x231   :  { %v5901_v27 = vadd.f32 %v2092_v0, %v2054_v29  ;;  %v4082_v0 = vld [vmem:[%s6368_s0 + $0x4f0] sm:$0xf0]  ;;  %v3617_v29 = vor.u32 %v4042_v34, %v3616_v53 }
 0x232   :  { %v2018_v10 = vadd.f32 %v2017_v46, %v1979_v33  ;;  %3649 = vmatmul.msk.bf16.gmra.mxu0 %vm682_vm0, %v3589_v38  ;;  %2495 = vmatmul.bf16.gmra.mxu1 %v3787_v17 }
 0x233   :  { %2534 = vmatmul.bf16.gmra.mxu2 %v3791_v7 }
 0x234   :  { %2573 = vmatmul.bf16.gmra.mxu3 %v3795_v15 }
 0x236   :  { %v2056_v44 = vpop.f32.mrf.mxu2 }
 0x237   :  { %v2095_v35 = vpop.f32.mrf.mxu3  ;;  %v2057_v8 = vadd.f32 %v2056_v44, %v2018_v10  ;;  %v1980_v40 = vpop.f32.mrf.mxu0  ;;  %v3823_v10 = vor.u32 %v4082_v0, %v3822_v60  ;;  %v4088_v60 = vld [vmem:[%s6368_s0 + $0x520] sm:$0xf0]  ;;  %v3844_v0 = vld [vmem:[%s6368_s0 + $0x524] sm:$0xf0] }
 0x238   :  { %v2019_v55 = vpop.f32.mrf.mxu1  ;;  %v1981_v31 = vadd.f32 %v1980_v40, %v5652_v9  ;;  %v4078_v9 = vld [vmem:[%s6368_s0 + $0x4d4] sm:$0xf] }
 0x239   :  { %v5905_v52 = vadd.f32 %v2095_v35, %v2057_v8  ;;  %v3819_v33 = vor.u32 %v4078_v9, %v3816_v16  ;;  %v4049_v9 = vld [vmem:[%s6368_s0 + $0x3e8] sm:$0xf0]  ;;  %v3842_v16 = vld [vmem:[%s6368_s0 + $0x508] sm:$0xf] }
 0x23a   :  { %v2020_v21 = vadd.f32 %v2019_v55, %v1981_v31 }
 0x23e   :  { %v2058_v38 = vpop.f32.mrf.mxu2 }
 0x23f   :  { %v2097_v17 = vpop.f32.mrf.mxu3  ;;  %v2059_v46 = vadd.f32 %v2058_v38, %v2020_v21  ;;  %v1983_v7 = vpop.f32.mrf.mxu0  ;;  %v3850_v38 = vld [vmem:[%s6368_s0 + $0x510] sm:$0xf] }
 0x240   :  { %v2022_v15 = vpop.f32.mrf.mxu1  ;;  %v1984_v44 = vadd.f32 %v1983_v7, %v5668_v3  ;;  %v3644_v3 = vld [vmem:[%s6368_s0 + $0x3d0] sm:$0xf]  ;;  %v3843_v7 = vor.u32 %v4088_v60, %v3842_v16 }
 0x241   :  { %v5932_v35 = vadd.f32 %v2097_v17, %v2059_v46  ;;  %v4089_v17 = vld [vmem:[%s6368_s0 + $0x528] sm:$0xf0]  ;;  %v3645_v46 = vor.u32 %v4049_v9, %v3644_v3 }
 0x242   :  { %v2023_v8 = vadd.f32 %v2022_v15, %v1984_v44  ;;  %3650 = vmatmul.msk.bf16.gmra.mxu0 %vm682_vm0, %v3617_v29  ;;  %2500 = vmatmul.bf16.gmra.mxu1 %v3815_v28 }
 0x243   :  { %2539 = vmatmul.bf16.gmra.mxu2 %v3819_v33 }
 0x244   :  { %2578 = vmatmul.bf16.gmra.mxu3 %v3823_v10 }
 0x246   :  { %v2061_v40 = vpop.f32.mrf.mxu2 }
 0x247   :  { %v2100_v55 = vpop.f32.mrf.mxu3  ;;  %v2062_v31 = vadd.f32 %v2061_v40, %v2023_v8  ;;  %v1985_v53 = vpop.f32.mrf.mxu0  ;;  %v3851_v8 = vor.u32 %v4089_v17, %v3850_v38  ;;  %v4055_v38 = vld [vmem:[%s6368_s0 + $0x418] sm:$0xf0]  ;;  %v3720_v17 = vld [vmem:[%s6368_s0 + $0x41c] sm:$0xf0] }
 0x248   :  { %v2024_v34 = vpop.f32.mrf.mxu1  ;;  %v1986_v21 = vadd.f32 %v1985_v53, %v5706_v24  ;;  %v4085_v24 = vld [vmem:[%s6368_s0 + $0x50c] sm:$0xf] }
 0x249   :  { %v5936_v26 = vadd.f32 %v2100_v55, %v2062_v31  ;;  %v3847_v44 = vor.u32 %v4085_v24, %v3844_v0  ;;  %v3712_v24 = vld [vmem:[%s6368_s0 + $0x414] sm:$0xf0]  ;;  %v3718_v0 = vld [vmem:[%s6368_s0 + $0x400] sm:$0xf] }
 0x24a   :  { %v2025_v22 = vadd.f32 %v2024_v34, %v1986_v21 }
 0x24e   :  { %v2063_v29 = vpop.f32.mrf.mxu2 }
 0x24f   :  { %v2102_v28 = vpop.f32.mrf.mxu3  ;;  %v2064_v15 = vadd.f32 %v2063_v29, %v2025_v22  ;;  %v1988_v33 = vpop.f32.mrf.mxu0  ;;  %v3726_v29 = vld [vmem:[%s6368_s0 + $0x408] sm:$0xf] }
 0x250   :  { %v2027_v10 = vpop.f32.mrf.mxu1  ;;  %v1989_v40 = vadd.f32 %v1988_v33, %v5722_v51  ;;  %v4051_v51 = vld [vmem:[%s6368_s0 + $0x3fc] sm:$0xf]  ;;  %v3719_v33 = vor.u32 %v4055_v38, %v3718_v0 }
 0x251   :  { %v5963_v55 = vadd.f32 %v2102_v28, %v2064_v15  ;;  %v4056_v28 = vld [vmem:[%s6368_s0 + $0x420] sm:$0xf0]  ;;  %v3715_v15 = vor.u32 %v4051_v51, %v3712_v24 }
 0x252   :  { %v2028_v31 = vadd.f32 %v2027_v10, %v1989_v40  ;;  %3651 = vmatmul.msk.bf16.gmra.mxu0 %vm682_vm0, %v3645_v46  ;;  %2505 = vmatmul.bf16.gmra.mxu1 %v3843_v7 }
 0x253   :  { %2544 = vmatmul.bf16.gmra.mxu2 %v3847_v44 }
 0x254   :  { %2583 = vmatmul.bf16.gmra.mxu3 %v3851_v8 }
 0x256   :  { %v2066_v53 = vpop.f32.mrf.mxu2 }
 0x257   :  { %v2105_v34 = vpop.f32.mrf.mxu3  ;;  %v2067_v21 = vadd.f32 %v2066_v53, %v2028_v31  ;;  %v1990_v3 = vpop.f32.mrf.mxu0  ;;  %v3727_v31 = vor.u32 %v4056_v28, %v3726_v29  ;;  %v4062_v29 = vld [vmem:[%s6368_s0 + $0x450] sm:$0xf0]  ;;  %v3748_v28 = vld [vmem:[%s6368_s0 + $0x454] sm:$0xf0] }
 0x258   :  { %v2029_v9 = vpop.f32.mrf.mxu1  ;;  %v1991_v22 = vadd.f32 %v1990_v3, %v5760_v54  ;;  %v4052_v54 = vld [vmem:[%s6368_s0 + $0x404] sm:$0xf] }
 0x259   :  { %v5967_v16 = vadd.f32 %v2105_v34, %v2067_v21  ;;  %v3723_v40 = vor.u32 %v4052_v54, %v3720_v17  ;;  %v3740_v54 = vld [vmem:[%s6368_s0 + $0x44c] sm:$0xf0]  ;;  %v3746_v17 = vld [vmem:[%s6368_s0 + $0x438] sm:$0xf] }
 0x25a   :  { %v2030_v60 = vadd.f32 %v2029_v9, %v1991_v22 }
 0x25e   :  { %v2068_v46 = vpop.f32.mrf.mxu2 }
 0x25f   :  { %v2107_v7 = vpop.f32.mrf.mxu3  ;;  %v2069_v10 = vadd.f32 %v2068_v46, %v2030_v60  ;;  %v1993_v44 = vpop.f32.mrf.mxu0  ;;  %v3754_v46 = vld [vmem:[%s6368_s0 + $0x440] sm:$0xf] }
 0x260   :  { %v2032_v8 = vpop.f32.mrf.mxu1  ;;  %v1994_v53 = vadd.f32 %v1993_v44, %v5777_v1  ;;  %v4058_v1 = vld [vmem:[%s6368_s0 + $0x434] sm:$0xf]  ;;  %v3747_v44 = vor.u32 %v4062_v29, %v3746_v17 }
 0x261   :  { %v5994_v34 = vadd.f32 %v2107_v7, %v2069_v10  ;;  %v4063_v7 = vld [vmem:[%s6368_s0 + $0x458] sm:$0xf0]  ;;  %v3743_v10 = vor.u32 %v4058_v1, %v3740_v54 }
 0x262   :  { %v2033_v21 = vadd.f32 %v2032_v8, %v1994_v53  ;;  %2597 = vmatmul.bf16.vlgmr.msra.gmra.mxu0 %v3715_v15  ;;  %2636 = vmatmul.bf16.vlgmr.msra.gmra.mxu1 %v3719_v33 }
 0x263   :  { %2675 = vmatmul.bf16.vlgmr.msra.gmra.mxu2 %v3723_v40 }
 0x264   :  { %3868 = vmatmul.msk.bf16.vlgmr.msra.gmra.mxu3 %vm682_vm0, %v3727_v31 }
 0x266   :  { %v2071_v3 = vpop.f32.mrf.mxu2 }
 0x267   :  { %v2110_v9 = vpop.f32.mrf.mxu3  ;;  %v2072_v22 = vadd.f32 %v2071_v3, %v2033_v21  ;;  %v1995_v51 = vpop.f32.mrf.mxu0  ;;  %v3755_v21 = vor.u32 %v4063_v7, %v3754_v46  ;;  %v4069_v46 = vld [vmem:[%s6368_s0 + $0x488] sm:$0xf0]  ;;  %v3776_v7 = vld [vmem:[%s6368_s0 + $0x48c] sm:$0xf0] }
 0x268   :  { %v2034_v24 = vpop.f32.mrf.mxu1  ;;  %v1996_v60 = vadd.f32 %v1995_v51, %v5815_v47  ;;  %v4059_v47 = vld [vmem:[%s6368_s0 + $0x43c] sm:$0xf] }
 0x269   :  { %v5998_v0 = vadd.f32 %v2110_v9, %v2072_v22  ;;  %v3751_v53 = vor.u32 %v4059_v47, %v3748_v28  ;;  %v3768_v47 = vld [vmem:[%s6368_s0 + $0x484] sm:$0xf0]  ;;  %v3774_v28 = vld [vmem:[%s6368_s0 + $0x470] sm:$0xf] }
 0x26a   :  { %v2035_v38 = vadd.f32 %v2034_v24, %v1996_v60 }
 0x26e   :  { %v2073_v15 = vpop.f32.mrf.mxu2 }
 0x26f   :  { %v2112_v33 = vpop.f32.mrf.mxu3  ;;  %v2074_v8 = vadd.f32 %v2073_v15, %v2035_v38  ;;  %v1998_v40 = vpop.f32.mrf.mxu0  ;;  %v3782_v15 = vld [vmem:[%s6368_s0 + $0x478] sm:$0xf] }
 0x270   :  { %v2037_v31 = vpop.f32.mrf.mxu1  ;;  %v1999_v3 = vadd.f32 %v1998_v40, %v5832_v4  ;;  %v4065_v4 = vld [vmem:[%s6368_s0 + $0x46c] sm:$0xf]  ;;  %v3775_v40 = vor.u32 %v4069_v46, %v3774_v28  ;;  %v4072_v46 = vld [vmem:[%s6368_s0 + $0x4a4] sm:$0xf] }
 0x271   :  { %v6025_v9 = vadd.f32 %v2112_v33, %v2074_v8  ;;  %v4070_v33 = vld [vmem:[%s6368_s0 + $0x490] sm:$0xf0]  ;;  %v3771_v8 = vor.u32 %v4065_v4, %v3768_v47 }
 0x272   :  { %v2038_v22 = vadd.f32 %v2037_v31, %v1999_v3  ;;  %2602 = vmatmul.bf16.gmra.mxu0 %v3743_v10  ;;  %2641 = vmatmul.bf16.gmra.mxu1 %v3747_v44 }
 0x273   :  { %2680 = vmatmul.bf16.gmra.mxu2 %v3751_v53 }
 0x274   :  { %3869 = vmatmul.msk.bf16.gmra.mxu3 %vm682_vm0, %v3755_v21 }
 0x276   :  { %v2076_v51 = vpop.f32.mrf.mxu2 }
 0x277   :  { %v2115_v24 = vpop.f32.mrf.mxu3  ;;  %v2077_v60 = vadd.f32 %v2076_v51, %v2038_v22  ;;  %v2000_v1 = vpop.f32.mrf.mxu0  ;;  %v3783_v22 = vor.u32 %v4070_v33, %v3782_v15  ;;  %v4076_v15 = vld [vmem:[%s6368_s0 + $0x4c0] sm:$0xf0]  ;;  %v3804_v33 = vld [vmem:[%s6368_s0 + $0x4c4] sm:$0xf0] }
 0x278   :  { %v2039_v54 = vpop.f32.mrf.mxu1  ;;  %v2001_v38 = vadd.f32 %v2000_v1, %v5870_v12  ;;  %v4066_v12 = vld [vmem:[%s6368_s0 + $0x474] sm:$0xf] }
 0x279   :  { %v6029_v17 = vadd.f32 %v2115_v24, %v2077_v60  ;;  %v3779_v3 = vor.u32 %v4066_v12, %v3776_v7  ;;  %v6063_v60 = vld [vmem:[%s6367_s2] ss:$0 sm:$0xff]  ;;  %v3802_v7 = vld [vmem:[%s6368_s0 + $0x4a8] sm:$0xf] }
 0x27a   :  { %v2040_v29 = vadd.f32 %v2039_v54, %v2001_v38  ;;  %v3796_v12 = vld [vmem:[%s6368_s0 + $0x4bc] sm:$0xf0] }
 0x27e   :  { %v2078_v10 = vpop.f32.mrf.mxu2 }
 0x27f   :  { %v2117_v44 = vpop.f32.mrf.mxu3  ;;  %v2079_v31 = vadd.f32 %v2078_v10, %v2040_v29  ;;  %v2129_v53 = vpop.f32.mrf.mxu0  ;;  %v3810_v10 = vld [vmem:[%s6368_s0 + $0x4b0] sm:$0xf] }
 0x280   :  { %v2481_v21 = vpop.f32.mrf.mxu1  ;;  %v6056_v51 = vadd.f32 %v2129_v53, %v5874_v50  ;;  %v3799_v53 = vor.u32 %v4072_v46, %v3796_v12 }
 0x281   :  { %v6058_v24 = vadd.f32 %v2117_v44, %v2079_v31  ;;  %v2482_v1 = vadd.f32 %v6063_v60, %v2481_v21  ;;  %v4077_v44 = vld [vmem:[%s6368_s0 + $0x4c8] sm:$0xf0]  ;;  %v3803_v21 = vor.u32 %v4076_v15, %v3802_v7 }
 0x282   :  { %2607 = vmatmul.bf16.gmra.mxu0 %v3771_v8  ;;  %2646 = vmatmul.bf16.gmra.mxu1 %v3775_v40 }
 0x283   :  { %2685 = vmatmul.bf16.gmra.mxu2 %v3779_v3 }
 0x284   :  { %3870 = vmatmul.msk.bf16.gmra.mxu3 %vm682_vm0, %v3783_v22 }
 0x286   :  { %v2520_v54 = vpop.f32.mrf.mxu2 }
 0x287   :  { %v2559_v38 = vpop.f32.mrf.mxu3  ;;  %v2521_v29 = vadd.f32 %v2520_v54, %v2482_v1  ;;  %v2131_v4 = vpop.f32.mrf.mxu0 }
 0x288   :  { %v2483_v50 = vpop.f32.mrf.mxu1  ;;  %v6068_v47 = vadd.f32 %v2131_v4, %v5901_v27  ;;  %v4073_v27 = vld [vmem:[%s6368_s0 + $0x4ac] sm:$0xf] }
 0x289   :  { %v6070_v28 = vadd.f32 %v2559_v38, %v2521_v29  ;;  %v2484_v8 = vadd.f32 %v6063_v60, %v2483_v50  ;;  %v3807_v54 = vor.u32 %v4073_v27, %v3804_v33  ;;  %v3811_v38 = vor.u32 %v4077_v44, %v3810_v10  ;;  %v3824_v10 = vld [vmem:[%s6368_s0 + $0x4f4] sm:$0xf0]  ;;  %v3830_v44 = vld [vmem:[%s6368_s0 + $0x4e0] sm:$0xf] }
 0x28a   :  { %vm2160_vm12 = vcmp.ge.f32.partialorder %v6068_v47, 0.0 }
 0x28e   :  { %v2522_v40 = vpop.f32.mrf.mxu2 }
 0x28f   :  { %v2561_v31 = vpop.f32.mrf.mxu3  ;;  %v2523_v3 = vadd.f32 %v2522_v40, %v2484_v8  ;;  %v2134_v22 = vpop.f32.mrf.mxu0  ;;  %v3832_v8 = vld [vmem:[%s6368_s0 + $0x4fc] sm:$0xf0]  ;;  %v3838_v40 = vld [vmem:[%s6368_s0 + $0x4e8] sm:$0xf] }
 0x290   :  { %v2486_v1 = vpop.f32.mrf.mxu1  ;;  %v6098_v29 = vadd.f32 %v2134_v22, %v5905_v52  ;;  %v4079_v52 = vld [vmem:[%s6368_s0 + $0x4dc] sm:$0xf] }
 0x291   :  { %v6100_v4 = vadd.f32 %v2561_v31, %v2523_v3  ;;  %v2487_v45 = vadd.f32 %v6063_v60, %v2486_v1  ;;  %v4084_v31 = vld [vmem:[%s6368_s0 + $0x500] sm:$0xf0]  ;;  %v3827_v22 = vor.u32 %v4079_v52, %v3824_v10 }
 0x292   :  { %2612 = vmatmul.bf16.gmra.mxu0 %v3799_v53  ;;  %2651 = vmatmul.bf16.gmra.mxu1 %v3803_v21  ;;  %vm2161_vm14 = vcmp.ge.f32.partialorder %v6098_v29, 0.0 }
 0x293   :  { %2690 = vmatmul.bf16.gmra.mxu2 %v3807_v54 }
 0x294   :  { %3871 = vmatmul.msk.bf16.gmra.mxu3 %vm682_vm0, %v3811_v38 }
 0x296   :  { %v2525_v50 = vpop.f32.mrf.mxu2 }
 0x297   :  { %v2564_v46 = vpop.f32.mrf.mxu3  ;;  %v2526_v12 = vadd.f32 %v2525_v50, %v2487_v45  ;;  %v2136_v7 = vpop.f32.mrf.mxu0  ;;  %v4083_v45 = vld [vmem:[%s6368_s0 + $0x4f8] sm:$0xf0] }
 0x298   :  { %v2488_v15 = vpop.f32.mrf.mxu1  ;;  %v6105_v27 = vadd.f32 %v2136_v7, %v5932_v35  ;;  %v4080_v35 = vld [vmem:[%s6368_s0 + $0x4e4] sm:$0xf]  ;;  %v3831_v1 = vor.u32 %v4083_v45, %v3830_v44 }
 0x299   :  { %v6107_v33 = vadd.f32 %v2564_v46, %v2526_v12  ;;  %v2489_v53 = vadd.f32 %v6063_v60, %v2488_v15  ;;  %v3835_v46 = vor.u32 %v4080_v35, %v3832_v8  ;;  %v3839_v12 = vor.u32 %v4084_v31, %v3838_v40  ;;  %v3852_v40 = vld [vmem:[%s6368_s0 + $0x52c] sm:$0xf0]  ;;  %v3858_v31 = vld [vmem:[%s6368_s0 + $0x518] sm:$0xf] }
 0x29a   :  { %vm2162_vm1 = vcmp.ge.f32.partialorder %v6105_v27, 0.0 }
 0x29e   :  { %v2527_v21 = vpop.f32.mrf.mxu2 }
 0x29f   :  { %v2566_v3 = vpop.f32.mrf.mxu3  ;;  %v2528_v54 = vadd.f32 %v2527_v21, %v2489_v53  ;;  %v2139_v38 = vpop.f32.mrf.mxu0  ;;  %v3860_v53 = vld [vmem:[%s6368_s0 + $0x534] sm:$0xf0]  ;;  %v3866_v21 = vld [vmem:[%s6368_s0 + $0x520] sm:$0xf] }
 0x2a0   :  { %v2491_v50 = vpop.f32.mrf.mxu1  ;;  %v6135_v7 = vadd.f32 %v2139_v38, %v5936_v26  ;;  %v4086_v26 = vld [vmem:[%s6368_s0 + $0x514] sm:$0xf] }
 0x2a1   :  { %v6137_v56 = vadd.f32 %v2566_v3, %v2528_v54  ;;  %v2492_v13 = vadd.f32 %v6063_v60, %v2491_v50  ;;  %v4091_v3 = vld [vmem:[%s6368_s0 + $0x538] sm:$0xf0]  ;;  %v3855_v38 = vor.u32 %v4086_v26, %v3852_v40 }
 0x2a2   :  { %2617 = vmatmul.bf16.gmra.mxu0 %v3827_v22  ;;  %2656 = vmatmul.bf16.gmra.mxu1 %v3831_v1  ;;  %vm2163_vm3 = vcmp.ge.f32.partialorder %v6135_v7, 0.0 }
 0x2a3   :  { %2695 = vmatmul.bf16.gmra.mxu2 %v3835_v46 }
 0x2a4   :  { %3872 = vmatmul.msk.bf16.gmra.mxu3 %vm682_vm0, %v3839_v12 }
 0x2a6   :  { %v2530_v15 = vpop.f32.mrf.mxu2 }
 0x2a7   :  { %v2569_v52 = vpop.f32.mrf.mxu3  ;;  %v2531_v10 = vadd.f32 %v2530_v15, %v2492_v13  ;;  %v2141_v44 = vpop.f32.mrf.mxu0  ;;  %v4090_v13 = vld [vmem:[%s6368_s0 + $0x530] sm:$0xf0] }
 0x2a8   :  { %v2493_v45 = vpop.f32.mrf.mxu1  ;;  %v6142_v35 = vadd.f32 %v2141_v44, %v5963_v55  ;;  %v4087_v55 = vld [vmem:[%s6368_s0 + $0x51c] sm:$0xf]  ;;  %v3859_v50 = vor.u32 %v4090_v13, %v3858_v31 }
 0x2a9   :  { %v6144_v8 = vadd.f32 %v2569_v52, %v2531_v10  ;;  %v2494_v22 = vadd.f32 %v6063_v60, %v2493_v45  ;;  %v3863_v52 = vor.u32 %v4087_v55, %v3860_v53  ;;  %v3867_v10 = vor.u32 %v4091_v3, %v3866_v21 }
 0x2aa   :  { %vm2164_vm5 = vcmp.ge.f32.partialorder %v6142_v35, 0.0 }
 0x2ae   :  { %v2532_v1 = vpop.f32.mrf.mxu2 }
 0x2af   :  { %v2571_v54 = vpop.f32.mrf.mxu3  ;;  %v2533_v46 = vadd.f32 %v2532_v1, %v2494_v22  ;;  %v2144_v12 = vpop.f32.mrf.mxu0 }
 0x2b0   :  { %v2496_v15 = vpop.f32.mrf.mxu1  ;;  %v6172_v44 = vadd.f32 %v2144_v12, %v5967_v16 }
 0x2b1   :  { %v6174_v25 = vadd.f32 %v2571_v54, %v2533_v46  ;;  %v2497_v19 = vadd.f32 %v6063_v60, %v2496_v15 }
 0x2b2   :  { %2622 = vmatmul.bf16.gmra.mxu0 %v3855_v38  ;;  %2661 = vmatmul.bf16.gmra.mxu1 %v3859_v50  ;;  %vm2165_vm7 = vcmp.ge.f32.partialorder %v6172_v44, 0.0 }
 0x2b3   :  { %2700 = vmatmul.bf16.gmra.mxu2 %v3863_v52 }
 0x2b4   :  { %3873 = vmatmul.msk.bf16.gmra.mxu3 %vm682_vm0, %v3867_v10  ;;  %vm2159_vm0 = vcmp.ge.f32.partialorder %v6056_v51, 0.0 }
 0x2b6   :  { %v2535_v45 = vpop.f32.mrf.mxu2 }
 0x2b7   :  { %v2574_v26 = vpop.f32.mrf.mxu3  ;;  %v2536_v40 = vadd.f32 %v2535_v45, %v2497_v19  ;;  %v2146_v31 = vpop.f32.mrf.mxu0 }
 0x2b8   :  { %v2498_v13 = vpop.f32.mrf.mxu1  ;;  %v6179_v55 = vadd.f32 %v2146_v31, %v5994_v34 }
 0x2b9   :  { %v6181_v53 = vadd.f32 %v2574_v26, %v2536_v40  ;;  %v2499_v16 = vadd.f32 %v6063_v60, %v2498_v13 }
 0x2ba   :  { %vm2166_vm9 = vcmp.ge.f32.partialorder %v6179_v55, 0.0 }
 0x2be   :  { %v2537_v21 = vpop.f32.mrf.mxu2 }
 0x2bf   :  { %v2576_v3 = vpop.f32.mrf.mxu3  ;;  %v2538_v22 = vadd.f32 %v2537_v21, %v2499_v16  ;;  %v2149_v1 = vpop.f32.mrf.mxu0 }
 0x2c0   :  { %v2501_v54 = vpop.f32.mrf.mxu1  ;;  %v6185_v38 = vadd.f32 %v2149_v1, %v5998_v0 }
 0x2c1   :  { %v6187_v50 = vadd.f32 %v2576_v3, %v2538_v22  ;;  %v2502_v19 = vadd.f32 %v6063_v60, %v2501_v54 }
 0x2c6   :  { %v2540_v46 = vpop.f32.mrf.mxu2 }
 0x2c7   :  { %v2579_v12 = vpop.f32.mrf.mxu3  ;;  %v2541_v34 = vadd.f32 %v2540_v46, %v2502_v19  ;;  %v2151_v15 = vpop.f32.mrf.mxu0 }
 0x2c8   :  { %v2503_v52 = vpop.f32.mrf.mxu1  ;;  %v6191_v10 = vadd.f32 %v2151_v15, %v6025_v9 }
 0x2c9   :  { %v6193_v45 = vadd.f32 %v2579_v12, %v2541_v34  ;;  %v2504_v26 = vadd.f32 %v6063_v60, %v2503_v52 }
 0x2ce   :  { %v2542_v40 = vpop.f32.mrf.mxu2 }
 0x2cf   :  { %v2581_v31 = vpop.f32.mrf.mxu3  ;;  %v2543_v0 = vadd.f32 %v2542_v40, %v2504_v26  ;;  %v2154_v13 = vpop.f32.mrf.mxu0 }
 0x2d0   :  { %v2506_v16 = vpop.f32.mrf.mxu1  ;;  %v6197_v21 = vadd.f32 %v2154_v13, %v6029_v17 }
 0x2d1   :  { %v6199_v3 = vadd.f32 %v2581_v31, %v2543_v0  ;;  %v2507_v22 = vadd.f32 %v6063_v60, %v2506_v16 }
 0x2d6   :  { %v2545_v1 = vpop.f32.mrf.mxu2 }
 0x2d7   :  { %v2584_v54 = vpop.f32.mrf.mxu3  ;;  %v2546_v9 = vadd.f32 %v2545_v1, %v2507_v22  ;;  %v2156_v19 = vpop.f32.mrf.mxu0 }
 0x2d8   :  { %v2508_v46 = vpop.f32.mrf.mxu1  ;;  %v6203_v12 = vadd.f32 %v2156_v19, %v6058_v24 }
 0x2d9   :  { %v6205_v34 = vadd.f32 %v2584_v54, %v2546_v9  ;;  %v2509_v15 = vadd.f32 %v6063_v60, %v2508_v46  ;;  %v2171_v54 = vmul.f32 %v6056_v51, %v5532_v20 }
 0x2db   :  { %v2183_v46 = vsel %vm2159_vm0, %v6056_v51, %v2171_v54 }
 0x2de   :  { %v2547_v52 = vpop.f32.mrf.mxu2 }
 0x2df   :  { %v2586_v26 = vpop.f32.mrf.mxu3  ;;  %v2548_v17 = vadd.f32 %v2547_v52, %v2509_v15  ;;  %v2598_v40 = vpop.f32.mrf.mxu0 }
 0x2e0   :  { %v2637_v31 = vpop.f32.mrf.mxu1  ;;  %v2599_v13 = vadd.f32 %v2598_v40, %v6070_v28 }
 0x2e1   :  { %v6208_v0 = vadd.f32 %v2586_v26, %v2548_v17 }
 0x2e2   :  { %v2638_v16 = vadd.f32 %v2637_v31, %v2599_v13 }
 0x2e6   :  { %v2676_v22 = vpop.f32.mrf.mxu2 }
 0x2e7   :  { %v2715_v1 = vpop.f32.mrf.mxu3  ;;  %v2677_v14 = vadd.f32 %v2676_v22, %v2638_v16  ;;  %v2600_v18 = vpop.f32.mrf.mxu0 }
 0x2e8   :  { %v2639_v24 = vpop.f32.mrf.mxu1  ;;  %v2601_v60 = vadd.f32 %v2600_v18, %v6100_v4  ;;  %v2172_v18 = vmul.f32 %v6068_v47, %v5532_v20 }
 0x2e9   :  { %v2716_v9 = vadd.f32 %v2715_v1, %v2677_v14  ;;  %v6377_v14 = vmax.f32 %v5551_v57, %v5553_v32 }
 0x2ea   :  { %v2640_v15 = vadd.f32 %v2639_v24, %v2601_v60  ;;  %v2184_v57 = vsel %vm2160_vm12, %v6068_v47, %v2172_v18 }
 0x2eb   :  { %vm2745_vm10 = vcmp.ge.f32.partialorder %v2716_v9, 0.0  ;;  %v2757_v19 = vmul.f32 %v2716_v9, %v5532_v20 }
 0x2ed   :  { %v2769_v28 = vsel %vm2745_vm10, %v2716_v9, %v2757_v19  ;;  %vm2167_vm10 = vcmp.ge.f32.partialorder %v6185_v38, 0.0 }
 0x2ee   :  { %v2781_v52 = vmax.f32 %v2183_v46, %v2769_v28  ;;  %v2678_v26 = vpop.f32.mrf.mxu2  ;;  %v6378_v28 = vmax.f32 %v5590_v2, %v5592_v36 }
 0x2ef   :  { %v2717_v17 = vpop.f32.mrf.mxu3  ;;  %v2679_v40 = vadd.f32 %v2678_v26, %v2640_v15  ;;  %v2603_v31 = vpop.f32.mrf.mxu0 }
 0x2f0   :  { %v2642_v13 = vpop.f32.mrf.mxu1  ;;  %v2793_v16 = vmax.f32 %v6377_v14, %v2781_v52  ;;  %v2604_v22 = vadd.f32 %v2603_v31, %v6107_v33  ;;  %v2173_v52 = vmul.f32 %v6098_v29, %v5532_v20 }
 0x2f1   :  { %v2718_v4 = vadd.f32 %v2717_v17, %v2679_v40 }
 0x2f2   :  { %v2805_v51 = vpack.c.bf16 %v2793_v16, %v2793_v16  ;;  %v2643_v24 = vadd.f32 %v2642_v13, %v2604_v22  ;;  %v2185_v2 = vsel %vm2161_vm14, %v6098_v29, %v2173_v52  ;;  %v6379_v22 = vmax.f32 %v5605_v23, %v5607_v58 }
 0x2f3   :  { %vm2746_vm13 = vcmp.ge.f32.partialorder %v2718_v4, 0.0  ;;  %v2758_v1 = vmul.f32 %v2718_v4, %v5532_v20  ;;  %v2175_v52 = vmul.f32 %v6135_v7, %v5532_v20 }
 0x2f4   :  { %2818 = vst.msk [vmem:[%s6370_s4] sm:$0xf] %vm2817_vm11, %v2805_v51 }
 0x2f5   :  { %v2770_v32 = vsel %vm2746_vm13, %v2718_v4, %v2758_v1  ;;  %v2174_v1 = vmul.f32 %v6105_v27, %v5532_v20  ;;  %vm2168_vm13 = vcmp.ge.f32.partialorder %v6191_v10, 0.0 }
 0x2f6   :  { %v2782_v54 = vmax.f32 %v2184_v57, %v2770_v32  ;;  %v2681_v9 = vpop.f32.mrf.mxu2 }
 0x2f7   :  { %v2720_v60 = vpop.f32.mrf.mxu3  ;;  %v2682_v19 = vadd.f32 %v2681_v9, %v2643_v24  ;;  %v2605_v33 = vpop.f32.mrf.mxu0  ;;  %v2186_v23 = vsel %vm2162_vm1, %v6105_v27, %v2174_v1 }
 0x2f8   :  { %v2644_v46 = vpop.f32.mrf.mxu1  ;;  %v2794_v15 = vmax.f32 %v6378_v28, %v2782_v54  ;;  %v2606_v17 = vadd.f32 %v2605_v33, %v6137_v56  ;;  %v6380_v28 = vmax.f32 %v5644_v6, %v5646_v63  ;;  %v2187_v6 = vsel %vm2163_vm3, %v6135_v7, %v2175_v52 }
 0x2f9   :  { %v2721_v26 = vadd.f32 %v2720_v60, %v2682_v19 }
 0x2fa   :  { %v2806_v47 = vpack.c.bf16 %v2794_v15, %v2794_v15  ;;  %v2645_v31 = vadd.f32 %v2644_v46, %v2606_v17 }
 0x2fb   :  { %vm2747_vm15 = vcmp.ge.f32.partialorder %v2721_v26, 0.0  ;;  %v2759_v40 = vmul.f32 %v2721_v26, %v5532_v20 }
 0x2fc   :  { %2819 = vst.msk [vmem:[%s6370_s4 + $0x4] sm:$0xf] %vm2817_vm11, %v2806_v47 }
 0x2fd   :  { %v2771_v36 = vsel %vm2747_vm15, %v2721_v26, %v2759_v40  ;;  %vm2169_vm15 = vcmp.ge.f32.partialorder %v6197_v21, 0.0 }
 0x2fe   :  { %v2783_v13 = vmax.f32 %v2185_v2, %v2771_v36  ;;  %v2683_v14 = vpop.f32.mrf.mxu2 }
 0x2ff   :  { %v2722_v16 = vpop.f32.mrf.mxu3  ;;  %v2684_v18 = vadd.f32 %v2683_v14, %v2645_v31  ;;  %v2608_v56 = vpop.f32.mrf.mxu0 }
 0x300   :  { %v2647_v4 = vpop.f32.mrf.mxu1  ;;  %v2795_v51 = vmax.f32 %v6379_v22, %v2783_v13  ;;  %v2609_v32 = vadd.f32 %v2608_v56, %v6144_v8  ;;  %v2176_v56 = vmul.f32 %v6142_v35, %v5532_v20 }
 0x301   :  { %v2723_v57 = vadd.f32 %v2722_v16, %v2684_v18  ;;  %v6381_v16 = vmax.f32 %v5659_v59, %v5661_v41 }
 0x302   :  { %v2807_v29 = vpack.c.bf16 %v2795_v51, %v2795_v51  ;;  %v2648_v54 = vadd.f32 %v2647_v4, %v2609_v32  ;;  %v2188_v59 = vsel %vm2164_vm5, %v6142_v35, %v2176_v56  ;;  %v2179_v56 = vmul.f32 %v6185_v38, %v5532_v20 }
 0x303   :  { %vm2748_vm2 = vcmp.ge.f32.partialorder %v2723_v57, 0.0  ;;  %v2760_v24 = vmul.f32 %v2723_v57, %v5532_v20 }
 0x304   :  { %2820 = vst.msk [vmem:[%s6370_s4 + $0x8] sm:$0xf] %vm2817_vm11, %v2807_v29 }
 0x305   :  { %v2772_v58 = vsel %vm2748_vm2, %v2723_v57, %v2760_v24  ;;  %vm2170_vm2 = vcmp.ge.f32.partialorder %v6203_v12, 0.0 }
 0x306   :  { %v2784_v9 = vmax.f32 %v2186_v23, %v2772_v58  ;;  %v2686_v60 = vpop.f32.mrf.mxu2  ;;  %v6382_v58 = vmax.f32 %v5698_v48, %v5700_v43 }
 0x307   :  { %v2725_v19 = vpop.f32.mrf.mxu3  ;;  %v2687_v33 = vadd.f32 %v2686_v60, %v2648_v54  ;;  %v2610_v8 = vpop.f32.mrf.mxu0 }
 0x308   :  { %v2649_v46 = vpop.f32.mrf.mxu1  ;;  %v2796_v15 = vmax.f32 %v6380_v28, %v2784_v9  ;;  %v2611_v17 = vadd.f32 %v2610_v8, %v6174_v25  ;;  %v2177_v9 = vmul.f32 %v6172_v44, %v5532_v20 }
 0x309   :  { %v2726_v26 = vadd.f32 %v2725_v19, %v2687_v33 }
 0x30a   :  { %v2808_v27 = vpack.c.bf16 %v2796_v15, %v2796_v15  ;;  %v2650_v40 = vadd.f32 %v2649_v46, %v2611_v17  ;;  %v2189_v48 = vsel %vm2165_vm7, %v6172_v44, %v2177_v9  ;;  %v6383_v17 = vmax.f32 %v5713_v49, %v5715_v11 }
 0x30b   :  { %vm2749_vm4 = vcmp.ge.f32.partialorder %v2726_v26, 0.0  ;;  %v2761_v47 = vmul.f32 %v2726_v26, %v5532_v20 }
 0x30c   :  { %2821 = vst.msk [vmem:[%s6370_s4 + $0xc] sm:$0xf] %vm2817_vm11, %v2808_v27 }
 0x30d   :  { %v2773_v63 = vsel %vm2749_vm4, %v2726_v26, %v2761_v47  ;;  %v2178_v47 = vmul.f32 %v6179_v55, %v5532_v20 }
 0x30e   :  { %v2785_v2 = vmax.f32 %v2187_v6, %v2773_v63  ;;  %v2688_v36 = vpop.f32.mrf.mxu2 }
 0x30f   :  { %v2727_v31 = vpop.f32.mrf.mxu3  ;;  %v2689_v13 = vadd.f32 %v2688_v36, %v2650_v40  ;;  %v2613_v25 = vpop.f32.mrf.mxu0  ;;  %v2190_v49 = vsel %vm2166_vm9, %v6179_v55, %v2178_v47 }
 0x310   :  { %v2652_v14 = vpop.f32.mrf.mxu1  ;;  %v2797_v18 = vmax.f32 %v6381_v16, %v2785_v2  ;;  %v2614_v22 = vadd.f32 %v2613_v25, %v6181_v53 }
 0x311   :  { %v2728_v4 = vadd.f32 %v2727_v31, %v2689_v13 }
 0x312   :  { %v2809_v7 = vpack.c.bf16 %v2797_v18, %v2797_v18  ;;  %v2653_v1 = vadd.f32 %v2652_v14, %v2614_v22  ;;  %v6384_v14 = vmax.f32 %v5752_v5, %v5754_v37  ;;  %v2191_v5 = vsel %vm2167_vm10, %v6185_v38, %v2179_v56 }
 0x313   :  { %vm2750_vm6 = vcmp.ge.f32.partialorder %v2728_v4, 0.0  ;;  %v2762_v51 = vmul.f32 %v2728_v4, %v5532_v20 }
 0x314   :  { %2822 = vst.msk [vmem:[%s6370_s4 + $0x10] sm:$0xf] %vm2817_vm11, %v2809_v7 }
 0x315   :  { %v2774_v41 = vsel %vm2750_vm6, %v2728_v4, %v2762_v51 }
 0x316   :  { %v2786_v57 = vmax.f32 %v2188_v59, %v2774_v41  ;;  %v2691_v32 = vpop.f32.mrf.mxu2 }
 0x317   :  { %v2730_v29 = vpop.f32.mrf.mxu3  ;;  %v2692_v24 = vadd.f32 %v2691_v32, %v2653_v1  ;;  %v2615_v53 = vpop.f32.mrf.mxu0  ;;  %v6385_v32 = vmax.f32 %v5768_v62, %v5770_v30 }
 0x318   :  { %v2654_v23 = vpop.f32.mrf.mxu1  ;;  %v2798_v54 = vmax.f32 %v6382_v58, %v2786_v57  ;;  %v2616_v19 = vadd.f32 %v2615_v53, %v6187_v50 }
 0x319   :  { %v2731_v60 = vadd.f32 %v2730_v29, %v2692_v24  ;;  %v2180_v24 = vmul.f32 %v6191_v10, %v5532_v20 }
 0x31a   :  { %v2810_v35 = vpack.c.bf16 %v2798_v54, %v2798_v54  ;;  %v2655_v8 = vadd.f32 %v2654_v23, %v2616_v19 }
 0x31b   :  { %vm2751_vm8 = vcmp.ge.f32.partialorder %v2731_v60, 0.0  ;;  %v2763_v33 = vmul.f32 %v2731_v60, %v5532_v20  ;;  %v2192_v62 = vsel %vm2168_vm13, %v6191_v10, %v2180_v24 }
 0x31c   :  { %2823 = vst.msk [vmem:[%s6370_s4 + $0x14] sm:$0xf] %vm2817_vm11, %v2810_v35 }
 0x31d   :  { %v2775_v43 = vsel %vm2751_vm8, %v2731_v60, %v2763_v33 }
 0x31e   :  { %v2787_v46 = vmax.f32 %v2189_v48, %v2775_v43  ;;  %v2693_v28 = vpop.f32.mrf.mxu2  ;;  %v6386_v48 = vmax.f32 %v5807_v42, %v5809_v39 }
 0x31f   :  { %v2732_v15 = vpop.f32.mrf.mxu3  ;;  %v2694_v52 = vadd.f32 %v2693_v28, %v2655_v8  ;;  %v2618_v50 = vpop.f32.mrf.mxu0  ;;  %v2181_v8 = vmul.f32 %v6197_v21, %v5532_v20 }
 0x320   :  { %v2657_v26 = vpop.f32.mrf.mxu1  ;;  %v2799_v27 = vmax.f32 %v6383_v17, %v2787_v46  ;;  %v2619_v63 = vadd.f32 %v2618_v50, %v6193_v45 }
 0x321   :  { %v2733_v6 = vadd.f32 %v2732_v15, %v2694_v52  ;;  %v2193_v42 = vsel %vm2169_vm15, %v6197_v21, %v2181_v8 }
 0x322   :  { %v2811_v44 = vpack.c.bf16 %v2799_v27, %v2799_v27  ;;  %v2658_v2 = vadd.f32 %v2657_v26, %v2619_v63 }
 0x323   :  { %vm2752_vm0 = vcmp.ge.f32.partialorder %v2733_v6, 0.0  ;;  %v2764_v40 = vmul.f32 %v2733_v6, %v5532_v20 }
 0x324   :  { %2824 = vst.msk [vmem:[%s6370_s4 + $0x18] sm:$0xf] %vm2817_vm11, %v2811_v44  ;;  %v2182_v44 = vmul.f32 %v6203_v12, %v5532_v20 }
 0x325   :  { %v2776_v11 = vsel %vm2752_vm0, %v2733_v6, %v2764_v40 }
 0x326   :  { %v2788_v36 = vmax.f32 %v2190_v49, %v2776_v11  ;;  %v2696_v31 = vpop.f32.mrf.mxu2  ;;  %v2194_v11 = vsel %vm2170_vm2, %v6203_v12, %v2182_v44 }
 0x327   :  { %v2735_v13 = vpop.f32.mrf.mxu3  ;;  %v2697_v25 = vadd.f32 %v2696_v31, %v2658_v2  ;;  %v2620_v45 = vpop.f32.mrf.mxu0  ;;  %v6390_v31 = vld [vmem:[#allocation5_spill] sm:$0xff] }
 0x328   :  { %v2800_v16 = vmax.f32 %v6384_v14, %v2788_v36  ;;  %v2659_v18 = vpop.f32.mrf.mxu1  ;;  %v2621_v22 = vadd.f32 %v2620_v45, %v6199_v3  ;;  %v6389_v36 = vld [vmem:[#allocation4_spill] sm:$0xff] }
 0x329   :  { %v2736_v4 = vadd.f32 %v2735_v13, %v2697_v25  ;;  %v6391_v13 = vmax.f32 %v6389_v36, %v6390_v31 }
 0x32a   :  { %v2812_v55 = vpack.c.bf16 %v2800_v16, %v2800_v16  ;;  %v2660_v51 = vadd.f32 %v2659_v18, %v2621_v22 }
 0x32b   :  { %vm2753_vm12 = vcmp.ge.f32.partialorder %v2736_v4, 0.0  ;;  %v2765_v7 = vmul.f32 %v2736_v4, %v5532_v20 }
 0x32c   :  { %2825 = vst.msk [vmem:[%s6370_s4 + $0x1c] sm:$0xf] %vm2817_vm11, %v2812_v55 }
 0x32d   :  { %v2777_v37 = vsel %vm2753_vm12, %v2736_v4, %v2765_v7 }
 0x32e   :  { %v2789_v59 = vmax.f32 %v2191_v5, %v2777_v37  ;;  %v2698_v41 = vpop.f32.mrf.mxu2 }
 0x32f   :  { %v2737_v1 = vpop.f32.mrf.mxu3  ;;  %v2699_v57 = vadd.f32 %v2698_v41, %v2660_v51  ;;  %v2623_v3 = vpop.f32.mrf.mxu0 }
 0x330   :  { %v2801_v29 = vmax.f32 %v6385_v32, %v2789_v59  ;;  %v2624_v23 = vadd.f32 %v2623_v3, %v6205_v34  ;;  %v2662_v58 = vpop.f32.mrf.mxu1 }
 0x331   :  { %v2738_v53 = vadd.f32 %v2737_v1, %v2699_v57 }
 0x332   :  { %v2813_v38 = vpack.c.bf16 %v2801_v29, %v2801_v29  ;;  %v2663_v9 = vadd.f32 %v2662_v58, %v2624_v23 }
 0x333   :  { %vm2754_vm14 = vcmp.ge.f32.partialorder %v2738_v53, 0.0  ;;  %v2766_v54 = vmul.f32 %v2738_v53, %v5532_v20 }
 0x334   :  { %2826 = vst.msk [vmem:[%s6370_s4 + $0x20] sm:$0xf] %vm2817_vm11, %v2813_v38 }
 0x335   :  { %v2778_v30 = vsel %vm2754_vm14, %v2738_v53, %v2766_v54 }
 0x336   :  { %v2790_v60 = vmax.f32 %v2192_v62, %v2778_v30  ;;  %v2701_v19 = vpop.f32.mrf.mxu2 }
 0x337   :  { %v2740_v35 = vpop.f32.mrf.mxu3  ;;  %v2702_v34 = vadd.f32 %v2701_v19, %v2663_v9  ;;  %v2625_v33 = vpop.f32.mrf.mxu0 }
 0x338   :  { %v2802_v43 = vmax.f32 %v6386_v48, %v2790_v60  ;;  %v2626_v28 = vadd.f32 %v2625_v33, %v6208_v0  ;;  %v2664_v52 = vpop.f32.mrf.mxu1  ;;  %v6387_v0 = vld [vmem:[#allocation3_spill] sm:$0xff] }
 0x339   :  { %v2741_v46 = vadd.f32 %v2740_v35, %v2702_v34  ;;  %v6388_v47 = vmax.f32 %v5823_v61, %v6387_v0 }
 0x33a   :  { %v2814_v10 = vpack.c.bf16 %v2802_v43, %v2802_v43  ;;  %v2665_v50 = vadd.f32 %v2664_v52, %v2626_v28 }
 0x33b   :  { %vm2755_vm1 = vcmp.ge.f32.partialorder %v2741_v46, 0.0  ;;  %v2767_v15 = vmul.f32 %v2741_v46, %v5532_v20 }
 0x33c   :  { %2827 = vst.msk [vmem:[%s6370_s4 + $0x24] sm:$0xf] %vm2817_vm11, %v2814_v10 }
 0x33d   :  { %v2779_v39 = vsel %vm2755_vm1, %v2741_v46, %v2767_v15 }
 0x33e   :  { %v2791_v26 = vmax.f32 %v2193_v42, %v2779_v39  ;;  %v2703_v17 = vpop.f32.mrf.mxu2 }
 0x33f   :  { %v2704_v27 = vadd.f32 %v2703_v17, %v2665_v50  ;;  %v2742_v63 = vpop.f32.mrf.mxu3 }
 0x340   :  { %v2803_v6 = vmax.f32 %v6388_v47, %v2791_v26 }
 0x341   :  { %v2743_v40 = vadd.f32 %v2742_v63, %v2704_v27 }
 0x342   :  { %v2815_v49 = vpack.c.bf16 %v2803_v6, %v2803_v6 }
 0x343   :  { %vm2756_vm3 = vcmp.ge.f32.partialorder %v2743_v40, 0.0  ;;  %v2768_v21 = vmul.f32 %v2743_v40, %v5532_v20 }
 0x344   :  { %2828 = vst.msk [vmem:[%s6370_s4 + $0x28] sm:$0xf] %vm2817_vm11, %v2815_v49 }
 0x345   :  { %v2780_v61 = vsel %vm2756_vm3, %v2743_v40, %v2768_v21 }
 0x346   :  { %v2792_v2 = vmax.f32 %v2194_v11, %v2780_v61 }
 0x348   :  { %v2804_v25 = vmax.f32 %v6391_v13, %v2792_v2 }
 0x34a   :  { %v2816_v45 = vpack.c.bf16 %v2804_v25, %v2804_v25 }
 0x34c   :  { %2829 = vst.msk [vmem:[%s6370_s4 + $0x2c] sm:$0xf] %vm2817_vm11, %v2816_v45 }

</bundles_post_ra>
